<compile_context>
chip_gen: v5e
topology: v5e:2x2
jax: 0.10.0
libtpu: 0.0.40
codegen_flags: <defaults>
</compile_context>

<pallas_src>
import functools

import jax
import jax.numpy as jnp
from jax.experimental import pallas as pl
from jax.experimental.pallas import tpu as pltpu


def _round_up(x, m):
    return (x + m - 1) // m * m


# ----------------------------- Pallas kernels -----------------------------

def _mm_bn_kernel(a_ref, b_ref, scale_ref, bias_ref, *rest, relu, has_res):
    if has_res:
        res_ref, o_ref = rest
    else:
        (o_ref,) = rest

    k = pl.program_id(2)

    @pl.when(k == 0)
    def _():
        o_ref[...] = jnp.zeros_like(o_ref)

    # bf16 x bf16 -> f32, accumulated directly in the VMEM-resident output block.
    o_ref[...] += jnp.dot(a_ref[...], b_ref[...],
                          preferred_element_type=jnp.float32)

    @pl.when(k == pl.num_programs(2) - 1)
    def _():
        y = o_ref[...] * scale_ref[...] + bias_ref[...]
        if has_res:
            y = y + res_ref[...]
        if relu:
            y = jnp.maximum(y, 0.0)
        o_ref[...] = y


def matmul_bn(a, b, scale, bias, res=None, *, relu):
    """(M,K)@(K,N) with fused per-column scale/bias (+optional residual add, +ReLU).

    bf16 MXU operands, f32 accumulation in the output block (no extra scratch),
    M/N/K tiling with parallel M/N grid axes and an innermost K reduction axis.
    The residual block index is independent of K, so it is fetched once per (i,j).
    """
    M, K = a.shape
    _, N = b.shape
    TM = 256 if M >= 256 else _round_up(M, 16)     # bf16 sublane packing = 16
    TN = 256 if N >= 256 else _round_up(N, 128)
    TK = 256 if K >= 256 else _round_up(K, 128)    # 256 feeds the 256-wide MXU
    Mp, Np, Kp = _round_up(M, TM), _round_up(N, TN), _round_up(K, TK)

    a_p = jnp.pad(a, ((0, Mp - M), (0, Kp - K))).astype(jnp.bfloat16)
    b_p = jnp.pad(b, ((0, Kp - K), (0, Np - N))).astype(jnp.bfloat16)
    scale_p = jnp.pad(scale, (0, Np - N)).reshape(1, Np).astype(jnp.float32)
    bias_p = jnp.pad(bias, (0, Np - N)).reshape(1, Np).astype(jnp.float32)

    has_res = res is not None
    inputs = [a_p, b_p, scale_p, bias_p]
    in_specs = [
        pl.BlockSpec((TM, TK), lambda i, j, k: (i, k)),
        pl.BlockSpec((TK, TN), lambda i, j, k: (k, j)),
        pl.BlockSpec((1, TN), lambda i, j, k: (0, j)),
        pl.BlockSpec((1, TN), lambda i, j, k: (0, j)),
    ]
    if has_res:
        res_p = jnp.pad(res, ((0, Mp - M), (0, Np - N))).astype(jnp.float32)
        inputs.append(res_p)
        in_specs.append(pl.BlockSpec((TM, TN), lambda i, j, k: (i, j)))

    out = pl.pallas_call(
        functools.partial(_mm_bn_kernel, relu=relu, has_res=has_res),
        out_shape=jax.ShapeDtypeStruct((Mp, Np), jnp.float32),
        grid_spec=pltpu.PrefetchScalarGridSpec(
            num_scalar_prefetch=0,
            grid=(Mp // TM, Np // TN, Kp // TK),
            in_specs=in_specs,
            out_specs=pl.BlockSpec((TM, TN), lambda i, j, k: (i, j)),
        ),
        compiler_params=pltpu.CompilerParams(
            dimension_semantics=("parallel", "parallel", "arbitrary")),
    )(*inputs)
    return out[:M, :N]


def _max_kernel(x_ref, o_ref):
    m = x_ref[0]
    for i in range(1, x_ref.shape[0]):        # static 9-way unrolled pairwise max (VPU)
        m = jnp.maximum(m, x_ref[i])
    o_ref[...] = m


def max_over_windows(stk):  # [9, M, C] -> [M, C]
    n9, M, C = stk.shape
    if (M * C) % 128 == 0:   # lane-dense reshape (elementwise max is layout-invariant)
        stk2 = stk.reshape(n9, (M * C) // 128, 128)
    else:
        stk2 = stk
    _, rows, cols = stk2.shape
    TR = rows if rows <= 1024 else 1024
    out = pl.pallas_call(
        _max_kernel,
        out_shape=jax.ShapeDtypeStruct((rows, cols), stk.dtype),
        grid=(pl.cdiv(rows, TR),),
        in_specs=[pl.BlockSpec((n9, TR, cols), lambda r: (0, r, 0))],
        out_specs=pl.BlockSpec((TR, cols), lambda r: (r, 0)),
        compiler_params=pltpu.CompilerParams(dimension_semantics=("parallel",)),
    )(stk2)
    return out.reshape(M, C)


def _mean_kernel(x_ref, o_ref, *, inv_hw):
    t = pl.program_id(0)

    @pl.when(t == 0)
    def _():
        o_ref[...] = jnp.zeros_like(o_ref)

    o_ref[...] += jnp.sum(x_ref[...], axis=1)

    @pl.when(t == pl.num_programs(0) - 1)
    def _():
        o_ref[...] = o_ref[...] * inv_hw


def spatial_mean(x):  # [N, HW, C] -> [N, C]
    N, HW, C = x.shape
    if HW % 8 == 0 and HW > 256:
        THW = 256
    else:
        THW = HW
    HWp = _round_up(HW, THW)
    if HWp != HW:
        x = jnp.pad(x, ((0, 0), (0, HWp - HW), (0, 0)))  # zero pad: safe for the sum
    out = pl.pallas_call(
        functools.partial(_mean_kernel, inv_hw=1.0 / HW),
        out_shape=jax.ShapeDtypeStruct((N, C), x.dtype),
        grid=(HWp // THW,),
        in_specs=[pl.BlockSpec((N, THW, C), lambda t: (0, t, 0))],
        out_specs=pl.BlockSpec((N, C), lambda t: (0, 0)),
        compiler_params=pltpu.CompilerParams(dimension_semantics=("arbitrary",)),
    )(x)
    return out


# ----------------------------- JAX glue -----------------------------------

def _im2col(x, kh, kw, stride, pad):
    """x: NHWC -> ([N*Ho*Wo, kh*kw*C], Ho, Wo)."""
    N, H, W, C = x.shape
    xp = jnp.pad(x, ((0, 0), (pad, pad), (pad, pad), (0, 0)))
    Ho = (H + 2 * pad - kh) // stride + 1
    Wo = (W + 2 * pad - kw) // stride + 1
    cols = []
    for i in range(kh):
        for j in range(kw):
            cols.append(xp[:, i:i + stride * Ho:stride,
                           j:j + stride * Wo:stride, :])  # [N,Ho,Wo,C]
    patches = jnp.stack(cols, axis=3)  # [N,Ho,Wo,kh*kw,C]
    return patches.reshape(N * Ho * Wo, kh * kw * C), Ho, Wo


def conv_bn(x, w, scale, bias, *, stride, pad, relu, residual=None):
    """NHWC conv with PyTorch-layout weight [Cout,Cin,kh,kw], fused BN (+res, +ReLU)."""
    cout, cin, kh, kw = w.shape
    cols, Ho, Wo = _im2col(x, kh, kw, stride, pad)
    wm = jnp.transpose(w, (2, 3, 1, 0)).reshape(kh * kw * cin, cout)
    res2d = residual.reshape(-1, cout) if residual is not None else None
    out = matmul_bn(cols, wm, scale, bias, res2d, relu=relu)
    return out.reshape(x.shape[0], Ho, Wo, cout)


def maxpool_3x3_s2_p1(x):
    N, H, W, C = x.shape
    xp = jnp.pad(x, ((0, 0), (1, 1), (1, 1), (0, 0)),
                 constant_values=-jnp.inf)
    Ho = (H + 2 - 3) // 2 + 1
    Wo = (W + 2 - 3) // 2 + 1
    slices = []
    for i in range(3):
        for j in range(3):
            slices.append(xp[:, i:i + 2 * Ho:2, j:j + 2 * Wo:2, :])
    stk = jnp.stack(slices, axis=0).reshape(9, N * Ho * Wo, C)
    return max_over_windows(stk).reshape(N, Ho, Wo, C)


def basic_block(x, bp, *, stride, has_down):
    out = conv_bn(x, bp['conv1_w'], *bp['bn1'], stride=stride, pad=1, relu=True)
    if has_down:
        identity = conv_bn(x, bp['down_w'], *bp['down_bn'],
                           stride=stride, pad=0, relu=False)
    else:
        identity = x
    # conv2 + BN + residual add + ReLU fused into one matmul epilogue.
    return conv_bn(out, bp['conv2_w'], *bp['bn2'], stride=1, pad=1,
                   relu=True, residual=identity)


_LAYER_STRIDES = (1, 2, 2, 2)   # static per-layer config (keeps jit-friendly slicing)


@jax.jit
def multimodal_forward(params, image_nchw):
    """Equivalent of MultiModalModel.forward (ResNet-18 minus fc, then squeeze)."""
    x = jnp.transpose(image_nchw, (0, 2, 3, 1)).astype(jnp.float32)  # NCHW->NHWC
    x = conv_bn(x, params['conv1_w'], *params['bn1'], stride=2, pad=3, relu=True)
    x = maxpool_3x3_s2_p1(x)
    for li, blocks in enumerate(params['layers']):
        for bi, bp in enumerate(blocks):
            stride = _LAYER_STRIDES[li] if bi == 0 else 1
            x = basic_block(x, bp, stride=stride, has_down=('down_w' in bp))
    N, H, W, C = x.shape
    feats = spatial_mean(x.reshape(N, H * W, C))  # adaptive avgpool to 1x1
    return jnp.squeeze(feats)                     # [N, 512, 1, 1].squeeze()


# --------------------------- parameter init -------------------------------

def _conv_weight(key, cout, cin, k):
    std = (2.0 / (cin * k * k)) ** 0.5
    return std * jax.random.normal(key, (cout, cin, k, k), jnp.float32)


def _bn(key, c, eps=1e-5):
    k1, k2, k3 = jax.random.split(key, 3)
    gamma = 1.0 + 0.05 * jax.random.normal(k1, (c,), jnp.float32)
    beta = 0.05 * jax.random.normal(k2, (c,), jnp.float32)
    mean = 0.05 * jax.random.normal(k3, (c,), jnp.float32)
    var = jnp.ones((c,), jnp.float32)
    scale = gamma / jnp.sqrt(var + eps)
    bias = beta - mean * scale
    return scale, bias


def init_params(key):
    keys = iter(jax.random.split(key, 128))
    p = {'conv1_w': _conv_weight(next(keys), 64, 3, 7),
         'bn1': _bn(next(keys), 64)}
    cfg = [(64, 64, 1), (64, 128, 2), (128, 256, 2), (256, 512, 2)]
    layers = []
    for cin, cout, stride in cfg:
        blocks = []
        for b in range(2):
            s = stride if b == 0 else 1
            in_c = cin if b == 0 else cout
            bp = {
                'conv1_w': _conv_weight(next(keys), cout, in_c, 3),
                'bn1': _bn(next(keys), cout),
                'conv2_w': _conv_weight(next(keys), cout, cout, 3),
                'bn2': _bn(next(keys), cout),
            }
            if s != 1 or in_c != cout:
                bp['down_w'] = _conv_weight(next(keys), cout, in_c, 1)
                bp['down_bn'] = _bn(next(keys), cout)
            blocks.append(bp)
        layers.append(blocks)
    p['layers'] = layers
    return p


# --------------------------------- main ------------------------------------

if __name__ == "__main__":
    key = jax.random.PRNGKey(0)
    kp, kx = jax.random.split(key)
    params = init_params(kp)
    image = jax.random.normal(kx, (2, 3, 32, 32), jnp.float32)  # NCHW like PyTorch
    feats = multimodal_forward(params, image)
    feats = jax.block_until_ready(feats)
    assert feats.shape == (2, 512), feats.shape
    assert bool(jnp.all(jnp.isfinite(feats)))
    print("KERNEL_OK")
</pallas_src>

<mosaic_0001>
module attributes {stable_mosaic.version = 11 : i64} {
  func.func @_mm_bn_kernel(%arg0: i32, %arg1: i32, %arg2: i32, %arg3: memref<256x256xbf16, #tpu.memory_space<vmem>>, %arg4: memref<256x128xbf16, #tpu.memory_space<vmem>>, %arg5: memref<1x128xf32, #tpu.memory_space<vmem>>, %arg6: memref<1x128xf32, #tpu.memory_space<vmem>>, %arg7: memref<256x128xf32, #tpu.memory_space<vmem>>) attributes {dimension_semantics = [#tpu.dimension_semantics<parallel>, #tpu.dimension_semantics<parallel>, #tpu.dimension_semantics<arbitrary>], iteration_bounds = array<i64: 2, 1, 1>, scalar_prefetch = 0 : i64, scratch_operands = 0 : i64, tpu.core_type = #tpu.core_type<tc>, window_params = [{transform_indices = @transform_0, window_bounds = array<i64: 256, 256>}, {transform_indices = @transform_1, window_bounds = array<i64: 256, 128>}, {transform_indices = @transform_2, window_bounds = array<i64: 1, 128>}, {transform_indices = @transform_3, window_bounds = array<i64: 1, 128>}, {transform_indices = @transform_4, window_bounds = array<i64: 256, 128>}]} {
    %c0_i32 = arith.constant 0 : i32
    %0 = arith.cmpi eq, %arg2, %c0_i32 : i32
    %1 = arith.extui %0 : i1 to i32
    %c0_i32_0 = arith.constant 0 : i32
    %2 = arith.cmpi ne, %1, %c0_i32_0 : i32
    scf.if %2 {
      %cst_10 = arith.constant 0.000000e+00 : f32
      %12 = vector.broadcast %cst_10 : f32 to vector<256x128xf32>
      %c0_11 = arith.constant 0 : index
      %c0_12 = arith.constant 0 : index
      %13 = vector.load %arg7[%c0_11, %c0_12] : memref<256x128xf32, #tpu.memory_space<vmem>>, vector<256x128xf32>
      tpu.vector_store %arg7[%c0_11, %c0_12], %12 {strides = array<i32>} : memref<256x128xf32, #tpu.memory_space<vmem>>, vector<256x128xf32>,
    } else {
    }
    %c0 = arith.constant 0 : index
    %c0_1 = arith.constant 0 : index
    %3 = vector.load %arg7[%c0, %c0_1] : memref<256x128xf32, #tpu.memory_space<vmem>>, vector<256x128xf32>
    %c0_2 = arith.constant 0 : index
    %c0_3 = arith.constant 0 : index
    %4 = vector.load %arg3[%c0_2, %c0_3] : memref<256x256xbf16, #tpu.memory_space<vmem>>, vector<256x256xbf16>
    %c0_4 = arith.constant 0 : index
    %c0_5 = arith.constant 0 : index
    %5 = vector.load %arg4[%c0_4, %c0_5] : memref<256x128xbf16, #tpu.memory_space<vmem>>, vector<256x128xbf16>
    %cst = arith.constant dense<0.000000e+00> : vector<256x128xf32>
    %6 = tpu.matmul %4, %5, %cst {dimension_numbers = #tpu.dot_dimension_numbers<[1], [0], [0], [1], [0, 0, 1, 1], [], []>} : vector<256x256xbf16>, vector<256x128xbf16>, vector<256x128xf32> -> vector<256x128xf32>
    %7 = arith.addf %3, %6 : vector<256x128xf32>
    %c0_6 = arith.constant 0 : index
    %c0_7 = arith.constant 0 : index
    %8 = vector.load %arg7[%c0_6, %c0_7] : memref<256x128xf32, #tpu.memory_space<vmem>>, vector<256x128xf32>
    tpu.vector_store %arg7[%c0_6, %c0_7], %7 {strides = array<i32>} : memref<256x128xf32, #tpu.memory_space<vmem>>, vector<256x128xf32>,
    %c0_i32_8 = arith.constant 0 : i32
    %9 = arith.cmpi eq, %arg2, %c0_i32_8 : i32
    %10 = arith.extui %9 : i1 to i32
    %c0_i32_9 = arith.constant 0 : i32
    %11 = arith.cmpi ne, %10, %c0_i32_9 : i32
    scf.if %11 {
      %c0_10 = arith.constant 0 : index
      %c0_11 = arith.constant 0 : index
      %12 = vector.load %arg7[%c0_10, %c0_11] : memref<256x128xf32, #tpu.memory_space<vmem>>, vector<256x128xf32>
      %c0_12 = arith.constant 0 : index
      %c0_13 = arith.constant 0 : index
      %13 = vector.load %arg5[%c0_12, %c0_13] : memref<1x128xf32, #tpu.memory_space<vmem>>, vector<1x128xf32>
      %14 = vector.broadcast %13 : vector<1x128xf32> to vector<256x128xf32>
      %15 = arith.mulf %12, %14 : vector<256x128xf32>
      %c0_14 = arith.constant 0 : index
      %c0_15 = arith.constant 0 : index
      %16 = vector.load %arg6[%c0_14, %c0_15] : memref<1x128xf32, #tpu.memory_space<vmem>>, vector<1x128xf32>
      %17 = vector.broadcast %16 : vector<1x128xf32> to vector<256x128xf32>
      %18 = arith.addf %15, %17 : vector<256x128xf32>
      %cst_16 = arith.constant 0.000000e+00 : f32
      %19 = vector.broadcast %cst_16 : f32 to vector<256x128xf32>
      %20 = arith.maximumf %18, %19 : vector<256x128xf32>
      %c0_17 = arith.constant 0 : index
      %c0_18 = arith.constant 0 : index
      %21 = vector.load %arg7[%c0_17, %c0_18] : memref<256x128xf32, #tpu.memory_space<vmem>>, vector<256x128xf32>
      tpu.vector_store %arg7[%c0_17, %c0_18], %20 {strides = array<i32>} : memref<256x128xf32, #tpu.memory_space<vmem>>, vector<256x128xf32>,
    } else {
    }
    return
  }
  func.func @transform_0(%arg0: i32, %arg1: i32, %arg2: i32) -> (i32, i32) {
    %c0_i32 = arith.constant 0 : i32
    return %arg0, %arg2 : i32, i32
  }
  func.func @transform_1(%arg0: i32, %arg1: i32, %arg2: i32) -> (i32, i32) {
    %c0_i32 = arith.constant 0 : i32
    return %arg2, %arg1 : i32, i32
  }
  func.func @transform_2(%arg0: i32, %arg1: i32, %arg2: i32) -> (i32, i32) {
    %c0_i32 = arith.constant 0 : i32
    %c0_i32_0 = arith.constant 0 : i32
    return %c0_i32, %arg1 : i32, i32
  }
  func.func @transform_3(%arg0: i32, %arg1: i32, %arg2: i32) -> (i32, i32) {
    %c0_i32 = arith.constant 0 : i32
    %c0_i32_0 = arith.constant 0 : i32
    return %c0_i32, %arg1 : i32, i32
  }
  func.func @transform_4(%arg0: i32, %arg1: i32, %arg2: i32) -> (i32, i32) {
    %c0_i32 = arith.constant 0 : i32
    return %arg0, %arg1 : i32, i32
  }
}

module attributes {stable_mosaic.version = 11 : i64} {
  func.func @_max_kernel(%arg0: i32, %arg1: memref<9x64x128xf32, #tpu.memory_space<vmem>>, %arg2: memref<64x128xf32, #tpu.memory_space<vmem>>) attributes {dimension_semantics = [#tpu.dimension_semantics<parallel>], iteration_bounds = array<i64: 1>, scalar_prefetch = 0 : i64, scratch_operands = 0 : i64, tpu.core_type = #tpu.core_type<tc>, window_params = [{transform_indices = @transform_0, window_bounds = array<i64: 9, 64, 128>}, {transform_indices = @transform_1, window_bounds = array<i64: 64, 128>}]} {
    %c0 = arith.constant 0 : index
    %c0_0 = arith.constant 0 : index
    %c0_1 = arith.constant 0 : index
    %0 = vector.load %arg1[%c0, %c0_0, %c0_1] : memref<9x64x128xf32, #tpu.memory_space<vmem>>, vector<1x64x128xf32>
    %1 = vector.shape_cast %0 : vector<1x64x128xf32> to vector<64x128xf32>
    %c1 = arith.constant 1 : index
    %c0_2 = arith.constant 0 : index
    %c0_3 = arith.constant 0 : index
    %2 = vector.load %arg1[%c1, %c0_2, %c0_3] : memref<9x64x128xf32, #tpu.memory_space<vmem>>, vector<1x64x128xf32>
    %3 = vector.shape_cast %2 : vector<1x64x128xf32> to vector<64x128xf32>
    %4 = arith.maximumf %1, %3 : vector<64x128xf32>
    %c2 = arith.constant 2 : index
    %c0_4 = arith.constant 0 : index
    %c0_5 = arith.constant 0 : index
    %5 = vector.load %arg1[%c2, %c0_4, %c0_5] : memref<9x64x128xf32, #tpu.memory_space<vmem>>, vector<1x64x128xf32>
    %6 = vector.shape_cast %5 : vector<1x64x128xf32> to vector<64x128xf32>
    %7 = arith.maximumf %4, %6 : vector<64x128xf32>
    %c3 = arith.constant 3 : index
    %c0_6 = arith.constant 0 : index
    %c0_7 = arith.constant 0 : index
    %8 = vector.load %arg1[%c3, %c0_6, %c0_7] : memref<9x64x128xf32, #tpu.memory_space<vmem>>, vector<1x64x128xf32>
    %9 = vector.shape_cast %8 : vector<1x64x128xf32> to vector<64x128xf32>
    %10 = arith.maximumf %7, %9 : vector<64x128xf32>
    %c4 = arith.constant 4 : index
    %c0_8 = arith.constant 0 : index
    %c0_9 = arith.constant 0 : index
    %11 = vector.load %arg1[%c4, %c0_8, %c0_9] : memref<9x64x128xf32, #tpu.memory_space<vmem>>, vector<1x64x128xf32>
    %12 = vector.shape_cast %11 : vector<1x64x128xf32> to vector<64x128xf32>
    %13 = arith.maximumf %10, %12 : vector<64x128xf32>
    %c5 = arith.constant 5 : index
    %c0_10 = arith.constant 0 : index
    %c0_11 = arith.constant 0 : index
    %14 = vector.load %arg1[%c5, %c0_10, %c0_11] : memref<9x64x128xf32, #tpu.memory_space<vmem>>, vector<1x64x128xf32>
    %15 = vector.shape_cast %14 : vector<1x64x128xf32> to vector<64x128xf32>
    %16 = arith.maximumf %13, %15 : vector<64x128xf32>
    %c6 = arith.constant 6 : index
    %c0_12 = arith.constant 0 : index
    %c0_13 = arith.constant 0 : index
    %17 = vector.load %arg1[%c6, %c0_12, %c0_13] : memref<9x64x128xf32, #tpu.memory_space<vmem>>, vector<1x64x128xf32>
    %18 = vector.shape_cast %17 : vector<1x64x128xf32> to vector<64x128xf32>
    %19 = arith.maximumf %16, %18 : vector<64x128xf32>
    %c7 = arith.constant 7 : index
    %c0_14 = arith.constant 0 : index
    %c0_15 = arith.constant 0 : index
    %20 = vector.load %arg1[%c7, %c0_14, %c0_15] : memref<9x64x128xf32, #tpu.memory_space<vmem>>, vector<1x64x128xf32>
    %21 = vector.shape_cast %20 : vector<1x64x128xf32> to vector<64x128xf32>
    %22 = arith.maximumf %19, %21 : vector<64x128xf32>
    %c8 = arith.constant 8 : index
    %c0_16 = arith.constant 0 : index
    %c0_17 = arith.constant 0 : index
    %23 = vector.load %arg1[%c8, %c0_16, %c0_17] : memref<9x64x128xf32, #tpu.memory_space<vmem>>, vector<1x64x128xf32>
    %24 = vector.shape_cast %23 : vector<1x64x128xf32> to vector<64x128xf32>
    %25 = arith.maximumf %22, %24 : vector<64x128xf32>
    %c0_18 = arith.constant 0 : index
    %c0_19 = arith.constant 0 : index
    %26 = vector.load %arg2[%c0_18, %c0_19] : memref<64x128xf32, #tpu.memory_space<vmem>>, vector<64x128xf32>
    tpu.vector_store %arg2[%c0_18, %c0_19], %25 {strides = array<i32>} : memref<64x128xf32, #tpu.memory_space<vmem>>, vector<64x128xf32>,
    return
  }
  func.func @transform_0(%arg0: i32) -> (i32, i32, i32) {
    %c0_i32 = arith.constant 0 : i32
    %c0_i32_0 = arith.constant 0 : i32
    %c0_i32_1 = arith.constant 0 : i32
    return %c0_i32, %arg0, %c0_i32_0 : i32, i32, i32
  }
  func.func @transform_1(%arg0: i32) -> (i32, i32) {
    %c0_i32 = arith.constant 0 : i32
    %c0_i32_0 = arith.constant 0 : i32
    return %arg0, %c0_i32 : i32, i32
  }
}

module attributes {stable_mosaic.version = 11 : i64} {
  func.func @_mm_bn_kernel(%arg0: i32, %arg1: i32, %arg2: i32, %arg3: memref<128x256xbf16, #tpu.memory_space<vmem>>, %arg4: memref<256x128xbf16, #tpu.memory_space<vmem>>, %arg5: memref<1x128xf32, #tpu.memory_space<vmem>>, %arg6: memref<1x128xf32, #tpu.memory_space<vmem>>, %arg7: memref<128x128xf32, #tpu.memory_space<vmem>>) attributes {dimension_semantics = [#tpu.dimension_semantics<parallel>, #tpu.dimension_semantics<parallel>, #tpu.dimension_semantics<arbitrary>], iteration_bounds = array<i64: 1, 1, 3>, scalar_prefetch = 0 : i64, scratch_operands = 0 : i64, tpu.core_type = #tpu.core_type<tc>, window_params = [{transform_indices = @transform_0, window_bounds = array<i64: 128, 256>}, {transform_indices = @transform_1, window_bounds = array<i64: 256, 128>}, {transform_indices = @transform_2, window_bounds = array<i64: 1, 128>}, {transform_indices = @transform_3, window_bounds = array<i64: 1, 128>}, {transform_indices = @transform_4, window_bounds = array<i64: 128, 128>}]} {
    %c0_i32 = arith.constant 0 : i32
    %0 = arith.cmpi eq, %arg2, %c0_i32 : i32
    %1 = arith.extui %0 : i1 to i32
    %c0_i32_0 = arith.constant 0 : i32
    %2 = arith.cmpi ne, %1, %c0_i32_0 : i32
    scf.if %2 {
      %cst_9 = arith.constant 0.000000e+00 : f32
      %12 = vector.broadcast %cst_9 : f32 to vector<128x128xf32>
      %c0_10 = arith.constant 0 : index
      %c0_11 = arith.constant 0 : index
      %13 = vector.load %arg7[%c0_10, %c0_11] : memref<128x128xf32, #tpu.memory_space<vmem>>, vector<128x128xf32>
      tpu.vector_store %arg7[%c0_10, %c0_11], %12 {strides = array<i32>} : memref<128x128xf32, #tpu.memory_space<vmem>>, vector<128x128xf32>,
    } else {
    }
    %c0 = arith.constant 0 : index
    %c0_1 = arith.constant 0 : index
    %3 = vector.load %arg7[%c0, %c0_1] : memref<128x128xf32, #tpu.memory_space<vmem>>, vector<128x128xf32>
    %c0_2 = arith.constant 0 : index
    %c0_3 = arith.constant 0 : index
    %4 = vector.load %arg3[%c0_2, %c0_3] : memref<128x256xbf16, #tpu.memory_space<vmem>>, vector<128x256xbf16>
    %c0_4 = arith.constant 0 : index
    %c0_5 = arith.constant 0 : index
    %5 = vector.load %arg4[%c0_4, %c0_5] : memref<256x128xbf16, #tpu.memory_space<vmem>>, vector<256x128xbf16>
    %cst = arith.constant dense<0.000000e+00> : vector<128x128xf32>
    %6 = tpu.matmul %4, %5, %cst {dimension_numbers = #tpu.dot_dimension_numbers<[1], [0], [0], [1], [0, 0, 1, 1], [], []>} : vector<128x256xbf16>, vector<256x128xbf16>, vector<128x128xf32> -> vector<128x128xf32>
    %7 = arith.addf %3, %6 : vector<128x128xf32>
    %c0_6 = arith.constant 0 : index
    %c0_7 = arith.constant 0 : index
    %8 = vector.load %arg7[%c0_6, %c0_7] : memref<128x128xf32, #tpu.memory_space<vmem>>, vector<128x128xf32>
    tpu.vector_store %arg7[%c0_6, %c0_7], %7 {strides = array<i32>} : memref<128x128xf32, #tpu.memory_space<vmem>>, vector<128x128xf32>,
    %c2_i32 = arith.constant 2 : i32
    %9 = arith.cmpi eq, %arg2, %c2_i32 : i32
    %10 = arith.extui %9 : i1 to i32
    %c0_i32_8 = arith.constant 0 : i32
    %11 = arith.cmpi ne, %10, %c0_i32_8 : i32
    scf.if %11 {
      %c0_9 = arith.constant 0 : index
      %c0_10 = arith.constant 0 : index
      %12 = vector.load %arg7[%c0_9, %c0_10] : memref<128x128xf32, #tpu.memory_space<vmem>>, vector<128x128xf32>
      %c0_11 = arith.constant 0 : index
      %c0_12 = arith.constant 0 : index
      %13 = vector.load %arg5[%c0_11, %c0_12] : memref<1x128xf32, #tpu.memory_space<vmem>>, vector<1x128xf32>
      %14 = vector.broadcast %13 : vector<1x128xf32> to vector<128x128xf32>
      %15 = arith.mulf %12, %14 : vector<128x128xf32>
      %c0_13 = arith.constant 0 : index
      %c0_14 = arith.constant 0 : index
      %16 = vector.load %arg6[%c0_13, %c0_14] : memref<1x128xf32, #tpu.memory_space<vmem>>, vector<1x128xf32>
      %17 = vector.broadcast %16 : vector<1x128xf32> to vector<128x128xf32>
      %18 = arith.addf %15, %17 : vector<128x128xf32>
      %cst_15 = arith.constant 0.000000e+00 : f32
      %19 = vector.broadcast %cst_15 : f32 to vector<128x128xf32>
      %20 = arith.maximumf %18, %19 : vector<128x128xf32>
      %c0_16 = arith.constant 0 : index
      %c0_17 = arith.constant 0 : index
      %21 = vector.load %arg7[%c0_16, %c0_17] : memref<128x128xf32, #tpu.memory_space<vmem>>, vector<128x128xf32>
      tpu.vector_store %arg7[%c0_16, %c0_17], %20 {strides = array<i32>} : memref<128x128xf32, #tpu.memory_space<vmem>>, vector<128x128xf32>,
    } else {
    }
    return
  }
  func.func @transform_0(%arg0: i32, %arg1: i32, %arg2: i32) -> (i32, i32) {
    %c0_i32 = arith.constant 0 : i32
    return %arg0, %arg2 : i32, i32
  }
  func.func @transform_1(%arg0: i32, %arg1: i32, %arg2: i32) -> (i32, i32) {
    %c0_i32 = arith.constant 0 : i32
    return %arg2, %arg1 : i32, i32
  }
  func.func @transform_2(%arg0: i32, %arg1: i32, %arg2: i32) -> (i32, i32) {
    %c0_i32 = arith.constant 0 : i32
    %c0_i32_0 = arith.constant 0 : i32
    return %c0_i32, %arg1 : i32, i32
  }
  func.func @transform_3(%arg0: i32, %arg1: i32, %arg2: i32) -> (i32, i32) {
    %c0_i32 = arith.constant 0 : i32
    %c0_i32_0 = arith.constant 0 : i32
    return %c0_i32, %arg1 : i32, i32
  }
  func.func @transform_4(%arg0: i32, %arg1: i32, %arg2: i32) -> (i32, i32) {
    %c0_i32 = arith.constant 0 : i32
    return %arg0, %arg1 : i32, i32
  }
}

module attributes {stable_mosaic.version = 11 : i64} {
  func.func @_mm_bn_kernel(%arg0: i32, %arg1: i32, %arg2: i32, %arg3: memref<128x256xbf16, #tpu.memory_space<vmem>>, %arg4: memref<256x128xbf16, #tpu.memory_space<vmem>>, %arg5: memref<1x128xf32, #tpu.memory_space<vmem>>, %arg6: memref<1x128xf32, #tpu.memory_space<vmem>>, %arg7: memref<128x128xf32, #tpu.memory_space<vmem>>, %arg8: memref<128x128xf32, #tpu.memory_space<vmem>>) attributes {dimension_semantics = [#tpu.dimension_semantics<parallel>, #tpu.dimension_semantics<parallel>, #tpu.dimension_semantics<arbitrary>], iteration_bounds = array<i64: 1, 1, 3>, scalar_prefetch = 0 : i64, scratch_operands = 0 : i64, tpu.core_type = #tpu.core_type<tc>, window_params = [{transform_indices = @transform_0, window_bounds = array<i64: 128, 256>}, {transform_indices = @transform_1, window_bounds = array<i64: 256, 128>}, {transform_indices = @transform_2, window_bounds = array<i64: 1, 128>}, {transform_indices = @transform_3, window_bounds = array<i64: 1, 128>}, {transform_indices = @transform_4, window_bounds = array<i64: 128, 128>}, {transform_indices = @transform_5, window_bounds = array<i64: 128, 128>}]} {
    %c0_i32 = arith.constant 0 : i32
    %0 = arith.cmpi eq, %arg2, %c0_i32 : i32
    %1 = arith.extui %0 : i1 to i32
    %c0_i32_0 = arith.constant 0 : i32
    %2 = arith.cmpi ne, %1, %c0_i32_0 : i32
    scf.if %2 {
      %cst_9 = arith.constant 0.000000e+00 : f32
      %12 = vector.broadcast %cst_9 : f32 to vector<128x128xf32>
      %c0_10 = arith.constant 0 : index
      %c0_11 = arith.constant 0 : index
      %13 = vector.load %arg8[%c0_10, %c0_11] : memref<128x128xf32, #tpu.memory_space<vmem>>, vector<128x128xf32>
      tpu.vector_store %arg8[%c0_10, %c0_11], %12 {strides = array<i32>} : memref<128x128xf32, #tpu.memory_space<vmem>>, vector<128x128xf32>,
    } else {
    }
    %c0 = arith.constant 0 : index
    %c0_1 = arith.constant 0 : index
    %3 = vector.load %arg8[%c0, %c0_1] : memref<128x128xf32, #tpu.memory_space<vmem>>, vector<128x128xf32>
    %c0_2 = arith.constant 0 : index
    %c0_3 = arith.constant 0 : index
    %4 = vector.load %arg3[%c0_2, %c0_3] : memref<128x256xbf16, #tpu.memory_space<vmem>>, vector<128x256xbf16>
    %c0_4 = arith.constant 0 : index
    %c0_5 = arith.constant 0 : index
    %5 = vector.load %arg4[%c0_4, %c0_5] : memref<256x128xbf16, #tpu.memory_space<vmem>>, vector<256x128xbf16>
    %cst = arith.constant dense<0.000000e+00> : vector<128x128xf32>
    %6 = tpu.matmul %4, %5, %cst {dimension_numbers = #tpu.dot_dimension_numbers<[1], [0], [0], [1], [0, 0, 1, 1], [], []>} : vector<128x256xbf16>, vector<256x128xbf16>, vector<128x128xf32> -> vector<128x128xf32>
    %7 = arith.addf %3, %6 : vector<128x128xf32>
    %c0_6 = arith.constant 0 : index
    %c0_7 = arith.constant 0 : index
    %8 = vector.load %arg8[%c0_6, %c0_7] : memref<128x128xf32, #tpu.memory_space<vmem>>, vector<128x128xf32>
    tpu.vector_store %arg8[%c0_6, %c0_7], %7 {strides = array<i32>} : memref<128x128xf32, #tpu.memory_space<vmem>>, vector<128x128xf32>,
    %c2_i32 = arith.constant 2 : i32
    %9 = arith.cmpi eq, %arg2, %c2_i32 : i32
    %10 = arith.extui %9 : i1 to i32
    %c0_i32_8 = arith.constant 0 : i32
    %11 = arith.cmpi ne, %10, %c0_i32_8 : i32
    scf.if %11 {
      %c0_9 = arith.constant 0 : index
      %c0_10 = arith.constant 0 : index
      %12 = vector.load %arg8[%c0_9, %c0_10] : memref<128x128xf32, #tpu.memory_space<vmem>>, vector<128x128xf32>
      %c0_11 = arith.constant 0 : index
      %c0_12 = arith.constant 0 : index
      %13 = vector.load %arg5[%c0_11, %c0_12] : memref<1x128xf32, #tpu.memory_space<vmem>>, vector<1x128xf32>
      %14 = vector.broadcast %13 : vector<1x128xf32> to vector<128x128xf32>
      %15 = arith.mulf %12, %14 : vector<128x128xf32>
      %c0_13 = arith.constant 0 : index
      %c0_14 = arith.constant 0 : index
      %16 = vector.load %arg6[%c0_13, %c0_14] : memref<1x128xf32, #tpu.memory_space<vmem>>, vector<1x128xf32>
      %17 = vector.broadcast %16 : vector<1x128xf32> to vector<128x128xf32>
      %18 = arith.addf %15, %17 : vector<128x128xf32>
      %c0_15 = arith.constant 0 : index
      %c0_16 = arith.constant 0 : index
      %19 = vector.load %arg7[%c0_15, %c0_16] : memref<128x128xf32, #tpu.memory_space<vmem>>, vector<128x128xf32>
      %20 = arith.addf %18, %19 : vector<128x128xf32>
      %cst_17 = arith.constant 0.000000e+00 : f32
      %21 = vector.broadcast %cst_17 : f32 to vector<128x128xf32>
      %22 = arith.maximumf %20, %21 : vector<128x128xf32>
      %c0_18 = arith.constant 0 : index
      %c0_19 = arith.constant 0 : index
      %23 = vector.load %arg8[%c0_18, %c0_19] : memref<128x128xf32, #tpu.memory_space<vmem>>, vector<128x128xf32>
      tpu.vector_store %arg8[%c0_18, %c0_19], %22 {strides = array<i32>} : memref<128x128xf32, #tpu.memory_space<vmem>>, vector<128x128xf32>,
    } else {
    }
    return
  }
  func.func @transform_0(%arg0: i32, %arg1: i32, %arg2: i32) -> (i32, i32) {
    %c0_i32 = arith.constant 0 : i32
    return %arg0, %arg2 : i32, i32
  }
  func.func @transform_1(%arg0: i32, %arg1: i32, %arg2: i32) -> (i32, i32) {
    %c0_i32 = arith.constant 0 : i32
    return %arg2, %arg1 : i32, i32
  }
  func.func @transform_2(%arg0: i32, %arg1: i32, %arg2: i32) -> (i32, i32) {
    %c0_i32 = arith.constant 0 : i32
    %c0_i32_0 = arith.constant 0 : i32
    return %c0_i32, %arg1 : i32, i32
  }
  func.func @transform_3(%arg0: i32, %arg1: i32, %arg2: i32) -> (i32, i32) {
    %c0_i32 = arith.constant 0 : i32
    %c0_i32_0 = arith.constant 0 : i32
    return %c0_i32, %arg1 : i32, i32
  }
  func.func @transform_4(%arg0: i32, %arg1: i32, %arg2: i32) -> (i32, i32) {
    %c0_i32 = arith.constant 0 : i32
    return %arg0, %arg1 : i32, i32
  }
  func.func @transform_5(%arg0: i32, %arg1: i32, %arg2: i32) -> (i32, i32) {
    %c0_i32 = arith.constant 0 : i32
    return %arg0, %arg1 : i32, i32
  }
}

module attributes {stable_mosaic.version = 11 : i64} {
  func.func @_mm_bn_kernel(%arg0: i32, %arg1: i32, %arg2: i32, %arg3: memref<32x256xbf16, #tpu.memory_space<vmem>>, %arg4: memref<256x128xbf16, #tpu.memory_space<vmem>>, %arg5: memref<1x128xf32, #tpu.memory_space<vmem>>, %arg6: memref<1x128xf32, #tpu.memory_space<vmem>>, %arg7: memref<32x128xf32, #tpu.memory_space<vmem>>) attributes {dimension_semantics = [#tpu.dimension_semantics<parallel>, #tpu.dimension_semantics<parallel>, #tpu.dimension_semantics<arbitrary>], iteration_bounds = array<i64: 1, 1, 3>, scalar_prefetch = 0 : i64, scratch_operands = 0 : i64, tpu.core_type = #tpu.core_type<tc>, window_params = [{transform_indices = @transform_0, window_bounds = array<i64: 32, 256>}, {transform_indices = @transform_1, window_bounds = array<i64: 256, 128>}, {transform_indices = @transform_2, window_bounds = array<i64: 1, 128>}, {transform_indices = @transform_3, window_bounds = array<i64: 1, 128>}, {transform_indices = @transform_4, window_bounds = array<i64: 32, 128>}]} {
    %c0_i32 = arith.constant 0 : i32
    %0 = arith.cmpi eq, %arg2, %c0_i32 : i32
    %1 = arith.extui %0 : i1 to i32
    %c0_i32_0 = arith.constant 0 : i32
    %2 = arith.cmpi ne, %1, %c0_i32_0 : i32
    scf.if %2 {
      %cst_9 = arith.constant 0.000000e+00 : f32
      %12 = vector.broadcast %cst_9 : f32 to vector<32x128xf32>
      %c0_10 = arith.constant 0 : index
      %c0_11 = arith.constant 0 : index
      %13 = vector.load %arg7[%c0_10, %c0_11] : memref<32x128xf32, #tpu.memory_space<vmem>>, vector<32x128xf32>
      tpu.vector_store %arg7[%c0_10, %c0_11], %12 {strides = array<i32>} : memref<32x128xf32, #tpu.memory_space<vmem>>, vector<32x128xf32>,
    } else {
    }
    %c0 = arith.constant 0 : index
    %c0_1 = arith.constant 0 : index
    %3 = vector.load %arg7[%c0, %c0_1] : memref<32x128xf32, #tpu.memory_space<vmem>>, vector<32x128xf32>
    %c0_2 = arith.constant 0 : index
    %c0_3 = arith.constant 0 : index
    %4 = vector.load %arg3[%c0_2, %c0_3] : memref<32x256xbf16, #tpu.memory_space<vmem>>, vector<32x256xbf16>
    %c0_4 = arith.constant 0 : index
    %c0_5 = arith.constant 0 : index
    %5 = vector.load %arg4[%c0_4, %c0_5] : memref<256x128xbf16, #tpu.memory_space<vmem>>, vector<256x128xbf16>
    %cst = arith.constant dense<0.000000e+00> : vector<32x128xf32>
    %6 = tpu.matmul %4, %5, %cst {dimension_numbers = #tpu.dot_dimension_numbers<[1], [0], [0], [1], [0, 0, 1, 1], [], []>} : vector<32x256xbf16>, vector<256x128xbf16>, vector<32x128xf32> -> vector<32x128xf32>
    %7 = arith.addf %3, %6 : vector<32x128xf32>
    %c0_6 = arith.constant 0 : index
    %c0_7 = arith.constant 0 : index
    %8 = vector.load %arg7[%c0_6, %c0_7] : memref<32x128xf32, #tpu.memory_space<vmem>>, vector<32x128xf32>
    tpu.vector_store %arg7[%c0_6, %c0_7], %7 {strides = array<i32>} : memref<32x128xf32, #tpu.memory_space<vmem>>, vector<32x128xf32>,
    %c2_i32 = arith.constant 2 : i32
    %9 = arith.cmpi eq, %arg2, %c2_i32 : i32
    %10 = arith.extui %9 : i1 to i32
    %c0_i32_8 = arith.constant 0 : i32
    %11 = arith.cmpi ne, %10, %c0_i32_8 : i32
    scf.if %11 {
      %c0_9 = arith.constant 0 : index
      %c0_10 = arith.constant 0 : index
      %12 = vector.load %arg7[%c0_9, %c0_10] : memref<32x128xf32, #tpu.memory_space<vmem>>, vector<32x128xf32>
      %c0_11 = arith.constant 0 : index
      %c0_12 = arith.constant 0 : index
      %13 = vector.load %arg5[%c0_11, %c0_12] : memref<1x128xf32, #tpu.memory_space<vmem>>, vector<1x128xf32>
      %14 = vector.broadcast %13 : vector<1x128xf32> to vector<32x128xf32>
      %15 = arith.mulf %12, %14 : vector<32x128xf32>
      %c0_13 = arith.constant 0 : index
      %c0_14 = arith.constant 0 : index
      %16 = vector.load %arg6[%c0_13, %c0_14] : memref<1x128xf32, #tpu.memory_space<vmem>>, vector<1x128xf32>
      %17 = vector.broadcast %16 : vector<1x128xf32> to vector<32x128xf32>
      %18 = arith.addf %15, %17 : vector<32x128xf32>
      %cst_15 = arith.constant 0.000000e+00 : f32
      %19 = vector.broadcast %cst_15 : f32 to vector<32x128xf32>
      %20 = arith.maximumf %18, %19 : vector<32x128xf32>
      %c0_16 = arith.constant 0 : index
      %c0_17 = arith.constant 0 : index
      %21 = vector.load %arg7[%c0_16, %c0_17] : memref<32x128xf32, #tpu.memory_space<vmem>>, vector<32x128xf32>
      tpu.vector_store %arg7[%c0_16, %c0_17], %20 {strides = array<i32>} : memref<32x128xf32, #tpu.memory_space<vmem>>, vector<32x128xf32>,
    } else {
    }
    return
  }
  func.func @transform_0(%arg0: i32, %arg1: i32, %arg2: i32) -> (i32, i32) {
    %c0_i32 = arith.constant 0 : i32
    return %arg0, %arg2 : i32, i32
  }
  func.func @transform_1(%arg0: i32, %arg1: i32, %arg2: i32) -> (i32, i32) {
    %c0_i32 = arith.constant 0 : i32
    return %arg2, %arg1 : i32, i32
  }
  func.func @transform_2(%arg0: i32, %arg1: i32, %arg2: i32) -> (i32, i32) {
    %c0_i32 = arith.constant 0 : i32
    %c0_i32_0 = arith.constant 0 : i32
    return %c0_i32, %arg1 : i32, i32
  }
  func.func @transform_3(%arg0: i32, %arg1: i32, %arg2: i32) -> (i32, i32) {
    %c0_i32 = arith.constant 0 : i32
    %c0_i32_0 = arith.constant 0 : i32
    return %c0_i32, %arg1 : i32, i32
  }
  func.func @transform_4(%arg0: i32, %arg1: i32, %arg2: i32) -> (i32, i32) {
    %c0_i32 = arith.constant 0 : i32
    return %arg0, %arg1 : i32, i32
  }
}

module attributes {stable_mosaic.version = 11 : i64} {
  func.func @_mm_bn_kernel(%arg0: i32, %arg1: i32, %arg2: i32, %arg3: memref<32x128xbf16, #tpu.memory_space<vmem>>, %arg4: memref<128x128xbf16, #tpu.memory_space<vmem>>, %arg5: memref<1x128xf32, #tpu.memory_space<vmem>>, %arg6: memref<1x128xf32, #tpu.memory_space<vmem>>, %arg7: memref<32x128xf32, #tpu.memory_space<vmem>>) attributes {dimension_semantics = [#tpu.dimension_semantics<parallel>, #tpu.dimension_semantics<parallel>, #tpu.dimension_semantics<arbitrary>], iteration_bounds = array<i64: 1, 1, 1>, scalar_prefetch = 0 : i64, scratch_operands = 0 : i64, tpu.core_type = #tpu.core_type<tc>, window_params = [{transform_indices = @transform_0, window_bounds = array<i64: 32, 128>}, {transform_indices = @transform_1, window_bounds = array<i64: 128, 128>}, {transform_indices = @transform_2, window_bounds = array<i64: 1, 128>}, {transform_indices = @transform_3, window_bounds = array<i64: 1, 128>}, {transform_indices = @transform_4, window_bounds = array<i64: 32, 128>}]} {
    %c0_i32 = arith.constant 0 : i32
    %0 = arith.cmpi eq, %arg2, %c0_i32 : i32
    %1 = arith.extui %0 : i1 to i32
    %c0_i32_0 = arith.constant 0 : i32
    %2 = arith.cmpi ne, %1, %c0_i32_0 : i32
    scf.if %2 {
      %cst_10 = arith.constant 0.000000e+00 : f32
      %12 = vector.broadcast %cst_10 : f32 to vector<32x128xf32>
      %c0_11 = arith.constant 0 : index
      %c0_12 = arith.constant 0 : index
      %13 = vector.load %arg7[%c0_11, %c0_12] : memref<32x128xf32, #tpu.memory_space<vmem>>, vector<32x128xf32>
      tpu.vector_store %arg7[%c0_11, %c0_12], %12 {strides = array<i32>} : memref<32x128xf32, #tpu.memory_space<vmem>>, vector<32x128xf32>,
    } else {
    }
    %c0 = arith.constant 0 : index
    %c0_1 = arith.constant 0 : index
    %3 = vector.load %arg7[%c0, %c0_1] : memref<32x128xf32, #tpu.memory_space<vmem>>, vector<32x128xf32>
    %c0_2 = arith.constant 0 : index
    %c0_3 = arith.constant 0 : index
    %4 = vector.load %arg3[%c0_2, %c0_3] : memref<32x128xbf16, #tpu.memory_space<vmem>>, vector<32x128xbf16>
    %c0_4 = arith.constant 0 : index
    %c0_5 = arith.constant 0 : index
    %5 = vector.load %arg4[%c0_4, %c0_5] : memref<128x128xbf16, #tpu.memory_space<vmem>>, vector<128x128xbf16>
    %cst = arith.constant dense<0.000000e+00> : vector<32x128xf32>
    %6 = tpu.matmul %4, %5, %cst {dimension_numbers = #tpu.dot_dimension_numbers<[1], [0], [0], [1], [0, 0, 1, 1], [], []>} : vector<32x128xbf16>, vector<128x128xbf16>, vector<32x128xf32> -> vector<32x128xf32>
    %7 = arith.addf %3, %6 : vector<32x128xf32>
    %c0_6 = arith.constant 0 : index
    %c0_7 = arith.constant 0 : index
    %8 = vector.load %arg7[%c0_6, %c0_7] : memref<32x128xf32, #tpu.memory_space<vmem>>, vector<32x128xf32>
    tpu.vector_store %arg7[%c0_6, %c0_7], %7 {strides = array<i32>} : memref<32x128xf32, #tpu.memory_space<vmem>>, vector<32x128xf32>,
    %c0_i32_8 = arith.constant 0 : i32
    %9 = arith.cmpi eq, %arg2, %c0_i32_8 : i32
    %10 = arith.extui %9 : i1 to i32
    %c0_i32_9 = arith.constant 0 : i32
    %11 = arith.cmpi ne, %10, %c0_i32_9 : i32
    scf.if %11 {
      %c0_10 = arith.constant 0 : index
      %c0_11 = arith.constant 0 : index
      %12 = vector.load %arg7[%c0_10, %c0_11] : memref<32x128xf32, #tpu.memory_space<vmem>>, vector<32x128xf32>
      %c0_12 = arith.constant 0 : index
      %c0_13 = arith.constant 0 : index
      %13 = vector.load %arg5[%c0_12, %c0_13] : memref<1x128xf32, #tpu.memory_space<vmem>>, vector<1x128xf32>
      %14 = vector.broadcast %13 : vector<1x128xf32> to vector<32x128xf32>
      %15 = arith.mulf %12, %14 : vector<32x128xf32>
      %c0_14 = arith.constant 0 : index
      %c0_15 = arith.constant 0 : index
      %16 = vector.load %arg6[%c0_14, %c0_15] : memref<1x128xf32, #tpu.memory_space<vmem>>, vector<1x128xf32>
      %17 = vector.broadcast %16 : vector<1x128xf32> to vector<32x128xf32>
      %18 = arith.addf %15, %17 : vector<32x128xf32>
      %c0_16 = arith.constant 0 : index
      %c0_17 = arith.constant 0 : index
      %19 = vector.load %arg7[%c0_16, %c0_17] : memref<32x128xf32, #tpu.memory_space<vmem>>, vector<32x128xf32>
      tpu.vector_store %arg7[%c0_16, %c0_17], %18 {strides = array<i32>} : memref<32x128xf32, #tpu.memory_space<vmem>>, vector<32x128xf32>,
    } else {
    }
    return
  }
  func.func @transform_0(%arg0: i32, %arg1: i32, %arg2: i32) -> (i32, i32) {
    %c0_i32 = arith.constant 0 : i32
    return %arg0, %arg2 : i32, i32
  }
  func.func @transform_1(%arg0: i32, %arg1: i32, %arg2: i32) -> (i32, i32) {
    %c0_i32 = arith.constant 0 : i32
    return %arg2, %arg1 : i32, i32
  }
  func.func @transform_2(%arg0: i32, %arg1: i32, %arg2: i32) -> (i32, i32) {
    %c0_i32 = arith.constant 0 : i32
    %c0_i32_0 = arith.constant 0 : i32
    return %c0_i32, %arg1 : i32, i32
  }
  func.func @transform_3(%arg0: i32, %arg1: i32, %arg2: i32) -> (i32, i32) {
    %c0_i32 = arith.constant 0 : i32
    %c0_i32_0 = arith.constant 0 : i32
    return %c0_i32, %arg1 : i32, i32
  }
  func.func @transform_4(%arg0: i32, %arg1: i32, %arg2: i32) -> (i32, i32) {
    %c0_i32 = arith.constant 0 : i32
    return %arg0, %arg1 : i32, i32
  }
}

module attributes {stable_mosaic.version = 11 : i64} {
  func.func @_mm_bn_kernel(%arg0: i32, %arg1: i32, %arg2: i32, %arg3: memref<32x256xbf16, #tpu.memory_space<vmem>>, %arg4: memref<256x128xbf16, #tpu.memory_space<vmem>>, %arg5: memref<1x128xf32, #tpu.memory_space<vmem>>, %arg6: memref<1x128xf32, #tpu.memory_space<vmem>>, %arg7: memref<32x128xf32, #tpu.memory_space<vmem>>, %arg8: memref<32x128xf32, #tpu.memory_space<vmem>>) attributes {dimension_semantics = [#tpu.dimension_semantics<parallel>, #tpu.dimension_semantics<parallel>, #tpu.dimension_semantics<arbitrary>], iteration_bounds = array<i64: 1, 1, 5>, scalar_prefetch = 0 : i64, scratch_operands = 0 : i64, tpu.core_type = #tpu.core_type<tc>, window_params = [{transform_indices = @transform_0, window_bounds = array<i64: 32, 256>}, {transform_indices = @transform_1, window_bounds = array<i64: 256, 128>}, {transform_indices = @transform_2, window_bounds = array<i64: 1, 128>}, {transform_indices = @transform_3, window_bounds = array<i64: 1, 128>}, {transform_indices = @transform_4, window_bounds = array<i64: 32, 128>}, {transform_indices = @transform_5, window_bounds = array<i64: 32, 128>}]} {
    %c0_i32 = arith.constant 0 : i32
    %0 = arith.cmpi eq, %arg2, %c0_i32 : i32
    %1 = arith.extui %0 : i1 to i32
    %c0_i32_0 = arith.constant 0 : i32
    %2 = arith.cmpi ne, %1, %c0_i32_0 : i32
    scf.if %2 {
      %cst_9 = arith.constant 0.000000e+00 : f32
      %12 = vector.broadcast %cst_9 : f32 to vector<32x128xf32>
      %c0_10 = arith.constant 0 : index
      %c0_11 = arith.constant 0 : index
      %13 = vector.load %arg8[%c0_10, %c0_11] : memref<32x128xf32, #tpu.memory_space<vmem>>, vector<32x128xf32>
      tpu.vector_store %arg8[%c0_10, %c0_11], %12 {strides = array<i32>} : memref<32x128xf32, #tpu.memory_space<vmem>>, vector<32x128xf32>,
    } else {
    }
    %c0 = arith.constant 0 : index
    %c0_1 = arith.constant 0 : index
    %3 = vector.load %arg8[%c0, %c0_1] : memref<32x128xf32, #tpu.memory_space<vmem>>, vector<32x128xf32>
    %c0_2 = arith.constant 0 : index
    %c0_3 = arith.constant 0 : index
    %4 = vector.load %arg3[%c0_2, %c0_3] : memref<32x256xbf16, #tpu.memory_space<vmem>>, vector<32x256xbf16>
    %c0_4 = arith.constant 0 : index
    %c0_5 = arith.constant 0 : index
    %5 = vector.load %arg4[%c0_4, %c0_5] : memref<256x128xbf16, #tpu.memory_space<vmem>>, vector<256x128xbf16>
    %cst = arith.constant dense<0.000000e+00> : vector<32x128xf32>
    %6 = tpu.matmul %4, %5, %cst {dimension_numbers = #tpu.dot_dimension_numbers<[1], [0], [0], [1], [0, 0, 1, 1], [], []>} : vector<32x256xbf16>, vector<256x128xbf16>, vector<32x128xf32> -> vector<32x128xf32>
    %7 = arith.addf %3, %6 : vector<32x128xf32>
    %c0_6 = arith.constant 0 : index
    %c0_7 = arith.constant 0 : index
    %8 = vector.load %arg8[%c0_6, %c0_7] : memref<32x128xf32, #tpu.memory_space<vmem>>, vector<32x128xf32>
    tpu.vector_store %arg8[%c0_6, %c0_7], %7 {strides = array<i32>} : memref<32x128xf32, #tpu.memory_space<vmem>>, vector<32x128xf32>,
    %c4_i32 = arith.constant 4 : i32
    %9 = arith.cmpi eq, %arg2, %c4_i32 : i32
    %10 = arith.extui %9 : i1 to i32
    %c0_i32_8 = arith.constant 0 : i32
    %11 = arith.cmpi ne, %10, %c0_i32_8 : i32
    scf.if %11 {
      %c0_9 = arith.constant 0 : index
      %c0_10 = arith.constant 0 : index
      %12 = vector.load %arg8[%c0_9, %c0_10] : memref<32x128xf32, #tpu.memory_space<vmem>>, vector<32x128xf32>
      %c0_11 = arith.constant 0 : index
      %c0_12 = arith.constant 0 : index
      %13 = vector.load %arg5[%c0_11, %c0_12] : memref<1x128xf32, #tpu.memory_space<vmem>>, vector<1x128xf32>
      %14 = vector.broadcast %13 : vector<1x128xf32> to vector<32x128xf32>
      %15 = arith.mulf %12, %14 : vector<32x128xf32>
      %c0_13 = arith.constant 0 : index
      %c0_14 = arith.constant 0 : index
      %16 = vector.load %arg6[%c0_13, %c0_14] : memref<1x128xf32, #tpu.memory_space<vmem>>, vector<1x128xf32>
      %17 = vector.broadcast %16 : vector<1x128xf32> to vector<32x128xf32>
      %18 = arith.addf %15, %17 : vector<32x128xf32>
      %c0_15 = arith.constant 0 : index
      %c0_16 = arith.constant 0 : index
      %19 = vector.load %arg7[%c0_15, %c0_16] : memref<32x128xf32, #tpu.memory_space<vmem>>, vector<32x128xf32>
      %20 = arith.addf %18, %19 : vector<32x128xf32>
      %cst_17 = arith.constant 0.000000e+00 : f32
      %21 = vector.broadcast %cst_17 : f32 to vector<32x128xf32>
      %22 = arith.maximumf %20, %21 : vector<32x128xf32>
      %c0_18 = arith.constant 0 : index
      %c0_19 = arith.constant 0 : index
      %23 = vector.load %arg8[%c0_18, %c0_19] : memref<32x128xf32, #tpu.memory_space<vmem>>, vector<32x128xf32>
      tpu.vector_store %arg8[%c0_18, %c0_19], %22 {strides = array<i32>} : memref<32x128xf32, #tpu.memory_space<vmem>>, vector<32x128xf32>,
    } else {
    }
    return
  }
  func.func @transform_0(%arg0: i32, %arg1: i32, %arg2: i32) -> (i32, i32) {
    %c0_i32 = arith.constant 0 : i32
    return %arg0, %arg2 : i32, i32
  }
  func.func @transform_1(%arg0: i32, %arg1: i32, %arg2: i32) -> (i32, i32) {
    %c0_i32 = arith.constant 0 : i32
    return %arg2, %arg1 : i32, i32
  }
  func.func @transform_2(%arg0: i32, %arg1: i32, %arg2: i32) -> (i32, i32) {
    %c0_i32 = arith.constant 0 : i32
    %c0_i32_0 = arith.constant 0 : i32
    return %c0_i32, %arg1 : i32, i32
  }
  func.func @transform_3(%arg0: i32, %arg1: i32, %arg2: i32) -> (i32, i32) {
    %c0_i32 = arith.constant 0 : i32
    %c0_i32_0 = arith.constant 0 : i32
    return %c0_i32, %arg1 : i32, i32
  }
  func.func @transform_4(%arg0: i32, %arg1: i32, %arg2: i32) -> (i32, i32) {
    %c0_i32 = arith.constant 0 : i32
    return %arg0, %arg1 : i32, i32
  }
  func.func @transform_5(%arg0: i32, %arg1: i32, %arg2: i32) -> (i32, i32) {
    %c0_i32 = arith.constant 0 : i32
    return %arg0, %arg1 : i32, i32
  }
}

module attributes {stable_mosaic.version = 11 : i64} {
  func.func @_mm_bn_kernel(%arg0: i32, %arg1: i32, %arg2: i32, %arg3: memref<32x256xbf16, #tpu.memory_space<vmem>>, %arg4: memref<256x128xbf16, #tpu.memory_space<vmem>>, %arg5: memref<1x128xf32, #tpu.memory_space<vmem>>, %arg6: memref<1x128xf32, #tpu.memory_space<vmem>>, %arg7: memref<32x128xf32, #tpu.memory_space<vmem>>) attributes {dimension_semantics = [#tpu.dimension_semantics<parallel>, #tpu.dimension_semantics<parallel>, #tpu.dimension_semantics<arbitrary>], iteration_bounds = array<i64: 1, 1, 5>, scalar_prefetch = 0 : i64, scratch_operands = 0 : i64, tpu.core_type = #tpu.core_type<tc>, window_params = [{transform_indices = @transform_0, window_bounds = array<i64: 32, 256>}, {transform_indices = @transform_1, window_bounds = array<i64: 256, 128>}, {transform_indices = @transform_2, window_bounds = array<i64: 1, 128>}, {transform_indices = @transform_3, window_bounds = array<i64: 1, 128>}, {transform_indices = @transform_4, window_bounds = array<i64: 32, 128>}]} {
    %c0_i32 = arith.constant 0 : i32
    %0 = arith.cmpi eq, %arg2, %c0_i32 : i32
    %1 = arith.extui %0 : i1 to i32
    %c0_i32_0 = arith.constant 0 : i32
    %2 = arith.cmpi ne, %1, %c0_i32_0 : i32
    scf.if %2 {
      %cst_9 = arith.constant 0.000000e+00 : f32
      %12 = vector.broadcast %cst_9 : f32 to vector<32x128xf32>
      %c0_10 = arith.constant 0 : index
      %c0_11 = arith.constant 0 : index
      %13 = vector.load %arg7[%c0_10, %c0_11] : memref<32x128xf32, #tpu.memory_space<vmem>>, vector<32x128xf32>
      tpu.vector_store %arg7[%c0_10, %c0_11], %12 {strides = array<i32>} : memref<32x128xf32, #tpu.memory_space<vmem>>, vector<32x128xf32>,
    } else {
    }
    %c0 = arith.constant 0 : index
    %c0_1 = arith.constant 0 : index
    %3 = vector.load %arg7[%c0, %c0_1] : memref<32x128xf32, #tpu.memory_space<vmem>>, vector<32x128xf32>
    %c0_2 = arith.constant 0 : index
    %c0_3 = arith.constant 0 : index
    %4 = vector.load %arg3[%c0_2, %c0_3] : memref<32x256xbf16, #tpu.memory_space<vmem>>, vector<32x256xbf16>
    %c0_4 = arith.constant 0 : index
    %c0_5 = arith.constant 0 : index
    %5 = vector.load %arg4[%c0_4, %c0_5] : memref<256x128xbf16, #tpu.memory_space<vmem>>, vector<256x128xbf16>
    %cst = arith.constant dense<0.000000e+00> : vector<32x128xf32>
    %6 = tpu.matmul %4, %5, %cst {dimension_numbers = #tpu.dot_dimension_numbers<[1], [0], [0], [1], [0, 0, 1, 1], [], []>} : vector<32x256xbf16>, vector<256x128xbf16>, vector<32x128xf32> -> vector<32x128xf32>
    %7 = arith.addf %3, %6 : vector<32x128xf32>
    %c0_6 = arith.constant 0 : index
    %c0_7 = arith.constant 0 : index
    %8 = vector.load %arg7[%c0_6, %c0_7] : memref<32x128xf32, #tpu.memory_space<vmem>>, vector<32x128xf32>
    tpu.vector_store %arg7[%c0_6, %c0_7], %7 {strides = array<i32>} : memref<32x128xf32, #tpu.memory_space<vmem>>, vector<32x128xf32>,
    %c4_i32 = arith.constant 4 : i32
    %9 = arith.cmpi eq, %arg2, %c4_i32 : i32
    %10 = arith.extui %9 : i1 to i32
    %c0_i32_8 = arith.constant 0 : i32
    %11 = arith.cmpi ne, %10, %c0_i32_8 : i32
    scf.if %11 {
      %c0_9 = arith.constant 0 : index
      %c0_10 = arith.constant 0 : index
      %12 = vector.load %arg7[%c0_9, %c0_10] : memref<32x128xf32, #tpu.memory_space<vmem>>, vector<32x128xf32>
      %c0_11 = arith.constant 0 : index
      %c0_12 = arith.constant 0 : index
      %13 = vector.load %arg5[%c0_11, %c0_12] : memref<1x128xf32, #tpu.memory_space<vmem>>, vector<1x128xf32>
      %14 = vector.broadcast %13 : vector<1x128xf32> to vector<32x128xf32>
      %15 = arith.mulf %12, %14 : vector<32x128xf32>
      %c0_13 = arith.constant 0 : index
      %c0_14 = arith.constant 0 : index
      %16 = vector.load %arg6[%c0_13, %c0_14] : memref<1x128xf32, #tpu.memory_space<vmem>>, vector<1x128xf32>
      %17 = vector.broadcast %16 : vector<1x128xf32> to vector<32x128xf32>
      %18 = arith.addf %15, %17 : vector<32x128xf32>
      %cst_15 = arith.constant 0.000000e+00 : f32
      %19 = vector.broadcast %cst_15 : f32 to vector<32x128xf32>
      %20 = arith.maximumf %18, %19 : vector<32x128xf32>
      %c0_16 = arith.constant 0 : index
      %c0_17 = arith.constant 0 : index
      %21 = vector.load %arg7[%c0_16, %c0_17] : memref<32x128xf32, #tpu.memory_space<vmem>>, vector<32x128xf32>
      tpu.vector_store %arg7[%c0_16, %c0_17], %20 {strides = array<i32>} : memref<32x128xf32, #tpu.memory_space<vmem>>, vector<32x128xf32>,
    } else {
    }
    return
  }
  func.func @transform_0(%arg0: i32, %arg1: i32, %arg2: i32) -> (i32, i32) {
    %c0_i32 = arith.constant 0 : i32
    return %arg0, %arg2 : i32, i32
  }
  func.func @transform_1(%arg0: i32, %arg1: i32, %arg2: i32) -> (i32, i32) {
    %c0_i32 = arith.constant 0 : i32
    return %arg2, %arg1 : i32, i32
  }
  func.func @transform_2(%arg0: i32, %arg1: i32, %arg2: i32) -> (i32, i32) {
    %c0_i32 = arith.constant 0 : i32
    %c0_i32_0 = arith.constant 0 : i32
    return %c0_i32, %arg1 : i32, i32
  }
  func.func @transform_3(%arg0: i32, %arg1: i32, %arg2: i32) -> (i32, i32) {
    %c0_i32 = arith.constant 0 : i32
    %c0_i32_0 = arith.constant 0 : i32
    return %c0_i32, %arg1 : i32, i32
  }
  func.func @transform_4(%arg0: i32, %arg1: i32, %arg2: i32) -> (i32, i32) {
    %c0_i32 = arith.constant 0 : i32
    return %arg0, %arg1 : i32, i32
  }
}

module attributes {stable_mosaic.version = 11 : i64} {
  func.func @_mm_bn_kernel(%arg0: i32, %arg1: i32, %arg2: i32, %arg3: memref<16x256xbf16, #tpu.memory_space<vmem>>, %arg4: memref<256x256xbf16, #tpu.memory_space<vmem>>, %arg5: memref<1x256xf32, #tpu.memory_space<vmem>>, %arg6: memref<1x256xf32, #tpu.memory_space<vmem>>, %arg7: memref<16x256xf32, #tpu.memory_space<vmem>>) attributes {dimension_semantics = [#tpu.dimension_semantics<parallel>, #tpu.dimension_semantics<parallel>, #tpu.dimension_semantics<arbitrary>], iteration_bounds = array<i64: 1, 1, 5>, scalar_prefetch = 0 : i64, scratch_operands = 0 : i64, tpu.core_type = #tpu.core_type<tc>, window_params = [{transform_indices = @transform_0, window_bounds = array<i64: 16, 256>}, {transform_indices = @transform_1, window_bounds = array<i64: 256, 256>}, {transform_indices = @transform_2, window_bounds = array<i64: 1, 256>}, {transform_indices = @transform_3, window_bounds = array<i64: 1, 256>}, {transform_indices = @transform_4, window_bounds = array<i64: 16, 256>}]} {
    %c0_i32 = arith.constant 0 : i32
    %0 = arith.cmpi eq, %arg2, %c0_i32 : i32
    %1 = arith.extui %0 : i1 to i32
    %c0_i32_0 = arith.constant 0 : i32
    %2 = arith.cmpi ne, %1, %c0_i32_0 : i32
    scf.if %2 {
      %cst_9 = arith.constant 0.000000e+00 : f32
      %12 = vector.broadcast %cst_9 : f32 to vector<16x256xf32>
      %c0_10 = arith.constant 0 : index
      %c0_11 = arith.constant 0 : index
      %13 = vector.load %arg7[%c0_10, %c0_11] : memref<16x256xf32, #tpu.memory_space<vmem>>, vector<16x256xf32>
      tpu.vector_store %arg7[%c0_10, %c0_11], %12 {strides = array<i32>} : memref<16x256xf32, #tpu.memory_space<vmem>>, vector<16x256xf32>,
    } else {
    }
    %c0 = arith.constant 0 : index
    %c0_1 = arith.constant 0 : index
    %3 = vector.load %arg7[%c0, %c0_1] : memref<16x256xf32, #tpu.memory_space<vmem>>, vector<16x256xf32>
    %c0_2 = arith.constant 0 : index
    %c0_3 = arith.constant 0 : index
    %4 = vector.load %arg3[%c0_2, %c0_3] : memref<16x256xbf16, #tpu.memory_space<vmem>>, vector<16x256xbf16>
    %c0_4 = arith.constant 0 : index
    %c0_5 = arith.constant 0 : index
    %5 = vector.load %arg4[%c0_4, %c0_5] : memref<256x256xbf16, #tpu.memory_space<vmem>>, vector<256x256xbf16>
    %cst = arith.constant dense<0.000000e+00> : vector<16x256xf32>
    %6 = tpu.matmul %4, %5, %cst {dimension_numbers = #tpu.dot_dimension_numbers<[1], [0], [0], [1], [0, 0, 1, 1], [], []>} : vector<16x256xbf16>, vector<256x256xbf16>, vector<16x256xf32> -> vector<16x256xf32>
    %7 = arith.addf %3, %6 : vector<16x256xf32>
    %c0_6 = arith.constant 0 : index
    %c0_7 = arith.constant 0 : index
    %8 = vector.load %arg7[%c0_6, %c0_7] : memref<16x256xf32, #tpu.memory_space<vmem>>, vector<16x256xf32>
    tpu.vector_store %arg7[%c0_6, %c0_7], %7 {strides = array<i32>} : memref<16x256xf32, #tpu.memory_space<vmem>>, vector<16x256xf32>,
    %c4_i32 = arith.constant 4 : i32
    %9 = arith.cmpi eq, %arg2, %c4_i32 : i32
    %10 = arith.extui %9 : i1 to i32
    %c0_i32_8 = arith.constant 0 : i32
    %11 = arith.cmpi ne, %10, %c0_i32_8 : i32
    scf.if %11 {
      %c0_9 = arith.constant 0 : index
      %c0_10 = arith.constant 0 : index
      %12 = vector.load %arg7[%c0_9, %c0_10] : memref<16x256xf32, #tpu.memory_space<vmem>>, vector<16x256xf32>
      %c0_11 = arith.constant 0 : index
      %c0_12 = arith.constant 0 : index
      %13 = vector.load %arg5[%c0_11, %c0_12] : memref<1x256xf32, #tpu.memory_space<vmem>>, vector<1x256xf32>
      %14 = vector.broadcast %13 : vector<1x256xf32> to vector<16x256xf32>
      %15 = arith.mulf %12, %14 : vector<16x256xf32>
      %c0_13 = arith.constant 0 : index
      %c0_14 = arith.constant 0 : index
      %16 = vector.load %arg6[%c0_13, %c0_14] : memref<1x256xf32, #tpu.memory_space<vmem>>, vector<1x256xf32>
      %17 = vector.broadcast %16 : vector<1x256xf32> to vector<16x256xf32>
      %18 = arith.addf %15, %17 : vector<16x256xf32>
      %cst_15 = arith.constant 0.000000e+00 : f32
      %19 = vector.broadcast %cst_15 : f32 to vector<16x256xf32>
      %20 = arith.maximumf %18, %19 : vector<16x256xf32>
      %c0_16 = arith.constant 0 : index
      %c0_17 = arith.constant 0 : index
      %21 = vector.load %arg7[%c0_16, %c0_17] : memref<16x256xf32, #tpu.memory_space<vmem>>, vector<16x256xf32>
      tpu.vector_store %arg7[%c0_16, %c0_17], %20 {strides = array<i32>} : memref<16x256xf32, #tpu.memory_space<vmem>>, vector<16x256xf32>,
    } else {
    }
    return
  }
  func.func @transform_0(%arg0: i32, %arg1: i32, %arg2: i32) -> (i32, i32) {
    %c0_i32 = arith.constant 0 : i32
    return %arg0, %arg2 : i32, i32
  }
  func.func @transform_1(%arg0: i32, %arg1: i32, %arg2: i32) -> (i32, i32) {
    %c0_i32 = arith.constant 0 : i32
    return %arg2, %arg1 : i32, i32
  }
  func.func @transform_2(%arg0: i32, %arg1: i32, %arg2: i32) -> (i32, i32) {
    %c0_i32 = arith.constant 0 : i32
    %c0_i32_0 = arith.constant 0 : i32
    return %c0_i32, %arg1 : i32, i32
  }
  func.func @transform_3(%arg0: i32, %arg1: i32, %arg2: i32) -> (i32, i32) {
    %c0_i32 = arith.constant 0 : i32
    %c0_i32_0 = arith.constant 0 : i32
    return %c0_i32, %arg1 : i32, i32
  }
  func.func @transform_4(%arg0: i32, %arg1: i32, %arg2: i32) -> (i32, i32) {
    %c0_i32 = arith.constant 0 : i32
    return %arg0, %arg1 : i32, i32
  }
}

module attributes {stable_mosaic.version = 11 : i64} {
  func.func @_mm_bn_kernel(%arg0: i32, %arg1: i32, %arg2: i32, %arg3: memref<16x128xbf16, #tpu.memory_space<vmem>>, %arg4: memref<128x256xbf16, #tpu.memory_space<vmem>>, %arg5: memref<1x256xf32, #tpu.memory_space<vmem>>, %arg6: memref<1x256xf32, #tpu.memory_space<vmem>>, %arg7: memref<16x256xf32, #tpu.memory_space<vmem>>) attributes {dimension_semantics = [#tpu.dimension_semantics<parallel>, #tpu.dimension_semantics<parallel>, #tpu.dimension_semantics<arbitrary>], iteration_bounds = array<i64: 1, 1, 1>, scalar_prefetch = 0 : i64, scratch_operands = 0 : i64, tpu.core_type = #tpu.core_type<tc>, window_params = [{transform_indices = @transform_0, window_bounds = array<i64: 16, 128>}, {transform_indices = @transform_1, window_bounds = array<i64: 128, 256>}, {transform_indices = @transform_2, window_bounds = array<i64: 1, 256>}, {transform_indices = @transform_3, window_bounds = array<i64: 1, 256>}, {transform_indices = @transform_4, window_bounds = array<i64: 16, 256>}]} {
    %c0_i32 = arith.constant 0 : i32
    %0 = arith.cmpi eq, %arg2, %c0_i32 : i32
    %1 = arith.extui %0 : i1 to i32
    %c0_i32_0 = arith.constant 0 : i32
    %2 = arith.cmpi ne, %1, %c0_i32_0 : i32
    scf.if %2 {
      %cst_10 = arith.constant 0.000000e+00 : f32
      %12 = vector.broadcast %cst_10 : f32 to vector<16x256xf32>
      %c0_11 = arith.constant 0 : index
      %c0_12 = arith.constant 0 : index
      %13 = vector.load %arg7[%c0_11, %c0_12] : memref<16x256xf32, #tpu.memory_space<vmem>>, vector<16x256xf32>
      tpu.vector_store %arg7[%c0_11, %c0_12], %12 {strides = array<i32>} : memref<16x256xf32, #tpu.memory_space<vmem>>, vector<16x256xf32>,
    } else {
    }
    %c0 = arith.constant 0 : index
    %c0_1 = arith.constant 0 : index
    %3 = vector.load %arg7[%c0, %c0_1] : memref<16x256xf32, #tpu.memory_space<vmem>>, vector<16x256xf32>
    %c0_2 = arith.constant 0 : index
    %c0_3 = arith.constant 0 : index
    %4 = vector.load %arg3[%c0_2, %c0_3] : memref<16x128xbf16, #tpu.memory_space<vmem>>, vector<16x128xbf16>
    %c0_4 = arith.constant 0 : index
    %c0_5 = arith.constant 0 : index
    %5 = vector.load %arg4[%c0_4, %c0_5] : memref<128x256xbf16, #tpu.memory_space<vmem>>, vector<128x256xbf16>
    %cst = arith.constant dense<0.000000e+00> : vector<16x256xf32>
    %6 = tpu.matmul %4, %5, %cst {dimension_numbers = #tpu.dot_dimension_numbers<[1], [0], [0], [1], [0, 0, 1, 1], [], []>} : vector<16x128xbf16>, vector<128x256xbf16>, vector<16x256xf32> -> vector<16x256xf32>
    %7 = arith.addf %3, %6 : vector<16x256xf32>
    %c0_6 = arith.constant 0 : index
    %c0_7 = arith.constant 0 : index
    %8 = vector.load %arg7[%c0_6, %c0_7] : memref<16x256xf32, #tpu.memory_space<vmem>>, vector<16x256xf32>
    tpu.vector_store %arg7[%c0_6, %c0_7], %7 {strides = array<i32>} : memref<16x256xf32, #tpu.memory_space<vmem>>, vector<16x256xf32>,
    %c0_i32_8 = arith.constant 0 : i32
    %9 = arith.cmpi eq, %arg2, %c0_i32_8 : i32
    %10 = arith.extui %9 : i1 to i32
    %c0_i32_9 = arith.constant 0 : i32
    %11 = arith.cmpi ne, %10, %c0_i32_9 : i32
    scf.if %11 {
      %c0_10 = arith.constant 0 : index
      %c0_11 = arith.constant 0 : index
      %12 = vector.load %arg7[%c0_10, %c0_11] : memref<16x256xf32, #tpu.memory_space<vmem>>, vector<16x256xf32>
      %c0_12 = arith.constant 0 : index
      %c0_13 = arith.constant 0 : index
      %13 = vector.load %arg5[%c0_12, %c0_13] : memref<1x256xf32, #tpu.memory_space<vmem>>, vector<1x256xf32>
      %14 = vector.broadcast %13 : vector<1x256xf32> to vector<16x256xf32>
      %15 = arith.mulf %12, %14 : vector<16x256xf32>
      %c0_14 = arith.constant 0 : index
      %c0_15 = arith.constant 0 : index
      %16 = vector.load %arg6[%c0_14, %c0_15] : memref<1x256xf32, #tpu.memory_space<vmem>>, vector<1x256xf32>
      %17 = vector.broadcast %16 : vector<1x256xf32> to vector<16x256xf32>
      %18 = arith.addf %15, %17 : vector<16x256xf32>
      %c0_16 = arith.constant 0 : index
      %c0_17 = arith.constant 0 : index
      %19 = vector.load %arg7[%c0_16, %c0_17] : memref<16x256xf32, #tpu.memory_space<vmem>>, vector<16x256xf32>
      tpu.vector_store %arg7[%c0_16, %c0_17], %18 {strides = array<i32>} : memref<16x256xf32, #tpu.memory_space<vmem>>, vector<16x256xf32>,
    } else {
    }
    return
  }
  func.func @transform_0(%arg0: i32, %arg1: i32, %arg2: i32) -> (i32, i32) {
    %c0_i32 = arith.constant 0 : i32
    return %arg0, %arg2 : i32, i32
  }
  func.func @transform_1(%arg0: i32, %arg1: i32, %arg2: i32) -> (i32, i32) {
    %c0_i32 = arith.constant 0 : i32
    return %arg2, %arg1 : i32, i32
  }
  func.func @transform_2(%arg0: i32, %arg1: i32, %arg2: i32) -> (i32, i32) {
    %c0_i32 = arith.constant 0 : i32
    %c0_i32_0 = arith.constant 0 : i32
    return %c0_i32, %arg1 : i32, i32
  }
  func.func @transform_3(%arg0: i32, %arg1: i32, %arg2: i32) -> (i32, i32) {
    %c0_i32 = arith.constant 0 : i32
    %c0_i32_0 = arith.constant 0 : i32
    return %c0_i32, %arg1 : i32, i32
  }
  func.func @transform_4(%arg0: i32, %arg1: i32, %arg2: i32) -> (i32, i32) {
    %c0_i32 = arith.constant 0 : i32
    return %arg0, %arg1 : i32, i32
  }
}

module attributes {stable_mosaic.version = 11 : i64} {
  func.func @_mm_bn_kernel(%arg0: i32, %arg1: i32, %arg2: i32, %arg3: memref<16x256xbf16, #tpu.memory_space<vmem>>, %arg4: memref<256x256xbf16, #tpu.memory_space<vmem>>, %arg5: memref<1x256xf32, #tpu.memory_space<vmem>>, %arg6: memref<1x256xf32, #tpu.memory_space<vmem>>, %arg7: memref<16x256xf32, #tpu.memory_space<vmem>>, %arg8: memref<16x256xf32, #tpu.memory_space<vmem>>) attributes {dimension_semantics = [#tpu.dimension_semantics<parallel>, #tpu.dimension_semantics<parallel>, #tpu.dimension_semantics<arbitrary>], iteration_bounds = array<i64: 1, 1, 9>, scalar_prefetch = 0 : i64, scratch_operands = 0 : i64, tpu.core_type = #tpu.core_type<tc>, window_params = [{transform_indices = @transform_0, window_bounds = array<i64: 16, 256>}, {transform_indices = @transform_1, window_bounds = array<i64: 256, 256>}, {transform_indices = @transform_2, window_bounds = array<i64: 1, 256>}, {transform_indices = @transform_3, window_bounds = array<i64: 1, 256>}, {transform_indices = @transform_4, window_bounds = array<i64: 16, 256>}, {transform_indices = @transform_5, window_bounds = array<i64: 16, 256>}]} {
    %c0_i32 = arith.constant 0 : i32
    %0 = arith.cmpi eq, %arg2, %c0_i32 : i32
    %1 = arith.extui %0 : i1 to i32
    %c0_i32_0 = arith.constant 0 : i32
    %2 = arith.cmpi ne, %1, %c0_i32_0 : i32
    scf.if %2 {
      %cst_9 = arith.constant 0.000000e+00 : f32
      %12 = vector.broadcast %cst_9 : f32 to vector<16x256xf32>
      %c0_10 = arith.constant 0 : index
      %c0_11 = arith.constant 0 : index
      %13 = vector.load %arg8[%c0_10, %c0_11] : memref<16x256xf32, #tpu.memory_space<vmem>>, vector<16x256xf32>
      tpu.vector_store %arg8[%c0_10, %c0_11], %12 {strides = array<i32>} : memref<16x256xf32, #tpu.memory_space<vmem>>, vector<16x256xf32>,
    } else {
    }
    %c0 = arith.constant 0 : index
    %c0_1 = arith.constant 0 : index
    %3 = vector.load %arg8[%c0, %c0_1] : memref<16x256xf32, #tpu.memory_space<vmem>>, vector<16x256xf32>
    %c0_2 = arith.constant 0 : index
    %c0_3 = arith.constant 0 : index
    %4 = vector.load %arg3[%c0_2, %c0_3] : memref<16x256xbf16, #tpu.memory_space<vmem>>, vector<16x256xbf16>
    %c0_4 = arith.constant 0 : index
    %c0_5 = arith.constant 0 : index
    %5 = vector.load %arg4[%c0_4, %c0_5] : memref<256x256xbf16, #tpu.memory_space<vmem>>, vector<256x256xbf16>
    %cst = arith.constant dense<0.000000e+00> : vector<16x256xf32>
    %6 = tpu.matmul %4, %5, %cst {dimension_numbers = #tpu.dot_dimension_numbers<[1], [0], [0], [1], [0, 0, 1, 1], [], []>} : vector<16x256xbf16>, vector<256x256xbf16>, vector<16x256xf32> -> vector<16x256xf32>
    %7 = arith.addf %3, %6 : vector<16x256xf32>
    %c0_6 = arith.constant 0 : index
    %c0_7 = arith.constant 0 : index
    %8 = vector.load %arg8[%c0_6, %c0_7] : memref<16x256xf32, #tpu.memory_space<vmem>>, vector<16x256xf32>
    tpu.vector_store %arg8[%c0_6, %c0_7], %7 {strides = array<i32>} : memref<16x256xf32, #tpu.memory_space<vmem>>, vector<16x256xf32>,
    %c8_i32 = arith.constant 8 : i32
    %9 = arith.cmpi eq, %arg2, %c8_i32 : i32
    %10 = arith.extui %9 : i1 to i32
    %c0_i32_8 = arith.constant 0 : i32
    %11 = arith.cmpi ne, %10, %c0_i32_8 : i32
    scf.if %11 {
      %c0_9 = arith.constant 0 : index
      %c0_10 = arith.constant 0 : index
      %12 = vector.load %arg8[%c0_9, %c0_10] : memref<16x256xf32, #tpu.memory_space<vmem>>, vector<16x256xf32>
      %c0_11 = arith.constant 0 : index
      %c0_12 = arith.constant 0 : index
      %13 = vector.load %arg5[%c0_11, %c0_12] : memref<1x256xf32, #tpu.memory_space<vmem>>, vector<1x256xf32>
      %14 = vector.broadcast %13 : vector<1x256xf32> to vector<16x256xf32>
      %15 = arith.mulf %12, %14 : vector<16x256xf32>
      %c0_13 = arith.constant 0 : index
      %c0_14 = arith.constant 0 : index
      %16 = vector.load %arg6[%c0_13, %c0_14] : memref<1x256xf32, #tpu.memory_space<vmem>>, vector<1x256xf32>
      %17 = vector.broadcast %16 : vector<1x256xf32> to vector<16x256xf32>
      %18 = arith.addf %15, %17 : vector<16x256xf32>
      %c0_15 = arith.constant 0 : index
      %c0_16 = arith.constant 0 : index
      %19 = vector.load %arg7[%c0_15, %c0_16] : memref<16x256xf32, #tpu.memory_space<vmem>>, vector<16x256xf32>
      %20 = arith.addf %18, %19 : vector<16x256xf32>
      %cst_17 = arith.constant 0.000000e+00 : f32
      %21 = vector.broadcast %cst_17 : f32 to vector<16x256xf32>
      %22 = arith.maximumf %20, %21 : vector<16x256xf32>
      %c0_18 = arith.constant 0 : index
      %c0_19 = arith.constant 0 : index
      %23 = vector.load %arg8[%c0_18, %c0_19] : memref<16x256xf32, #tpu.memory_space<vmem>>, vector<16x256xf32>
      tpu.vector_store %arg8[%c0_18, %c0_19], %22 {strides = array<i32>} : memref<16x256xf32, #tpu.memory_space<vmem>>, vector<16x256xf32>,
    } else {
    }
    return
  }
  func.func @transform_0(%arg0: i32, %arg1: i32, %arg2: i32) -> (i32, i32) {
    %c0_i32 = arith.constant 0 : i32
    return %arg0, %arg2 : i32, i32
  }
  func.func @transform_1(%arg0: i32, %arg1: i32, %arg2: i32) -> (i32, i32) {
    %c0_i32 = arith.constant 0 : i32
    return %arg2, %arg1 : i32, i32
  }
  func.func @transform_2(%arg0: i32, %arg1: i32, %arg2: i32) -> (i32, i32) {
    %c0_i32 = arith.constant 0 : i32
    %c0_i32_0 = arith.constant 0 : i32
    return %c0_i32, %arg1 : i32, i32
  }
  func.func @transform_3(%arg0: i32, %arg1: i32, %arg2: i32) -> (i32, i32) {
    %c0_i32 = arith.constant 0 : i32
    %c0_i32_0 = arith.constant 0 : i32
    return %c0_i32, %arg1 : i32, i32
  }
  func.func @transform_4(%arg0: i32, %arg1: i32, %arg2: i32) -> (i32, i32) {
    %c0_i32 = arith.constant 0 : i32
    return %arg0, %arg1 : i32, i32
  }
  func.func @transform_5(%arg0: i32, %arg1: i32, %arg2: i32) -> (i32, i32) {
    %c0_i32 = arith.constant 0 : i32
    return %arg0, %arg1 : i32, i32
  }
}

module attributes {stable_mosaic.version = 11 : i64} {
  func.func @_mm_bn_kernel(%arg0: i32, %arg1: i32, %arg2: i32, %arg3: memref<16x256xbf16, #tpu.memory_space<vmem>>, %arg4: memref<256x256xbf16, #tpu.memory_space<vmem>>, %arg5: memref<1x256xf32, #tpu.memory_space<vmem>>, %arg6: memref<1x256xf32, #tpu.memory_space<vmem>>, %arg7: memref<16x256xf32, #tpu.memory_space<vmem>>) attributes {dimension_semantics = [#tpu.dimension_semantics<parallel>, #tpu.dimension_semantics<parallel>, #tpu.dimension_semantics<arbitrary>], iteration_bounds = array<i64: 1, 1, 9>, scalar_prefetch = 0 : i64, scratch_operands = 0 : i64, tpu.core_type = #tpu.core_type<tc>, window_params = [{transform_indices = @transform_0, window_bounds = array<i64: 16, 256>}, {transform_indices = @transform_1, window_bounds = array<i64: 256, 256>}, {transform_indices = @transform_2, window_bounds = array<i64: 1, 256>}, {transform_indices = @transform_3, window_bounds = array<i64: 1, 256>}, {transform_indices = @transform_4, window_bounds = array<i64: 16, 256>}]} {
    %c0_i32 = arith.constant 0 : i32
    %0 = arith.cmpi eq, %arg2, %c0_i32 : i32
    %1 = arith.extui %0 : i1 to i32
    %c0_i32_0 = arith.constant 0 : i32
    %2 = arith.cmpi ne, %1, %c0_i32_0 : i32
    scf.if %2 {
      %cst_9 = arith.constant 0.000000e+00 : f32
      %12 = vector.broadcast %cst_9 : f32 to vector<16x256xf32>
      %c0_10 = arith.constant 0 : index
      %c0_11 = arith.constant 0 : index
      %13 = vector.load %arg7[%c0_10, %c0_11] : memref<16x256xf32, #tpu.memory_space<vmem>>, vector<16x256xf32>
      tpu.vector_store %arg7[%c0_10, %c0_11], %12 {strides = array<i32>} : memref<16x256xf32, #tpu.memory_space<vmem>>, vector<16x256xf32>,
    } else {
    }
    %c0 = arith.constant 0 : index
    %c0_1 = arith.constant 0 : index
    %3 = vector.load %arg7[%c0, %c0_1] : memref<16x256xf32, #tpu.memory_space<vmem>>, vector<16x256xf32>
    %c0_2 = arith.constant 0 : index
    %c0_3 = arith.constant 0 : index
    %4 = vector.load %arg3[%c0_2, %c0_3] : memref<16x256xbf16, #tpu.memory_space<vmem>>, vector<16x256xbf16>
    %c0_4 = arith.constant 0 : index
    %c0_5 = arith.constant 0 : index
    %5 = vector.load %arg4[%c0_4, %c0_5] : memref<256x256xbf16, #tpu.memory_space<vmem>>, vector<256x256xbf16>
    %cst = arith.constant dense<0.000000e+00> : vector<16x256xf32>
    %6 = tpu.matmul %4, %5, %cst {dimension_numbers = #tpu.dot_dimension_numbers<[1], [0], [0], [1], [0, 0, 1, 1], [], []>} : vector<16x256xbf16>, vector<256x256xbf16>, vector<16x256xf32> -> vector<16x256xf32>
    %7 = arith.addf %3, %6 : vector<16x256xf32>
    %c0_6 = arith.constant 0 : index
    %c0_7 = arith.constant 0 : index
    %8 = vector.load %arg7[%c0_6, %c0_7] : memref<16x256xf32, #tpu.memory_space<vmem>>, vector<16x256xf32>
    tpu.vector_store %arg7[%c0_6, %c0_7], %7 {strides = array<i32>} : memref<16x256xf32, #tpu.memory_space<vmem>>, vector<16x256xf32>,
    %c8_i32 = arith.constant 8 : i32
    %9 = arith.cmpi eq, %arg2, %c8_i32 : i32
    %10 = arith.extui %9 : i1 to i32
    %c0_i32_8 = arith.constant 0 : i32
    %11 = arith.cmpi ne, %10, %c0_i32_8 : i32
    scf.if %11 {
      %c0_9 = arith.constant 0 : index
      %c0_10 = arith.constant 0 : index
      %12 = vector.load %arg7[%c0_9, %c0_10] : memref<16x256xf32, #tpu.memory_space<vmem>>, vector<16x256xf32>
      %c0_11 = arith.constant 0 : index
      %c0_12 = arith.constant 0 : index
      %13 = vector.load %arg5[%c0_11, %c0_12] : memref<1x256xf32, #tpu.memory_space<vmem>>, vector<1x256xf32>
      %14 = vector.broadcast %13 : vector<1x256xf32> to vector<16x256xf32>
      %15 = arith.mulf %12, %14 : vector<16x256xf32>
      %c0_13 = arith.constant 0 : index
      %c0_14 = arith.constant 0 : index
      %16 = vector.load %arg6[%c0_13, %c0_14] : memref<1x256xf32, #tpu.memory_space<vmem>>, vector<1x256xf32>
      %17 = vector.broadcast %16 : vector<1x256xf32> to vector<16x256xf32>
      %18 = arith.addf %15, %17 : vector<16x256xf32>
      %cst_15 = arith.constant 0.000000e+00 : f32
      %19 = vector.broadcast %cst_15 : f32 to vector<16x256xf32>
      %20 = arith.maximumf %18, %19 : vector<16x256xf32>
      %c0_16 = arith.constant 0 : index
      %c0_17 = arith.constant 0 : index
      %21 = vector.load %arg7[%c0_16, %c0_17] : memref<16x256xf32, #tpu.memory_space<vmem>>, vector<16x256xf32>
      tpu.vector_store %arg7[%c0_16, %c0_17], %20 {strides = array<i32>} : memref<16x256xf32, #tpu.memory_space<vmem>>, vector<16x256xf32>,
    } else {
    }
    return
  }
  func.func @transform_0(%arg0: i32, %arg1: i32, %arg2: i32) -> (i32, i32) {
    %c0_i32 = arith.constant 0 : i32
    return %arg0, %arg2 : i32, i32
  }
  func.func @transform_1(%arg0: i32, %arg1: i32, %arg2: i32) -> (i32, i32) {
    %c0_i32 = arith.constant 0 : i32
    return %arg2, %arg1 : i32, i32
  }
  func.func @transform_2(%arg0: i32, %arg1: i32, %arg2: i32) -> (i32, i32) {
    %c0_i32 = arith.constant 0 : i32
    %c0_i32_0 = arith.constant 0 : i32
    return %c0_i32, %arg1 : i32, i32
  }
  func.func @transform_3(%arg0: i32, %arg1: i32, %arg2: i32) -> (i32, i32) {
    %c0_i32 = arith.constant 0 : i32
    %c0_i32_0 = arith.constant 0 : i32
    return %c0_i32, %arg1 : i32, i32
  }
  func.func @transform_4(%arg0: i32, %arg1: i32, %arg2: i32) -> (i32, i32) {
    %c0_i32 = arith.constant 0 : i32
    return %arg0, %arg1 : i32, i32
  }
}

module attributes {stable_mosaic.version = 11 : i64} {
  func.func @_mm_bn_kernel(%arg0: i32, %arg1: i32, %arg2: i32, %arg3: memref<16x256xbf16, #tpu.memory_space<vmem>>, %arg4: memref<256x256xbf16, #tpu.memory_space<vmem>>, %arg5: memref<1x256xf32, #tpu.memory_space<vmem>>, %arg6: memref<1x256xf32, #tpu.memory_space<vmem>>, %arg7: memref<16x256xf32, #tpu.memory_space<vmem>>) attributes {dimension_semantics = [#tpu.dimension_semantics<parallel>, #tpu.dimension_semantics<parallel>, #tpu.dimension_semantics<arbitrary>], iteration_bounds = array<i64: 1, 2, 9>, scalar_prefetch = 0 : i64, scratch_operands = 0 : i64, tpu.core_type = #tpu.core_type<tc>, window_params = [{transform_indices = @transform_0, window_bounds = array<i64: 16, 256>}, {transform_indices = @transform_1, window_bounds = array<i64: 256, 256>}, {transform_indices = @transform_2, window_bounds = array<i64: 1, 256>}, {transform_indices = @transform_3, window_bounds = array<i64: 1, 256>}, {transform_indices = @transform_4, window_bounds = array<i64: 16, 256>}]} {
    %c0_i32 = arith.constant 0 : i32
    %0 = arith.cmpi eq, %arg2, %c0_i32 : i32
    %1 = arith.extui %0 : i1 to i32
    %c0_i32_0 = arith.constant 0 : i32
    %2 = arith.cmpi ne, %1, %c0_i32_0 : i32
    scf.if %2 {
      %cst_9 = arith.constant 0.000000e+00 : f32
      %12 = vector.broadcast %cst_9 : f32 to vector<16x256xf32>
      %c0_10 = arith.constant 0 : index
      %c0_11 = arith.constant 0 : index
      %13 = vector.load %arg7[%c0_10, %c0_11] : memref<16x256xf32, #tpu.memory_space<vmem>>, vector<16x256xf32>
      tpu.vector_store %arg7[%c0_10, %c0_11], %12 {strides = array<i32>} : memref<16x256xf32, #tpu.memory_space<vmem>>, vector<16x256xf32>,
    } else {
    }
    %c0 = arith.constant 0 : index
    %c0_1 = arith.constant 0 : index
    %3 = vector.load %arg7[%c0, %c0_1] : memref<16x256xf32, #tpu.memory_space<vmem>>, vector<16x256xf32>
    %c0_2 = arith.constant 0 : index
    %c0_3 = arith.constant 0 : index
    %4 = vector.load %arg3[%c0_2, %c0_3] : memref<16x256xbf16, #tpu.memory_space<vmem>>, vector<16x256xbf16>
    %c0_4 = arith.constant 0 : index
    %c0_5 = arith.constant 0 : index
    %5 = vector.load %arg4[%c0_4, %c0_5] : memref<256x256xbf16, #tpu.memory_space<vmem>>, vector<256x256xbf16>
    %cst = arith.constant dense<0.000000e+00> : vector<16x256xf32>
    %6 = tpu.matmul %4, %5, %cst {dimension_numbers = #tpu.dot_dimension_numbers<[1], [0], [0], [1], [0, 0, 1, 1], [], []>} : vector<16x256xbf16>, vector<256x256xbf16>, vector<16x256xf32> -> vector<16x256xf32>
    %7 = arith.addf %3, %6 : vector<16x256xf32>
    %c0_6 = arith.constant 0 : index
    %c0_7 = arith.constant 0 : index
    %8 = vector.load %arg7[%c0_6, %c0_7] : memref<16x256xf32, #tpu.memory_space<vmem>>, vector<16x256xf32>
    tpu.vector_store %arg7[%c0_6, %c0_7], %7 {strides = array<i32>} : memref<16x256xf32, #tpu.memory_space<vmem>>, vector<16x256xf32>,
    %c8_i32 = arith.constant 8 : i32
    %9 = arith.cmpi eq, %arg2, %c8_i32 : i32
    %10 = arith.extui %9 : i1 to i32
    %c0_i32_8 = arith.constant 0 : i32
    %11 = arith.cmpi ne, %10, %c0_i32_8 : i32
    scf.if %11 {
      %c0_9 = arith.constant 0 : index
      %c0_10 = arith.constant 0 : index
      %12 = vector.load %arg7[%c0_9, %c0_10] : memref<16x256xf32, #tpu.memory_space<vmem>>, vector<16x256xf32>
      %c0_11 = arith.constant 0 : index
      %c0_12 = arith.constant 0 : index
      %13 = vector.load %arg5[%c0_11, %c0_12] : memref<1x256xf32, #tpu.memory_space<vmem>>, vector<1x256xf32>
      %14 = vector.broadcast %13 : vector<1x256xf32> to vector<16x256xf32>
      %15 = arith.mulf %12, %14 : vector<16x256xf32>
      %c0_13 = arith.constant 0 : index
      %c0_14 = arith.constant 0 : index
      %16 = vector.load %arg6[%c0_13, %c0_14] : memref<1x256xf32, #tpu.memory_space<vmem>>, vector<1x256xf32>
      %17 = vector.broadcast %16 : vector<1x256xf32> to vector<16x256xf32>
      %18 = arith.addf %15, %17 : vector<16x256xf32>
      %cst_15 = arith.constant 0.000000e+00 : f32
      %19 = vector.broadcast %cst_15 : f32 to vector<16x256xf32>
      %20 = arith.maximumf %18, %19 : vector<16x256xf32>
      %c0_16 = arith.constant 0 : index
      %c0_17 = arith.constant 0 : index
      %21 = vector.load %arg7[%c0_16, %c0_17] : memref<16x256xf32, #tpu.memory_space<vmem>>, vector<16x256xf32>
      tpu.vector_store %arg7[%c0_16, %c0_17], %20 {strides = array<i32>} : memref<16x256xf32, #tpu.memory_space<vmem>>, vector<16x256xf32>,
    } else {
    }
    return
  }
  func.func @transform_0(%arg0: i32, %arg1: i32, %arg2: i32) -> (i32, i32) {
    %c0_i32 = arith.constant 0 : i32
    return %arg0, %arg2 : i32, i32
  }
  func.func @transform_1(%arg0: i32, %arg1: i32, %arg2: i32) -> (i32, i32) {
    %c0_i32 = arith.constant 0 : i32
    return %arg2, %arg1 : i32, i32
  }
  func.func @transform_2(%arg0: i32, %arg1: i32, %arg2: i32) -> (i32, i32) {
    %c0_i32 = arith.constant 0 : i32
    %c0_i32_0 = arith.constant 0 : i32
    return %c0_i32, %arg1 : i32, i32
  }
  func.func @transform_3(%arg0: i32, %arg1: i32, %arg2: i32) -> (i32, i32) {
    %c0_i32 = arith.constant 0 : i32
    %c0_i32_0 = arith.constant 0 : i32
    return %c0_i32, %arg1 : i32, i32
  }
  func.func @transform_4(%arg0: i32, %arg1: i32, %arg2: i32) -> (i32, i32) {
    %c0_i32 = arith.constant 0 : i32
    return %arg0, %arg1 : i32, i32
  }
}

module attributes {stable_mosaic.version = 11 : i64} {
  func.func @_mm_bn_kernel(%arg0: i32, %arg1: i32, %arg2: i32, %arg3: memref<16x256xbf16, #tpu.memory_space<vmem>>, %arg4: memref<256x256xbf16, #tpu.memory_space<vmem>>, %arg5: memref<1x256xf32, #tpu.memory_space<vmem>>, %arg6: memref<1x256xf32, #tpu.memory_space<vmem>>, %arg7: memref<16x256xf32, #tpu.memory_space<vmem>>) attributes {dimension_semantics = [#tpu.dimension_semantics<parallel>, #tpu.dimension_semantics<parallel>, #tpu.dimension_semantics<arbitrary>], iteration_bounds = array<i64: 1, 2, 1>, scalar_prefetch = 0 : i64, scratch_operands = 0 : i64, tpu.core_type = #tpu.core_type<tc>, window_params = [{transform_indices = @transform_0, window_bounds = array<i64: 16, 256>}, {transform_indices = @transform_1, window_bounds = array<i64: 256, 256>}, {transform_indices = @transform_2, window_bounds = array<i64: 1, 256>}, {transform_indices = @transform_3, window_bounds = array<i64: 1, 256>}, {transform_indices = @transform_4, window_bounds = array<i64: 16, 256>}]} {
    %c0_i32 = arith.constant 0 : i32
    %0 = arith.cmpi eq, %arg2, %c0_i32 : i32
    %1 = arith.extui %0 : i1 to i32
    %c0_i32_0 = arith.constant 0 : i32
    %2 = arith.cmpi ne, %1, %c0_i32_0 : i32
    scf.if %2 {
      %cst_10 = arith.constant 0.000000e+00 : f32
      %12 = vector.broadcast %cst_10 : f32 to vector<16x256xf32>
      %c0_11 = arith.constant 0 : index
      %c0_12 = arith.constant 0 : index
      %13 = vector.load %arg7[%c0_11, %c0_12] : memref<16x256xf32, #tpu.memory_space<vmem>>, vector<16x256xf32>
      tpu.vector_store %arg7[%c0_11, %c0_12], %12 {strides = array<i32>} : memref<16x256xf32, #tpu.memory_space<vmem>>, vector<16x256xf32>,
    } else {
    }
    %c0 = arith.constant 0 : index
    %c0_1 = arith.constant 0 : index
    %3 = vector.load %arg7[%c0, %c0_1] : memref<16x256xf32, #tpu.memory_space<vmem>>, vector<16x256xf32>
    %c0_2 = arith.constant 0 : index
    %c0_3 = arith.constant 0 : index
    %4 = vector.load %arg3[%c0_2, %c0_3] : memref<16x256xbf16, #tpu.memory_space<vmem>>, vector<16x256xbf16>
    %c0_4 = arith.constant 0 : index
    %c0_5 = arith.constant 0 : index
    %5 = vector.load %arg4[%c0_4, %c0_5] : memref<256x256xbf16, #tpu.memory_space<vmem>>, vector<256x256xbf16>
    %cst = arith.constant dense<0.000000e+00> : vector<16x256xf32>
    %6 = tpu.matmul %4, %5, %cst {dimension_numbers = #tpu.dot_dimension_numbers<[1], [0], [0], [1], [0, 0, 1, 1], [], []>} : vector<16x256xbf16>, vector<256x256xbf16>, vector<16x256xf32> -> vector<16x256xf32>
    %7 = arith.addf %3, %6 : vector<16x256xf32>
    %c0_6 = arith.constant 0 : index
    %c0_7 = arith.constant 0 : index
    %8 = vector.load %arg7[%c0_6, %c0_7] : memref<16x256xf32, #tpu.memory_space<vmem>>, vector<16x256xf32>
    tpu.vector_store %arg7[%c0_6, %c0_7], %7 {strides = array<i32>} : memref<16x256xf32, #tpu.memory_space<vmem>>, vector<16x256xf32>,
    %c0_i32_8 = arith.constant 0 : i32
    %9 = arith.cmpi eq, %arg2, %c0_i32_8 : i32
    %10 = arith.extui %9 : i1 to i32
    %c0_i32_9 = arith.constant 0 : i32
    %11 = arith.cmpi ne, %10, %c0_i32_9 : i32
    scf.if %11 {
      %c0_10 = arith.constant 0 : index
      %c0_11 = arith.constant 0 : index
      %12 = vector.load %arg7[%c0_10, %c0_11] : memref<16x256xf32, #tpu.memory_space<vmem>>, vector<16x256xf32>
      %c0_12 = arith.constant 0 : index
      %c0_13 = arith.constant 0 : index
      %13 = vector.load %arg5[%c0_12, %c0_13] : memref<1x256xf32, #tpu.memory_space<vmem>>, vector<1x256xf32>
      %14 = vector.broadcast %13 : vector<1x256xf32> to vector<16x256xf32>
      %15 = arith.mulf %12, %14 : vector<16x256xf32>
      %c0_14 = arith.constant 0 : index
      %c0_15 = arith.constant 0 : index
      %16 = vector.load %arg6[%c0_14, %c0_15] : memref<1x256xf32, #tpu.memory_space<vmem>>, vector<1x256xf32>
      %17 = vector.broadcast %16 : vector<1x256xf32> to vector<16x256xf32>
      %18 = arith.addf %15, %17 : vector<16x256xf32>
      %c0_16 = arith.constant 0 : index
      %c0_17 = arith.constant 0 : index
      %19 = vector.load %arg7[%c0_16, %c0_17] : memref<16x256xf32, #tpu.memory_space<vmem>>, vector<16x256xf32>
      tpu.vector_store %arg7[%c0_16, %c0_17], %18 {strides = array<i32>} : memref<16x256xf32, #tpu.memory_space<vmem>>, vector<16x256xf32>,
    } else {
    }
    return
  }
  func.func @transform_0(%arg0: i32, %arg1: i32, %arg2: i32) -> (i32, i32) {
    %c0_i32 = arith.constant 0 : i32
    return %arg0, %arg2 : i32, i32
  }
  func.func @transform_1(%arg0: i32, %arg1: i32, %arg2: i32) -> (i32, i32) {
    %c0_i32 = arith.constant 0 : i32
    return %arg2, %arg1 : i32, i32
  }
  func.func @transform_2(%arg0: i32, %arg1: i32, %arg2: i32) -> (i32, i32) {
    %c0_i32 = arith.constant 0 : i32
    %c0_i32_0 = arith.constant 0 : i32
    return %c0_i32, %arg1 : i32, i32
  }
  func.func @transform_3(%arg0: i32, %arg1: i32, %arg2: i32) -> (i32, i32) {
    %c0_i32 = arith.constant 0 : i32
    %c0_i32_0 = arith.constant 0 : i32
    return %c0_i32, %arg1 : i32, i32
  }
  func.func @transform_4(%arg0: i32, %arg1: i32, %arg2: i32) -> (i32, i32) {
    %c0_i32 = arith.constant 0 : i32
    return %arg0, %arg1 : i32, i32
  }
}

module attributes {stable_mosaic.version = 11 : i64} {
  func.func @_mm_bn_kernel(%arg0: i32, %arg1: i32, %arg2: i32, %arg3: memref<16x256xbf16, #tpu.memory_space<vmem>>, %arg4: memref<256x256xbf16, #tpu.memory_space<vmem>>, %arg5: memref<1x256xf32, #tpu.memory_space<vmem>>, %arg6: memref<1x256xf32, #tpu.memory_space<vmem>>, %arg7: memref<16x256xf32, #tpu.memory_space<vmem>>) attributes {dimension_semantics = [#tpu.dimension_semantics<parallel>, #tpu.dimension_semantics<parallel>, #tpu.dimension_semantics<arbitrary>], iteration_bounds = array<i64: 1, 2, 18>, scalar_prefetch = 0 : i64, scratch_operands = 0 : i64, tpu.core_type = #tpu.core_type<tc>, window_params = [{transform_indices = @transform_0, window_bounds = array<i64: 16, 256>}, {transform_indices = @transform_1, window_bounds = array<i64: 256, 256>}, {transform_indices = @transform_2, window_bounds = array<i64: 1, 256>}, {transform_indices = @transform_3, window_bounds = array<i64: 1, 256>}, {transform_indices = @transform_4, window_bounds = array<i64: 16, 256>}]} {
    %c0_i32 = arith.constant 0 : i32
    %0 = arith.cmpi eq, %arg2, %c0_i32 : i32
    %1 = arith.extui %0 : i1 to i32
    %c0_i32_0 = arith.constant 0 : i32
    %2 = arith.cmpi ne, %1, %c0_i32_0 : i32
    scf.if %2 {
      %cst_9 = arith.constant 0.000000e+00 : f32
      %12 = vector.broadcast %cst_9 : f32 to vector<16x256xf32>
      %c0_10 = arith.constant 0 : index
      %c0_11 = arith.constant 0 : index
      %13 = vector.load %arg7[%c0_10, %c0_11] : memref<16x256xf32, #tpu.memory_space<vmem>>, vector<16x256xf32>
      tpu.vector_store %arg7[%c0_10, %c0_11], %12 {strides = array<i32>} : memref<16x256xf32, #tpu.memory_space<vmem>>, vector<16x256xf32>,
    } else {
    }
    %c0 = arith.constant 0 : index
    %c0_1 = arith.constant 0 : index
    %3 = vector.load %arg7[%c0, %c0_1] : memref<16x256xf32, #tpu.memory_space<vmem>>, vector<16x256xf32>
    %c0_2 = arith.constant 0 : index
    %c0_3 = arith.constant 0 : index
    %4 = vector.load %arg3[%c0_2, %c0_3] : memref<16x256xbf16, #tpu.memory_space<vmem>>, vector<16x256xbf16>
    %c0_4 = arith.constant 0 : index
    %c0_5 = arith.constant 0 : index
    %5 = vector.load %arg4[%c0_4, %c0_5] : memref<256x256xbf16, #tpu.memory_space<vmem>>, vector<256x256xbf16>
    %cst = arith.constant dense<0.000000e+00> : vector<16x256xf32>
    %6 = tpu.matmul %4, %5, %cst {dimension_numbers = #tpu.dot_dimension_numbers<[1], [0], [0], [1], [0, 0, 1, 1], [], []>} : vector<16x256xbf16>, vector<256x256xbf16>, vector<16x256xf32> -> vector<16x256xf32>
    %7 = arith.addf %3, %6 : vector<16x256xf32>
    %c0_6 = arith.constant 0 : index
    %c0_7 = arith.constant 0 : index
    %8 = vector.load %arg7[%c0_6, %c0_7] : memref<16x256xf32, #tpu.memory_space<vmem>>, vector<16x256xf32>
    tpu.vector_store %arg7[%c0_6, %c0_7], %7 {strides = array<i32>} : memref<16x256xf32, #tpu.memory_space<vmem>>, vector<16x256xf32>,
    %c17_i32 = arith.constant 17 : i32
    %9 = arith.cmpi eq, %arg2, %c17_i32 : i32
    %10 = arith.extui %9 : i1 to i32
    %c0_i32_8 = arith.constant 0 : i32
    %11 = arith.cmpi ne, %10, %c0_i32_8 : i32
    scf.if %11 {
      %c0_9 = arith.constant 0 : index
      %c0_10 = arith.constant 0 : index
      %12 = vector.load %arg7[%c0_9, %c0_10] : memref<16x256xf32, #tpu.memory_space<vmem>>, vector<16x256xf32>
      %c0_11 = arith.constant 0 : index
      %c0_12 = arith.constant 0 : index
      %13 = vector.load %arg5[%c0_11, %c0_12] : memref<1x256xf32, #tpu.memory_space<vmem>>, vector<1x256xf32>
      %14 = vector.broadcast %13 : vector<1x256xf32> to vector<16x256xf32>
      %15 = arith.mulf %12, %14 : vector<16x256xf32>
      %c0_13 = arith.constant 0 : index
      %c0_14 = arith.constant 0 : index
      %16 = vector.load %arg6[%c0_13, %c0_14] : memref<1x256xf32, #tpu.memory_space<vmem>>, vector<1x256xf32>
      %17 = vector.broadcast %16 : vector<1x256xf32> to vector<16x256xf32>
      %18 = arith.addf %15, %17 : vector<16x256xf32>
      %cst_15 = arith.constant 0.000000e+00 : f32
      %19 = vector.broadcast %cst_15 : f32 to vector<16x256xf32>
      %20 = arith.maximumf %18, %19 : vector<16x256xf32>
      %c0_16 = arith.constant 0 : index
      %c0_17 = arith.constant 0 : index
      %21 = vector.load %arg7[%c0_16, %c0_17] : memref<16x256xf32, #tpu.memory_space<vmem>>, vector<16x256xf32>
      tpu.vector_store %arg7[%c0_16, %c0_17], %20 {strides = array<i32>} : memref<16x256xf32, #tpu.memory_space<vmem>>, vector<16x256xf32>,
    } else {
    }
    return
  }
  func.func @transform_0(%arg0: i32, %arg1: i32, %arg2: i32) -> (i32, i32) {
    %c0_i32 = arith.constant 0 : i32
    return %arg0, %arg2 : i32, i32
  }
  func.func @transform_1(%arg0: i32, %arg1: i32, %arg2: i32) -> (i32, i32) {
    %c0_i32 = arith.constant 0 : i32
    return %arg2, %arg1 : i32, i32
  }
  func.func @transform_2(%arg0: i32, %arg1: i32, %arg2: i32) -> (i32, i32) {
    %c0_i32 = arith.constant 0 : i32
    %c0_i32_0 = arith.constant 0 : i32
    return %c0_i32, %arg1 : i32, i32
  }
  func.func @transform_3(%arg0: i32, %arg1: i32, %arg2: i32) -> (i32, i32) {
    %c0_i32 = arith.constant 0 : i32
    %c0_i32_0 = arith.constant 0 : i32
    return %c0_i32, %arg1 : i32, i32
  }
  func.func @transform_4(%arg0: i32, %arg1: i32, %arg2: i32) -> (i32, i32) {
    %c0_i32 = arith.constant 0 : i32
    return %arg0, %arg1 : i32, i32
  }
}

module attributes {stable_mosaic.version = 11 : i64} {
  func.func @_mm_bn_kernel(%arg0: i32, %arg1: i32, %arg2: i32, %arg3: memref<16x256xbf16, #tpu.memory_space<vmem>>, %arg4: memref<256x256xbf16, #tpu.memory_space<vmem>>, %arg5: memref<1x256xf32, #tpu.memory_space<vmem>>, %arg6: memref<1x256xf32, #tpu.memory_space<vmem>>, %arg7: memref<16x256xf32, #tpu.memory_space<vmem>>, %arg8: memref<16x256xf32, #tpu.memory_space<vmem>>) attributes {dimension_semantics = [#tpu.dimension_semantics<parallel>, #tpu.dimension_semantics<parallel>, #tpu.dimension_semantics<arbitrary>], iteration_bounds = array<i64: 1, 2, 18>, scalar_prefetch = 0 : i64, scratch_operands = 0 : i64, tpu.core_type = #tpu.core_type<tc>, window_params = [{transform_indices = @transform_0, window_bounds = array<i64: 16, 256>}, {transform_indices = @transform_1, window_bounds = array<i64: 256, 256>}, {transform_indices = @transform_2, window_bounds = array<i64: 1, 256>}, {transform_indices = @transform_3, window_bounds = array<i64: 1, 256>}, {transform_indices = @transform_4, window_bounds = array<i64: 16, 256>}, {transform_indices = @transform_5, window_bounds = array<i64: 16, 256>}]} {
    %c0_i32 = arith.constant 0 : i32
    %0 = arith.cmpi eq, %arg2, %c0_i32 : i32
    %1 = arith.extui %0 : i1 to i32
    %c0_i32_0 = arith.constant 0 : i32
    %2 = arith.cmpi ne, %1, %c0_i32_0 : i32
    scf.if %2 {
      %cst_9 = arith.constant 0.000000e+00 : f32
      %12 = vector.broadcast %cst_9 : f32 to vector<16x256xf32>
      %c0_10 = arith.constant 0 : index
      %c0_11 = arith.constant 0 : index
      %13 = vector.load %arg8[%c0_10, %c0_11] : memref<16x256xf32, #tpu.memory_space<vmem>>, vector<16x256xf32>
      tpu.vector_store %arg8[%c0_10, %c0_11], %12 {strides = array<i32>} : memref<16x256xf32, #tpu.memory_space<vmem>>, vector<16x256xf32>,
    } else {
    }
    %c0 = arith.constant 0 : index
    %c0_1 = arith.constant 0 : index
    %3 = vector.load %arg8[%c0, %c0_1] : memref<16x256xf32, #tpu.memory_space<vmem>>, vector<16x256xf32>
    %c0_2 = arith.constant 0 : index
    %c0_3 = arith.constant 0 : index
    %4 = vector.load %arg3[%c0_2, %c0_3] : memref<16x256xbf16, #tpu.memory_space<vmem>>, vector<16x256xbf16>
    %c0_4 = arith.constant 0 : index
    %c0_5 = arith.constant 0 : index
    %5 = vector.load %arg4[%c0_4, %c0_5] : memref<256x256xbf16, #tpu.memory_space<vmem>>, vector<256x256xbf16>
    %cst = arith.constant dense<0.000000e+00> : vector<16x256xf32>
    %6 = tpu.matmul %4, %5, %cst {dimension_numbers = #tpu.dot_dimension_numbers<[1], [0], [0], [1], [0, 0, 1, 1], [], []>} : vector<16x256xbf16>, vector<256x256xbf16>, vector<16x256xf32> -> vector<16x256xf32>
    %7 = arith.addf %3, %6 : vector<16x256xf32>
    %c0_6 = arith.constant 0 : index
    %c0_7 = arith.constant 0 : index
    %8 = vector.load %arg8[%c0_6, %c0_7] : memref<16x256xf32, #tpu.memory_space<vmem>>, vector<16x256xf32>
    tpu.vector_store %arg8[%c0_6, %c0_7], %7 {strides = array<i32>} : memref<16x256xf32, #tpu.memory_space<vmem>>, vector<16x256xf32>,
    %c17_i32 = arith.constant 17 : i32
    %9 = arith.cmpi eq, %arg2, %c17_i32 : i32
    %10 = arith.extui %9 : i1 to i32
    %c0_i32_8 = arith.constant 0 : i32
    %11 = arith.cmpi ne, %10, %c0_i32_8 : i32
    scf.if %11 {
      %c0_9 = arith.constant 0 : index
      %c0_10 = arith.constant 0 : index
      %12 = vector.load %arg8[%c0_9, %c0_10] : memref<16x256xf32, #tpu.memory_space<vmem>>, vector<16x256xf32>
      %c0_11 = arith.constant 0 : index
      %c0_12 = arith.constant 0 : index
      %13 = vector.load %arg5[%c0_11, %c0_12] : memref<1x256xf32, #tpu.memory_space<vmem>>, vector<1x256xf32>
      %14 = vector.broadcast %13 : vector<1x256xf32> to vector<16x256xf32>
      %15 = arith.mulf %12, %14 : vector<16x256xf32>
      %c0_13 = arith.constant 0 : index
      %c0_14 = arith.constant 0 : index
      %16 = vector.load %arg6[%c0_13, %c0_14] : memref<1x256xf32, #tpu.memory_space<vmem>>, vector<1x256xf32>
      %17 = vector.broadcast %16 : vector<1x256xf32> to vector<16x256xf32>
      %18 = arith.addf %15, %17 : vector<16x256xf32>
      %c0_15 = arith.constant 0 : index
      %c0_16 = arith.constant 0 : index
      %19 = vector.load %arg7[%c0_15, %c0_16] : memref<16x256xf32, #tpu.memory_space<vmem>>, vector<16x256xf32>
      %20 = arith.addf %18, %19 : vector<16x256xf32>
      %cst_17 = arith.constant 0.000000e+00 : f32
      %21 = vector.broadcast %cst_17 : f32 to vector<16x256xf32>
      %22 = arith.maximumf %20, %21 : vector<16x256xf32>
      %c0_18 = arith.constant 0 : index
      %c0_19 = arith.constant 0 : index
      %23 = vector.load %arg8[%c0_18, %c0_19] : memref<16x256xf32, #tpu.memory_space<vmem>>, vector<16x256xf32>
      tpu.vector_store %arg8[%c0_18, %c0_19], %22 {strides = array<i32>} : memref<16x256xf32, #tpu.memory_space<vmem>>, vector<16x256xf32>,
    } else {
    }
    return
  }
  func.func @transform_0(%arg0: i32, %arg1: i32, %arg2: i32) -> (i32, i32) {
    %c0_i32 = arith.constant 0 : i32
    return %arg0, %arg2 : i32, i32
  }
  func.func @transform_1(%arg0: i32, %arg1: i32, %arg2: i32) -> (i32, i32) {
    %c0_i32 = arith.constant 0 : i32
    return %arg2, %arg1 : i32, i32
  }
  func.func @transform_2(%arg0: i32, %arg1: i32, %arg2: i32) -> (i32, i32) {
    %c0_i32 = arith.constant 0 : i32
    %c0_i32_0 = arith.constant 0 : i32
    return %c0_i32, %arg1 : i32, i32
  }
  func.func @transform_3(%arg0: i32, %arg1: i32, %arg2: i32) -> (i32, i32) {
    %c0_i32 = arith.constant 0 : i32
    %c0_i32_0 = arith.constant 0 : i32
    return %c0_i32, %arg1 : i32, i32
  }
  func.func @transform_4(%arg0: i32, %arg1: i32, %arg2: i32) -> (i32, i32) {
    %c0_i32 = arith.constant 0 : i32
    return %arg0, %arg1 : i32, i32
  }
  func.func @transform_5(%arg0: i32, %arg1: i32, %arg2: i32) -> (i32, i32) {
    %c0_i32 = arith.constant 0 : i32
    return %arg0, %arg1 : i32, i32
  }
}

module attributes {stable_mosaic.version = 11 : i64} {
  func.func @_mean_kernel(%arg0: i32, %arg1: memref<2x1x512xf32, #tpu.memory_space<vmem>>, %arg2: memref<2x512xf32, #tpu.memory_space<vmem>>) attributes {dimension_semantics = [#tpu.dimension_semantics<arbitrary>], iteration_bounds = array<i64: 1>, scalar_prefetch = 0 : i64, scratch_operands = 0 : i64, tpu.core_type = #tpu.core_type<tc>, window_params = [{transform_indices = @transform_0, window_bounds = array<i64: 2, 1, 512>}, {pipeline_mode = #tpu.pipeline_mode<synchronous>, transform_indices = @transform_1, window_bounds = array<i64: 2, 512>}]} {
    %c0_i32 = arith.constant 0 : i32
    %0 = arith.cmpi eq, %arg0, %c0_i32 : i32
    %1 = arith.extui %0 : i1 to i32
    %c0_i32_0 = arith.constant 0 : i32
    %2 = arith.cmpi ne, %1, %c0_i32_0 : i32
    scf.if %2 {
      %cst_9 = arith.constant 0.000000e+00 : f32
      %11 = vector.broadcast %cst_9 : f32 to vector<2x512xf32>
      %c0_10 = arith.constant 0 : index
      %c0_11 = arith.constant 0 : index
      %12 = vector.load %arg2[%c0_10, %c0_11] : memref<2x512xf32, #tpu.memory_space<vmem>>, vector<2x512xf32>
      tpu.vector_store %arg2[%c0_10, %c0_11], %11 {strides = array<i32>} : memref<2x512xf32, #tpu.memory_space<vmem>>, vector<2x512xf32>,
    } else {
    }
    %c0 = arith.constant 0 : index
    %c0_1 = arith.constant 0 : index
    %3 = vector.load %arg2[%c0, %c0_1] : memref<2x512xf32, #tpu.memory_space<vmem>>, vector<2x512xf32>
    %c0_2 = arith.constant 0 : index
    %c0_3 = arith.constant 0 : index
    %c0_4 = arith.constant 0 : index
    %4 = vector.load %arg1[%c0_2, %c0_3, %c0_4] : memref<2x1x512xf32, #tpu.memory_space<vmem>>, vector<2x1x512xf32>
    %cst = arith.constant dense<0.000000e+00> : vector<2x512xf32>
    %5 = vector.multi_reduction <add>, %4, %cst [1] : vector<2x1x512xf32> to vector<2x512xf32>
    %6 = arith.addf %3, %5 : vector<2x512xf32>
    %c0_5 = arith.constant 0 : index
    %c0_6 = arith.constant 0 : index
    %7 = vector.load %arg2[%c0_5, %c0_6] : memref<2x512xf32, #tpu.memory_space<vmem>>, vector<2x512xf32>
    tpu.vector_store %arg2[%c0_5, %c0_6], %6 {strides = array<i32>} : memref<2x512xf32, #tpu.memory_space<vmem>>, vector<2x512xf32>,
    %c0_i32_7 = arith.constant 0 : i32
    %8 = arith.cmpi eq, %arg0, %c0_i32_7 : i32
    %9 = arith.extui %8 : i1 to i32
    %c0_i32_8 = arith.constant 0 : i32
    %10 = arith.cmpi ne, %9, %c0_i32_8 : i32
    scf.if %10 {
      %c0_9 = arith.constant 0 : index
      %c0_10 = arith.constant 0 : index
      %11 = vector.load %arg2[%c0_9, %c0_10] : memref<2x512xf32, #tpu.memory_space<vmem>>, vector<2x512xf32>
      %cst_11 = arith.constant 1.000000e+00 : f32
      %12 = vector.broadcast %cst_11 : f32 to vector<2x512xf32>
      %13 = arith.mulf %11, %12 : vector<2x512xf32>
      %c0_12 = arith.constant 0 : index
      %c0_13 = arith.constant 0 : index
      %14 = vector.load %arg2[%c0_12, %c0_13] : memref<2x512xf32, #tpu.memory_space<vmem>>, vector<2x512xf32>
      tpu.vector_store %arg2[%c0_12, %c0_13], %13 {strides = array<i32>} : memref<2x512xf32, #tpu.memory_space<vmem>>, vector<2x512xf32>,
    } else {
    }
    return
  }
  func.func @transform_0(%arg0: i32) -> (i32, i32, i32) {
    %c0_i32 = arith.constant 0 : i32
    %c0_i32_0 = arith.constant 0 : i32
    %c0_i32_1 = arith.constant 0 : i32
    return %c0_i32, %arg0, %c0_i32_0 : i32, i32, i32
  }
  func.func @transform_1(%arg0: i32) -> (i32, i32) {
    %c0_i32 = arith.constant 0 : i32
    %c0_i32_0 = arith.constant 0 : i32
    %c0_i32_1 = arith.constant 0 : i32
    return %c0_i32, %c0_i32_0 : i32, i32
  }
}

</mosaic_0001>

<bundles_post_ra>
// kernel: multimodal_forward.23
= control target key start
LH: loop header
LB: loop body
LE: loop exit
PB: predicated region body
PF: predicated region fallthrough
CT: control target
= control target key end

     0   :  { %s478_s0 = inlined_call_operand.vmem [shape: f32[9,64,128], index: 0, kind: input, shape index: {}]   ;;  %s479_s1 = inlined_call_operand.vmem [shape: f32[64,128], index: 1, kind: output, shape index: {}]  }
   0x1   :  { %v8_v0 = vld [vmem:[%s478_s0] sm:$0xff]  ;;  %v9_v6 = vld [vmem:[%s478_s0 + $0x8] sm:$0xff]  ;;  %v10_v15 = vld [vmem:[%s478_s0 + $0x10] sm:$0xff] }
   0x2   :  { %v164_v1 = vld [vmem:[%s478_s0 + $0x40] sm:$0xff]  ;;  %v165_v7 = vld [vmem:[%s478_s0 + $0x48] sm:$0xff]  ;;  %v166_v16 = vld [vmem:[%s478_s0 + $0x50] sm:$0xff] }
   0x3   :  { %v172_v2 = vld [vmem:[%s478_s0 + $0x80] sm:$0xff]  ;;  %v25_v3 = vmax.f32 %v8_v0, %v164_v1  ;;  %v173_v8 = vld [vmem:[%s478_s0 + $0x88] sm:$0xff]  ;;  %v26_v10 = vmax.f32 %v9_v6, %v165_v7  ;;  %v174_v17 = vld [vmem:[%s478_s0 + $0x90] sm:$0xff]  ;;  %v27_v20 = vmax.f32 %v10_v15, %v166_v16 }
   0x4   :  { %v180_v4 = vld [vmem:[%s478_s0 + $0xc0] sm:$0xff]  ;;  %v181_v13 = vld [vmem:[%s478_s0 + $0xc8] sm:$0xff]  ;;  %v182_v24 = vld [vmem:[%s478_s0 + $0xd0] sm:$0xff] }
   0x5   :  { %v42_v5 = vmax.f32 %v25_v3, %v172_v2  ;;  %v188_v9 = vld [vmem:[%s478_s0 + $0x100] sm:$0xff]  ;;  %v43_v14 = vmax.f32 %v26_v10, %v173_v8  ;;  %v189_v19 = vld [vmem:[%s478_s0 + $0x108] sm:$0xff]  ;;  %v44_v26 = vmax.f32 %v27_v20, %v174_v17  ;;  %v11_v27 = vld [vmem:[%s478_s0 + $0x18] sm:$0xff] }
   0x6   :  { %v196_v12 = vld [vmem:[%s478_s0 + $0x140] sm:$0xff]  ;;  %v197_v23 = vld [vmem:[%s478_s0 + $0x148] sm:$0xff]  ;;  %v167_v28 = vld [vmem:[%s478_s0 + $0x58] sm:$0xff] }
   0x7   :  { %v59_v11 = vmax.f32 %v42_v5, %v180_v4  ;;  %v204_v21 = vld [vmem:[%s478_s0 + $0x180] sm:$0xff]  ;;  %v60_v22 = vmax.f32 %v43_v14, %v181_v13  ;;  %v175_v29 = vld [vmem:[%s478_s0 + $0x98] sm:$0xff]  ;;  %v190_v33 = vld [vmem:[%s478_s0 + $0x110] sm:$0xff]  ;;  %v28_v34 = vmax.f32 %v11_v27, %v167_v28  ;;  %v61_v37 = vmax.f32 %v44_v26, %v182_v24 }
   0x8   :  { %v212_v30 = vld [vmem:[%s478_s0 + $0x1c0] sm:$0xff]  ;;  %v205_v36 = vld [vmem:[%s478_s0 + $0x188] sm:$0xff]  ;;  %v198_v38 = vld [vmem:[%s478_s0 + $0x150] sm:$0xff] }
   0x9   :  { %v76_v18 = vmax.f32 %v59_v11, %v188_v9  ;;  %v220_v31 = vld [vmem:[%s478_s0 + $0x200] sm:$0xff]  ;;  %v77_v32 = vmax.f32 %v60_v22, %v189_v19  ;;  %v183_v39 = vld [vmem:[%s478_s0 + $0xd8] sm:$0xff]  ;;  %v45_v41 = vmax.f32 %v28_v34, %v175_v29  ;;  %v213_v46 = vld [vmem:[%s478_s0 + $0x1c8] sm:$0xff]  ;;  %v78_v48 = vmax.f32 %v61_v37, %v190_v33 }
   0xa   :  { %v12_v42 = vld [vmem:[%s478_s0 + $0x20] sm:$0xff]  ;;  %v221_v47 = vld [vmem:[%s478_s0 + $0x208] sm:$0xff]  ;;  %v191_v49 = vld [vmem:[%s478_s0 + $0x118] sm:$0xff] }
   0xb   :  { %v93_v25 = vmax.f32 %v76_v18, %v196_v12  ;;  %v94_v40 = vmax.f32 %v77_v32, %v197_v23  ;;  %v168_v43 = vld [vmem:[%s478_s0 + $0x60] sm:$0xff]  ;;  %v206_v52 = vld [vmem:[%s478_s0 + $0x190] sm:$0xff]  ;;  %v62_v53 = vmax.f32 %v45_v41, %v183_v39  ;;  %v199_v54 = vld [vmem:[%s478_s0 + $0x158] sm:$0xff]  ;;  %v95_v57 = vmax.f32 %v78_v48, %v198_v38 }
   0xc   :  { %v176_v44 = vld [vmem:[%s478_s0 + $0xa0] sm:$0xff]  ;;  %v29_v50 = vmax.f32 %v12_v42, %v168_v43  ;;  %v13_v59 = vld [vmem:[%s478_s0 + $0x28] sm:$0xff]  ;;  %v214_v63 = vld [vmem:[%s478_s0 + $0x1d0] sm:$0xff] }
   0xd   :  { %v110_v35 = vmax.f32 %v93_v25, %v204_v21  ;;  %v111_v51 = vmax.f32 %v94_v40, %v205_v36  ;;  %v184_v55 = vld [vmem:[%s478_s0 + $0xe0] sm:$0xff]  ;;  %v169_v60 = vld [vmem:[%s478_s0 + $0x68] sm:$0xff]  ;;  %v222_v0 = vld [vmem:[%s478_s0 + $0x210] sm:$0xff]  ;;  %v79_v1 = vmax.f32 %v62_v53, %v191_v49  ;;  %v112_v4 = vmax.f32 %v95_v57, %v206_v52 }
   0xe   :  { %v46_v58 = vmax.f32 %v29_v50, %v176_v44  ;;  %v177_v61 = vld [vmem:[%s478_s0 + $0xa8] sm:$0xff]  ;;  %v192_v2 = vld [vmem:[%s478_s0 + $0x120] sm:$0xff]  ;;  %v30_v3 = vmax.f32 %v13_v59, %v169_v60  ;;  %v207_v5 = vld [vmem:[%s478_s0 + $0x198] sm:$0xff] }
   0xf   :  { %v127_v45 = vmax.f32 %v110_v35, %v212_v30  ;;  %v128_v62 = vmax.f32 %v111_v51, %v213_v46  ;;  %v200_v7 = vld [vmem:[%s478_s0 + $0x160] sm:$0xff]  ;;  %v185_v8 = vld [vmem:[%s478_s0 + $0xe8] sm:$0xff]  ;;  %v96_v10 = vmax.f32 %v79_v1, %v199_v54  ;;  %v14_v12 = vld [vmem:[%s478_s0 + $0x30] sm:$0xff]  ;;  %v129_v15 = vmax.f32 %v112_v4, %v214_v63 }
  0x10   :  { %v63_v6 = vmax.f32 %v46_v58, %v184_v55  ;;  %v47_v11 = vmax.f32 %v30_v3, %v177_v61  ;;  %v170_v13 = vld [vmem:[%s478_s0 + $0x70] sm:$0xff]  ;;  %v215_v16 = vld [vmem:[%s478_s0 + $0x1d8] sm:$0xff]  ;;  %v193_v19 = vld [vmem:[%s478_s0 + $0x128] sm:$0xff] }
  0x11   :  { %v144_v56 = vmax.f32 %v127_v45, %v220_v31  ;;  %v145_v9 = vmax.f32 %v128_v62, %v221_v47  ;;  %v178_v14 = vld [vmem:[%s478_s0 + $0xb0] sm:$0xff]  ;;  %v223_v17 = vld [vmem:[%s478_s0 + $0x218] sm:$0xff]  ;;  %v31_v20 = vmax.f32 %v14_v12, %v170_v13  ;;  %v113_v21 = vmax.f32 %v96_v10, %v207_v5  ;;  %v208_v22 = vld [vmem:[%s478_s0 + $0x1a0] sm:$0xff] }
  0x12   :  { %v80_v18 = vmax.f32 %v63_v6, %v192_v2  ;;  %v64_v23 = vmax.f32 %v47_v11, %v185_v8  ;;  %v201_v24 = vld [vmem:[%s478_s0 + $0x168] sm:$0xff]  ;;  %v186_v25 = vld [vmem:[%s478_s0 + $0xf0] sm:$0xff]  ;;  %v146_v26 = vmax.f32 %v129_v15, %v222_v0  ;;  %v15_v29 = vld [vmem:[%s478_s0 + $0x38] sm:$0xff] }
  0x13   :  { %152 = vst [vmem:[%s479_s1] sm:$0xff] %v144_v56  ;;  %v48_v28 = vmax.f32 %v31_v20, %v178_v14  ;;  %v171_v30 = vld [vmem:[%s478_s0 + $0x78] sm:$0xff]  ;;  %v130_v32 = vmax.f32 %v113_v21, %v215_v16  ;;  %v216_v33 = vld [vmem:[%s478_s0 + $0x1e0] sm:$0xff]  ;;  %v194_v35 = vld [vmem:[%s478_s0 + $0x130] sm:$0xff] }
  0x14   :  { %153 = vst [vmem:[%s479_s1 + $0x8] sm:$0xff] %v145_v9  ;;  %v97_v27 = vmax.f32 %v80_v18, %v200_v7  ;;  %v179_v31 = vld [vmem:[%s478_s0 + $0xb8] sm:$0xff]  ;;  %v81_v34 = vmax.f32 %v64_v23, %v193_v19  ;;  %v32_v36 = vmax.f32 %v15_v29, %v171_v30  ;;  %v209_v38 = vld [vmem:[%s478_s0 + $0x1a8] sm:$0xff]  ;;  %v224_v42 = vld [vmem:[%s478_s0 + $0x220] sm:$0xff] }
  0x15   :  { %154 = vst [vmem:[%s479_s1 + $0x10] sm:$0xff] %v146_v26  ;;  %v65_v39 = vmax.f32 %v48_v28, %v186_v25  ;;  %v187_v40 = vld [vmem:[%s478_s0 + $0xf8] sm:$0xff]  ;;  %v147_v41 = vmax.f32 %v130_v32, %v223_v17  ;;  %v202_v44 = vld [vmem:[%s478_s0 + $0x170] sm:$0xff]  ;;  %v217_v47 = vld [vmem:[%s478_s0 + $0x1e8] sm:$0xff] }
  0x16   :  { %v114_v37 = vmax.f32 %v97_v27, %v208_v22  ;;  %v98_v43 = vmax.f32 %v81_v34, %v201_v24  ;;  %v49_v45 = vmax.f32 %v32_v36, %v179_v31  ;;  %v195_v49 = vld [vmem:[%s478_s0 + $0x138] sm:$0xff]  ;;  %v210_v51 = vld [vmem:[%s478_s0 + $0x1b0] sm:$0xff]  ;;  %v225_v54 = vld [vmem:[%s478_s0 + $0x228] sm:$0xff] }
  0x17   :  { %v82_v48 = vmax.f32 %v65_v39, %v194_v35  ;;  %155 = vst [vmem:[%s479_s1 + $0x18] sm:$0xff] %v147_v41  ;;  %v203_v56 = vld [vmem:[%s478_s0 + $0x178] sm:$0xff]  ;;  %v218_v58 = vld [vmem:[%s478_s0 + $0x1f0] sm:$0xff] }
  0x18   :  { %v131_v46 = vmax.f32 %v114_v37, %v216_v33  ;;  %v115_v50 = vmax.f32 %v98_v43, %v209_v38  ;;  %v66_v52 = vmax.f32 %v49_v45, %v187_v40  ;;  %v211_v61 = vld [vmem:[%s478_s0 + $0x1b8] sm:$0xff]  ;;  %v226_v63 = vld [vmem:[%s478_s0 + $0x230] sm:$0xff] }
  0x19   :  { %v99_v55 = vmax.f32 %v82_v48, %v202_v44  ;;  %v219_v2 = vld [vmem:[%s478_s0 + $0x1f8] sm:$0xff] }
  0x1a   :  { %v148_v53 = vmax.f32 %v131_v46, %v224_v42  ;;  %v132_v57 = vmax.f32 %v115_v50, %v217_v47  ;;  %v83_v59 = vmax.f32 %v66_v52, %v195_v49  ;;  %v227_v5 = vld [vmem:[%s478_s0 + $0x238] sm:$0xff] }
  0x1b   :  { %v116_v60 = vmax.f32 %v99_v55, %v210_v51 }
  0x1c   :  { %156 = vst [vmem:[%s479_s1 + $0x20] sm:$0xff] %v148_v53  ;;  %v149_v62 = vmax.f32 %v132_v57, %v225_v54  ;;  %v100_v0 = vmax.f32 %v83_v59, %v203_v56 }
  0x1d   :  { %v133_v1 = vmax.f32 %v116_v60, %v218_v58 }
  0x1e   :  { %157 = vst [vmem:[%s479_s1 + $0x28] sm:$0xff] %v149_v62  ;;  %v117_v3 = vmax.f32 %v100_v0, %v211_v61 }
  0x1f   :  { %v150_v4 = vmax.f32 %v133_v1, %v226_v63 }
  0x20   :  { %v134_v6 = vmax.f32 %v117_v3, %v219_v2 }
  0x21   :  { %158 = vst [vmem:[%s479_s1 + $0x30] sm:$0xff] %v150_v4 }
  0x22   :  { %v151_v7 = vmax.f32 %v134_v6, %v227_v5 }
  0x24   :  { %159 = vst [vmem:[%s479_s1 + $0x38] sm:$0xff] %v151_v7 }

// kernel: multimodal_forward.22
= control target key start
LH: loop header
LB: loop body
LE: loop exit
PB: predicated region body
PF: predicated region fallthrough
CT: control target
= control target key end

     0   :  { %s1583_s15 = smov 0   ;;  %s1585_s16 = smov 0   ;;  %s1848_s0 = inlined_call_operand.vmem [shape: bf16[512,256], index: 0, kind: input, shape index: {}]   ;;  %s1849_s1 = inlined_call_operand.vmem [shape: bf16[256,128], index: 1, kind: input, shape index: {}]   ;;  %s1850_s2 = inlined_call_operand.vmem [shape: f32[1,128], index: 2, kind: input, shape index: {}]   ;;  %s1851_s3 = inlined_call_operand.vmem [shape: f32[1,128], index: 3, kind: input, shape index: {}]   ;;  %s1852_s4 = inlined_call_operand.vmem [shape: f32[512,128], index: 4, kind: output, shape index: {}]  }
   0x1   :  { %s1587_s17 = smov 0  }
   0x2 LB: > { %s33_s18 = sadd.s32 1, %s1552_s16  ;;  %p1242_p0 = scmp.ge.s32.totalorder %s1556_s17, 1  ;;  %s1556_s17 = sphi %s1587_s17, %s14_s17   ;;  %s1552_s16 = sphi %s1585_s16, %s1854_s16   ;;  %s1548_s15 = sphi %s1583_s15, %s1853_s15  }
   0x3   : > { %p35_p1 = scmp.ge.s32.totalorder %s33_s18, 2  ;;  %p224_p2 = scmp.lt.s32.totalorder %s1556_s17, 3 }
   0x5   : > { %s1856_s18 = smov (%p35_p1, %s33_s18), 0  ;;  %p225_p3 = pnand %p1242_p0, %p224_p2 }
   0x6   : > { %s1243_s5 = sshll.u32 (!%p225_p3), %s1548_s15, 5 }
   0x7   : > { %228 = sbr.rel (%p225_p3) target bundleno = 306 (0x132), region = 36  ;;  %p274_p4 = scmp.lt.s32.totalorder (!%p225_p3), %s1243_s5, 63 }
   0xc   : > { %v1482_v0 = vld [vmem:[%s1849_s1 + $0x38] sm:$0xff]  ;;  %v1481_v2 = vld [vmem:[%s1849_s1 + $0x30] sm:$0xff]  ;;  %v1480_v4 = vld [vmem:[%s1849_s1 + $0x28] sm:$0xff]  ;;  %s1858_s5 = smov (!%p274_p4, %s1243_s5), 63 }
   0xd   : > { %v1490_v1 = vld [vmem:[%s1849_s1 + $0x78] sm:$0xff]  ;;  %696 = vmatpush.bf16.msra.mxu0 %v1482_v0  ;;  %1491 = vmatpush.bf16.msra.mxu2 %v1482_v0  ;;  %v1489_v3 = vld [vmem:[%s1849_s1 + $0x70] sm:$0xff]  ;;  %v1488_v5 = vld [vmem:[%s1849_s1 + $0x68] sm:$0xff]  ;;  %s1442_s21 = sshll.u32 %s1858_s5, 3 }
   0xe   : > { %785 = vmatpush.bf16.msra.mxu1 %v1490_v1  ;;  %1499 = vmatpush.bf16.msra.mxu3 %v1490_v1  ;;  %v1479_v6 = vld [vmem:[%s1849_s1 + $0x20] sm:$0xff]  ;;  %v1478_v8 = vld [vmem:[%s1849_s1 + $0x18] sm:$0xff]  ;;  %v1477_v10 = vld [vmem:[%s1849_s1 + $0x10] sm:$0xff]  ;;  %s1651_s26 = scalar_lea.vmem %s1848_s0, %s1442_s21  ;;  %s1743_s14 = scalar_lea.vmem %s1852_s4, %s1442_s21 }
   0xf   : > { %v1487_v7 = vld [vmem:[%s1849_s1 + $0x60] sm:$0xff]  ;;  %v1486_v9 = vld [vmem:[%s1849_s1 + $0x58] sm:$0xff]  ;;  %v1485_v11 = vld [vmem:[%s1849_s1 + $0x50] sm:$0xff] }
  0x10   : > { %v1476_v12 = vld [vmem:[%s1849_s1 + $0x8] sm:$0xff]  ;;  %v1475_v14 = vld [vmem:[%s1849_s1] sm:$0xff]  ;;  %v1258_v28 = vld [vmem:[%s1651_s26 + $0x10] sm:$0xf] }
  0x11   : > { %697 = vmatpush.bf16.msra.mxu0 %v1481_v2  ;;  %1492 = vmatpush.bf16.msra.mxu2 %v1481_v2  ;;  %v1484_v13 = vld [vmem:[%s1849_s1 + $0x48] sm:$0xff]  ;;  %v1483_v15 = vld [vmem:[%s1849_s1 + $0x40] sm:$0xff]  ;;  %v1446_v29 = vld [vmem:[%s1651_s26 + $0x14] sm:$0xf0] }
  0x12   : > { %786 = vmatpush.bf16.msra.mxu1 %v1489_v3  ;;  %1500 = vmatpush.bf16.msra.mxu3 %v1489_v3  ;;  %v1250_v16 = vld [vmem:[%s1651_s26] sm:$0xf]  ;;  %v1444_v17 = vld [vmem:[%s1651_s26 + $0x4] sm:$0xf0]  ;;  %v1443_v20 = vld [vmem:[%s1651_s26 + $0x4] sm:$0xf]  ;;  %v1259_v36 = vor.u32 %v1446_v29, %v1258_v28 }
  0x13   : > { %v1314_v18 = vld [vmem:[%s1651_s26 + $0x80] sm:$0xf]  ;;  %v1460_v19 = vld [vmem:[%s1651_s26 + $0x84] sm:$0xf0]  ;;  %v1252_v21 = vld [vmem:[%s1651_s26 + $0x8] sm:$0xf0]  ;;  %v1251_v24 = vor.u32 %v1444_v17, %v1250_v16 }
  0x14   : > { %v1459_v22 = vld [vmem:[%s1651_s26 + $0x84] sm:$0xf]  ;;  %v1316_v23 = vld [vmem:[%s1651_s26 + $0x88] sm:$0xf0]  ;;  %v1315_v25 = vor.u32 %v1460_v19, %v1314_v18  ;;  %v1255_v26 = vor.u32 %v1443_v20, %v1252_v21  ;;  %v1322_v30 = vld [vmem:[%s1651_s26 + $0x90] sm:$0xf] }
  0x15   : > { %698 = vmatpush.bf16.msra.mxu0 %v1480_v4  ;;  %1493 = vmatpush.bf16.msra.mxu2 %v1480_v4  ;;  %v1319_v27 = vor.u32 %v1459_v22, %v1316_v23  ;;  %v1462_v31 = vld [vmem:[%s1651_s26 + $0x94] sm:$0xf0]  ;;  %v1445_v32 = vld [vmem:[%s1651_s26 + $0x14] sm:$0xf]  ;;  %v1260_v33 = vld [vmem:[%s1651_s26 + $0x18] sm:$0xf0] }
  0x16   : > { %787 = vmatpush.bf16.msra.mxu1 %v1488_v5  ;;  %1501 = vmatpush.bf16.msra.mxu3 %v1488_v5  ;;  %v1461_v34 = vld [vmem:[%s1651_s26 + $0x94] sm:$0xf]  ;;  %v1324_v35 = vld [vmem:[%s1651_s26 + $0x98] sm:$0xf0]  ;;  %v1323_v37 = vor.u32 %v1462_v31, %v1322_v30  ;;  %v1263_v38 = vor.u32 %v1445_v32, %v1260_v33  ;;  %v1266_v40 = vld [vmem:[%s1651_s26 + $0x20] sm:$0xf] }
  0x17   : > { %v1327_v39 = vor.u32 %v1461_v34, %v1324_v35  ;;  %v1448_v41 = vld [vmem:[%s1651_s26 + $0x24] sm:$0xf0]  ;;  %v1330_v42 = vld [vmem:[%s1651_s26 + $0xa0] sm:$0xf]  ;;  %v1447_v44 = vld [vmem:[%s1651_s26 + $0x24] sm:$0xf] }
  0x18   : > { %v1464_v43 = vld [vmem:[%s1651_s26 + $0xa4] sm:$0xf0]  ;;  %v1268_v45 = vld [vmem:[%s1651_s26 + $0x28] sm:$0xf0]  ;;  %v1463_v46 = vld [vmem:[%s1651_s26 + $0xa4] sm:$0xf]  ;;  %v1267_v48 = vor.u32 %v1448_v41, %v1266_v40 }
  0x19   : > { %699 = vmatpush.bf16.msra.mxu0 %v1479_v6  ;;  %1494 = vmatpush.bf16.msra.mxu2 %v1479_v6  ;;  %v1332_v47 = vld [vmem:[%s1651_s26 + $0xa8] sm:$0xf0]  ;;  %v1331_v49 = vor.u32 %v1464_v43, %v1330_v42  ;;  %v1271_v50 = vor.u32 %v1447_v44, %v1268_v45  ;;  %v1274_v52 = vld [vmem:[%s1651_s26 + $0x30] sm:$0xf]  ;;  %v1450_v53 = vld [vmem:[%s1651_s26 + $0x34] sm:$0xf0] }
  0x1a   : > { %788 = vmatpush.bf16.msra.mxu1 %v1487_v7  ;;  %1502 = vmatpush.bf16.msra.mxu3 %v1487_v7  ;;  %v1335_v51 = vor.u32 %v1463_v46, %v1332_v47  ;;  %v1338_v54 = vld [vmem:[%s1651_s26 + $0xb0] sm:$0xf]  ;;  %v1466_v55 = vld [vmem:[%s1651_s26 + $0xb4] sm:$0xf0]  ;;  %v1449_v56 = vld [vmem:[%s1651_s26 + $0x34] sm:$0xf]  ;;  %v1275_v60 = vor.u32 %v1450_v53, %v1274_v52 }
  0x1b   : > { %v1276_v57 = vld [vmem:[%s1651_s26 + $0x38] sm:$0xf0]  ;;  %v1465_v58 = vld [vmem:[%s1651_s26 + $0xb4] sm:$0xf]  ;;  %v1339_v61 = vor.u32 %v1466_v55, %v1338_v54  ;;  %v1282_v0 = vld [vmem:[%s1651_s26 + $0x40] sm:$0xf] }
  0x1c   : > { %v1340_v59 = vld [vmem:[%s1651_s26 + $0xb8] sm:$0xf0]  ;;  %v1279_v62 = vor.u32 %v1449_v56, %v1276_v57  ;;  %v1452_v1 = vld [vmem:[%s1651_s26 + $0x44] sm:$0xf0]  ;;  %v1346_v2 = vld [vmem:[%s1651_s26 + $0xc0] sm:$0xf] }
  0x1d   : > { %700 = vmatpush.bf16.msra.mxu0 %v1478_v8  ;;  %1495 = vmatpush.bf16.msra.mxu2 %v1478_v8  ;;  %v1343_v63 = vor.u32 %v1465_v58, %v1340_v59  ;;  %v1468_v3 = vld [vmem:[%s1651_s26 + $0xc4] sm:$0xf0]  ;;  %v1451_v4 = vld [vmem:[%s1651_s26 + $0x44] sm:$0xf]  ;;  %v1284_v5 = vld [vmem:[%s1651_s26 + $0x48] sm:$0xf0]  ;;  %v1283_v8 = vor.u32 %v1452_v1, %v1282_v0 }
  0x1e   : > { %789 = vmatpush.bf16.msra.mxu1 %v1486_v9  ;;  %1503 = vmatpush.bf16.msra.mxu3 %v1486_v9  ;;  %v1467_v6 = vld [vmem:[%s1651_s26 + $0xc4] sm:$0xf]  ;;  %v1348_v7 = vld [vmem:[%s1651_s26 + $0xc8] sm:$0xf0]  ;;  %v1347_v9 = vor.u32 %v1468_v3, %v1346_v2  ;;  %v1453_v16 = vld [vmem:[%s1651_s26 + $0x54] sm:$0xf] }
  0x1f   : > { %v1292_v17 = vld [vmem:[%s1651_s26 + $0x58] sm:$0xf0]  ;;  %v1469_v18 = vld [vmem:[%s1651_s26 + $0xd4] sm:$0xf]  ;;  %v1455_v28 = vld [vmem:[%s1651_s26 + $0x64] sm:$0xf] }
  0x20   : > { %v1356_v19 = vld [vmem:[%s1651_s26 + $0xd8] sm:$0xf0]  ;;  %v1295_v22 = vor.u32 %v1453_v16, %v1292_v17  ;;  %v1300_v29 = vld [vmem:[%s1651_s26 + $0x68] sm:$0xf0]  ;;  %v1471_v30 = vld [vmem:[%s1651_s26 + $0xe4] sm:$0xf] }
  0x21   : > { %701 = vmatpush.bf16.msra.mxu0 %v1477_v10  ;;  %1496 = vmatpush.bf16.msra.mxu2 %v1477_v10  ;;  %v1287_v10 = vor.u32 %v1451_v4, %v1284_v5  ;;  %v1359_v23 = vor.u32 %v1469_v18, %v1356_v19  ;;  %v1364_v31 = vld [vmem:[%s1651_s26 + $0xe8] sm:$0xf0]  ;;  %v1303_v34 = vor.u32 %v1455_v28, %v1300_v29  ;;  %v1457_v40 = vld [vmem:[%s1651_s26 + $0x74] sm:$0xf]  ;;  %v1308_v41 = vld [vmem:[%s1651_s26 + $0x78] sm:$0xf0] }
  0x22   : > { %790 = vmatpush.bf16.msra.mxu1 %v1485_v11  ;;  %1504 = vmatpush.bf16.msra.mxu3 %v1485_v11  ;;  %v1351_v11 = vor.u32 %v1467_v6, %v1348_v7  ;;  %v1367_v35 = vor.u32 %v1471_v30, %v1364_v31  ;;  %v1473_v42 = vld [vmem:[%s1651_s26 + $0xf4] sm:$0xf]  ;;  %v1372_v43 = vld [vmem:[%s1651_s26 + $0xf8] sm:$0xf0]  ;;  %v1311_v46 = vor.u32 %v1457_v40, %v1308_v41  ;;  %v1734_v52 = vld [vmem:[%s1851_s3] ss:$0 sm:$0xff] }
  0x23   : > { %v1375_v47 = vor.u32 %v1473_v42, %v1372_v43 }
  0x25   : > { %702 = vmatpush.bf16.msra.mxu0 %v1476_v12  ;;  %1497 = vmatpush.bf16.msra.mxu2 %v1476_v12  ;;  %v1290_v12 = vld [vmem:[%s1651_s26 + $0x50] sm:$0xf] }
  0x26   : > { %791 = vmatpush.bf16.msra.mxu1 %v1484_v13  ;;  %1505 = vmatpush.bf16.msra.mxu3 %v1484_v13  ;;  %v1454_v13 = vld [vmem:[%s1651_s26 + $0x54] sm:$0xf0] }
  0x27   : > { %v1291_v20 = vor.u32 %v1454_v13, %v1290_v12 }
  0x29   : > { %703 = vmatpush.bf16.msra.mxu0 %v1475_v14  ;;  %1498 = vmatpush.bf16.msra.mxu2 %v1475_v14  ;;  %v1354_v14 = vld [vmem:[%s1651_s26 + $0xd0] sm:$0xf] }
  0x2a   : > { %792 = vmatpush.bf16.msra.mxu1 %v1483_v15  ;;  %1506 = vmatpush.bf16.msra.mxu3 %v1483_v15  ;;  %v1470_v15 = vld [vmem:[%s1651_s26 + $0xd4] sm:$0xf0] }
  0x2b   : > { %v1355_v21 = vor.u32 %v1470_v15, %v1354_v14 }
  0x2c   : > { %704 = vmatmul.bf16.vlgmr.msra.gmra.mxu0 %v1251_v24  ;;  %744 = vmatmul.bf16.vlgmr.msra.gmra.mxu2 %v1315_v25  ;;  %v1298_v24 = vld [vmem:[%s1651_s26 + $0x60] sm:$0xf]  ;;  %v1456_v25 = vld [vmem:[%s1651_s26 + $0x64] sm:$0xf0] }
  0x2d   : > { %793 = vmatmul.bf16.vlgmr.msra.gmra.mxu1 %v1255_v26  ;;  %833 = vmatmul.bf16.vlgmr.msra.gmra.mxu3 %v1319_v27  ;;  %v1362_v26 = vld [vmem:[%s1651_s26 + $0xe0] sm:$0xf]  ;;  %v1472_v27 = vld [vmem:[%s1651_s26 + $0xe4] sm:$0xf0]  ;;  %v1299_v32 = vor.u32 %v1456_v25, %v1298_v24 }
  0x2e   : > { %v1363_v33 = vor.u32 %v1472_v27, %v1362_v26 }
  0x3c   : > { %709 = vmatmul.bf16.gmra.mxu0 %v1259_v36  ;;  %749 = vmatmul.bf16.gmra.mxu2 %v1323_v37  ;;  %v1306_v36 = vld [vmem:[%s1651_s26 + $0x70] sm:$0xf]  ;;  %v1458_v37 = vld [vmem:[%s1651_s26 + $0x74] sm:$0xf0] }
  0x3d   : > { %798 = vmatmul.bf16.gmra.mxu1 %v1263_v38  ;;  %838 = vmatmul.bf16.gmra.mxu3 %v1327_v39  ;;  %v1370_v38 = vld [vmem:[%s1651_s26 + $0xf0] sm:$0xf]  ;;  %v1474_v39 = vld [vmem:[%s1651_s26 + $0xf4] sm:$0xf0]  ;;  %v1307_v44 = vor.u32 %v1458_v37, %v1306_v36 }
  0x3e   : > { %v1371_v45 = vor.u32 %v1474_v39, %v1370_v38 }
  0x4c   : > { %714 = vmatmul.bf16.gmra.mxu0 %v1267_v48  ;;  %754 = vmatmul.bf16.gmra.mxu2 %v1331_v49 }
  0x4d   : > { %803 = vmatmul.bf16.gmra.mxu1 %v1271_v50  ;;  %843 = vmatmul.bf16.gmra.mxu3 %v1335_v51  ;;  %v1729_v51 = vld [vmem:[%s1850_s2] ss:$0 sm:$0xff] }
  0x5c   : > { %719 = vmatmul.bf16.gmra.mxu0 %v1275_v60  ;;  %759 = vmatmul.bf16.gmra.mxu2 %v1339_v61 }
  0x5d   : > { %808 = vmatmul.bf16.gmra.mxu1 %v1279_v62  ;;  %848 = vmatmul.bf16.gmra.mxu3 %v1343_v63 }
  0x6c   : > { %724 = vmatmul.bf16.gmra.mxu0 %v1283_v8  ;;  %764 = vmatmul.bf16.gmra.mxu2 %v1347_v9 }
  0x6d   : > { %813 = vmatmul.bf16.gmra.mxu1 %v1287_v10  ;;  %853 = vmatmul.bf16.gmra.mxu3 %v1351_v11 }
  0x7c   : > { %729 = vmatmul.bf16.gmra.mxu0 %v1291_v20  ;;  %769 = vmatmul.bf16.gmra.mxu2 %v1355_v21 }
  0x7d   : > { %818 = vmatmul.bf16.gmra.mxu1 %v1295_v22  ;;  %858 = vmatmul.bf16.gmra.mxu3 %v1359_v23 }
  0x8c   : > { %734 = vmatmul.bf16.gmra.mxu0 %v1299_v32  ;;  %774 = vmatmul.bf16.gmra.mxu2 %v1363_v33 }
  0x8d   : > { %823 = vmatmul.bf16.gmra.mxu1 %v1303_v34  ;;  %863 = vmatmul.bf16.gmra.mxu3 %v1367_v35 }
  0x9c   : > { %739 = vmatmul.bf16.gmra.mxu0 %v1307_v44  ;;  %779 = vmatmul.bf16.gmra.mxu2 %v1371_v45 }
  0x9d   : > { %828 = vmatmul.bf16.gmra.mxu1 %v1311_v46  ;;  %868 = vmatmul.bf16.gmra.mxu3 %v1375_v47 }
  0xa9   : > { %v705_v48 = vpop.f32.mrf.mxu0 }
  0xaa   : > { %v794_v49 = vpop.f32.mrf.mxu1 }
  0xab   : > { %v795_v50 = vadd.f32 %v794_v49, %v705_v48 }
  0xad   : > { %v977_v53 = vmul.f32 %v1729_v51, %v795_v50 }
  0xaf   : > { %v745_v54 = vpop.f32.mrf.mxu2  ;;  %v1013_v56 = vadd.f32 %v1734_v52, %v977_v53 }
  0xb0   : > { %v834_v55 = vpop.f32.mrf.mxu3 }
  0xb1   : > { %v835_v57 = vadd.f32 %v834_v55, %v745_v54  ;;  %v707_v58 = vpop.f32.mrf.mxu0  ;;  %v1045_v60 = vmax.f32 %v1013_v56, 0.0 }
  0xb2   : > { %v796_v59 = vpop.f32.mrf.mxu1 }
  0xb3   : > { %v797_v61 = vadd.f32 %v796_v59, %v707_v58  ;;  %1077 = vst [vmem:[%s1743_s14] sm:$0xff] %v1045_v60  ;;  %v993_v62 = vmul.f32 %v1729_v51, %v835_v57 }
  0xb5   : > { %v1029_v63 = vadd.f32 %v1734_v52, %v993_v62  ;;  %v978_v0 = vmul.f32 %v1729_v51, %v797_v61 }
  0xb7   : > { %v747_v1 = vpop.f32.mrf.mxu2  ;;  %v1061_v3 = vmax.f32 %v1029_v63, 0.0  ;;  %v1014_v4 = vadd.f32 %v1734_v52, %v978_v0 }
  0xb8   : > { %v836_v2 = vpop.f32.mrf.mxu3 }
  0xb9   : > { %v837_v5 = vadd.f32 %v836_v2, %v747_v1  ;;  %v710_v6 = vpop.f32.mrf.mxu0  ;;  %1093 = vst [vmem:[%s1743_s14 + $0x80] sm:$0xff] %v1061_v3  ;;  %v1046_v8 = vmax.f32 %v1014_v4, 0.0 }
  0xba   : > { %v799_v7 = vpop.f32.mrf.mxu1 }
  0xbb   : > { %v800_v9 = vadd.f32 %v799_v7, %v710_v6  ;;  %1078 = vst [vmem:[%s1743_s14 + $0x8] sm:$0xff] %v1046_v8  ;;  %v994_v10 = vmul.f32 %v1729_v51, %v837_v5 }
  0xbd   : > { %v1030_v11 = vadd.f32 %v1734_v52, %v994_v10  ;;  %v979_v12 = vmul.f32 %v1729_v51, %v800_v9 }
  0xbf   : > { %v750_v13 = vpop.f32.mrf.mxu2  ;;  %v1062_v15 = vmax.f32 %v1030_v11, 0.0  ;;  %v1015_v16 = vadd.f32 %v1734_v52, %v979_v12 }
  0xc0   : > { %v839_v14 = vpop.f32.mrf.mxu3 }
  0xc1   : > { %v840_v17 = vadd.f32 %v839_v14, %v750_v13  ;;  %v712_v18 = vpop.f32.mrf.mxu0  ;;  %1094 = vst [vmem:[%s1743_s14 + $0x88] sm:$0xff] %v1062_v15  ;;  %v1047_v20 = vmax.f32 %v1015_v16, 0.0 }
  0xc2   : > { %v801_v19 = vpop.f32.mrf.mxu1 }
  0xc3   : > { %v802_v21 = vadd.f32 %v801_v19, %v712_v18  ;;  %1079 = vst [vmem:[%s1743_s14 + $0x10] sm:$0xff] %v1047_v20  ;;  %v995_v22 = vmul.f32 %v1729_v51, %v840_v17 }
  0xc5   : > { %v1031_v23 = vadd.f32 %v1734_v52, %v995_v22  ;;  %v980_v24 = vmul.f32 %v1729_v51, %v802_v21 }
  0xc7   : > { %v752_v25 = vpop.f32.mrf.mxu2  ;;  %v1063_v27 = vmax.f32 %v1031_v23, 0.0  ;;  %v1016_v28 = vadd.f32 %v1734_v52, %v980_v24 }
  0xc8   : > { %v841_v26 = vpop.f32.mrf.mxu3 }
  0xc9   : > { %v842_v29 = vadd.f32 %v841_v26, %v752_v25  ;;  %v715_v30 = vpop.f32.mrf.mxu0  ;;  %1095 = vst [vmem:[%s1743_s14 + $0x90] sm:$0xff] %v1063_v27  ;;  %v1048_v32 = vmax.f32 %v1016_v28, 0.0 }
  0xca   : > { %v804_v31 = vpop.f32.mrf.mxu1 }
  0xcb   : > { %v805_v33 = vadd.f32 %v804_v31, %v715_v30  ;;  %1080 = vst [vmem:[%s1743_s14 + $0x18] sm:$0xff] %v1048_v32  ;;  %v996_v34 = vmul.f32 %v1729_v51, %v842_v29 }
  0xcd   : > { %v1032_v35 = vadd.f32 %v1734_v52, %v996_v34  ;;  %v981_v36 = vmul.f32 %v1729_v51, %v805_v33 }
  0xcf   : > { %v755_v37 = vpop.f32.mrf.mxu2  ;;  %v1064_v39 = vmax.f32 %v1032_v35, 0.0  ;;  %v1017_v40 = vadd.f32 %v1734_v52, %v981_v36 }
  0xd0   : > { %v844_v38 = vpop.f32.mrf.mxu3 }
  0xd1   : > { %v845_v41 = vadd.f32 %v844_v38, %v755_v37  ;;  %v717_v42 = vpop.f32.mrf.mxu0  ;;  %1096 = vst [vmem:[%s1743_s14 + $0x98] sm:$0xff] %v1064_v39  ;;  %v1049_v44 = vmax.f32 %v1017_v40, 0.0 }
  0xd2   : > { %v806_v43 = vpop.f32.mrf.mxu1 }
  0xd3   : > { %v807_v45 = vadd.f32 %v806_v43, %v717_v42  ;;  %1081 = vst [vmem:[%s1743_s14 + $0x20] sm:$0xff] %v1049_v44  ;;  %v997_v46 = vmul.f32 %v1729_v51, %v845_v41 }
  0xd5   : > { %v1033_v47 = vadd.f32 %v1734_v52, %v997_v46  ;;  %v982_v48 = vmul.f32 %v1729_v51, %v807_v45 }
  0xd7   : > { %v757_v49 = vpop.f32.mrf.mxu2  ;;  %v1065_v53 = vmax.f32 %v1033_v47, 0.0  ;;  %v1018_v54 = vadd.f32 %v1734_v52, %v982_v48 }
  0xd8   : > { %v846_v50 = vpop.f32.mrf.mxu3 }
  0xd9   : > { %v847_v55 = vadd.f32 %v846_v50, %v757_v49  ;;  %v720_v56 = vpop.f32.mrf.mxu0  ;;  %1097 = vst [vmem:[%s1743_s14 + $0xa0] sm:$0xff] %v1065_v53  ;;  %v1050_v58 = vmax.f32 %v1018_v54, 0.0 }
  0xda   : > { %v809_v57 = vpop.f32.mrf.mxu1 }
  0xdb   : > { %v810_v59 = vadd.f32 %v809_v57, %v720_v56  ;;  %1082 = vst [vmem:[%s1743_s14 + $0x28] sm:$0xff] %v1050_v58  ;;  %v998_v60 = vmul.f32 %v1729_v51, %v847_v55 }
  0xdd   : > { %v1034_v61 = vadd.f32 %v1734_v52, %v998_v60  ;;  %v983_v62 = vmul.f32 %v1729_v51, %v810_v59 }
  0xdf   : > { %v760_v63 = vpop.f32.mrf.mxu2  ;;  %v1066_v1 = vmax.f32 %v1034_v61, 0.0  ;;  %v1019_v2 = vadd.f32 %v1734_v52, %v983_v62 }
  0xe0   : > { %v849_v0 = vpop.f32.mrf.mxu3 }
  0xe1   : > { %v850_v3 = vadd.f32 %v849_v0, %v760_v63  ;;  %v722_v4 = vpop.f32.mrf.mxu0  ;;  %1098 = vst [vmem:[%s1743_s14 + $0xa8] sm:$0xff] %v1066_v1  ;;  %v1051_v6 = vmax.f32 %v1019_v2, 0.0 }
  0xe2   : > { %v811_v5 = vpop.f32.mrf.mxu1 }
  0xe3   : > { %v812_v7 = vadd.f32 %v811_v5, %v722_v4  ;;  %1083 = vst [vmem:[%s1743_s14 + $0x30] sm:$0xff] %v1051_v6  ;;  %v999_v8 = vmul.f32 %v1729_v51, %v850_v3 }
  0xe5   : > { %v1035_v9 = vadd.f32 %v1734_v52, %v999_v8  ;;  %v984_v10 = vmul.f32 %v1729_v51, %v812_v7 }
  0xe7   : > { %v762_v11 = vpop.f32.mrf.mxu2  ;;  %v1067_v13 = vmax.f32 %v1035_v9, 0.0  ;;  %v1020_v14 = vadd.f32 %v1734_v52, %v984_v10 }
  0xe8   : > { %v851_v12 = vpop.f32.mrf.mxu3 }
  0xe9   : > { %v852_v15 = vadd.f32 %v851_v12, %v762_v11  ;;  %v725_v16 = vpop.f32.mrf.mxu0  ;;  %1099 = vst [vmem:[%s1743_s14 + $0xb0] sm:$0xff] %v1067_v13  ;;  %v1052_v18 = vmax.f32 %v1020_v14, 0.0 }
  0xea   : > { %v814_v17 = vpop.f32.mrf.mxu1 }
  0xeb   : > { %v815_v19 = vadd.f32 %v814_v17, %v725_v16  ;;  %1084 = vst [vmem:[%s1743_s14 + $0x38] sm:$0xff] %v1052_v18  ;;  %v1000_v20 = vmul.f32 %v1729_v51, %v852_v15 }
  0xed   : > { %v1036_v21 = vadd.f32 %v1734_v52, %v1000_v20  ;;  %v985_v22 = vmul.f32 %v1729_v51, %v815_v19 }
  0xef   : > { %v765_v23 = vpop.f32.mrf.mxu2  ;;  %v1068_v25 = vmax.f32 %v1036_v21, 0.0  ;;  %v1021_v26 = vadd.f32 %v1734_v52, %v985_v22 }
  0xf0   : > { %v854_v24 = vpop.f32.mrf.mxu3 }
  0xf1   : > { %v855_v27 = vadd.f32 %v854_v24, %v765_v23  ;;  %v727_v28 = vpop.f32.mrf.mxu0  ;;  %1100 = vst [vmem:[%s1743_s14 + $0xb8] sm:$0xff] %v1068_v25  ;;  %v1053_v30 = vmax.f32 %v1021_v26, 0.0 }
  0xf2   : > { %v816_v29 = vpop.f32.mrf.mxu1 }
  0xf3   : > { %v817_v31 = vadd.f32 %v816_v29, %v727_v28  ;;  %1085 = vst [vmem:[%s1743_s14 + $0x40] sm:$0xff] %v1053_v30  ;;  %v1001_v32 = vmul.f32 %v1729_v51, %v855_v27 }
  0xf5   : > { %v1037_v33 = vadd.f32 %v1734_v52, %v1001_v32  ;;  %v986_v34 = vmul.f32 %v1729_v51, %v817_v31 }
  0xf7   : > { %v767_v35 = vpop.f32.mrf.mxu2  ;;  %v1069_v37 = vmax.f32 %v1037_v33, 0.0  ;;  %v1022_v38 = vadd.f32 %v1734_v52, %v986_v34 }
  0xf8   : > { %v856_v36 = vpop.f32.mrf.mxu3 }
  0xf9   : > { %v857_v39 = vadd.f32 %v856_v36, %v767_v35  ;;  %v730_v40 = vpop.f32.mrf.mxu0  ;;  %1101 = vst [vmem:[%s1743_s14 + $0xc0] sm:$0xff] %v1069_v37  ;;  %v1054_v42 = vmax.f32 %v1022_v38, 0.0 }
  0xfa   : > { %v819_v41 = vpop.f32.mrf.mxu1 }
  0xfb   : > { %v820_v43 = vadd.f32 %v819_v41, %v730_v40  ;;  %1086 = vst [vmem:[%s1743_s14 + $0x48] sm:$0xff] %v1054_v42  ;;  %v1002_v44 = vmul.f32 %v1729_v51, %v857_v39 }
  0xfd   : > { %v1038_v45 = vadd.f32 %v1734_v52, %v1002_v44  ;;  %v987_v46 = vmul.f32 %v1729_v51, %v820_v43 }
  0xff   : > { %v770_v47 = vpop.f32.mrf.mxu2  ;;  %v1070_v49 = vmax.f32 %v1038_v45, 0.0  ;;  %v1023_v50 = vadd.f32 %v1734_v52, %v987_v46 }
 0x100   : > { %v859_v48 = vpop.f32.mrf.mxu3 }
 0x101   : > { %v860_v53 = vadd.f32 %v859_v48, %v770_v47  ;;  %v732_v54 = vpop.f32.mrf.mxu0  ;;  %1102 = vst [vmem:[%s1743_s14 + $0xc8] sm:$0xff] %v1070_v49  ;;  %v1055_v56 = vmax.f32 %v1023_v50, 0.0 }
 0x102   : > { %v821_v55 = vpop.f32.mrf.mxu1 }
 0x103   : > { %v822_v57 = vadd.f32 %v821_v55, %v732_v54  ;;  %1087 = vst [vmem:[%s1743_s14 + $0x50] sm:$0xff] %v1055_v56  ;;  %v1003_v58 = vmul.f32 %v1729_v51, %v860_v53 }
 0x105   : > { %v1039_v59 = vadd.f32 %v1734_v52, %v1003_v58  ;;  %v988_v60 = vmul.f32 %v1729_v51, %v822_v57 }
 0x107   : > { %v772_v61 = vpop.f32.mrf.mxu2  ;;  %v1071_v63 = vmax.f32 %v1039_v59, 0.0  ;;  %v1024_v0 = vadd.f32 %v1734_v52, %v988_v60 }
 0x108   : > { %v861_v62 = vpop.f32.mrf.mxu3 }
 0x109   : > { %v862_v1 = vadd.f32 %v861_v62, %v772_v61  ;;  %v735_v2 = vpop.f32.mrf.mxu0  ;;  %1103 = vst [vmem:[%s1743_s14 + $0xd0] sm:$0xff] %v1071_v63  ;;  %v1056_v4 = vmax.f32 %v1024_v0, 0.0 }
 0x10a   : > { %v824_v3 = vpop.f32.mrf.mxu1 }
 0x10b   : > { %v825_v5 = vadd.f32 %v824_v3, %v735_v2  ;;  %1088 = vst [vmem:[%s1743_s14 + $0x58] sm:$0xff] %v1056_v4  ;;  %v1004_v6 = vmul.f32 %v1729_v51, %v862_v1 }
 0x10d   : > { %v1040_v7 = vadd.f32 %v1734_v52, %v1004_v6  ;;  %v989_v8 = vmul.f32 %v1729_v51, %v825_v5 }
 0x10f   : > { %v775_v9 = vpop.f32.mrf.mxu2  ;;  %v1072_v11 = vmax.f32 %v1040_v7, 0.0  ;;  %v1025_v12 = vadd.f32 %v1734_v52, %v989_v8 }
 0x110   : > { %v864_v10 = vpop.f32.mrf.mxu3 }
 0x111   : > { %v865_v13 = vadd.f32 %v864_v10, %v775_v9  ;;  %v737_v14 = vpop.f32.mrf.mxu0  ;;  %1104 = vst [vmem:[%s1743_s14 + $0xd8] sm:$0xff] %v1072_v11  ;;  %v1057_v16 = vmax.f32 %v1025_v12, 0.0 }
 0x112   : > { %v826_v15 = vpop.f32.mrf.mxu1 }
 0x113   : > { %v827_v17 = vadd.f32 %v826_v15, %v737_v14  ;;  %1089 = vst [vmem:[%s1743_s14 + $0x60] sm:$0xff] %v1057_v16  ;;  %v1005_v18 = vmul.f32 %v1729_v51, %v865_v13 }
 0x115   : > { %v1041_v19 = vadd.f32 %v1734_v52, %v1005_v18  ;;  %v990_v20 = vmul.f32 %v1729_v51, %v827_v17 }
 0x117   : > { %v777_v21 = vpop.f32.mrf.mxu2  ;;  %v1073_v23 = vmax.f32 %v1041_v19, 0.0  ;;  %v1026_v24 = vadd.f32 %v1734_v52, %v990_v20 }
 0x118   : > { %v866_v22 = vpop.f32.mrf.mxu3 }
 0x119   : > { %v867_v25 = vadd.f32 %v866_v22, %v777_v21  ;;  %v740_v26 = vpop.f32.mrf.mxu0  ;;  %1105 = vst [vmem:[%s1743_s14 + $0xe0] sm:$0xff] %v1073_v23  ;;  %v1058_v28 = vmax.f32 %v1026_v24, 0.0 }
 0x11a   : > { %v829_v27 = vpop.f32.mrf.mxu1 }
 0x11b   : > { %v830_v29 = vadd.f32 %v829_v27, %v740_v26  ;;  %1090 = vst [vmem:[%s1743_s14 + $0x68] sm:$0xff] %v1058_v28  ;;  %v1006_v30 = vmul.f32 %v1729_v51, %v867_v25 }
 0x11d   : > { %v1042_v31 = vadd.f32 %v1734_v52, %v1006_v30  ;;  %v991_v32 = vmul.f32 %v1729_v51, %v830_v29 }
 0x11f   : > { %v780_v33 = vpop.f32.mrf.mxu2  ;;  %v1074_v35 = vmax.f32 %v1042_v31, 0.0  ;;  %v1027_v36 = vadd.f32 %v1734_v52, %v991_v32 }
 0x120   : > { %v869_v34 = vpop.f32.mrf.mxu3 }
 0x121   : > { %v870_v37 = vadd.f32 %v869_v34, %v780_v33  ;;  %v742_v38 = vpop.f32.mrf.mxu0  ;;  %1106 = vst [vmem:[%s1743_s14 + $0xe8] sm:$0xff] %v1074_v35  ;;  %v1059_v40 = vmax.f32 %v1027_v36, 0.0 }
 0x122   : > { %v831_v39 = vpop.f32.mrf.mxu1 }
 0x123   : > { %v832_v41 = vadd.f32 %v831_v39, %v742_v38  ;;  %1091 = vst [vmem:[%s1743_s14 + $0x70] sm:$0xff] %v1059_v40  ;;  %v1007_v42 = vmul.f32 %v1729_v51, %v870_v37 }
 0x125   : > { %v1043_v43 = vadd.f32 %v1734_v52, %v1007_v42  ;;  %v992_v44 = vmul.f32 %v1729_v51, %v832_v41 }
 0x127   : > { %v782_v45 = vpop.f32.mrf.mxu2  ;;  %v1075_v47 = vmax.f32 %v1043_v43, 0.0  ;;  %v1028_v48 = vadd.f32 %v1734_v52, %v992_v44 }
 0x128   : > { %v871_v46 = vpop.f32.mrf.mxu3 }
 0x129   : > { %v872_v49 = vadd.f32 %v871_v46, %v782_v45  ;;  %1107 = vst [vmem:[%s1743_s14 + $0xf0] sm:$0xff] %v1075_v47  ;;  %v1060_v50 = vmax.f32 %v1028_v48, 0.0 }
 0x12b   : > { %1092 = vst [vmem:[%s1743_s14 + $0x78] sm:$0xff] %v1060_v50  ;;  %v1008_v53 = vmul.f32 %v1729_v51, %v872_v49 }
 0x12d   : > { %v1044_v54 = vadd.f32 %v1734_v52, %v1008_v53 }
 0x12f   : > { %v1076_v55 = vmax.f32 %v1044_v54, 0.0 }
 0x131   : > { %1108 = vst [vmem:[%s1743_s14 + $0xf8] sm:$0xff] %v1076_v55 }
 0x132 PF: > { %s14_s17 = sadd.s32 1, %s1556_s17   ;;  %s1853_s15 = smov %s1552_s16 }
 0x133   : > { %p11_p5 = scmp.ge.s32.totalorder %s14_s17, 4   ;;  %s1854_s16 = smov %s1856_s18 }
 0x135   :  { %13 = sbr.rel (!%p11_p5) target bundleno = 2 (0x2), region = 83 }

// kernel: multimodal_forward.25
= control target key start
LH: loop header
LB: loop body
LE: loop exit
PB: predicated region body
PF: predicated region fallthrough
CT: control target
= control target key end

     0   :  { %s1415_s18 = smov 0   ;;  %s1417_s19 = smov 0   ;;  %s1882_s0 = inlined_call_operand.vmem [shape: bf16[128,768], index: 0, kind: input, shape index: {}]   ;;  %s1883_s1 = inlined_call_operand.vmem [shape: bf16[768,128], index: 1, kind: input, shape index: {}]   ;;  %s1884_s2 = inlined_call_operand.vmem [shape: f32[1,128], index: 2, kind: input, shape index: {}]   ;;  %s1885_s3 = inlined_call_operand.vmem [shape: f32[1,128], index: 3, kind: input, shape index: {}]   ;;  %s1886_s4 = inlined_call_operand.vmem [shape: f32[128,128], index: 4, kind: input, shape index: {}]   ;;  %s1887_s5 = inlined_call_operand.vmem [shape: f32[128,128], index: 5, kind: output, shape index: {}]  }
   0x1   :  { %s1419_s20 = smov 0   ;;  %s1421_s21 = smov 0  }
   0x2   :  { %s1423_s22 = smov 0  }
   0x3 LB: > { %s27_s23 = sadd.s32 1, %s1378_s21  ;;  %p50_p1 = scmp.ne.s32.totalorder %s1370_s19, %s1366_s18  ;;  %s1382_s22 = sphi %s1423_s22, %s15_s22   ;;  %s1378_s21 = sphi %s1421_s21, %s1891_s21   ;;  %s1374_s20 = sphi %s1419_s20, %s1890_s20   ;;  %s1370_s19 = sphi %s1417_s19, %s1889_s19   ;;  %s1366_s18 = sphi %s1415_s18, %s1888_s18  }
   0x4   : > { %p28_p0 = scmp.ge.s32.totalorder %s27_s23, 3  ;;  %p51_p2 = scmp.eq.s32.totalorder %s1382_s22, 0 }
   0x5   : > { %s43_s25 = sadd.s32 1, %s1370_s19  ;;  %p1110_p5 = scmp.ge.s32.totalorder %s1382_s22, 3 }
   0x6   : > { %s1893_s23 = smov (%p28_p0, %s27_s23), 0  ;;  %p52_p3 = por %p51_p2, %p50_p1 }
   0x7   : > { %s39_s24 = ssub.s32 %s1378_s21, %s1893_s23  ;;  %236 = sbr.rel (%p1110_p5) target bundleno = 32 (0x20), region = 28 }
   0x8   : > { %p41_p4 = scmp.eq.s32.totalorder %s39_s24, 0 }
   0xa   : > { %s1450_s26 = scalar_select %p41_p4, %s1370_s19, %s43_s25  }
   0xc   : > { %239 = sbr.rel (!%p52_p3) target bundleno = 32 (0x20), region = 32  ;;  %s241_s27 = sand.u32 (%p52_p3), 1, %s1370_s19  }
   0xd   : > { %s1252_s28 = sshll.u32 (%p52_p3), %s1378_s21, 3  ;;  %s1111_s29 = sshll.u32 (%p52_p3), %s241_s27, 7 }
   0xe   : > { %s1458_s7 = scalar_lea.vmem (%p52_p3), %s1882_s0, %s1252_s28  ;;  %s243_s8 = scalar_lea.vmem (%p52_p3), [#allocation2], %s1111_s29 }
   0xf   : > { %v308_v0 = vld [vmem:[%s1458_s7] sm:$0xff] (%p52_p3)  ;;  %v310_v1 = vld [vmem:[%s1458_s7 + $0x18] sm:$0xff] (%p52_p3)  ;;  %v312_v2 = vld [vmem:[%s1458_s7 + $0x30] sm:$0xff] (%p52_p3) }
  0x10   : > { %309 = vst [vmem:[%s243_s8] sm:$0xff] (%p52_p3), %v308_v0  ;;  %v314_v3 = vld [vmem:[%s1458_s7 + $0x48] sm:$0xff] (%p52_p3)  ;;  %v316_v4 = vld [vmem:[%s1458_s7 + $0x60] sm:$0xff] (%p52_p3)  ;;  %v318_v5 = vld [vmem:[%s1458_s7 + $0x78] sm:$0xff] (%p52_p3) }
  0x11   : > { %311 = vst [vmem:[%s243_s8 + $0x8] sm:$0xff] %v310_v1  ;;  %v320_v6 = vld [vmem:[%s1458_s7 + $0x90] sm:$0xff]  ;;  %v322_v7 = vld [vmem:[%s1458_s7 + $0xa8] sm:$0xff]  ;;  %v324_v8 = vld [vmem:[%s1458_s7 + $0xc0] sm:$0xff] }
  0x12   : > { %313 = vst [vmem:[%s243_s8 + $0x10] sm:$0xff] %v312_v2  ;;  %v326_v9 = vld [vmem:[%s1458_s7 + $0xd8] sm:$0xff]  ;;  %v328_v10 = vld [vmem:[%s1458_s7 + $0xf0] sm:$0xff]  ;;  %v330_v11 = vld [vmem:[%s1458_s7 + $0x108] sm:$0xff] }
  0x13   : > { %315 = vst [vmem:[%s243_s8 + $0x18] sm:$0xff] %v314_v3  ;;  %v332_v12 = vld [vmem:[%s1458_s7 + $0x120] sm:$0xff]  ;;  %v334_v13 = vld [vmem:[%s1458_s7 + $0x138] sm:$0xff]  ;;  %v336_v14 = vld [vmem:[%s1458_s7 + $0x150] sm:$0xff] }
  0x14   : > { %317 = vst [vmem:[%s243_s8 + $0x20] sm:$0xff] %v316_v4  ;;  %v338_v15 = vld [vmem:[%s1458_s7 + $0x168] sm:$0xff] }
  0x15   : > { %319 = vst [vmem:[%s243_s8 + $0x28] sm:$0xff] %v318_v5 }
  0x16   : > { %321 = vst [vmem:[%s243_s8 + $0x30] sm:$0xff] %v320_v6 }
  0x17   : > { %323 = vst [vmem:[%s243_s8 + $0x38] sm:$0xff] %v322_v7 }
  0x18   : > { %325 = vst [vmem:[%s243_s8 + $0x40] sm:$0xff] %v324_v8 }
  0x19   : > { %327 = vst [vmem:[%s243_s8 + $0x48] sm:$0xff] %v326_v9 }
  0x1a   : > { %329 = vst [vmem:[%s243_s8 + $0x50] sm:$0xff] %v328_v10 }
  0x1b   : > { %331 = vst [vmem:[%s243_s8 + $0x58] sm:$0xff] %v330_v11 }
  0x1c   : > { %333 = vst [vmem:[%s243_s8 + $0x60] sm:$0xff] %v332_v12 }
  0x1d   : > { %335 = vst [vmem:[%s243_s8 + $0x68] sm:$0xff] %v334_v13 }
  0x1e   : > { %337 = vst [vmem:[%s243_s8 + $0x70] sm:$0xff] %v336_v14 }
  0x1f   : > { %339 = vst [vmem:[%s243_s8 + $0x78] sm:$0xff] %v338_v15 }
  0x20 PF: > { %p1114_p6 = scmp.ge.s32.totalorder %s1382_s22, 1  ;;  %p356_p7 = scmp.lt.s32.totalorder %s1382_s22, 4 }
  0x22   : > { %p357_p8 = pnand %p1114_p6, %p356_p7 }
  0x23   : > { %s363_s9 = sand.u32 (!%p357_p8), 1, %s1366_s18   ;;  %s1116_s10 = sshll.u32 (!%p357_p8), %s1374_s20, 5 }
  0x24   : > { %360 = sbr.rel (%p357_p8) target bundleno = 315 (0x13b), region = 74  ;;  %s1115_s11 = sshll.u32 (!%p357_p8), %s363_s9, 7 }
  0x25   : > { %p418_p9 = scmp.lt.s32.totalorder (!%p357_p8), %s1116_s10, 95  ;;  %s1485_s16 = scalar_lea.vmem (!%p357_p8), [#allocation2], %s1115_s11 }
  0x26   : > { %p1118_p10 = scmp.ne.s32.totalorder (!%p357_p8), %s1374_s20, 0 }
  0x29   : > { %s1895_s10 = smov (!%p418_p9, %s1116_s10), 95  ;;  %453 = sbr.rel (%p1118_p10) target bundleno = 63 (0x3f), region = 82 }
  0x2a   : > { %s1117_s12 = sshll.u32 %s1895_s10, 2 }
  0x2b   : > { %s1483_s15 = scalar_lea.vmem %s1883_s1, %s1117_s12 }
  0x2e   : > { %v1384_v16 = vmov 0.0  }
  0x2f   : > { %454 = vst [vmem:[%s1887_s5] sm:$0xff] %v1384_v16 }
  0x30   : > { %455 = vst [vmem:[%s1887_s5 + $0x8] sm:$0xff] %v1384_v16 }
  0x31   : > { %456 = vst [vmem:[%s1887_s5 + $0x10] sm:$0xff] %v1384_v16 }
  0x32   : > { %457 = vst [vmem:[%s1887_s5 + $0x18] sm:$0xff] %v1384_v16 }
  0x33   : > { %458 = vst [vmem:[%s1887_s5 + $0x20] sm:$0xff] %v1384_v16 }
  0x34   : > { %459 = vst [vmem:[%s1887_s5 + $0x28] sm:$0xff] %v1384_v16 }
  0x35   : > { %460 = vst [vmem:[%s1887_s5 + $0x30] sm:$0xff] %v1384_v16 }
  0x36   : > { %461 = vst [vmem:[%s1887_s5 + $0x38] sm:$0xff] %v1384_v16 }
  0x37   : > { %462 = vst [vmem:[%s1887_s5 + $0x40] sm:$0xff] %v1384_v16 }
  0x38   : > { %463 = vst [vmem:[%s1887_s5 + $0x48] sm:$0xff] %v1384_v16 }
  0x39   : > { %464 = vst [vmem:[%s1887_s5 + $0x50] sm:$0xff] %v1384_v16 }
  0x3a   : > { %465 = vst [vmem:[%s1887_s5 + $0x58] sm:$0xff] %v1384_v16 }
  0x3b   : > { %466 = vst [vmem:[%s1887_s5 + $0x60] sm:$0xff] %v1384_v16 }
  0x3c   : > { %467 = vst [vmem:[%s1887_s5 + $0x68] sm:$0xff] %v1384_v16 }
  0x3d   : > { %468 = vst [vmem:[%s1887_s5 + $0x70] sm:$0xff] %v1384_v16 }
  0x3e   : > { %469 = vst [vmem:[%s1887_s5 + $0x78] sm:$0xff] %v1384_v16 }
  0x3f PF: > { %v1276_v17 = vld [vmem:[%s1483_s15 + $0x38] sm:$0xff]  ;;  %v1275_v19 = vld [vmem:[%s1483_s15 + $0x30] sm:$0xff]  ;;  %v1274_v21 = vld [vmem:[%s1483_s15 + $0x28] sm:$0xff]  ;;  %p1247_p11 = scmp.ne.s32.totalorder %s1374_s20, 2 }
  0x40   : > { %v1284_v18 = vld [vmem:[%s1483_s15 + $0x78] sm:$0xff]  ;;  %710 = vmatpush.bf16.msra.mxu0 %v1276_v17  ;;  %1285 = vmatpush.bf16.msra.mxu2 %v1276_v17  ;;  %v1283_v20 = vld [vmem:[%s1483_s15 + $0x70] sm:$0xff]  ;;  %v1282_v22 = vld [vmem:[%s1483_s15 + $0x68] sm:$0xff] }
  0x41   : > { %759 = vmatpush.bf16.msra.mxu1 %v1284_v18  ;;  %1293 = vmatpush.bf16.msra.mxu3 %v1284_v18  ;;  %v1273_v23 = vld [vmem:[%s1483_s15 + $0x20] sm:$0xff]  ;;  %v1272_v25 = vld [vmem:[%s1483_s15 + $0x18] sm:$0xff]  ;;  %v1271_v27 = vld [vmem:[%s1483_s15 + $0x10] sm:$0xff] }
  0x42   : > { %v1281_v24 = vld [vmem:[%s1483_s15 + $0x60] sm:$0xff]  ;;  %v1280_v26 = vld [vmem:[%s1483_s15 + $0x58] sm:$0xff]  ;;  %v1279_v28 = vld [vmem:[%s1483_s15 + $0x50] sm:$0xff] }
  0x43   : > { %v1270_v29 = vld [vmem:[%s1483_s15 + $0x8] sm:$0xff]  ;;  %v1269_v31 = vld [vmem:[%s1483_s15] sm:$0xff]  ;;  %v1129_v45 = vld [vmem:[%s1485_s16 + $0x10] sm:$0xf] }
  0x44   : > { %711 = vmatpush.bf16.msra.mxu0 %v1275_v19  ;;  %1286 = vmatpush.bf16.msra.mxu2 %v1275_v19  ;;  %v1278_v30 = vld [vmem:[%s1483_s15 + $0x48] sm:$0xff]  ;;  %v1277_v32 = vld [vmem:[%s1483_s15 + $0x40] sm:$0xff]  ;;  %v1256_v46 = vld [vmem:[%s1485_s16 + $0x14] sm:$0xf0] }
  0x45   : > { %760 = vmatpush.bf16.msra.mxu1 %v1283_v20  ;;  %1294 = vmatpush.bf16.msra.mxu3 %v1283_v20  ;;  %v1121_v33 = vld [vmem:[%s1485_s16] sm:$0xf]  ;;  %v1254_v34 = vld [vmem:[%s1485_s16 + $0x4] sm:$0xf0]  ;;  %v1253_v37 = vld [vmem:[%s1485_s16 + $0x4] sm:$0xf]  ;;  %v1130_v53 = vor.u32 %v1256_v46, %v1129_v45 }
  0x46   : > { %v1153_v35 = vld [vmem:[%s1485_s16 + $0x40] sm:$0xf]  ;;  %v1262_v36 = vld [vmem:[%s1485_s16 + $0x44] sm:$0xf0]  ;;  %v1123_v38 = vld [vmem:[%s1485_s16 + $0x8] sm:$0xf0]  ;;  %v1122_v41 = vor.u32 %v1254_v34, %v1121_v33 }
  0x47   : > { %v1261_v39 = vld [vmem:[%s1485_s16 + $0x44] sm:$0xf]  ;;  %v1155_v40 = vld [vmem:[%s1485_s16 + $0x48] sm:$0xf0]  ;;  %v1154_v42 = vor.u32 %v1262_v36, %v1153_v35  ;;  %v1126_v43 = vor.u32 %v1253_v37, %v1123_v38  ;;  %v1161_v47 = vld [vmem:[%s1485_s16 + $0x50] sm:$0xf] }
  0x48   : > { %712 = vmatpush.bf16.msra.mxu0 %v1274_v21  ;;  %1287 = vmatpush.bf16.msra.mxu2 %v1274_v21  ;;  %v1158_v44 = vor.u32 %v1261_v39, %v1155_v40  ;;  %v1264_v48 = vld [vmem:[%s1485_s16 + $0x54] sm:$0xf0]  ;;  %v1255_v49 = vld [vmem:[%s1485_s16 + $0x14] sm:$0xf]  ;;  %v1131_v50 = vld [vmem:[%s1485_s16 + $0x18] sm:$0xf0] }
  0x49   : > { %761 = vmatpush.bf16.msra.mxu1 %v1282_v22  ;;  %1295 = vmatpush.bf16.msra.mxu3 %v1282_v22  ;;  %v1263_v51 = vld [vmem:[%s1485_s16 + $0x54] sm:$0xf]  ;;  %v1163_v52 = vld [vmem:[%s1485_s16 + $0x58] sm:$0xf0]  ;;  %v1162_v54 = vor.u32 %v1264_v48, %v1161_v47  ;;  %v1134_v55 = vor.u32 %v1255_v49, %v1131_v50  ;;  %v1137_v57 = vld [vmem:[%s1485_s16 + $0x20] sm:$0xf] }
  0x4a   : > { %v1166_v56 = vor.u32 %v1263_v51, %v1163_v52  ;;  %v1258_v58 = vld [vmem:[%s1485_s16 + $0x24] sm:$0xf0]  ;;  %v1169_v59 = vld [vmem:[%s1485_s16 + $0x60] sm:$0xf]  ;;  %v1257_v61 = vld [vmem:[%s1485_s16 + $0x24] sm:$0xf] }
  0x4b   : > { %v1266_v60 = vld [vmem:[%s1485_s16 + $0x64] sm:$0xf0]  ;;  %v1139_v62 = vld [vmem:[%s1485_s16 + $0x28] sm:$0xf0]  ;;  %v1265_v63 = vld [vmem:[%s1485_s16 + $0x64] sm:$0xf]  ;;  %v1138_v1 = vor.u32 %v1258_v58, %v1137_v57 }
  0x4c   : > { %713 = vmatpush.bf16.msra.mxu0 %v1273_v23  ;;  %1288 = vmatpush.bf16.msra.mxu2 %v1273_v23  ;;  %v1171_v0 = vld [vmem:[%s1485_s16 + $0x68] sm:$0xf0]  ;;  %v1170_v2 = vor.u32 %v1266_v60, %v1169_v59  ;;  %v1142_v3 = vor.u32 %v1257_v61, %v1139_v62  ;;  %v1145_v5 = vld [vmem:[%s1485_s16 + $0x30] sm:$0xf]  ;;  %v1260_v6 = vld [vmem:[%s1485_s16 + $0x34] sm:$0xf0] }
  0x4d   : > { %762 = vmatpush.bf16.msra.mxu1 %v1281_v24  ;;  %1296 = vmatpush.bf16.msra.mxu3 %v1281_v24  ;;  %v1174_v4 = vor.u32 %v1265_v63, %v1171_v0  ;;  %v1177_v7 = vld [vmem:[%s1485_s16 + $0x70] sm:$0xf]  ;;  %v1268_v8 = vld [vmem:[%s1485_s16 + $0x74] sm:$0xf0]  ;;  %v1259_v9 = vld [vmem:[%s1485_s16 + $0x34] sm:$0xf]  ;;  %v1146_v13 = vor.u32 %v1260_v6, %v1145_v5 }
  0x4e   : > { %v1147_v10 = vld [vmem:[%s1485_s16 + $0x38] sm:$0xf0]  ;;  %v1267_v11 = vld [vmem:[%s1485_s16 + $0x74] sm:$0xf]  ;;  %v1178_v14 = vor.u32 %v1268_v8, %v1177_v7  ;;  %v470_v18 = vld [vmem:[%s1887_s5] sm:$0xff] }
  0x4f   : > { %v1179_v12 = vld [vmem:[%s1485_s16 + $0x78] sm:$0xf0]  ;;  %v1150_v15 = vor.u32 %v1259_v9, %v1147_v10  ;;  %v478_v23 = vld [vmem:[%s1887_s5 + $0x40] sm:$0xff]  ;;  %v479_v33 = vld [vmem:[%s1887_s5 + $0x48] sm:$0xff] }
  0x50   : > { %714 = vmatpush.bf16.msra.mxu0 %v1272_v25  ;;  %1289 = vmatpush.bf16.msra.mxu2 %v1272_v25  ;;  %v1182_v16 = vor.u32 %v1267_v11, %v1179_v12  ;;  %v472_v37 = vld [vmem:[%s1887_s5 + $0x10] sm:$0xff]  ;;  %v473_v47 = vld [vmem:[%s1887_s5 + $0x18] sm:$0xff]  ;;  %v474_v57 = vld [vmem:[%s1887_s5 + $0x20] sm:$0xff] }
  0x51   : > { %763 = vmatpush.bf16.msra.mxu1 %v1280_v26  ;;  %1297 = vmatpush.bf16.msra.mxu3 %v1280_v26  ;;  %v482_v63 = vld [vmem:[%s1887_s5 + $0x60] sm:$0xff]  ;;  %v483_v9 = vld [vmem:[%s1887_s5 + $0x68] sm:$0xff] }
  0x54   : > { %715 = vmatpush.bf16.msra.mxu0 %v1271_v27  ;;  %1290 = vmatpush.bf16.msra.mxu2 %v1271_v27  ;;  %v471_v27 = vld [vmem:[%s1887_s5 + $0x8] sm:$0xff] }
  0x55   : > { %764 = vmatpush.bf16.msra.mxu1 %v1279_v28  ;;  %1298 = vmatpush.bf16.msra.mxu3 %v1279_v28 }
  0x58   : > { %716 = vmatpush.bf16.msra.mxu0 %v1270_v29  ;;  %1291 = vmatpush.bf16.msra.mxu2 %v1270_v29 }
  0x59   : > { %765 = vmatpush.bf16.msra.mxu1 %v1278_v30  ;;  %1299 = vmatpush.bf16.msra.mxu3 %v1278_v30 }
  0x5c   : > { %717 = vmatpush.bf16.msra.mxu0 %v1269_v31  ;;  %1292 = vmatpush.bf16.msra.mxu2 %v1269_v31 }
  0x5d   : > { %766 = vmatpush.bf16.msra.mxu1 %v1277_v32  ;;  %1300 = vmatpush.bf16.msra.mxu3 %v1277_v32 }
  0x5f   : > { %718 = vmatmul.bf16.vlgmr.msra.gmra.mxu0 %v1122_v41  ;;  %738 = vmatmul.bf16.vlgmr.msra.gmra.mxu2 %v1154_v42 }
  0x60   : > { %767 = vmatmul.bf16.vlgmr.msra.gmra.mxu1 %v1126_v43  ;;  %787 = vmatmul.bf16.vlgmr.msra.gmra.mxu3 %v1158_v44  ;;  %v480_v43 = vld [vmem:[%s1887_s5 + $0x50] sm:$0xff] }
  0x6f   : > { %723 = vmatmul.bf16.gmra.mxu0 %v1130_v53  ;;  %743 = vmatmul.bf16.gmra.mxu2 %v1162_v54  ;;  %v481_v53 = vld [vmem:[%s1887_s5 + $0x58] sm:$0xff] }
  0x70   : > { %772 = vmatmul.bf16.gmra.mxu1 %v1134_v55  ;;  %792 = vmatmul.bf16.gmra.mxu3 %v1166_v56 }
  0x7f   : > { %728 = vmatmul.bf16.gmra.mxu0 %v1138_v1  ;;  %748 = vmatmul.bf16.gmra.mxu2 %v1170_v2 }
  0x80   : > { %777 = vmatmul.bf16.gmra.mxu1 %v1142_v3  ;;  %797 = vmatmul.bf16.gmra.mxu3 %v1174_v4  ;;  %v475_v3 = vld [vmem:[%s1887_s5 + $0x28] sm:$0xff] }
  0x8f   : > { %733 = vmatmul.bf16.gmra.mxu0 %v1146_v13  ;;  %753 = vmatmul.bf16.gmra.mxu2 %v1178_v14  ;;  %v476_v13 = vld [vmem:[%s1887_s5 + $0x30] sm:$0xff] }
  0x90   : > { %782 = vmatmul.bf16.gmra.mxu1 %v1150_v15  ;;  %802 = vmatmul.bf16.gmra.mxu3 %v1182_v16 }
  0xdc   : > { %v719_v17 = vpop.f32.mrf.mxu0 }
  0xdd   : > { %v768_v19 = vpop.f32.mrf.mxu1 }
  0xde   : > { %v769_v20 = vadd.f32 %v768_v19, %v719_v17  ;;  %v484_v19 = vld [vmem:[%s1887_s5 + $0x70] sm:$0xff] }
  0xe0   : > { %v808_v21 = vadd.f32 %v769_v20, %v470_v18 }
  0xe2   : > { %824 = vst [vmem:[%s1887_s5] sm:$0xff] %v808_v21  ;;  %v739_v22 = vpop.f32.mrf.mxu2 }
  0xe3   : > { %v788_v24 = vpop.f32.mrf.mxu3 }
  0xe4   : > { %v789_v25 = vadd.f32 %v788_v24, %v739_v22  ;;  %v721_v26 = vpop.f32.mrf.mxu0 }
  0xe5   : > { %v770_v28 = vpop.f32.mrf.mxu1 }
  0xe6   : > { %v816_v29 = vadd.f32 %v789_v25, %v478_v23  ;;  %v771_v30 = vadd.f32 %v770_v28, %v721_v26  ;;  %v477_v23 = vld [vmem:[%s1887_s5 + $0x38] sm:$0xff] }
  0xe8   : > { %832 = vst [vmem:[%s1887_s5 + $0x40] sm:$0xff] %v816_v29  ;;  %v809_v31 = vadd.f32 %v771_v30, %v471_v27  ;;  %v485_v29 = vld [vmem:[%s1887_s5 + $0x78] sm:$0xff] }
  0xea   : > { %825 = vst [vmem:[%s1887_s5 + $0x8] sm:$0xff] %v809_v31  ;;  %v741_v32 = vpop.f32.mrf.mxu2 }
  0xeb   : > { %v790_v34 = vpop.f32.mrf.mxu3 }
  0xec   : > { %v791_v35 = vadd.f32 %v790_v34, %v741_v32  ;;  %v724_v36 = vpop.f32.mrf.mxu0 }
  0xed   : > { %v773_v38 = vpop.f32.mrf.mxu1 }
  0xee   : > { %v817_v39 = vadd.f32 %v791_v35, %v479_v33  ;;  %v774_v40 = vadd.f32 %v773_v38, %v724_v36 }
  0xf0   : > { %833 = vst [vmem:[%s1887_s5 + $0x48] sm:$0xff] %v817_v39  ;;  %v810_v41 = vadd.f32 %v774_v40, %v472_v37 }
  0xf2   : > { %826 = vst [vmem:[%s1887_s5 + $0x10] sm:$0xff] %v810_v41  ;;  %v744_v42 = vpop.f32.mrf.mxu2 }
  0xf3   : > { %v793_v44 = vpop.f32.mrf.mxu3 }
  0xf4   : > { %v794_v45 = vadd.f32 %v793_v44, %v744_v42  ;;  %v726_v46 = vpop.f32.mrf.mxu0 }
  0xf5   : > { %v775_v48 = vpop.f32.mrf.mxu1 }
  0xf6   : > { %v818_v49 = vadd.f32 %v794_v45, %v480_v43  ;;  %v776_v50 = vadd.f32 %v775_v48, %v726_v46 }
  0xf8   : > { %834 = vst [vmem:[%s1887_s5 + $0x50] sm:$0xff] %v818_v49  ;;  %v811_v51 = vadd.f32 %v776_v50, %v473_v47 }
  0xfa   : > { %827 = vst [vmem:[%s1887_s5 + $0x18] sm:$0xff] %v811_v51  ;;  %v746_v52 = vpop.f32.mrf.mxu2 }
  0xfb   : > { %v795_v54 = vpop.f32.mrf.mxu3 }
  0xfc   : > { %v796_v55 = vadd.f32 %v795_v54, %v746_v52  ;;  %v729_v56 = vpop.f32.mrf.mxu0 }
  0xfd   : > { %v778_v58 = vpop.f32.mrf.mxu1 }
  0xfe   : > { %v819_v59 = vadd.f32 %v796_v55, %v481_v53  ;;  %v779_v60 = vadd.f32 %v778_v58, %v729_v56 }
 0x100   : > { %835 = vst [vmem:[%s1887_s5 + $0x58] sm:$0xff] %v819_v59  ;;  %v812_v61 = vadd.f32 %v779_v60, %v474_v57 }
 0x102   : > { %828 = vst [vmem:[%s1887_s5 + $0x20] sm:$0xff] %v812_v61  ;;  %v749_v62 = vpop.f32.mrf.mxu2 }
 0x103   : > { %v798_v0 = vpop.f32.mrf.mxu3 }
 0x104   : > { %v799_v1 = vadd.f32 %v798_v0, %v749_v62  ;;  %v731_v2 = vpop.f32.mrf.mxu0 }
 0x105   : > { %v780_v4 = vpop.f32.mrf.mxu1 }
 0x106   : > { %v820_v5 = vadd.f32 %v799_v1, %v482_v63  ;;  %v781_v6 = vadd.f32 %v780_v4, %v731_v2 }
 0x108   : > { %836 = vst [vmem:[%s1887_s5 + $0x60] sm:$0xff] %v820_v5  ;;  %v813_v7 = vadd.f32 %v781_v6, %v475_v3 }
 0x10a   : > { %829 = vst [vmem:[%s1887_s5 + $0x28] sm:$0xff] %v813_v7  ;;  %v751_v8 = vpop.f32.mrf.mxu2 }
 0x10b   : > { %v800_v10 = vpop.f32.mrf.mxu3 }
 0x10c   : > { %v801_v11 = vadd.f32 %v800_v10, %v751_v8  ;;  %v734_v12 = vpop.f32.mrf.mxu0 }
 0x10d   : > { %v783_v14 = vpop.f32.mrf.mxu1 }
 0x10e   : > { %v821_v15 = vadd.f32 %v801_v11, %v483_v9  ;;  %v784_v16 = vadd.f32 %v783_v14, %v734_v12 }
 0x110   : > { %837 = vst [vmem:[%s1887_s5 + $0x68] sm:$0xff] %v821_v15  ;;  %v814_v17 = vadd.f32 %v784_v16, %v476_v13 }
 0x112   : > { %830 = vst [vmem:[%s1887_s5 + $0x30] sm:$0xff] %v814_v17  ;;  %v754_v18 = vpop.f32.mrf.mxu2 }
 0x113   : > { %v803_v20 = vpop.f32.mrf.mxu3 }
 0x114   : > { %v804_v21 = vadd.f32 %v803_v20, %v754_v18  ;;  %v736_v22 = vpop.f32.mrf.mxu0 }
 0x115   : > { %v785_v24 = vpop.f32.mrf.mxu1 }
 0x116   : > { %v822_v25 = vadd.f32 %v804_v21, %v484_v19  ;;  %v786_v26 = vadd.f32 %v785_v24, %v736_v22 }
 0x118   : > { %838 = vst [vmem:[%s1887_s5 + $0x70] sm:$0xff] %v822_v25  ;;  %v815_v27 = vadd.f32 %v786_v26, %v477_v23 }
 0x11a   : > { %831 = vst [vmem:[%s1887_s5 + $0x38] sm:$0xff] %v815_v27  ;;  %v756_v28 = vpop.f32.mrf.mxu2 }
 0x11b   : > { %v805_v30 = vpop.f32.mrf.mxu3 }
 0x11c   : > { %v806_v31 = vadd.f32 %v805_v30, %v756_v28  ;;  %843 = sbr.rel (%p1247_p11) target bundleno = 315 (0x13b), region = 86 }
 0x11e   : > { %v823_v32 = vadd.f32 %v806_v31, %v485_v29 }
 0x120   : > { %839 = vst [vmem:[%s1887_s5 + $0x78] sm:$0xff] %v823_v32 }
 0x121   : > { %v844_v33 = vld [vmem:[%s1887_s5] sm:$0xff]  ;;  %v845_v37 = vld [vmem:[%s1887_s5 + $0x8] sm:$0xff]  ;;  %v846_v38 = vld [vmem:[%s1887_s5 + $0x10] sm:$0xff] }
 0x122   : > { %v1687_v34 = vld [vmem:[%s1884_s2] ss:$0 sm:$0xff]  ;;  %v901_v41 = vld [vmem:[%s1886_s4 + $0x8] sm:$0xff]  ;;  %v847_v43 = vld [vmem:[%s1887_s5 + $0x18] sm:$0xff] }
 0x123   : > { %v1692_v35 = vld [vmem:[%s1885_s3] ss:$0 sm:$0xff]  ;;  %v864_v36 = vmul.f32 %v1687_v34, %v844_v33  ;;  %v865_v40 = vmul.f32 %v1687_v34, %v845_v37  ;;  %v866_v42 = vmul.f32 %v1687_v34, %v846_v38  ;;  %v902_v45 = vld [vmem:[%s1886_s4 + $0x10] sm:$0xff]  ;;  %v867_v46 = vmul.f32 %v1687_v34, %v847_v43  ;;  %v849_v48 = vld [vmem:[%s1887_s5 + $0x28] sm:$0xff] }
 0x124   : > { %v900_v39 = vld [vmem:[%s1886_s4] sm:$0xff]  ;;  %v903_v51 = vld [vmem:[%s1886_s4 + $0x18] sm:$0xff]  ;;  %v869_v53 = vmul.f32 %v1687_v34, %v849_v48  ;;  %v850_v54 = vld [vmem:[%s1887_s5 + $0x30] sm:$0xff] }
 0x125   : > { %v884_v44 = vadd.f32 %v1692_v35, %v864_v36  ;;  %v848_v47 = vld [vmem:[%s1887_s5 + $0x20] sm:$0xff]  ;;  %v885_v49 = vadd.f32 %v1692_v35, %v865_v40  ;;  %v886_v50 = vadd.f32 %v1692_v35, %v866_v42  ;;  %v887_v56 = vadd.f32 %v1692_v35, %v867_v46  ;;  %v905_v58 = vld [vmem:[%s1886_s4 + $0x28] sm:$0xff]  ;;  %v851_v60 = vld [vmem:[%s1887_s5 + $0x38] sm:$0xff] }
 0x126   : > { %v868_v52 = vmul.f32 %v1687_v34, %v848_v47  ;;  %v904_v57 = vld [vmem:[%s1886_s4 + $0x20] sm:$0xff]  ;;  %v870_v59 = vmul.f32 %v1687_v34, %v850_v54  ;;  %v889_v0 = vadd.f32 %v1692_v35, %v869_v53  ;;  %v906_v1 = vld [vmem:[%s1886_s4 + $0x30] sm:$0xff]  ;;  %v871_v6 = vmul.f32 %v1687_v34, %v851_v60  ;;  %v853_v7 = vld [vmem:[%s1887_s5 + $0x48] sm:$0xff] }
 0x127   : > { %v916_v55 = vadd.f32 %v900_v39, %v884_v44  ;;  %v917_v61 = vadd.f32 %v901_v41, %v885_v49  ;;  %v918_v62 = vadd.f32 %v902_v45, %v886_v50  ;;  %v852_v2 = vld [vmem:[%s1887_s5 + $0x40] sm:$0xff]  ;;  %v919_v4 = vadd.f32 %v903_v51, %v887_v56  ;;  %v854_v8 = vld [vmem:[%s1887_s5 + $0x50] sm:$0xff]  ;;  %v907_v13 = vld [vmem:[%s1886_s4 + $0x38] sm:$0xff] }
 0x128   : > { %v888_v63 = vadd.f32 %v1692_v35, %v868_v52  ;;  %v890_v5 = vadd.f32 %v1692_v35, %v870_v59  ;;  %v921_v12 = vadd.f32 %v905_v58, %v889_v0  ;;  %v855_v14 = vld [vmem:[%s1887_s5 + $0x58] sm:$0xff]  ;;  %v891_v17 = vadd.f32 %v1692_v35, %v871_v6  ;;  %v856_v19 = vld [vmem:[%s1887_s5 + $0x60] sm:$0xff]  ;;  %v857_v20 = vld [vmem:[%s1887_s5 + $0x68] sm:$0xff] }
 0x129   : > { %v932_v3 = vmax.f32 %v916_v55, 0.0  ;;  %v933_v9 = vmax.f32 %v917_v61, 0.0  ;;  %v934_v10 = vmax.f32 %v918_v62, 0.0  ;;  %v935_v15 = vmax.f32 %v919_v4, 0.0  ;;  %v908_v23 = vld [vmem:[%s1886_s4 + $0x40] sm:$0xff]  ;;  %v858_v26 = vld [vmem:[%s1887_s5 + $0x70] sm:$0xff] }
 0x12a   : > { %v920_v11 = vadd.f32 %v904_v57, %v888_v63  ;;  %v922_v16 = vadd.f32 %v906_v1, %v890_v5  ;;  %v872_v18 = vmul.f32 %v1687_v34, %v852_v2  ;;  %v937_v22 = vmax.f32 %v921_v12, 0.0  ;;  %v909_v30 = vld [vmem:[%s1886_s4 + $0x48] sm:$0xff]  ;;  %v910_v31 = vld [vmem:[%s1886_s4 + $0x50] sm:$0xff]  ;;  %v911_v37 = vld [vmem:[%s1886_s4 + $0x58] sm:$0xff] }
 0x12b   : > { %948 = vst [vmem:[%s1887_s5] sm:$0xff] %v932_v3  ;;  %v873_v24 = vmul.f32 %v1687_v34, %v853_v7  ;;  %v874_v25 = vmul.f32 %v1687_v34, %v854_v8  ;;  %v923_v28 = vadd.f32 %v907_v13, %v891_v17  ;;  %v875_v32 = vmul.f32 %v1687_v34, %v855_v14  ;;  %v859_v40 = vld [vmem:[%s1887_s5 + $0x78] sm:$0xff]  ;;  %v912_v44 = vld [vmem:[%s1886_s4 + $0x60] sm:$0xff]  ;;  %v913_v45 = vld [vmem:[%s1886_s4 + $0x68] sm:$0xff] }
 0x12c   : > { %949 = vst [vmem:[%s1887_s5 + $0x8] sm:$0xff] %v933_v9  ;;  %v936_v21 = vmax.f32 %v920_v11, 0.0  ;;  %v938_v27 = vmax.f32 %v922_v16, 0.0  ;;  %v892_v29 = vadd.f32 %v1692_v35, %v872_v18  ;;  %v876_v38 = vmul.f32 %v1687_v34, %v856_v19  ;;  %v914_v51 = vld [vmem:[%s1886_s4 + $0x70] sm:$0xff]  ;;  %v915_v60 = vld [vmem:[%s1886_s4 + $0x78] sm:$0xff] }
 0x12d   : > { %950 = vst [vmem:[%s1887_s5 + $0x10] sm:$0xff] %v934_v10  ;;  %v893_v33 = vadd.f32 %v1692_v35, %v873_v24  ;;  %v894_v36 = vadd.f32 %v1692_v35, %v874_v25  ;;  %v877_v39 = vmul.f32 %v1687_v34, %v857_v20  ;;  %v939_v41 = vmax.f32 %v923_v28, 0.0 }
 0x12e   : > { %951 = vst [vmem:[%s1887_s5 + $0x18] sm:$0xff] %v935_v15  ;;  %v924_v42 = vadd.f32 %v908_v23, %v892_v29  ;;  %v895_v43 = vadd.f32 %v1692_v35, %v875_v32  ;;  %v878_v46 = vmul.f32 %v1687_v34, %v858_v26  ;;  %v896_v49 = vadd.f32 %v1692_v35, %v876_v38 }
 0x12f   : > { %952 = vst [vmem:[%s1887_s5 + $0x20] sm:$0xff] %v936_v21  ;;  %v925_v47 = vadd.f32 %v909_v30, %v893_v33  ;;  %v926_v48 = vadd.f32 %v910_v31, %v894_v36  ;;  %v897_v50 = vadd.f32 %v1692_v35, %v877_v39  ;;  %v879_v55 = vmul.f32 %v1687_v34, %v859_v40 }
 0x130   : > { %953 = vst [vmem:[%s1887_s5 + $0x28] sm:$0xff] %v937_v22  ;;  %v940_v52 = vmax.f32 %v924_v42, 0.0  ;;  %v927_v53 = vadd.f32 %v911_v37, %v895_v43  ;;  %v898_v54 = vadd.f32 %v1692_v35, %v878_v46  ;;  %v928_v58 = vadd.f32 %v912_v44, %v896_v49 }
 0x131   : > { %954 = vst [vmem:[%s1887_s5 + $0x30] sm:$0xff] %v938_v27  ;;  %v941_v56 = vmax.f32 %v925_v47, 0.0  ;;  %v942_v57 = vmax.f32 %v926_v48, 0.0  ;;  %v929_v59 = vadd.f32 %v913_v45, %v897_v50  ;;  %v899_v34 = vadd.f32 %v1692_v35, %v879_v55 }
 0x132   : > { %955 = vst [vmem:[%s1887_s5 + $0x38] sm:$0xff] %v939_v41  ;;  %v943_v61 = vmax.f32 %v927_v53, 0.0  ;;  %v930_v62 = vadd.f32 %v914_v51, %v898_v54  ;;  %v944_v63 = vmax.f32 %v928_v58, 0.0 }
 0x133   : > { %956 = vst [vmem:[%s1887_s5 + $0x40] sm:$0xff] %v940_v52  ;;  %v945_v0 = vmax.f32 %v929_v59, 0.0  ;;  %v931_v2 = vadd.f32 %v915_v60, %v899_v34 }
 0x134   : > { %957 = vst [vmem:[%s1887_s5 + $0x48] sm:$0xff] %v941_v56  ;;  %v946_v1 = vmax.f32 %v930_v62, 0.0 }
 0x135   : > { %958 = vst [vmem:[%s1887_s5 + $0x50] sm:$0xff] %v942_v57  ;;  %v947_v35 = vmax.f32 %v931_v2, 0.0 }
 0x136   : > { %959 = vst [vmem:[%s1887_s5 + $0x58] sm:$0xff] %v943_v61 }
 0x137   : > { %960 = vst [vmem:[%s1887_s5 + $0x60] sm:$0xff] %v944_v63 }
 0x138   : > { %961 = vst [vmem:[%s1887_s5 + $0x68] sm:$0xff] %v945_v0 }
 0x139   : > { %962 = vst [vmem:[%s1887_s5 + $0x70] sm:$0xff] %v946_v1 }
 0x13a   : > { %963 = vst [vmem:[%s1887_s5 + $0x78] sm:$0xff] %v947_v35 }
 0x13b PF: > { %s15_s22 = sadd.s32 1, %s1382_s22   ;;  %s1888_s18 = smov %s1370_s19 }
 0x13c   : > { %p12_p12 = scmp.ge.s32.totalorder %s15_s22, 5   ;;  %s1889_s19 = smov %s1450_s26 }
 0x13d   : > { %s1890_s20 = smov %s1378_s21  ;;  %s1891_s21 = smov %s1893_s23 }
 0x13e   :  { %14 = sbr.rel (!%p12_p12) target bundleno = 3 (0x3), region = 133 }

// kernel: multimodal_forward.24
= control target key start
LH: loop header
LB: loop body
LE: loop exit
PB: predicated region body
PF: predicated region fallthrough
CT: control target
= control target key end

     0   :  { %s1299_s15 = smov 0   ;;  %s1301_s16 = smov 0   ;;  %s1700_s0 = inlined_call_operand.vmem [shape: bf16[128,768], index: 0, kind: input, shape index: {}]   ;;  %s1701_s1 = inlined_call_operand.vmem [shape: bf16[768,128], index: 1, kind: input, shape index: {}]   ;;  %s1702_s2 = inlined_call_operand.vmem [shape: f32[1,128], index: 2, kind: input, shape index: {}]   ;;  %s1703_s3 = inlined_call_operand.vmem [shape: f32[1,128], index: 3, kind: input, shape index: {}]   ;;  %s1704_s4 = inlined_call_operand.vmem [shape: f32[128,128], index: 4, kind: output, shape index: {}]  }
   0x1   :  { %s1303_s17 = smov 0   ;;  %s1305_s18 = smov 0  }
   0x2   :  { %s1307_s19 = smov 0  }
   0x3 LB: > { %s26_s20 = sadd.s32 1, %s1267_s18  ;;  %p49_p1 = scmp.ne.s32.totalorder %s1259_s16, %s1255_s15  ;;  %s1271_s19 = sphi %s1307_s19, %s14_s19   ;;  %s1267_s18 = sphi %s1305_s18, %s1708_s18   ;;  %s1263_s17 = sphi %s1303_s17, %s1707_s17   ;;  %s1259_s16 = sphi %s1301_s16, %s1706_s16   ;;  %s1255_s15 = sphi %s1299_s15, %s1705_s15  }
   0x4   : > { %p27_p0 = scmp.ge.s32.totalorder %s26_s20, 3  ;;  %p50_p2 = scmp.eq.s32.totalorder %s1271_s19, 0 }
   0x5   : > { %s42_s22 = sadd.s32 1, %s1259_s16  ;;  %p999_p5 = scmp.ge.s32.totalorder %s1271_s19, 3 }
   0x6   : > { %s1710_s20 = smov (%p27_p0, %s26_s20), 0  ;;  %p51_p3 = por %p50_p2, %p49_p1 }
   0x7   : > { %s38_s21 = ssub.s32 %s1267_s18, %s1710_s20  ;;  %195 = sbr.rel (%p999_p5) target bundleno = 32 (0x20), region = 24 }
   0x8   : > { %p40_p4 = scmp.eq.s32.totalorder %s38_s21, 0 }
   0xa   : > { %s1334_s23 = scalar_select %p40_p4, %s1259_s16, %s42_s22  }
   0xc   : > { %198 = sbr.rel (!%p51_p3) target bundleno = 32 (0x20), region = 28  ;;  %s200_s24 = sand.u32 (%p51_p3), 1, %s1259_s16  }
   0xd   : > { %s1141_s25 = sshll.u32 (%p51_p3), %s1267_s18, 3  ;;  %s1000_s26 = sshll.u32 (%p51_p3), %s200_s24, 7 }
   0xe   : > { %s1342_s29 = scalar_lea.vmem (%p51_p3), %s1700_s0, %s1141_s25  ;;  %s202_s30 = scalar_lea.vmem (%p51_p3), [#allocation2], %s1000_s26 }
   0xf   : > { %v267_v0 = vld [vmem:[%s1342_s29] sm:$0xff] (%p51_p3)  ;;  %v269_v1 = vld [vmem:[%s1342_s29 + $0x18] sm:$0xff] (%p51_p3)  ;;  %v271_v2 = vld [vmem:[%s1342_s29 + $0x30] sm:$0xff] (%p51_p3) }
  0x10   : > { %268 = vst [vmem:[%s202_s30] sm:$0xff] (%p51_p3), %v267_v0  ;;  %v273_v3 = vld [vmem:[%s1342_s29 + $0x48] sm:$0xff] (%p51_p3)  ;;  %v275_v4 = vld [vmem:[%s1342_s29 + $0x60] sm:$0xff] (%p51_p3)  ;;  %v277_v5 = vld [vmem:[%s1342_s29 + $0x78] sm:$0xff] (%p51_p3) }
  0x11   : > { %270 = vst [vmem:[%s202_s30 + $0x8] sm:$0xff] %v269_v1  ;;  %v279_v6 = vld [vmem:[%s1342_s29 + $0x90] sm:$0xff]  ;;  %v281_v7 = vld [vmem:[%s1342_s29 + $0xa8] sm:$0xff]  ;;  %v283_v8 = vld [vmem:[%s1342_s29 + $0xc0] sm:$0xff] }
  0x12   : > { %272 = vst [vmem:[%s202_s30 + $0x10] sm:$0xff] %v271_v2  ;;  %v285_v9 = vld [vmem:[%s1342_s29 + $0xd8] sm:$0xff]  ;;  %v287_v10 = vld [vmem:[%s1342_s29 + $0xf0] sm:$0xff]  ;;  %v289_v11 = vld [vmem:[%s1342_s29 + $0x108] sm:$0xff] }
  0x13   : > { %274 = vst [vmem:[%s202_s30 + $0x18] sm:$0xff] %v273_v3  ;;  %v291_v12 = vld [vmem:[%s1342_s29 + $0x120] sm:$0xff]  ;;  %v293_v13 = vld [vmem:[%s1342_s29 + $0x138] sm:$0xff]  ;;  %v295_v14 = vld [vmem:[%s1342_s29 + $0x150] sm:$0xff] }
  0x14   : > { %276 = vst [vmem:[%s202_s30 + $0x20] sm:$0xff] %v275_v4  ;;  %v297_v15 = vld [vmem:[%s1342_s29 + $0x168] sm:$0xff] }
  0x15   : > { %278 = vst [vmem:[%s202_s30 + $0x28] sm:$0xff] %v277_v5 }
  0x16   : > { %280 = vst [vmem:[%s202_s30 + $0x30] sm:$0xff] %v279_v6 }
  0x17   : > { %282 = vst [vmem:[%s202_s30 + $0x38] sm:$0xff] %v281_v7 }
  0x18   : > { %284 = vst [vmem:[%s202_s30 + $0x40] sm:$0xff] %v283_v8 }
  0x19   : > { %286 = vst [vmem:[%s202_s30 + $0x48] sm:$0xff] %v285_v9 }
  0x1a   : > { %288 = vst [vmem:[%s202_s30 + $0x50] sm:$0xff] %v287_v10 }
  0x1b   : > { %290 = vst [vmem:[%s202_s30 + $0x58] sm:$0xff] %v289_v11 }
  0x1c   : > { %292 = vst [vmem:[%s202_s30 + $0x60] sm:$0xff] %v291_v12 }
  0x1d   : > { %294 = vst [vmem:[%s202_s30 + $0x68] sm:$0xff] %v293_v13 }
  0x1e   : > { %296 = vst [vmem:[%s202_s30 + $0x70] sm:$0xff] %v295_v14 }
  0x1f   : > { %298 = vst [vmem:[%s202_s30 + $0x78] sm:$0xff] %v297_v15 }
  0x20 PF: > { %p1003_p6 = scmp.ge.s32.totalorder %s1271_s19, 1  ;;  %p315_p7 = scmp.lt.s32.totalorder %s1271_s19, 4 }
  0x22   : > { %p316_p8 = pnand %p1003_p6, %p315_p7 }
  0x23   : > { %s322_s5 = sand.u32 (!%p316_p8), 1, %s1255_s15   ;;  %s1005_s6 = sshll.u32 (!%p316_p8), %s1263_s17, 5 }
  0x24   : > { %319 = sbr.rel (%p316_p8) target bundleno = 313 (0x139), region = 70  ;;  %s1004_s7 = sshll.u32 (!%p316_p8), %s322_s5, 7 }
  0x25   : > { %p367_p9 = scmp.lt.s32.totalorder (!%p316_p8), %s1005_s6, 95  ;;  %s1369_s12 = scalar_lea.vmem (!%p316_p8), [#allocation2], %s1004_s7 }
  0x26   : > { %p1007_p10 = scmp.ne.s32.totalorder (!%p316_p8), %s1263_s17, 0 }
  0x29   : > { %s1712_s6 = smov (!%p367_p9, %s1005_s6), 95  ;;  %393 = sbr.rel (%p1007_p10) target bundleno = 63 (0x3f), region = 78 }
  0x2a   : > { %s1006_s8 = sshll.u32 %s1712_s6, 2 }
  0x2b   : > { %s1367_s11 = scalar_lea.vmem %s1701_s1, %s1006_s8 }
  0x2e   : > { %v1273_v16 = vmov 0.0  }
  0x2f   : > { %394 = vst [vmem:[%s1704_s4] sm:$0xff] %v1273_v16 }
  0x30   : > { %395 = vst [vmem:[%s1704_s4 + $0x8] sm:$0xff] %v1273_v16 }
  0x31   : > { %396 = vst [vmem:[%s1704_s4 + $0x10] sm:$0xff] %v1273_v16 }
  0x32   : > { %397 = vst [vmem:[%s1704_s4 + $0x18] sm:$0xff] %v1273_v16 }
  0x33   : > { %398 = vst [vmem:[%s1704_s4 + $0x20] sm:$0xff] %v1273_v16 }
  0x34   : > { %399 = vst [vmem:[%s1704_s4 + $0x28] sm:$0xff] %v1273_v16 }
  0x35   : > { %400 = vst [vmem:[%s1704_s4 + $0x30] sm:$0xff] %v1273_v16 }
  0x36   : > { %401 = vst [vmem:[%s1704_s4 + $0x38] sm:$0xff] %v1273_v16 }
  0x37   : > { %402 = vst [vmem:[%s1704_s4 + $0x40] sm:$0xff] %v1273_v16 }
  0x38   : > { %403 = vst [vmem:[%s1704_s4 + $0x48] sm:$0xff] %v1273_v16 }
  0x39   : > { %404 = vst [vmem:[%s1704_s4 + $0x50] sm:$0xff] %v1273_v16 }
  0x3a   : > { %405 = vst [vmem:[%s1704_s4 + $0x58] sm:$0xff] %v1273_v16 }
  0x3b   : > { %406 = vst [vmem:[%s1704_s4 + $0x60] sm:$0xff] %v1273_v16 }
  0x3c   : > { %407 = vst [vmem:[%s1704_s4 + $0x68] sm:$0xff] %v1273_v16 }
  0x3d   : > { %408 = vst [vmem:[%s1704_s4 + $0x70] sm:$0xff] %v1273_v16 }
  0x3e   : > { %409 = vst [vmem:[%s1704_s4 + $0x78] sm:$0xff] %v1273_v16 }
  0x3f PF: > { %v1165_v17 = vld [vmem:[%s1367_s11 + $0x38] sm:$0xff]  ;;  %v1164_v19 = vld [vmem:[%s1367_s11 + $0x30] sm:$0xff]  ;;  %v1163_v21 = vld [vmem:[%s1367_s11 + $0x28] sm:$0xff]  ;;  %p1136_p11 = scmp.ne.s32.totalorder %s1263_s17, 2 }
  0x40   : > { %v1173_v18 = vld [vmem:[%s1367_s11 + $0x78] sm:$0xff]  ;;  %650 = vmatpush.bf16.msra.mxu0 %v1165_v17  ;;  %1174 = vmatpush.bf16.msra.mxu2 %v1165_v17  ;;  %v1172_v20 = vld [vmem:[%s1367_s11 + $0x70] sm:$0xff]  ;;  %v1171_v22 = vld [vmem:[%s1367_s11 + $0x68] sm:$0xff] }
  0x41   : > { %699 = vmatpush.bf16.msra.mxu1 %v1173_v18  ;;  %1182 = vmatpush.bf16.msra.mxu3 %v1173_v18  ;;  %v1162_v23 = vld [vmem:[%s1367_s11 + $0x20] sm:$0xff]  ;;  %v1161_v25 = vld [vmem:[%s1367_s11 + $0x18] sm:$0xff]  ;;  %v1160_v27 = vld [vmem:[%s1367_s11 + $0x10] sm:$0xff] }
  0x42   : > { %v1170_v24 = vld [vmem:[%s1367_s11 + $0x60] sm:$0xff]  ;;  %v1169_v26 = vld [vmem:[%s1367_s11 + $0x58] sm:$0xff]  ;;  %v1168_v28 = vld [vmem:[%s1367_s11 + $0x50] sm:$0xff] }
  0x43   : > { %v1159_v29 = vld [vmem:[%s1367_s11 + $0x8] sm:$0xff]  ;;  %v1158_v31 = vld [vmem:[%s1367_s11] sm:$0xff]  ;;  %v1018_v45 = vld [vmem:[%s1369_s12 + $0x10] sm:$0xf] }
  0x44   : > { %651 = vmatpush.bf16.msra.mxu0 %v1164_v19  ;;  %1175 = vmatpush.bf16.msra.mxu2 %v1164_v19  ;;  %v1167_v30 = vld [vmem:[%s1367_s11 + $0x48] sm:$0xff]  ;;  %v1166_v32 = vld [vmem:[%s1367_s11 + $0x40] sm:$0xff]  ;;  %v1145_v46 = vld [vmem:[%s1369_s12 + $0x14] sm:$0xf0] }
  0x45   : > { %700 = vmatpush.bf16.msra.mxu1 %v1172_v20  ;;  %1183 = vmatpush.bf16.msra.mxu3 %v1172_v20  ;;  %v1010_v33 = vld [vmem:[%s1369_s12] sm:$0xf]  ;;  %v1143_v34 = vld [vmem:[%s1369_s12 + $0x4] sm:$0xf0]  ;;  %v1142_v37 = vld [vmem:[%s1369_s12 + $0x4] sm:$0xf]  ;;  %v1019_v53 = vor.u32 %v1145_v46, %v1018_v45 }
  0x46   : > { %v1042_v35 = vld [vmem:[%s1369_s12 + $0x40] sm:$0xf]  ;;  %v1151_v36 = vld [vmem:[%s1369_s12 + $0x44] sm:$0xf0]  ;;  %v1012_v38 = vld [vmem:[%s1369_s12 + $0x8] sm:$0xf0]  ;;  %v1011_v41 = vor.u32 %v1143_v34, %v1010_v33 }
  0x47   : > { %v1150_v39 = vld [vmem:[%s1369_s12 + $0x44] sm:$0xf]  ;;  %v1044_v40 = vld [vmem:[%s1369_s12 + $0x48] sm:$0xf0]  ;;  %v1043_v42 = vor.u32 %v1151_v36, %v1042_v35  ;;  %v1015_v43 = vor.u32 %v1142_v37, %v1012_v38  ;;  %v1050_v47 = vld [vmem:[%s1369_s12 + $0x50] sm:$0xf] }
  0x48   : > { %652 = vmatpush.bf16.msra.mxu0 %v1163_v21  ;;  %1176 = vmatpush.bf16.msra.mxu2 %v1163_v21  ;;  %v1047_v44 = vor.u32 %v1150_v39, %v1044_v40  ;;  %v1153_v48 = vld [vmem:[%s1369_s12 + $0x54] sm:$0xf0]  ;;  %v1144_v49 = vld [vmem:[%s1369_s12 + $0x14] sm:$0xf]  ;;  %v1020_v50 = vld [vmem:[%s1369_s12 + $0x18] sm:$0xf0] }
  0x49   : > { %701 = vmatpush.bf16.msra.mxu1 %v1171_v22  ;;  %1184 = vmatpush.bf16.msra.mxu3 %v1171_v22  ;;  %v1152_v51 = vld [vmem:[%s1369_s12 + $0x54] sm:$0xf]  ;;  %v1052_v52 = vld [vmem:[%s1369_s12 + $0x58] sm:$0xf0]  ;;  %v1051_v54 = vor.u32 %v1153_v48, %v1050_v47  ;;  %v1023_v55 = vor.u32 %v1144_v49, %v1020_v50  ;;  %v1026_v57 = vld [vmem:[%s1369_s12 + $0x20] sm:$0xf] }
  0x4a   : > { %v1055_v56 = vor.u32 %v1152_v51, %v1052_v52  ;;  %v1147_v58 = vld [vmem:[%s1369_s12 + $0x24] sm:$0xf0]  ;;  %v1058_v59 = vld [vmem:[%s1369_s12 + $0x60] sm:$0xf]  ;;  %v1146_v61 = vld [vmem:[%s1369_s12 + $0x24] sm:$0xf] }
  0x4b   : > { %v1155_v60 = vld [vmem:[%s1369_s12 + $0x64] sm:$0xf0]  ;;  %v1028_v62 = vld [vmem:[%s1369_s12 + $0x28] sm:$0xf0]  ;;  %v1154_v63 = vld [vmem:[%s1369_s12 + $0x64] sm:$0xf]  ;;  %v1027_v1 = vor.u32 %v1147_v58, %v1026_v57 }
  0x4c   : > { %653 = vmatpush.bf16.msra.mxu0 %v1162_v23  ;;  %1177 = vmatpush.bf16.msra.mxu2 %v1162_v23  ;;  %v1060_v0 = vld [vmem:[%s1369_s12 + $0x68] sm:$0xf0]  ;;  %v1059_v2 = vor.u32 %v1155_v60, %v1058_v59  ;;  %v1031_v3 = vor.u32 %v1146_v61, %v1028_v62  ;;  %v1034_v5 = vld [vmem:[%s1369_s12 + $0x30] sm:$0xf]  ;;  %v1149_v6 = vld [vmem:[%s1369_s12 + $0x34] sm:$0xf0] }
  0x4d   : > { %702 = vmatpush.bf16.msra.mxu1 %v1170_v24  ;;  %1185 = vmatpush.bf16.msra.mxu3 %v1170_v24  ;;  %v1063_v4 = vor.u32 %v1154_v63, %v1060_v0  ;;  %v1066_v7 = vld [vmem:[%s1369_s12 + $0x70] sm:$0xf]  ;;  %v1157_v8 = vld [vmem:[%s1369_s12 + $0x74] sm:$0xf0]  ;;  %v1148_v9 = vld [vmem:[%s1369_s12 + $0x34] sm:$0xf]  ;;  %v1035_v13 = vor.u32 %v1149_v6, %v1034_v5 }
  0x4e   : > { %v1036_v10 = vld [vmem:[%s1369_s12 + $0x38] sm:$0xf0]  ;;  %v1156_v11 = vld [vmem:[%s1369_s12 + $0x74] sm:$0xf]  ;;  %v1067_v14 = vor.u32 %v1157_v8, %v1066_v7  ;;  %v410_v18 = vld [vmem:[%s1704_s4] sm:$0xff] }
  0x4f   : > { %v1068_v12 = vld [vmem:[%s1369_s12 + $0x78] sm:$0xf0]  ;;  %v1039_v15 = vor.u32 %v1148_v9, %v1036_v10  ;;  %v418_v23 = vld [vmem:[%s1704_s4 + $0x40] sm:$0xff]  ;;  %v419_v33 = vld [vmem:[%s1704_s4 + $0x48] sm:$0xff] }
  0x50   : > { %654 = vmatpush.bf16.msra.mxu0 %v1161_v25  ;;  %1178 = vmatpush.bf16.msra.mxu2 %v1161_v25  ;;  %v1071_v16 = vor.u32 %v1156_v11, %v1068_v12  ;;  %v412_v37 = vld [vmem:[%s1704_s4 + $0x10] sm:$0xff]  ;;  %v413_v47 = vld [vmem:[%s1704_s4 + $0x18] sm:$0xff]  ;;  %v414_v57 = vld [vmem:[%s1704_s4 + $0x20] sm:$0xff] }
  0x51   : > { %703 = vmatpush.bf16.msra.mxu1 %v1169_v26  ;;  %1186 = vmatpush.bf16.msra.mxu3 %v1169_v26  ;;  %v422_v63 = vld [vmem:[%s1704_s4 + $0x60] sm:$0xff]  ;;  %v423_v9 = vld [vmem:[%s1704_s4 + $0x68] sm:$0xff] }
  0x54   : > { %655 = vmatpush.bf16.msra.mxu0 %v1160_v27  ;;  %1179 = vmatpush.bf16.msra.mxu2 %v1160_v27  ;;  %v411_v27 = vld [vmem:[%s1704_s4 + $0x8] sm:$0xff] }
  0x55   : > { %704 = vmatpush.bf16.msra.mxu1 %v1168_v28  ;;  %1187 = vmatpush.bf16.msra.mxu3 %v1168_v28 }
  0x58   : > { %656 = vmatpush.bf16.msra.mxu0 %v1159_v29  ;;  %1180 = vmatpush.bf16.msra.mxu2 %v1159_v29 }
  0x59   : > { %705 = vmatpush.bf16.msra.mxu1 %v1167_v30  ;;  %1188 = vmatpush.bf16.msra.mxu3 %v1167_v30 }
  0x5c   : > { %657 = vmatpush.bf16.msra.mxu0 %v1158_v31  ;;  %1181 = vmatpush.bf16.msra.mxu2 %v1158_v31 }
  0x5d   : > { %706 = vmatpush.bf16.msra.mxu1 %v1166_v32  ;;  %1189 = vmatpush.bf16.msra.mxu3 %v1166_v32 }
  0x5f   : > { %658 = vmatmul.bf16.vlgmr.msra.gmra.mxu0 %v1011_v41  ;;  %678 = vmatmul.bf16.vlgmr.msra.gmra.mxu2 %v1043_v42 }
  0x60   : > { %707 = vmatmul.bf16.vlgmr.msra.gmra.mxu1 %v1015_v43  ;;  %727 = vmatmul.bf16.vlgmr.msra.gmra.mxu3 %v1047_v44  ;;  %v420_v43 = vld [vmem:[%s1704_s4 + $0x50] sm:$0xff] }
  0x6f   : > { %663 = vmatmul.bf16.gmra.mxu0 %v1019_v53  ;;  %683 = vmatmul.bf16.gmra.mxu2 %v1051_v54  ;;  %v421_v53 = vld [vmem:[%s1704_s4 + $0x58] sm:$0xff] }
  0x70   : > { %712 = vmatmul.bf16.gmra.mxu1 %v1023_v55  ;;  %732 = vmatmul.bf16.gmra.mxu3 %v1055_v56 }
  0x7f   : > { %668 = vmatmul.bf16.gmra.mxu0 %v1027_v1  ;;  %688 = vmatmul.bf16.gmra.mxu2 %v1059_v2 }
  0x80   : > { %717 = vmatmul.bf16.gmra.mxu1 %v1031_v3  ;;  %737 = vmatmul.bf16.gmra.mxu3 %v1063_v4  ;;  %v415_v3 = vld [vmem:[%s1704_s4 + $0x28] sm:$0xff] }
  0x8f   : > { %673 = vmatmul.bf16.gmra.mxu0 %v1035_v13  ;;  %693 = vmatmul.bf16.gmra.mxu2 %v1067_v14  ;;  %v416_v13 = vld [vmem:[%s1704_s4 + $0x30] sm:$0xff] }
  0x90   : > { %722 = vmatmul.bf16.gmra.mxu1 %v1039_v15  ;;  %742 = vmatmul.bf16.gmra.mxu3 %v1071_v16 }
  0xdc   : > { %v659_v17 = vpop.f32.mrf.mxu0 }
  0xdd   : > { %v708_v19 = vpop.f32.mrf.mxu1 }
  0xde   : > { %v709_v20 = vadd.f32 %v708_v19, %v659_v17  ;;  %v424_v19 = vld [vmem:[%s1704_s4 + $0x70] sm:$0xff] }
  0xe0   : > { %v748_v21 = vadd.f32 %v709_v20, %v410_v18 }
  0xe2   : > { %764 = vst [vmem:[%s1704_s4] sm:$0xff] %v748_v21  ;;  %v679_v22 = vpop.f32.mrf.mxu2 }
  0xe3   : > { %v728_v24 = vpop.f32.mrf.mxu3 }
  0xe4   : > { %v729_v25 = vadd.f32 %v728_v24, %v679_v22  ;;  %v661_v26 = vpop.f32.mrf.mxu0 }
  0xe5   : > { %v710_v28 = vpop.f32.mrf.mxu1 }
  0xe6   : > { %v756_v29 = vadd.f32 %v729_v25, %v418_v23  ;;  %v711_v30 = vadd.f32 %v710_v28, %v661_v26  ;;  %v417_v23 = vld [vmem:[%s1704_s4 + $0x38] sm:$0xff] }
  0xe8   : > { %772 = vst [vmem:[%s1704_s4 + $0x40] sm:$0xff] %v756_v29  ;;  %v749_v31 = vadd.f32 %v711_v30, %v411_v27  ;;  %v425_v29 = vld [vmem:[%s1704_s4 + $0x78] sm:$0xff] }
  0xea   : > { %765 = vst [vmem:[%s1704_s4 + $0x8] sm:$0xff] %v749_v31  ;;  %v681_v32 = vpop.f32.mrf.mxu2 }
  0xeb   : > { %v730_v34 = vpop.f32.mrf.mxu3 }
  0xec   : > { %v731_v35 = vadd.f32 %v730_v34, %v681_v32  ;;  %v664_v36 = vpop.f32.mrf.mxu0 }
  0xed   : > { %v713_v38 = vpop.f32.mrf.mxu1 }
  0xee   : > { %v757_v39 = vadd.f32 %v731_v35, %v419_v33  ;;  %v714_v40 = vadd.f32 %v713_v38, %v664_v36 }
  0xf0   : > { %773 = vst [vmem:[%s1704_s4 + $0x48] sm:$0xff] %v757_v39  ;;  %v750_v41 = vadd.f32 %v714_v40, %v412_v37 }
  0xf2   : > { %766 = vst [vmem:[%s1704_s4 + $0x10] sm:$0xff] %v750_v41  ;;  %v684_v42 = vpop.f32.mrf.mxu2 }
  0xf3   : > { %v733_v44 = vpop.f32.mrf.mxu3 }
  0xf4   : > { %v734_v45 = vadd.f32 %v733_v44, %v684_v42  ;;  %v666_v46 = vpop.f32.mrf.mxu0 }
  0xf5   : > { %v715_v48 = vpop.f32.mrf.mxu1 }
  0xf6   : > { %v758_v49 = vadd.f32 %v734_v45, %v420_v43  ;;  %v716_v50 = vadd.f32 %v715_v48, %v666_v46 }
  0xf8   : > { %774 = vst [vmem:[%s1704_s4 + $0x50] sm:$0xff] %v758_v49  ;;  %v751_v51 = vadd.f32 %v716_v50, %v413_v47 }
  0xfa   : > { %767 = vst [vmem:[%s1704_s4 + $0x18] sm:$0xff] %v751_v51  ;;  %v686_v52 = vpop.f32.mrf.mxu2 }
  0xfb   : > { %v735_v54 = vpop.f32.mrf.mxu3 }
  0xfc   : > { %v736_v55 = vadd.f32 %v735_v54, %v686_v52  ;;  %v669_v56 = vpop.f32.mrf.mxu0 }
  0xfd   : > { %v718_v58 = vpop.f32.mrf.mxu1 }
  0xfe   : > { %v759_v59 = vadd.f32 %v736_v55, %v421_v53  ;;  %v719_v60 = vadd.f32 %v718_v58, %v669_v56 }
 0x100   : > { %775 = vst [vmem:[%s1704_s4 + $0x58] sm:$0xff] %v759_v59  ;;  %v752_v61 = vadd.f32 %v719_v60, %v414_v57 }
 0x102   : > { %768 = vst [vmem:[%s1704_s4 + $0x20] sm:$0xff] %v752_v61  ;;  %v689_v62 = vpop.f32.mrf.mxu2 }
 0x103   : > { %v738_v0 = vpop.f32.mrf.mxu3 }
 0x104   : > { %v739_v1 = vadd.f32 %v738_v0, %v689_v62  ;;  %v671_v2 = vpop.f32.mrf.mxu0 }
 0x105   : > { %v720_v4 = vpop.f32.mrf.mxu1 }
 0x106   : > { %v760_v5 = vadd.f32 %v739_v1, %v422_v63  ;;  %v721_v6 = vadd.f32 %v720_v4, %v671_v2 }
 0x108   : > { %776 = vst [vmem:[%s1704_s4 + $0x60] sm:$0xff] %v760_v5  ;;  %v753_v7 = vadd.f32 %v721_v6, %v415_v3 }
 0x10a   : > { %769 = vst [vmem:[%s1704_s4 + $0x28] sm:$0xff] %v753_v7  ;;  %v691_v8 = vpop.f32.mrf.mxu2 }
 0x10b   : > { %v740_v10 = vpop.f32.mrf.mxu3 }
 0x10c   : > { %v741_v11 = vadd.f32 %v740_v10, %v691_v8  ;;  %v674_v12 = vpop.f32.mrf.mxu0 }
 0x10d   : > { %v723_v14 = vpop.f32.mrf.mxu1 }
 0x10e   : > { %v761_v15 = vadd.f32 %v741_v11, %v423_v9  ;;  %v724_v16 = vadd.f32 %v723_v14, %v674_v12 }
 0x110   : > { %777 = vst [vmem:[%s1704_s4 + $0x68] sm:$0xff] %v761_v15  ;;  %v754_v17 = vadd.f32 %v724_v16, %v416_v13 }
 0x112   : > { %770 = vst [vmem:[%s1704_s4 + $0x30] sm:$0xff] %v754_v17  ;;  %v694_v18 = vpop.f32.mrf.mxu2 }
 0x113   : > { %v743_v20 = vpop.f32.mrf.mxu3 }
 0x114   : > { %v744_v21 = vadd.f32 %v743_v20, %v694_v18  ;;  %v676_v22 = vpop.f32.mrf.mxu0 }
 0x115   : > { %v725_v24 = vpop.f32.mrf.mxu1 }
 0x116   : > { %v762_v25 = vadd.f32 %v744_v21, %v424_v19  ;;  %v726_v26 = vadd.f32 %v725_v24, %v676_v22 }
 0x118   : > { %778 = vst [vmem:[%s1704_s4 + $0x70] sm:$0xff] %v762_v25  ;;  %v755_v27 = vadd.f32 %v726_v26, %v417_v23 }
 0x11a   : > { %771 = vst [vmem:[%s1704_s4 + $0x38] sm:$0xff] %v755_v27  ;;  %v696_v28 = vpop.f32.mrf.mxu2 }
 0x11b   : > { %v745_v30 = vpop.f32.mrf.mxu3 }
 0x11c   : > { %v746_v31 = vadd.f32 %v745_v30, %v696_v28  ;;  %783 = sbr.rel (%p1136_p11) target bundleno = 313 (0x139), region = 82 }
 0x11e   : > { %v763_v32 = vadd.f32 %v746_v31, %v425_v29 }
 0x120   : > { %779 = vst [vmem:[%s1704_s4 + $0x78] sm:$0xff] %v763_v32 }
 0x121   : > { %v784_v33 = vld [vmem:[%s1704_s4] sm:$0xff]  ;;  %v785_v36 = vld [vmem:[%s1704_s4 + $0x8] sm:$0xff]  ;;  %v786_v39 = vld [vmem:[%s1704_s4 + $0x10] sm:$0xff] }
 0x122   : > { %v1231_v34 = vld [vmem:[%s1702_s2] ss:$0 sm:$0xff]  ;;  %v787_v40 = vld [vmem:[%s1704_s4 + $0x18] sm:$0xff]  ;;  %v789_v45 = vld [vmem:[%s1704_s4 + $0x28] sm:$0xff] }
 0x123   : > { %v1574_v35 = vld [vmem:[%s1703_s3] ss:$0 sm:$0xff]  ;;  %v804_v37 = vmul.f32 %v1231_v34, %v784_v33  ;;  %v805_v38 = vmul.f32 %v1231_v34, %v785_v36  ;;  %v806_v42 = vmul.f32 %v1231_v34, %v786_v39  ;;  %v807_v43 = vmul.f32 %v1231_v34, %v787_v40  ;;  %v790_v46 = vld [vmem:[%s1704_s4 + $0x30] sm:$0xff]  ;;  %v791_v47 = vld [vmem:[%s1704_s4 + $0x38] sm:$0xff] }
 0x124   : > { %v788_v41 = vld [vmem:[%s1704_s4 + $0x20] sm:$0xff]  ;;  %v809_v50 = vmul.f32 %v1231_v34, %v789_v45  ;;  %v810_v51 = vmul.f32 %v1231_v34, %v790_v46  ;;  %v811_v55 = vmul.f32 %v1231_v34, %v791_v47  ;;  %v793_v57 = vld [vmem:[%s1704_s4 + $0x48] sm:$0xff]  ;;  %v794_v62 = vld [vmem:[%s1704_s4 + $0x50] sm:$0xff] }
 0x125   : > { %v808_v44 = vmul.f32 %v1231_v34, %v788_v41  ;;  %v824_v48 = vadd.f32 %v1574_v35, %v804_v37  ;;  %v825_v49 = vadd.f32 %v1574_v35, %v805_v38  ;;  %v826_v52 = vadd.f32 %v1574_v35, %v806_v42  ;;  %v792_v56 = vld [vmem:[%s1704_s4 + $0x40] sm:$0xff]  ;;  %v795_v63 = vld [vmem:[%s1704_s4 + $0x58] sm:$0xff]  ;;  %v797_v4 = vld [vmem:[%s1704_s4 + $0x68] sm:$0xff] }
 0x126   : > { %v827_v53 = vadd.f32 %v1574_v35, %v807_v43  ;;  %v829_v60 = vadd.f32 %v1574_v35, %v809_v50  ;;  %v830_v61 = vadd.f32 %v1574_v35, %v810_v51  ;;  %v796_v0 = vld [vmem:[%s1704_s4 + $0x60] sm:$0xff]  ;;  %v831_v3 = vadd.f32 %v1574_v35, %v811_v55  ;;  %v798_v5 = vld [vmem:[%s1704_s4 + $0x70] sm:$0xff] }
 0x127   : > { %v828_v54 = vadd.f32 %v1574_v35, %v808_v44  ;;  %v840_v58 = vmax.f32 %v824_v48, 0.0  ;;  %v841_v59 = vmax.f32 %v825_v49, 0.0  ;;  %v842_v1 = vmax.f32 %v826_v52, 0.0  ;;  %v799_v10 = vld [vmem:[%s1704_s4 + $0x78] sm:$0xff] }
 0x128   : > { %v843_v2 = vmax.f32 %v827_v53, 0.0  ;;  %v845_v7 = vmax.f32 %v829_v60, 0.0  ;;  %v812_v8 = vmul.f32 %v1231_v34, %v792_v56  ;;  %v813_v9 = vmul.f32 %v1231_v34, %v793_v57 }
 0x129   : > { %856 = vst [vmem:[%s1704_s4] sm:$0xff] %v840_v58  ;;  %v844_v6 = vmax.f32 %v828_v54, 0.0  ;;  %v846_v11 = vmax.f32 %v830_v61, 0.0  ;;  %v814_v12 = vmul.f32 %v1231_v34, %v794_v62  ;;  %v815_v13 = vmul.f32 %v1231_v34, %v795_v63 }
 0x12a   : > { %857 = vst [vmem:[%s1704_s4 + $0x8] sm:$0xff] %v841_v59  ;;  %v816_v14 = vmul.f32 %v1231_v34, %v796_v0  ;;  %v832_v15 = vadd.f32 %v1574_v35, %v812_v8  ;;  %v833_v16 = vadd.f32 %v1574_v35, %v813_v9  ;;  %v817_v17 = vmul.f32 %v1231_v34, %v797_v4 }
 0x12b   : > { %858 = vst [vmem:[%s1704_s4 + $0x10] sm:$0xff] %v842_v1  ;;  %v818_v18 = vmul.f32 %v1231_v34, %v798_v5  ;;  %v847_v19 = vmax.f32 %v831_v3, 0.0  ;;  %v834_v20 = vadd.f32 %v1574_v35, %v814_v12  ;;  %v835_v21 = vadd.f32 %v1574_v35, %v815_v13 }
 0x12c   : > { %859 = vst [vmem:[%s1704_s4 + $0x18] sm:$0xff] %v843_v2  ;;  %v819_v22 = vmul.f32 %v1231_v34, %v799_v10  ;;  %v848_v23 = vmax.f32 %v832_v15, 0.0  ;;  %v836_v24 = vadd.f32 %v1574_v35, %v816_v14  ;;  %v849_v25 = vmax.f32 %v833_v16, 0.0 }
 0x12d   : > { %860 = vst [vmem:[%s1704_s4 + $0x20] sm:$0xff] %v844_v6  ;;  %v837_v26 = vadd.f32 %v1574_v35, %v817_v17  ;;  %v850_v27 = vmax.f32 %v834_v20, 0.0  ;;  %v838_v28 = vadd.f32 %v1574_v35, %v818_v18  ;;  %v851_v29 = vmax.f32 %v835_v21, 0.0 }
 0x12e   : > { %861 = vst [vmem:[%s1704_s4 + $0x28] sm:$0xff] %v845_v7  ;;  %v839_v30 = vadd.f32 %v1574_v35, %v819_v22  ;;  %v852_v31 = vmax.f32 %v836_v24, 0.0 }
 0x12f   : > { %862 = vst [vmem:[%s1704_s4 + $0x30] sm:$0xff] %v846_v11  ;;  %v853_v32 = vmax.f32 %v837_v26, 0.0  ;;  %v854_v33 = vmax.f32 %v838_v28, 0.0 }
 0x130   : > { %863 = vst [vmem:[%s1704_s4 + $0x38] sm:$0xff] %v847_v19  ;;  %v855_v34 = vmax.f32 %v839_v30, 0.0 }
 0x131   : > { %864 = vst [vmem:[%s1704_s4 + $0x40] sm:$0xff] %v848_v23 }
 0x132   : > { %865 = vst [vmem:[%s1704_s4 + $0x48] sm:$0xff] %v849_v25 }
 0x133   : > { %866 = vst [vmem:[%s1704_s4 + $0x50] sm:$0xff] %v850_v27 }
 0x134   : > { %867 = vst [vmem:[%s1704_s4 + $0x58] sm:$0xff] %v851_v29 }
 0x135   : > { %868 = vst [vmem:[%s1704_s4 + $0x60] sm:$0xff] %v852_v31 }
 0x136   : > { %869 = vst [vmem:[%s1704_s4 + $0x68] sm:$0xff] %v853_v32 }
 0x137   : > { %870 = vst [vmem:[%s1704_s4 + $0x70] sm:$0xff] %v854_v33 }
 0x138   : > { %871 = vst [vmem:[%s1704_s4 + $0x78] sm:$0xff] %v855_v34 }
 0x139 PF: > { %s14_s19 = sadd.s32 1, %s1271_s19   ;;  %s1705_s15 = smov %s1259_s16 }
 0x13a   : > { %p11_p12 = scmp.ge.s32.totalorder %s14_s19, 5   ;;  %s1706_s16 = smov %s1334_s23 }
 0x13b   : > { %s1707_s17 = smov %s1267_s18  ;;  %s1708_s18 = smov %s1710_s20 }
 0x13c   :  { %13 = sbr.rel (!%p11_p12) target bundleno = 3 (0x3), region = 126 }

// kernel: multimodal_forward.28
= control target key start
LH: loop header
LB: loop body
LE: loop exit
PB: predicated region body
PF: predicated region fallthrough
CT: control target
= control target key end

     0   :  { %s951_s15 = smov 0   ;;  %s953_s16 = smov 0   ;;  %s1112_s0 = inlined_call_operand.vmem [shape: bf16[32,768], index: 0, kind: input, shape index: {}]   ;;  %s1113_s1 = inlined_call_operand.vmem [shape: bf16[768,128], index: 1, kind: input, shape index: {}]   ;;  %s1114_s2 = inlined_call_operand.vmem [shape: f32[1,128], index: 2, kind: input, shape index: {}]   ;;  %s1115_s3 = inlined_call_operand.vmem [shape: f32[1,128], index: 3, kind: input, shape index: {}]   ;;  %s1116_s4 = inlined_call_operand.vmem [shape: f32[32,128], index: 4, kind: output, shape index: {}]  }
   0x1   :  { %s955_s17 = smov 0   ;;  %s957_s18 = smov 0  }
   0x2   :  { %s959_s19 = smov 0  }
   0x3 LB: > { %s26_s20 = sadd.s32 1, %s919_s18  ;;  %p49_p1 = scmp.ne.s32.totalorder %s911_s16, %s907_s15  ;;  %s923_s19 = sphi %s959_s19, %s14_s19   ;;  %s919_s18 = sphi %s957_s18, %s1120_s18   ;;  %s915_s17 = sphi %s955_s17, %s1119_s17   ;;  %s911_s16 = sphi %s953_s16, %s1118_s16   ;;  %s907_s15 = sphi %s951_s15, %s1117_s15  }
   0x4   : > { %p27_p0 = scmp.ge.s32.totalorder %s26_s20, 3  ;;  %p50_p2 = scmp.eq.s32.totalorder %s923_s19, 0 }
   0x5   : > { %s42_s22 = sadd.s32 1, %s911_s16  ;;  %p711_p5 = scmp.ge.s32.totalorder %s923_s19, 3 }
   0x6   : > { %s1122_s20 = smov (%p27_p0, %s26_s20), 0  ;;  %p51_p3 = por %p50_p2, %p49_p1 }
   0x7   : > { %s38_s21 = ssub.s32 %s919_s18, %s1122_s20  ;;  %195 = sbr.rel (%p711_p5) target bundleno = 20 (0x14), region = 24 }
   0x8   : > { %p40_p4 = scmp.eq.s32.totalorder %s38_s21, 0 }
   0xa   : > { %s986_s23 = scalar_select %p40_p4, %s911_s16, %s42_s22  }
   0xc   : > { %198 = sbr.rel (!%p51_p3) target bundleno = 20 (0x14), region = 28  ;;  %s200_s24 = sand.u32 (%p51_p3), 1, %s911_s16  }
   0xd   : > { %s805_s25 = sshll.u32 (%p51_p3), %s919_s18, 3  ;;  %s712_s26 = sshll.u32 (%p51_p3), %s200_s24, 5 }
   0xe   : > { %s208_s29 = scalar_lea.vmem (%p51_p3), %s1112_s0, %s805_s25  ;;  %s202_s30 = scalar_lea.vmem (%p51_p3), [#allocation2], %s712_s26 }
   0xf   : > { %v243_v0 = vld [vmem:[%s208_s29] sm:$0xff] (%p51_p3)  ;;  %v245_v1 = vld [vmem:[%s208_s29 + $0x18] sm:$0xff] (%p51_p3)  ;;  %v247_v2 = vld [vmem:[%s208_s29 + $0x30] sm:$0xff] (%p51_p3) }
  0x10   : > { %244 = vst [vmem:[%s202_s30] sm:$0xff] (%p51_p3), %v243_v0  ;;  %v249_v3 = vld [vmem:[%s208_s29 + $0x48] sm:$0xff] (%p51_p3) }
  0x11   : > { %246 = vst [vmem:[%s202_s30 + $0x8] sm:$0xff] %v245_v1 }
  0x12   : > { %248 = vst [vmem:[%s202_s30 + $0x10] sm:$0xff] %v247_v2 }
  0x13   : > { %250 = vst [vmem:[%s202_s30 + $0x18] sm:$0xff] %v249_v3 }
  0x14 PF: > { %p715_p6 = scmp.ge.s32.totalorder %s923_s19, 1  ;;  %p267_p7 = scmp.lt.s32.totalorder %s923_s19, 4 }
  0x16   : > { %p268_p8 = pnand %p715_p6, %p267_p7 }
  0x17   : > { %s274_s5 = sand.u32 (!%p268_p8), 1, %s907_s15   ;;  %s717_s6 = sshll.u32 (!%p268_p8), %s915_s17, 5 }
  0x18   : > { %271 = sbr.rel (%p268_p8) target bundleno = 231 (0xe7), region = 70  ;;  %s716_s7 = sshll.u32 (!%p268_p8), %s274_s5, 5 }
  0x19   : > { %p319_p9 = scmp.lt.s32.totalorder (!%p268_p8), %s717_s6, 95  ;;  %s1003_s12 = scalar_lea.vmem (!%p268_p8), [#allocation2], %s716_s7 }
  0x1a   : > { %p719_p10 = scmp.ne.s32.totalorder (!%p268_p8), %s915_s17, 0 }
  0x1d   : > { %s1124_s6 = smov (!%p319_p9, %s717_s6), 95  ;;  %345 = sbr.rel (%p719_p10) target bundleno = 39 (0x27), region = 78 }
  0x1e   : > { %s718_s8 = sshll.u32 %s1124_s6, 2 }
  0x1f   : > { %s1001_s11 = scalar_lea.vmem %s1113_s1, %s718_s8 }
  0x22   : > { %v925_v4 = vmov 0.0  }
  0x23   : > { %346 = vst [vmem:[%s1116_s4] sm:$0xff] %v925_v4 }
  0x24   : > { %347 = vst [vmem:[%s1116_s4 + $0x8] sm:$0xff] %v925_v4 }
  0x25   : > { %348 = vst [vmem:[%s1116_s4 + $0x10] sm:$0xff] %v925_v4 }
  0x26   : > { %349 = vst [vmem:[%s1116_s4 + $0x18] sm:$0xff] %v925_v4 }
  0x27 PF: > { %v817_v5 = vld [vmem:[%s1001_s11 + $0x38] sm:$0xff]  ;;  %v816_v7 = vld [vmem:[%s1001_s11 + $0x30] sm:$0xff]  ;;  %v815_v9 = vld [vmem:[%s1001_s11 + $0x28] sm:$0xff]  ;;  %p800_p11 = scmp.ne.s32.totalorder %s915_s17, 2 }
  0x28   : > { %v825_v6 = vld [vmem:[%s1001_s11 + $0x78] sm:$0xff]  ;;  %506 = vmatpush.bf16.msra.mxu0 %v817_v5  ;;  %826 = vmatpush.bf16.msra.mxu2 %v817_v5  ;;  %v824_v8 = vld [vmem:[%s1001_s11 + $0x70] sm:$0xff]  ;;  %v823_v10 = vld [vmem:[%s1001_s11 + $0x68] sm:$0xff] }
  0x29   : > { %525 = vmatpush.bf16.msra.mxu1 %v825_v6  ;;  %834 = vmatpush.bf16.msra.mxu3 %v825_v6  ;;  %v814_v11 = vld [vmem:[%s1001_s11 + $0x20] sm:$0xff]  ;;  %v813_v13 = vld [vmem:[%s1001_s11 + $0x18] sm:$0xff]  ;;  %v812_v15 = vld [vmem:[%s1001_s11 + $0x10] sm:$0xff] }
  0x2a   : > { %v822_v12 = vld [vmem:[%s1001_s11 + $0x60] sm:$0xff]  ;;  %v821_v14 = vld [vmem:[%s1001_s11 + $0x58] sm:$0xff]  ;;  %v820_v16 = vld [vmem:[%s1001_s11 + $0x50] sm:$0xff] }
  0x2b   : > { %v811_v17 = vld [vmem:[%s1001_s11 + $0x8] sm:$0xff]  ;;  %v810_v19 = vld [vmem:[%s1001_s11] sm:$0xff]  ;;  %v730_v23 = vld [vmem:[%s1003_s12 + $0x10] sm:$0xf] }
  0x2c   : > { %507 = vmatpush.bf16.msra.mxu0 %v816_v7  ;;  %827 = vmatpush.bf16.msra.mxu2 %v816_v7  ;;  %v819_v18 = vld [vmem:[%s1001_s11 + $0x48] sm:$0xff]  ;;  %v818_v20 = vld [vmem:[%s1001_s11 + $0x40] sm:$0xff]  ;;  %v809_v24 = vld [vmem:[%s1003_s12 + $0x14] sm:$0xf0] }
  0x2d   : > { %526 = vmatpush.bf16.msra.mxu1 %v824_v8  ;;  %835 = vmatpush.bf16.msra.mxu3 %v824_v8  ;;  %v722_v21 = vld [vmem:[%s1003_s12] sm:$0xf]  ;;  %v807_v22 = vld [vmem:[%s1003_s12 + $0x4] sm:$0xf0]  ;;  %v806_v25 = vld [vmem:[%s1003_s12 + $0x4] sm:$0xf]  ;;  %v731_v30 = vor.u32 %v809_v24, %v730_v23 }
  0x2e   : > { %v724_v26 = vld [vmem:[%s1003_s12 + $0x8] sm:$0xf0]  ;;  %v808_v27 = vld [vmem:[%s1003_s12 + $0x14] sm:$0xf]  ;;  %v732_v28 = vld [vmem:[%s1003_s12 + $0x18] sm:$0xf0]  ;;  %v723_v29 = vor.u32 %v807_v22, %v722_v21 }
  0x2f   : > { %v727_v31 = vor.u32 %v806_v25, %v724_v26  ;;  %v735_v32 = vor.u32 %v808_v27, %v732_v28  ;;  %v350_v34 = vld [vmem:[%s1116_s4] sm:$0xff]  ;;  %v352_v39 = vld [vmem:[%s1116_s4 + $0x10] sm:$0xff]  ;;  %v351_v43 = vld [vmem:[%s1116_s4 + $0x8] sm:$0xff] }
  0x30   : > { %508 = vmatpush.bf16.msra.mxu0 %v815_v9  ;;  %828 = vmatpush.bf16.msra.mxu2 %v815_v9  ;;  %v353_v49 = vld [vmem:[%s1116_s4 + $0x18] sm:$0xff] }
  0x31   : > { %527 = vmatpush.bf16.msra.mxu1 %v823_v10  ;;  %836 = vmatpush.bf16.msra.mxu3 %v823_v10 }
  0x34   : > { %509 = vmatpush.bf16.msra.mxu0 %v814_v11  ;;  %829 = vmatpush.bf16.msra.mxu2 %v814_v11 }
  0x35   : > { %528 = vmatpush.bf16.msra.mxu1 %v822_v12  ;;  %837 = vmatpush.bf16.msra.mxu3 %v822_v12 }
  0x38   : > { %510 = vmatpush.bf16.msra.mxu0 %v813_v13  ;;  %830 = vmatpush.bf16.msra.mxu2 %v813_v13 }
  0x39   : > { %529 = vmatpush.bf16.msra.mxu1 %v821_v14  ;;  %838 = vmatpush.bf16.msra.mxu3 %v821_v14 }
  0x3c   : > { %511 = vmatpush.bf16.msra.mxu0 %v812_v15  ;;  %831 = vmatpush.bf16.msra.mxu2 %v812_v15 }
  0x3d   : > { %530 = vmatpush.bf16.msra.mxu1 %v820_v16  ;;  %839 = vmatpush.bf16.msra.mxu3 %v820_v16 }
  0x40   : > { %512 = vmatpush.bf16.msra.mxu0 %v811_v17  ;;  %832 = vmatpush.bf16.msra.mxu2 %v811_v17 }
  0x41   : > { %531 = vmatpush.bf16.msra.mxu1 %v819_v18  ;;  %840 = vmatpush.bf16.msra.mxu3 %v819_v18 }
  0x44   : > { %513 = vmatpush.bf16.msra.mxu0 %v810_v19  ;;  %833 = vmatpush.bf16.msra.mxu2 %v810_v19 }
  0x45   : > { %532 = vmatpush.bf16.msra.mxu1 %v818_v20  ;;  %841 = vmatpush.bf16.msra.mxu3 %v818_v20 }
  0x47   : > { %514 = vmatmul.bf16.vlgmr.msra.gmra.mxu0 %v723_v29  ;;  %519 = vmatmul.bf16.vlgmr.msra.gmra.mxu2 %v731_v30 }
  0x48   : > { %533 = vmatmul.bf16.vlgmr.msra.gmra.mxu1 %v727_v31  ;;  %538 = vmatmul.bf16.vlgmr.msra.gmra.mxu3 %v735_v32 }
  0xc4   : > { %v515_v33 = vpop.f32.mrf.mxu0 }
  0xc5   : > { %v534_v35 = vpop.f32.mrf.mxu1 }
  0xc6   : > { %v535_v36 = vadd.f32 %v534_v35, %v515_v33 }
  0xc8   : > { %v544_v37 = vadd.f32 %v535_v36, %v350_v34 }
  0xca   : > { %548 = vst [vmem:[%s1116_s4] sm:$0xff] %v544_v37  ;;  %v520_v38 = vpop.f32.mrf.mxu2 }
  0xcb   : > { %v539_v40 = vpop.f32.mrf.mxu3 }
  0xcc   : > { %v540_v41 = vadd.f32 %v539_v40, %v520_v38  ;;  %v517_v42 = vpop.f32.mrf.mxu0 }
  0xcd   : > { %v536_v44 = vpop.f32.mrf.mxu1 }
  0xce   : > { %v546_v45 = vadd.f32 %v540_v41, %v352_v39  ;;  %v537_v46 = vadd.f32 %v536_v44, %v517_v42 }
  0xd0   : > { %550 = vst [vmem:[%s1116_s4 + $0x10] sm:$0xff] %v546_v45  ;;  %v545_v47 = vadd.f32 %v537_v46, %v351_v43 }
  0xd2   : > { %549 = vst [vmem:[%s1116_s4 + $0x8] sm:$0xff] %v545_v47  ;;  %v522_v48 = vpop.f32.mrf.mxu2 }
  0xd3   : > { %v541_v50 = vpop.f32.mrf.mxu3 }
  0xd4   : > { %v542_v51 = vadd.f32 %v541_v50, %v522_v48  ;;  %555 = sbr.rel (%p800_p11) target bundleno = 231 (0xe7), region = 82 }
  0xd6   : > { %v547_v52 = vadd.f32 %v542_v51, %v353_v49 }
  0xd8   : > { %551 = vst [vmem:[%s1116_s4 + $0x18] sm:$0xff] %v547_v52 }
  0xd9   : > { %v556_v53 = vld [vmem:[%s1116_s4] sm:$0xff]  ;;  %v557_v56 = vld [vmem:[%s1116_s4 + $0x8] sm:$0xff]  ;;  %v558_v59 = vld [vmem:[%s1116_s4 + $0x10] sm:$0xff] }
  0xda   : > { %v883_v54 = vld [vmem:[%s1114_s2] ss:$0 sm:$0xff] }
  0xdb   : > { %v884_v55 = vld [vmem:[%s1115_s3] ss:$0 sm:$0xff]  ;;  %v564_v57 = vmul.f32 %v883_v54, %v556_v53  ;;  %v565_v58 = vmul.f32 %v883_v54, %v557_v56  ;;  %v566_v61 = vmul.f32 %v883_v54, %v558_v59 }
  0xdd   : > { %v572_v63 = vadd.f32 %v884_v55, %v564_v57  ;;  %v573_v0 = vadd.f32 %v884_v55, %v565_v58  ;;  %v574_v1 = vadd.f32 %v884_v55, %v566_v61 }
  0xdf   : > { %v559_v60 = vld [vmem:[%s1116_s4 + $0x18] sm:$0xff]  ;;  %v576_v3 = vmax.f32 %v572_v63, 0.0  ;;  %v577_v4 = vmax.f32 %v573_v0, 0.0  ;;  %v578_v5 = vmax.f32 %v574_v1, 0.0 }
  0xe0   : > { %v567_v62 = vmul.f32 %v883_v54, %v559_v60 }
  0xe1   : > { %580 = vst [vmem:[%s1116_s4] sm:$0xff] %v576_v3 }
  0xe2   : > { %v575_v2 = vadd.f32 %v884_v55, %v567_v62  ;;  %581 = vst [vmem:[%s1116_s4 + $0x8] sm:$0xff] %v577_v4 }
  0xe3   : > { %582 = vst [vmem:[%s1116_s4 + $0x10] sm:$0xff] %v578_v5 }
  0xe4   : > { %v579_v6 = vmax.f32 %v575_v2, 0.0 }
  0xe6   : > { %583 = vst [vmem:[%s1116_s4 + $0x18] sm:$0xff] %v579_v6 }
  0xe7 PF: > { %s14_s19 = sadd.s32 1, %s923_s19   ;;  %s1117_s15 = smov %s911_s16 }
  0xe8   : > { %p11_p12 = scmp.ge.s32.totalorder %s14_s19, 5   ;;  %s1118_s16 = smov %s986_s23 }
  0xe9   : > { %s1119_s17 = smov %s919_s18  ;;  %s1120_s18 = smov %s1122_s20 }
  0xea   :  { %13 = sbr.rel (!%p11_p12) target bundleno = 3 (0x3), region = 126 }

// kernel: multimodal_forward.29
= control target key start
LH: loop header
LB: loop body
LE: loop exit
PB: predicated region body
PF: predicated region fallthrough
CT: control target
= control target key end

     0   :  { %s301_s1 = inlined_call_operand.vmem [shape: bf16[128,128], index: 1, kind: input, shape index: {}]   ;;  %s302_s2 = inlined_call_operand.vmem [shape: f32[1,128], index: 2, kind: input, shape index: {}]   ;;  %s303_s3 = inlined_call_operand.vmem [shape: f32[1,128], index: 3, kind: input, shape index: {}]   ;;  %s304_s0 = inlined_call_operand.vmem [shape: bf16[32,128], index: 0, kind: input, shape index: {}]   ;;  %s305_s4 = inlined_call_operand.vmem [shape: f32[32,128], index: 4, kind: output, shape index: {}]  }
   0x1   :  { %v216_v0 = vld [vmem:[%s301_s1 + $0x38] sm:$0xff]  ;;  %v215_v1 = vld [vmem:[%s301_s1 + $0x30] sm:$0xff]  ;;  %v214_v2 = vld [vmem:[%s301_s1 + $0x28] sm:$0xff] }
   0x2   :  { %109 = vmatpush.bf16.msra.mxu0 %v216_v0  ;;  %217 = vmatpush.bf16.msra.mxu1 %v216_v0  ;;  %v213_v3 = vld [vmem:[%s301_s1 + $0x20] sm:$0xff]  ;;  %v212_v4 = vld [vmem:[%s301_s1 + $0x18] sm:$0xff]  ;;  %v211_v5 = vld [vmem:[%s301_s1 + $0x10] sm:$0xff] }
   0x3   :  { %v210_v6 = vld [vmem:[%s301_s1 + $0x8] sm:$0xff]  ;;  %v209_v7 = vld [vmem:[%s301_s1] sm:$0xff] }
   0x4   :  { %v207_v8 = vld [vmem:[%s304_s0] sm:$0xff]  ;;  %v208_v9 = vld [vmem:[%s304_s0 + $0x8] sm:$0xff] }
   0x5   :  { %v226_v10 = vld [vmem:[%s302_s2] ss:$0 sm:$0xff] }
   0x6   :  { %110 = vmatpush.bf16.msra.mxu0 %v215_v1  ;;  %218 = vmatpush.bf16.msra.mxu1 %v215_v1  ;;  %v227_v13 = vld [vmem:[%s303_s3] ss:$0 sm:$0xff] }
   0xa   :  { %111 = vmatpush.bf16.msra.mxu0 %v214_v2  ;;  %219 = vmatpush.bf16.msra.mxu1 %v214_v2 }
   0xe   :  { %112 = vmatpush.bf16.msra.mxu0 %v213_v3  ;;  %220 = vmatpush.bf16.msra.mxu1 %v213_v3 }
  0x12   :  { %113 = vmatpush.bf16.msra.mxu0 %v212_v4  ;;  %221 = vmatpush.bf16.msra.mxu1 %v212_v4 }
  0x16   :  { %114 = vmatpush.bf16.msra.mxu0 %v211_v5  ;;  %222 = vmatpush.bf16.msra.mxu1 %v211_v5 }
  0x1a   :  { %115 = vmatpush.bf16.msra.mxu0 %v210_v6  ;;  %223 = vmatpush.bf16.msra.mxu1 %v210_v6 }
  0x1e   :  { %116 = vmatpush.bf16.msra.mxu0 %v209_v7  ;;  %224 = vmatpush.bf16.msra.mxu1 %v209_v7 }
  0x21   :  { %117 = vmatmul.bf16.vlgmr.msra.gmra.mxu0 %v207_v8  ;;  %122 = vmatmul.bf16.vlgmr.msra.gmra.mxu1 %v208_v9 }
  0x9e   :  { %v118_v11 = vpop.f32.mrf.mxu0  ;;  %v123_v12 = vpop.f32.mrf.mxu1 }
  0x9f   :  { %v147_v14 = vmul.f32 %v226_v10, %v118_v11  ;;  %v149_v15 = vmul.f32 %v226_v10, %v123_v12 }
  0xa1   :  { %v155_v16 = vadd.f32 %v227_v13, %v147_v14  ;;  %v157_v17 = vadd.f32 %v227_v13, %v149_v15 }
  0xa3   :  { %159 = vst [vmem:[%s305_s4] sm:$0xff] %v155_v16 }
  0xa4   :  { %161 = vst [vmem:[%s305_s4 + $0x10] sm:$0xff] %v157_v17 }
  0xa6   :  { %v120_v18 = vpop.f32.mrf.mxu0  ;;  %v125_v19 = vpop.f32.mrf.mxu1 }
  0xa7   :  { %v148_v20 = vmul.f32 %v226_v10, %v120_v18  ;;  %v150_v21 = vmul.f32 %v226_v10, %v125_v19 }
  0xa9   :  { %v156_v22 = vadd.f32 %v227_v13, %v148_v20  ;;  %v158_v23 = vadd.f32 %v227_v13, %v150_v21 }
  0xab   :  { %160 = vst [vmem:[%s305_s4 + $0x8] sm:$0xff] %v156_v22 }
  0xac   :  { %162 = vst [vmem:[%s305_s4 + $0x18] sm:$0xff] %v158_v23 }

// kernel: multimodal_forward.30
= control target key start
LH: loop header
LB: loop body
LE: loop exit
PB: predicated region body
PF: predicated region fallthrough
CT: control target
= control target key end

     0   :  { %s1043_s18 = smov 0   ;;  %s1045_s19 = smov 0   ;;  %s1216_s0 = inlined_call_operand.vmem [shape: bf16[32,1280], index: 0, kind: input, shape index: {}]   ;;  %s1217_s1 = inlined_call_operand.vmem [shape: bf16[1280,128], index: 1, kind: input, shape index: {}]   ;;  %s1218_s2 = inlined_call_operand.vmem [shape: f32[1,128], index: 2, kind: input, shape index: {}]   ;;  %s1219_s3 = inlined_call_operand.vmem [shape: f32[1,128], index: 3, kind: input, shape index: {}]   ;;  %s1220_s4 = inlined_call_operand.vmem [shape: f32[32,128], index: 4, kind: input, shape index: {}]   ;;  %s1221_s5 = inlined_call_operand.vmem [shape: f32[32,128], index: 5, kind: output, shape index: {}]  }
   0x1   :  { %s1047_s20 = smov 0   ;;  %s1049_s21 = smov 0  }
   0x2   :  { %s1051_s22 = smov 0  }
   0x3 LB: > { %s27_s23 = sadd.s32 1, %s1006_s21  ;;  %p50_p1 = scmp.ne.s32.totalorder %s998_s19, %s994_s18  ;;  %s1010_s22 = sphi %s1051_s22, %s15_s22   ;;  %s1006_s21 = sphi %s1049_s21, %s1225_s21   ;;  %s1002_s20 = sphi %s1047_s20, %s1224_s20   ;;  %s998_s19 = sphi %s1045_s19, %s1223_s19   ;;  %s994_s18 = sphi %s1043_s18, %s1222_s18  }
   0x4   : > { %p28_p0 = scmp.ge.s32.totalorder %s27_s23, 5  ;;  %p51_p2 = scmp.eq.s32.totalorder %s1010_s22, 0 }
   0x5   : > { %s43_s25 = sadd.s32 1, %s998_s19  ;;  %p798_p5 = scmp.ge.s32.totalorder %s1010_s22, 5 }
   0x6   : > { %s1227_s23 = smov (%p28_p0, %s27_s23), 0  ;;  %p52_p3 = por %p51_p2, %p50_p1 }
   0x7   : > { %s39_s24 = ssub.s32 %s1006_s21, %s1227_s23  ;;  %236 = sbr.rel (%p798_p5) target bundleno = 20 (0x14), region = 28 }
   0x8   : > { %p41_p4 = scmp.eq.s32.totalorder %s39_s24, 0 }
   0xa   : > { %s1078_s26 = scalar_select %p41_p4, %s998_s19, %s43_s25  }
   0xc   : > { %239 = sbr.rel (!%p52_p3) target bundleno = 20 (0x14), region = 32  ;;  %s241_s27 = sand.u32 (%p52_p3), 1, %s998_s19  }
   0xd   : > { %s892_s28 = sshll.u32 (%p52_p3), %s1006_s21, 3  ;;  %s799_s29 = sshll.u32 (%p52_p3), %s241_s27, 5 }
   0xe   : > { %s249_s7 = scalar_lea.vmem (%p52_p3), %s1216_s0, %s892_s28  ;;  %s243_s8 = scalar_lea.vmem (%p52_p3), [#allocation2], %s799_s29 }
   0xf   : > { %v284_v0 = vld [vmem:[%s249_s7] sm:$0xff] (%p52_p3)  ;;  %v286_v1 = vld [vmem:[%s249_s7 + $0x28] sm:$0xff] (%p52_p3)  ;;  %v288_v2 = vld [vmem:[%s249_s7 + $0x50] sm:$0xff] (%p52_p3) }
  0x10   : > { %285 = vst [vmem:[%s243_s8] sm:$0xff] (%p52_p3), %v284_v0  ;;  %v290_v3 = vld [vmem:[%s249_s7 + $0x78] sm:$0xff] (%p52_p3) }
  0x11   : > { %287 = vst [vmem:[%s243_s8 + $0x8] sm:$0xff] %v286_v1 }
  0x12   : > { %289 = vst [vmem:[%s243_s8 + $0x10] sm:$0xff] %v288_v2 }
  0x13   : > { %291 = vst [vmem:[%s243_s8 + $0x18] sm:$0xff] %v290_v3 }
  0x14 PF: > { %p802_p6 = scmp.ge.s32.totalorder %s1010_s22, 1  ;;  %p308_p7 = scmp.lt.s32.totalorder %s1010_s22, 6 }
  0x16   : > { %p309_p8 = pnand %p802_p6, %p308_p7 }
  0x17   : > { %s315_s9 = sand.u32 (!%p309_p8), 1, %s994_s18   ;;  %s804_s10 = sshll.u32 (!%p309_p8), %s1002_s20, 5 }
  0x18   : > { %312 = sbr.rel (%p309_p8) target bundleno = 233 (0xe9), region = 74  ;;  %s803_s11 = sshll.u32 (!%p309_p8), %s315_s9, 5 }
  0x19   : > { %p370_p9 = scmp.lt.s32.totalorder (!%p309_p8), %s804_s10, 159  ;;  %s1095_s16 = scalar_lea.vmem (!%p309_p8), [#allocation2], %s803_s11 }
  0x1a   : > { %p806_p10 = scmp.ne.s32.totalorder (!%p309_p8), %s1002_s20, 0 }
  0x1d   : > { %s1229_s10 = smov (!%p370_p9, %s804_s10), 159  ;;  %405 = sbr.rel (%p806_p10) target bundleno = 39 (0x27), region = 82 }
  0x1e   : > { %s805_s12 = sshll.u32 %s1229_s10, 2 }
  0x1f   : > { %s1093_s15 = scalar_lea.vmem %s1217_s1, %s805_s12 }
  0x22   : > { %v1012_v4 = vmov 0.0  }
  0x23   : > { %406 = vst [vmem:[%s1221_s5] sm:$0xff] %v1012_v4 }
  0x24   : > { %407 = vst [vmem:[%s1221_s5 + $0x8] sm:$0xff] %v1012_v4 }
  0x25   : > { %408 = vst [vmem:[%s1221_s5 + $0x10] sm:$0xff] %v1012_v4 }
  0x26   : > { %409 = vst [vmem:[%s1221_s5 + $0x18] sm:$0xff] %v1012_v4 }
  0x27 PF: > { %v904_v5 = vld [vmem:[%s1093_s15 + $0x38] sm:$0xff]  ;;  %v903_v7 = vld [vmem:[%s1093_s15 + $0x30] sm:$0xff]  ;;  %v902_v9 = vld [vmem:[%s1093_s15 + $0x28] sm:$0xff]  ;;  %p887_p11 = scmp.ne.s32.totalorder %s1002_s20, 4 }
  0x28   : > { %v912_v6 = vld [vmem:[%s1093_s15 + $0x78] sm:$0xff]  ;;  %566 = vmatpush.bf16.msra.mxu0 %v904_v5  ;;  %913 = vmatpush.bf16.msra.mxu2 %v904_v5  ;;  %v911_v8 = vld [vmem:[%s1093_s15 + $0x70] sm:$0xff]  ;;  %v910_v10 = vld [vmem:[%s1093_s15 + $0x68] sm:$0xff] }
  0x29   : > { %585 = vmatpush.bf16.msra.mxu1 %v912_v6  ;;  %921 = vmatpush.bf16.msra.mxu3 %v912_v6  ;;  %v901_v11 = vld [vmem:[%s1093_s15 + $0x20] sm:$0xff]  ;;  %v900_v13 = vld [vmem:[%s1093_s15 + $0x18] sm:$0xff]  ;;  %v899_v15 = vld [vmem:[%s1093_s15 + $0x10] sm:$0xff] }
  0x2a   : > { %v909_v12 = vld [vmem:[%s1093_s15 + $0x60] sm:$0xff]  ;;  %v908_v14 = vld [vmem:[%s1093_s15 + $0x58] sm:$0xff]  ;;  %v907_v16 = vld [vmem:[%s1093_s15 + $0x50] sm:$0xff] }
  0x2b   : > { %v898_v17 = vld [vmem:[%s1093_s15 + $0x8] sm:$0xff]  ;;  %v897_v19 = vld [vmem:[%s1093_s15] sm:$0xff]  ;;  %v817_v23 = vld [vmem:[%s1095_s16 + $0x10] sm:$0xf] }
  0x2c   : > { %567 = vmatpush.bf16.msra.mxu0 %v903_v7  ;;  %914 = vmatpush.bf16.msra.mxu2 %v903_v7  ;;  %v906_v18 = vld [vmem:[%s1093_s15 + $0x48] sm:$0xff]  ;;  %v905_v20 = vld [vmem:[%s1093_s15 + $0x40] sm:$0xff]  ;;  %v896_v24 = vld [vmem:[%s1095_s16 + $0x14] sm:$0xf0] }
  0x2d   : > { %586 = vmatpush.bf16.msra.mxu1 %v911_v8  ;;  %922 = vmatpush.bf16.msra.mxu3 %v911_v8  ;;  %v809_v21 = vld [vmem:[%s1095_s16] sm:$0xf]  ;;  %v894_v22 = vld [vmem:[%s1095_s16 + $0x4] sm:$0xf0]  ;;  %v893_v25 = vld [vmem:[%s1095_s16 + $0x4] sm:$0xf]  ;;  %v818_v30 = vor.u32 %v896_v24, %v817_v23 }
  0x2e   : > { %v811_v26 = vld [vmem:[%s1095_s16 + $0x8] sm:$0xf0]  ;;  %v895_v27 = vld [vmem:[%s1095_s16 + $0x14] sm:$0xf]  ;;  %v819_v28 = vld [vmem:[%s1095_s16 + $0x18] sm:$0xf0]  ;;  %v810_v29 = vor.u32 %v894_v22, %v809_v21 }
  0x2f   : > { %v814_v31 = vor.u32 %v893_v25, %v811_v26  ;;  %v822_v32 = vor.u32 %v895_v27, %v819_v28  ;;  %v410_v34 = vld [vmem:[%s1221_s5] sm:$0xff]  ;;  %v412_v39 = vld [vmem:[%s1221_s5 + $0x10] sm:$0xff]  ;;  %v411_v43 = vld [vmem:[%s1221_s5 + $0x8] sm:$0xff] }
  0x30   : > { %568 = vmatpush.bf16.msra.mxu0 %v902_v9  ;;  %915 = vmatpush.bf16.msra.mxu2 %v902_v9  ;;  %v413_v49 = vld [vmem:[%s1221_s5 + $0x18] sm:$0xff] }
  0x31   : > { %587 = vmatpush.bf16.msra.mxu1 %v910_v10  ;;  %923 = vmatpush.bf16.msra.mxu3 %v910_v10 }
  0x34   : > { %569 = vmatpush.bf16.msra.mxu0 %v901_v11  ;;  %916 = vmatpush.bf16.msra.mxu2 %v901_v11 }
  0x35   : > { %588 = vmatpush.bf16.msra.mxu1 %v909_v12  ;;  %924 = vmatpush.bf16.msra.mxu3 %v909_v12 }
  0x38   : > { %570 = vmatpush.bf16.msra.mxu0 %v900_v13  ;;  %917 = vmatpush.bf16.msra.mxu2 %v900_v13 }
  0x39   : > { %589 = vmatpush.bf16.msra.mxu1 %v908_v14  ;;  %925 = vmatpush.bf16.msra.mxu3 %v908_v14 }
  0x3c   : > { %571 = vmatpush.bf16.msra.mxu0 %v899_v15  ;;  %918 = vmatpush.bf16.msra.mxu2 %v899_v15 }
  0x3d   : > { %590 = vmatpush.bf16.msra.mxu1 %v907_v16  ;;  %926 = vmatpush.bf16.msra.mxu3 %v907_v16 }
  0x40   : > { %572 = vmatpush.bf16.msra.mxu0 %v898_v17  ;;  %919 = vmatpush.bf16.msra.mxu2 %v898_v17 }
  0x41   : > { %591 = vmatpush.bf16.msra.mxu1 %v906_v18  ;;  %927 = vmatpush.bf16.msra.mxu3 %v906_v18 }
  0x44   : > { %573 = vmatpush.bf16.msra.mxu0 %v897_v19  ;;  %920 = vmatpush.bf16.msra.mxu2 %v897_v19 }
  0x45   : > { %592 = vmatpush.bf16.msra.mxu1 %v905_v20  ;;  %928 = vmatpush.bf16.msra.mxu3 %v905_v20 }
  0x47   : > { %574 = vmatmul.bf16.vlgmr.msra.gmra.mxu0 %v810_v29  ;;  %579 = vmatmul.bf16.vlgmr.msra.gmra.mxu2 %v818_v30 }
  0x48   : > { %593 = vmatmul.bf16.vlgmr.msra.gmra.mxu1 %v814_v31  ;;  %598 = vmatmul.bf16.vlgmr.msra.gmra.mxu3 %v822_v32 }
  0xc4   : > { %v575_v33 = vpop.f32.mrf.mxu0 }
  0xc5   : > { %v594_v35 = vpop.f32.mrf.mxu1 }
  0xc6   : > { %v595_v36 = vadd.f32 %v594_v35, %v575_v33 }
  0xc8   : > { %v604_v37 = vadd.f32 %v595_v36, %v410_v34 }
  0xca   : > { %608 = vst [vmem:[%s1221_s5] sm:$0xff] %v604_v37  ;;  %v580_v38 = vpop.f32.mrf.mxu2 }
  0xcb   : > { %v599_v40 = vpop.f32.mrf.mxu3 }
  0xcc   : > { %v600_v41 = vadd.f32 %v599_v40, %v580_v38  ;;  %v577_v42 = vpop.f32.mrf.mxu0 }
  0xcd   : > { %v596_v44 = vpop.f32.mrf.mxu1 }
  0xce   : > { %v606_v45 = vadd.f32 %v600_v41, %v412_v39  ;;  %v597_v46 = vadd.f32 %v596_v44, %v577_v42 }
  0xd0   : > { %610 = vst [vmem:[%s1221_s5 + $0x10] sm:$0xff] %v606_v45  ;;  %v605_v47 = vadd.f32 %v597_v46, %v411_v43 }
  0xd2   : > { %609 = vst [vmem:[%s1221_s5 + $0x8] sm:$0xff] %v605_v47  ;;  %v582_v48 = vpop.f32.mrf.mxu2 }
  0xd3   : > { %v601_v50 = vpop.f32.mrf.mxu3 }
  0xd4   : > { %v602_v51 = vadd.f32 %v601_v50, %v582_v48  ;;  %615 = sbr.rel (%p887_p11) target bundleno = 233 (0xe9), region = 86 }
  0xd6   : > { %v607_v52 = vadd.f32 %v602_v51, %v413_v49 }
  0xd8   : > { %611 = vst [vmem:[%s1221_s5 + $0x18] sm:$0xff] %v607_v52 }
  0xd9   : > { %v616_v53 = vld [vmem:[%s1221_s5] sm:$0xff]  ;;  %v617_v57 = vld [vmem:[%s1221_s5 + $0x8] sm:$0xff]  ;;  %v618_v58 = vld [vmem:[%s1221_s5 + $0x10] sm:$0xff] }
  0xda   : > { %v970_v54 = vld [vmem:[%s1218_s2] ss:$0 sm:$0xff]  ;;  %v637_v0 = vld [vmem:[%s1220_s4 + $0x8] sm:$0xff]  ;;  %v638_v1 = vld [vmem:[%s1220_s4 + $0x10] sm:$0xff] }
  0xdb   : > { %v971_v55 = vld [vmem:[%s1219_s3] ss:$0 sm:$0xff]  ;;  %v624_v56 = vmul.f32 %v970_v54, %v616_v53  ;;  %v625_v60 = vmul.f32 %v970_v54, %v617_v57  ;;  %v626_v61 = vmul.f32 %v970_v54, %v618_v58  ;;  %v639_v5 = vld [vmem:[%s1220_s4 + $0x18] sm:$0xff] }
  0xdc   : > { %v636_v59 = vld [vmem:[%s1220_s4] sm:$0xff] }
  0xdd   : > { %v632_v63 = vadd.f32 %v971_v55, %v624_v56  ;;  %v633_v3 = vadd.f32 %v971_v55, %v625_v60  ;;  %v634_v4 = vadd.f32 %v971_v55, %v626_v61 }
  0xdf   : > { %v619_v62 = vld [vmem:[%s1221_s5 + $0x18] sm:$0xff]  ;;  %v640_v6 = vadd.f32 %v636_v59, %v632_v63  ;;  %v641_v8 = vadd.f32 %v637_v0, %v633_v3  ;;  %v642_v9 = vadd.f32 %v638_v1, %v634_v4 }
  0xe0   : > { %v627_v2 = vmul.f32 %v970_v54, %v619_v62 }
  0xe1   : > { %v644_v10 = vmax.f32 %v640_v6, 0.0  ;;  %v645_v12 = vmax.f32 %v641_v8, 0.0  ;;  %v646_v13 = vmax.f32 %v642_v9, 0.0 }
  0xe2   : > { %v635_v7 = vadd.f32 %v971_v55, %v627_v2 }
  0xe3   : > { %648 = vst [vmem:[%s1221_s5] sm:$0xff] %v644_v10 }
  0xe4   : > { %v643_v11 = vadd.f32 %v639_v5, %v635_v7  ;;  %649 = vst [vmem:[%s1221_s5 + $0x8] sm:$0xff] %v645_v12 }
  0xe5   : > { %650 = vst [vmem:[%s1221_s5 + $0x10] sm:$0xff] %v646_v13 }
  0xe6   : > { %v647_v14 = vmax.f32 %v643_v11, 0.0 }
  0xe8   : > { %651 = vst [vmem:[%s1221_s5 + $0x18] sm:$0xff] %v647_v14 }
  0xe9 PF: > { %s15_s22 = sadd.s32 1, %s1010_s22   ;;  %s1222_s18 = smov %s998_s19 }
  0xea   : > { %p12_p12 = scmp.ge.s32.totalorder %s15_s22, 7   ;;  %s1223_s19 = smov %s1078_s26 }
  0xeb   : > { %s1224_s20 = smov %s1006_s21  ;;  %s1225_s21 = smov %s1227_s23 }
  0xec   :  { %14 = sbr.rel (!%p12_p12) target bundleno = 3 (0x3), region = 133 }

// kernel: multimodal_forward.31
= control target key start
LH: loop header
LB: loop body
LE: loop exit
PB: predicated region body
PF: predicated region fallthrough
CT: control target
= control target key end

     0   :  { %s951_s15 = smov 0   ;;  %s953_s16 = smov 0   ;;  %s1112_s0 = inlined_call_operand.vmem [shape: bf16[32,1280], index: 0, kind: input, shape index: {}]   ;;  %s1113_s1 = inlined_call_operand.vmem [shape: bf16[1280,128], index: 1, kind: input, shape index: {}]   ;;  %s1114_s2 = inlined_call_operand.vmem [shape: f32[1,128], index: 2, kind: input, shape index: {}]   ;;  %s1115_s3 = inlined_call_operand.vmem [shape: f32[1,128], index: 3, kind: input, shape index: {}]   ;;  %s1116_s4 = inlined_call_operand.vmem [shape: f32[32,128], index: 4, kind: output, shape index: {}]  }
   0x1   :  { %s955_s17 = smov 0   ;;  %s957_s18 = smov 0  }
   0x2   :  { %s959_s19 = smov 0  }
   0x3 LB: > { %s26_s20 = sadd.s32 1, %s919_s18  ;;  %p49_p1 = scmp.ne.s32.totalorder %s911_s16, %s907_s15  ;;  %s923_s19 = sphi %s959_s19, %s14_s19   ;;  %s919_s18 = sphi %s957_s18, %s1120_s18   ;;  %s915_s17 = sphi %s955_s17, %s1119_s17   ;;  %s911_s16 = sphi %s953_s16, %s1118_s16   ;;  %s907_s15 = sphi %s951_s15, %s1117_s15  }
   0x4   : > { %p27_p0 = scmp.ge.s32.totalorder %s26_s20, 5  ;;  %p50_p2 = scmp.eq.s32.totalorder %s923_s19, 0 }
   0x5   : > { %s42_s22 = sadd.s32 1, %s911_s16  ;;  %p711_p5 = scmp.ge.s32.totalorder %s923_s19, 5 }
   0x6   : > { %s1122_s20 = smov (%p27_p0, %s26_s20), 0  ;;  %p51_p3 = por %p50_p2, %p49_p1 }
   0x7   : > { %s38_s21 = ssub.s32 %s919_s18, %s1122_s20  ;;  %195 = sbr.rel (%p711_p5) target bundleno = 20 (0x14), region = 24 }
   0x8   : > { %p40_p4 = scmp.eq.s32.totalorder %s38_s21, 0 }
   0xa   : > { %s986_s23 = scalar_select %p40_p4, %s911_s16, %s42_s22  }
   0xc   : > { %198 = sbr.rel (!%p51_p3) target bundleno = 20 (0x14), region = 28  ;;  %s200_s24 = sand.u32 (%p51_p3), 1, %s911_s16  }
   0xd   : > { %s805_s25 = sshll.u32 (%p51_p3), %s919_s18, 3  ;;  %s712_s26 = sshll.u32 (%p51_p3), %s200_s24, 5 }
   0xe   : > { %s208_s29 = scalar_lea.vmem (%p51_p3), %s1112_s0, %s805_s25  ;;  %s202_s30 = scalar_lea.vmem (%p51_p3), [#allocation2], %s712_s26 }
   0xf   : > { %v243_v0 = vld [vmem:[%s208_s29] sm:$0xff] (%p51_p3)  ;;  %v245_v1 = vld [vmem:[%s208_s29 + $0x28] sm:$0xff] (%p51_p3)  ;;  %v247_v2 = vld [vmem:[%s208_s29 + $0x50] sm:$0xff] (%p51_p3) }
  0x10   : > { %244 = vst [vmem:[%s202_s30] sm:$0xff] (%p51_p3), %v243_v0  ;;  %v249_v3 = vld [vmem:[%s208_s29 + $0x78] sm:$0xff] (%p51_p3) }
  0x11   : > { %246 = vst [vmem:[%s202_s30 + $0x8] sm:$0xff] %v245_v1 }
  0x12   : > { %248 = vst [vmem:[%s202_s30 + $0x10] sm:$0xff] %v247_v2 }
  0x13   : > { %250 = vst [vmem:[%s202_s30 + $0x18] sm:$0xff] %v249_v3 }
  0x14 PF: > { %p715_p6 = scmp.ge.s32.totalorder %s923_s19, 1  ;;  %p267_p7 = scmp.lt.s32.totalorder %s923_s19, 6 }
  0x16   : > { %p268_p8 = pnand %p715_p6, %p267_p7 }
  0x17   : > { %s274_s5 = sand.u32 (!%p268_p8), 1, %s907_s15   ;;  %s717_s6 = sshll.u32 (!%p268_p8), %s915_s17, 5 }
  0x18   : > { %271 = sbr.rel (%p268_p8) target bundleno = 231 (0xe7), region = 70  ;;  %s716_s7 = sshll.u32 (!%p268_p8), %s274_s5, 5 }
  0x19   : > { %p319_p9 = scmp.lt.s32.totalorder (!%p268_p8), %s717_s6, 159  ;;  %s1003_s12 = scalar_lea.vmem (!%p268_p8), [#allocation2], %s716_s7 }
  0x1a   : > { %p719_p10 = scmp.ne.s32.totalorder (!%p268_p8), %s915_s17, 0 }
  0x1d   : > { %s1124_s6 = smov (!%p319_p9, %s717_s6), 159  ;;  %345 = sbr.rel (%p719_p10) target bundleno = 39 (0x27), region = 78 }
  0x1e   : > { %s718_s8 = sshll.u32 %s1124_s6, 2 }
  0x1f   : > { %s1001_s11 = scalar_lea.vmem %s1113_s1, %s718_s8 }
  0x22   : > { %v925_v4 = vmov 0.0  }
  0x23   : > { %346 = vst [vmem:[%s1116_s4] sm:$0xff] %v925_v4 }
  0x24   : > { %347 = vst [vmem:[%s1116_s4 + $0x8] sm:$0xff] %v925_v4 }
  0x25   : > { %348 = vst [vmem:[%s1116_s4 + $0x10] sm:$0xff] %v925_v4 }
  0x26   : > { %349 = vst [vmem:[%s1116_s4 + $0x18] sm:$0xff] %v925_v4 }
  0x27 PF: > { %v817_v5 = vld [vmem:[%s1001_s11 + $0x38] sm:$0xff]  ;;  %v816_v7 = vld [vmem:[%s1001_s11 + $0x30] sm:$0xff]  ;;  %v815_v9 = vld [vmem:[%s1001_s11 + $0x28] sm:$0xff]  ;;  %p800_p11 = scmp.ne.s32.totalorder %s915_s17, 4 }
  0x28   : > { %v825_v6 = vld [vmem:[%s1001_s11 + $0x78] sm:$0xff]  ;;  %506 = vmatpush.bf16.msra.mxu0 %v817_v5  ;;  %826 = vmatpush.bf16.msra.mxu2 %v817_v5  ;;  %v824_v8 = vld [vmem:[%s1001_s11 + $0x70] sm:$0xff]  ;;  %v823_v10 = vld [vmem:[%s1001_s11 + $0x68] sm:$0xff] }
  0x29   : > { %525 = vmatpush.bf16.msra.mxu1 %v825_v6  ;;  %834 = vmatpush.bf16.msra.mxu3 %v825_v6  ;;  %v814_v11 = vld [vmem:[%s1001_s11 + $0x20] sm:$0xff]  ;;  %v813_v13 = vld [vmem:[%s1001_s11 + $0x18] sm:$0xff]  ;;  %v812_v15 = vld [vmem:[%s1001_s11 + $0x10] sm:$0xff] }
  0x2a   : > { %v822_v12 = vld [vmem:[%s1001_s11 + $0x60] sm:$0xff]  ;;  %v821_v14 = vld [vmem:[%s1001_s11 + $0x58] sm:$0xff]  ;;  %v820_v16 = vld [vmem:[%s1001_s11 + $0x50] sm:$0xff] }
  0x2b   : > { %v811_v17 = vld [vmem:[%s1001_s11 + $0x8] sm:$0xff]  ;;  %v810_v19 = vld [vmem:[%s1001_s11] sm:$0xff]  ;;  %v730_v23 = vld [vmem:[%s1003_s12 + $0x10] sm:$0xf] }
  0x2c   : > { %507 = vmatpush.bf16.msra.mxu0 %v816_v7  ;;  %827 = vmatpush.bf16.msra.mxu2 %v816_v7  ;;  %v819_v18 = vld [vmem:[%s1001_s11 + $0x48] sm:$0xff]  ;;  %v818_v20 = vld [vmem:[%s1001_s11 + $0x40] sm:$0xff]  ;;  %v809_v24 = vld [vmem:[%s1003_s12 + $0x14] sm:$0xf0] }
  0x2d   : > { %526 = vmatpush.bf16.msra.mxu1 %v824_v8  ;;  %835 = vmatpush.bf16.msra.mxu3 %v824_v8  ;;  %v722_v21 = vld [vmem:[%s1003_s12] sm:$0xf]  ;;  %v807_v22 = vld [vmem:[%s1003_s12 + $0x4] sm:$0xf0]  ;;  %v806_v25 = vld [vmem:[%s1003_s12 + $0x4] sm:$0xf]  ;;  %v731_v30 = vor.u32 %v809_v24, %v730_v23 }
  0x2e   : > { %v724_v26 = vld [vmem:[%s1003_s12 + $0x8] sm:$0xf0]  ;;  %v808_v27 = vld [vmem:[%s1003_s12 + $0x14] sm:$0xf]  ;;  %v732_v28 = vld [vmem:[%s1003_s12 + $0x18] sm:$0xf0]  ;;  %v723_v29 = vor.u32 %v807_v22, %v722_v21 }
  0x2f   : > { %v727_v31 = vor.u32 %v806_v25, %v724_v26  ;;  %v735_v32 = vor.u32 %v808_v27, %v732_v28  ;;  %v350_v34 = vld [vmem:[%s1116_s4] sm:$0xff]  ;;  %v352_v39 = vld [vmem:[%s1116_s4 + $0x10] sm:$0xff]  ;;  %v351_v43 = vld [vmem:[%s1116_s4 + $0x8] sm:$0xff] }
  0x30   : > { %508 = vmatpush.bf16.msra.mxu0 %v815_v9  ;;  %828 = vmatpush.bf16.msra.mxu2 %v815_v9  ;;  %v353_v49 = vld [vmem:[%s1116_s4 + $0x18] sm:$0xff] }
  0x31   : > { %527 = vmatpush.bf16.msra.mxu1 %v823_v10  ;;  %836 = vmatpush.bf16.msra.mxu3 %v823_v10 }
  0x34   : > { %509 = vmatpush.bf16.msra.mxu0 %v814_v11  ;;  %829 = vmatpush.bf16.msra.mxu2 %v814_v11 }
  0x35   : > { %528 = vmatpush.bf16.msra.mxu1 %v822_v12  ;;  %837 = vmatpush.bf16.msra.mxu3 %v822_v12 }
  0x38   : > { %510 = vmatpush.bf16.msra.mxu0 %v813_v13  ;;  %830 = vmatpush.bf16.msra.mxu2 %v813_v13 }
  0x39   : > { %529 = vmatpush.bf16.msra.mxu1 %v821_v14  ;;  %838 = vmatpush.bf16.msra.mxu3 %v821_v14 }
  0x3c   : > { %511 = vmatpush.bf16.msra.mxu0 %v812_v15  ;;  %831 = vmatpush.bf16.msra.mxu2 %v812_v15 }
  0x3d   : > { %530 = vmatpush.bf16.msra.mxu1 %v820_v16  ;;  %839 = vmatpush.bf16.msra.mxu3 %v820_v16 }
  0x40   : > { %512 = vmatpush.bf16.msra.mxu0 %v811_v17  ;;  %832 = vmatpush.bf16.msra.mxu2 %v811_v17 }
  0x41   : > { %531 = vmatpush.bf16.msra.mxu1 %v819_v18  ;;  %840 = vmatpush.bf16.msra.mxu3 %v819_v18 }
  0x44   : > { %513 = vmatpush.bf16.msra.mxu0 %v810_v19  ;;  %833 = vmatpush.bf16.msra.mxu2 %v810_v19 }
  0x45   : > { %532 = vmatpush.bf16.msra.mxu1 %v818_v20  ;;  %841 = vmatpush.bf16.msra.mxu3 %v818_v20 }
  0x47   : > { %514 = vmatmul.bf16.vlgmr.msra.gmra.mxu0 %v723_v29  ;;  %519 = vmatmul.bf16.vlgmr.msra.gmra.mxu2 %v731_v30 }
  0x48   : > { %533 = vmatmul.bf16.vlgmr.msra.gmra.mxu1 %v727_v31  ;;  %538 = vmatmul.bf16.vlgmr.msra.gmra.mxu3 %v735_v32 }
  0xc4   : > { %v515_v33 = vpop.f32.mrf.mxu0 }
  0xc5   : > { %v534_v35 = vpop.f32.mrf.mxu1 }
  0xc6   : > { %v535_v36 = vadd.f32 %v534_v35, %v515_v33 }
  0xc8   : > { %v544_v37 = vadd.f32 %v535_v36, %v350_v34 }
  0xca   : > { %548 = vst [vmem:[%s1116_s4] sm:$0xff] %v544_v37  ;;  %v520_v38 = vpop.f32.mrf.mxu2 }
  0xcb   : > { %v539_v40 = vpop.f32.mrf.mxu3 }
  0xcc   : > { %v540_v41 = vadd.f32 %v539_v40, %v520_v38  ;;  %v517_v42 = vpop.f32.mrf.mxu0 }
  0xcd   : > { %v536_v44 = vpop.f32.mrf.mxu1 }
  0xce   : > { %v546_v45 = vadd.f32 %v540_v41, %v352_v39  ;;  %v537_v46 = vadd.f32 %v536_v44, %v517_v42 }
  0xd0   : > { %550 = vst [vmem:[%s1116_s4 + $0x10] sm:$0xff] %v546_v45  ;;  %v545_v47 = vadd.f32 %v537_v46, %v351_v43 }
  0xd2   : > { %549 = vst [vmem:[%s1116_s4 + $0x8] sm:$0xff] %v545_v47  ;;  %v522_v48 = vpop.f32.mrf.mxu2 }
  0xd3   : > { %v541_v50 = vpop.f32.mrf.mxu3 }
  0xd4   : > { %v542_v51 = vadd.f32 %v541_v50, %v522_v48  ;;  %555 = sbr.rel (%p800_p11) target bundleno = 231 (0xe7), region = 82 }
  0xd6   : > { %v547_v52 = vadd.f32 %v542_v51, %v353_v49 }
  0xd8   : > { %551 = vst [vmem:[%s1116_s4 + $0x18] sm:$0xff] %v547_v52 }
  0xd9   : > { %v556_v53 = vld [vmem:[%s1116_s4] sm:$0xff]  ;;  %v557_v56 = vld [vmem:[%s1116_s4 + $0x8] sm:$0xff]  ;;  %v558_v59 = vld [vmem:[%s1116_s4 + $0x10] sm:$0xff] }
  0xda   : > { %v883_v54 = vld [vmem:[%s1114_s2] ss:$0 sm:$0xff] }
  0xdb   : > { %v884_v55 = vld [vmem:[%s1115_s3] ss:$0 sm:$0xff]  ;;  %v564_v57 = vmul.f32 %v883_v54, %v556_v53  ;;  %v565_v58 = vmul.f32 %v883_v54, %v557_v56  ;;  %v566_v61 = vmul.f32 %v883_v54, %v558_v59 }
  0xdd   : > { %v572_v63 = vadd.f32 %v884_v55, %v564_v57  ;;  %v573_v0 = vadd.f32 %v884_v55, %v565_v58  ;;  %v574_v1 = vadd.f32 %v884_v55, %v566_v61 }
  0xdf   : > { %v559_v60 = vld [vmem:[%s1116_s4 + $0x18] sm:$0xff]  ;;  %v576_v3 = vmax.f32 %v572_v63, 0.0  ;;  %v577_v4 = vmax.f32 %v573_v0, 0.0  ;;  %v578_v5 = vmax.f32 %v574_v1, 0.0 }
  0xe0   : > { %v567_v62 = vmul.f32 %v883_v54, %v559_v60 }
  0xe1   : > { %580 = vst [vmem:[%s1116_s4] sm:$0xff] %v576_v3 }
  0xe2   : > { %v575_v2 = vadd.f32 %v884_v55, %v567_v62  ;;  %581 = vst [vmem:[%s1116_s4 + $0x8] sm:$0xff] %v577_v4 }
  0xe3   : > { %582 = vst [vmem:[%s1116_s4 + $0x10] sm:$0xff] %v578_v5 }
  0xe4   : > { %v579_v6 = vmax.f32 %v575_v2, 0.0 }
  0xe6   : > { %583 = vst [vmem:[%s1116_s4 + $0x18] sm:$0xff] %v579_v6 }
  0xe7 PF: > { %s14_s19 = sadd.s32 1, %s923_s19   ;;  %s1117_s15 = smov %s911_s16 }
  0xe8   : > { %p11_p12 = scmp.ge.s32.totalorder %s14_s19, 7   ;;  %s1118_s16 = smov %s986_s23 }
  0xe9   : > { %s1119_s17 = smov %s919_s18  ;;  %s1120_s18 = smov %s1122_s20 }
  0xea   :  { %13 = sbr.rel (!%p11_p12) target bundleno = 3 (0x3), region = 126 }

// kernel: multimodal_forward.33
= control target key start
LH: loop header
LB: loop body
LE: loop exit
PB: predicated region body
PF: predicated region fallthrough
CT: control target
= control target key end

     0   :  { %s1106_s15 = smov 0   ;;  %s1108_s16 = smov 0   ;;  %s1311_s0 = inlined_call_operand.vmem [shape: bf16[16,1280], index: 0, kind: input, shape index: {}]   ;;  %s1312_s1 = inlined_call_operand.vmem [shape: bf16[1280,256], index: 1, kind: input, shape index: {}]   ;;  %s1313_s2 = inlined_call_operand.vmem [shape: f32[1,256], index: 2, kind: input, shape index: {}]   ;;  %s1314_s3 = inlined_call_operand.vmem [shape: f32[1,256], index: 3, kind: input, shape index: {}]   ;;  %s1315_s4 = inlined_call_operand.vmem [shape: f32[16,256], index: 4, kind: output, shape index: {}]  }
   0x1   :  { %s1110_s17 = smov 0   ;;  %s1112_s18 = smov 0  }
   0x2   :  { %s1114_s19 = smov 0  }
   0x3 LB: > { %s26_s20 = sadd.s32 1, %s1074_s18  ;;  %p49_p1 = scmp.ne.s32.totalorder %s1066_s16, %s1062_s15  ;;  %s1078_s19 = sphi %s1114_s19, %s14_s19   ;;  %s1074_s18 = sphi %s1112_s18, %s1319_s18   ;;  %s1070_s17 = sphi %s1110_s17, %s1318_s17   ;;  %s1066_s16 = sphi %s1108_s16, %s1317_s16   ;;  %s1062_s15 = sphi %s1106_s15, %s1316_s15  }
   0x4   : > { %p27_p0 = scmp.ge.s32.totalorder %s26_s20, 5  ;;  %p50_p2 = scmp.eq.s32.totalorder %s1078_s19, 0 }
   0x5   : > { %s42_s22 = sadd.s32 1, %s1066_s16  ;;  %p812_p5 = scmp.ge.s32.totalorder %s1078_s19, 5 }
   0x6   : > { %s1321_s20 = smov (%p27_p0, %s26_s20), 0  ;;  %p51_p3 = por %p50_p2, %p49_p1 }
   0x7   : > { %s38_s21 = ssub.s32 %s1074_s18, %s1321_s20  ;;  %199 = sbr.rel (%p812_p5) target bundleno = 18 (0x12), region = 24 }
   0x8   : > { %p40_p4 = scmp.eq.s32.totalorder %s38_s21, 0 }
   0xa   : > { %s1141_s23 = scalar_select %p40_p4, %s1066_s16, %s42_s22  }
   0xc   : > { %202 = sbr.rel (!%p51_p3) target bundleno = 18 (0x12), region = 28  ;;  %s204_s24 = sand.u32 (%p51_p3), 1, %s1066_s16  }
   0xd   : > { %s963_s25 = sshll.u32 (%p51_p3), %s1074_s18, 3  ;;  %s813_s26 = sshll.u32 (%p51_p3), %s204_s24, 4 }
   0xe   : > { %s212_s29 = scalar_lea.vmem (%p51_p3), %s1311_s0, %s963_s25  ;;  %s206_s30 = scalar_lea.vmem (%p51_p3), [#allocation2], %s813_s26 }
   0xf   : > { %v243_v0 = vld [vmem:[%s212_s29] sm:$0xff] (%p51_p3)  ;;  %v245_v1 = vld [vmem:[%s212_s29 + $0x28] sm:$0xff] (%p51_p3) }
  0x10   : > { %244 = vst [vmem:[%s206_s30] sm:$0xff] (%p51_p3), %v243_v0 }
  0x11   : > { %246 = vst [vmem:[%s206_s30 + $0x8] sm:$0xff] %v245_v1 }
  0x12 PF: > { %p816_p6 = scmp.ge.s32.totalorder %s1078_s19, 1  ;;  %p266_p7 = scmp.lt.s32.totalorder %s1078_s19, 6 }
  0x14   : > { %p267_p8 = pnand %p816_p6, %p266_p7 }
  0x15   : > { %s273_s5 = sand.u32 (!%p267_p8), 1, %s1062_s15   ;;  %s818_s6 = sshll.u32 (!%p267_p8), %s1070_s17, 5 }
  0x16   : > { %270 = sbr.rel (%p267_p8) target bundleno = 232 (0xe8), region = 70  ;;  %s817_s7 = sshll.u32 (!%p267_p8), %s273_s5, 4 }
  0x17   : > { %p325_p9 = scmp.lt.s32.totalorder (!%p267_p8), %s818_s6, 159  ;;  %s1158_s12 = scalar_lea.vmem (!%p267_p8), [#allocation2], %s817_s7 }
  0x18   : > { %p821_p10 = scmp.ne.s32.totalorder (!%p267_p8), %s1070_s17, 0 }
  0x1b   : > { %s1323_s6 = smov (!%p325_p9, %s818_s6), 159  ;;  %360 = sbr.rel (%p821_p10) target bundleno = 37 (0x25), region = 78 }
  0x1c   : > { %s964_s8 = sshll.u32 %s1323_s6, 3 }
  0x1d   : > { %s1156_s11 = scalar_lea.vmem %s1312_s1, %s964_s8 }
  0x20   : > { %v1080_v2 = vmov 0.0  }
  0x21   : > { %361 = vst [vmem:[%s1315_s4] sm:$0xff] %v1080_v2 }
  0x22   : > { %362 = vst [vmem:[%s1315_s4 + $0x8] sm:$0xff] %v1080_v2 }
  0x23   : > { %363 = vst [vmem:[%s1315_s4 + $0x10] sm:$0xff] %v1080_v2 }
  0x24   : > { %364 = vst [vmem:[%s1315_s4 + $0x18] sm:$0xff] %v1080_v2 }
  0x25 PF: > { %v888_v3 = vld [vmem:[%s1156_s11 + $0x70] sm:$0xf]  ;;  %v982_v4 = vld [vmem:[%s1156_s11 + $0x74] sm:$0xf0]  ;;  %v981_v8 = vld [vmem:[%s1156_s11 + $0x74] sm:$0xf] }
  0x26   : > { %v952_v5 = vld [vmem:[%s1156_s11 + $0xf0] sm:$0xf]  ;;  %v889_v6 = vor.u32 %v982_v4, %v888_v3  ;;  %v998_v7 = vld [vmem:[%s1156_s11 + $0xf4] sm:$0xf0]  ;;  %v890_v9 = vld [vmem:[%s1156_s11 + $0x78] sm:$0xf0] }
  0x27   : > { %v953_v10 = vor.u32 %v998_v7, %v952_v5  ;;  %v893_v11 = vor.u32 %v981_v8, %v890_v9  ;;  %v997_v12 = vld [vmem:[%s1156_s11 + $0xf4] sm:$0xf]  ;;  %v954_v13 = vld [vmem:[%s1156_s11 + $0xf8] sm:$0xf0]  ;;  %v880_v14 = vld [vmem:[%s1156_s11 + $0x60] sm:$0xf] }
  0x28   : > { %573 = vmatpush.bf16.msra.mxu0 %v889_v6  ;;  %v957_v15 = vor.u32 %v997_v12, %v954_v13  ;;  %v980_v16 = vld [vmem:[%s1156_s11 + $0x64] sm:$0xf0]  ;;  %v944_v17 = vld [vmem:[%s1156_s11 + $0xe0] sm:$0xf]  ;;  %v979_v21 = vld [vmem:[%s1156_s11 + $0x64] sm:$0xf] }
  0x29   : > { %v996_v18 = vld [vmem:[%s1156_s11 + $0xe4] sm:$0xf0]  ;;  %587 = vmatpush.bf16.msra.mxu1 %v953_v10  ;;  %601 = vmatpush.bf16.msra.mxu2 %v893_v11  ;;  %v881_v19 = vor.u32 %v980_v16, %v880_v14  ;;  %v882_v22 = vld [vmem:[%s1156_s11 + $0x68] sm:$0xf0]  ;;  %v995_v23 = vld [vmem:[%s1156_s11 + $0xe4] sm:$0xf] }
  0x2a   : > { %v945_v20 = vor.u32 %v996_v18, %v944_v17  ;;  %615 = vmatpush.bf16.msra.mxu3 %v957_v15  ;;  %v885_v24 = vor.u32 %v979_v21, %v882_v22  ;;  %v946_v25 = vld [vmem:[%s1156_s11 + $0xe8] sm:$0xf0]  ;;  %v872_v26 = vld [vmem:[%s1156_s11 + $0x50] sm:$0xf]  ;;  %v978_v27 = vld [vmem:[%s1156_s11 + $0x54] sm:$0xf0] }
  0x2b   : > { %v949_v28 = vor.u32 %v995_v23, %v946_v25  ;;  %v936_v29 = vld [vmem:[%s1156_s11 + $0xd0] sm:$0xf]  ;;  %v994_v30 = vld [vmem:[%s1156_s11 + $0xd4] sm:$0xf0]  ;;  %v977_v31 = vld [vmem:[%s1156_s11 + $0x54] sm:$0xf]  ;;  %v873_v32 = vor.u32 %v978_v27, %v872_v26 }
  0x2c   : > { %574 = vmatpush.bf16.msra.mxu0 %v881_v19  ;;  %v874_v33 = vld [vmem:[%s1156_s11 + $0x58] sm:$0xf0]  ;;  %v993_v34 = vld [vmem:[%s1156_s11 + $0xd4] sm:$0xf]  ;;  %v937_v36 = vor.u32 %v994_v30, %v936_v29  ;;  %v864_v38 = vld [vmem:[%s1156_s11 + $0x40] sm:$0xf] }
  0x2d   : > { %v938_v35 = vld [vmem:[%s1156_s11 + $0xd8] sm:$0xf0]  ;;  %588 = vmatpush.bf16.msra.mxu1 %v945_v20  ;;  %602 = vmatpush.bf16.msra.mxu2 %v885_v24  ;;  %v877_v37 = vor.u32 %v977_v31, %v874_v33  ;;  %v976_v39 = vld [vmem:[%s1156_s11 + $0x44] sm:$0xf0]  ;;  %v928_v40 = vld [vmem:[%s1156_s11 + $0xc0] sm:$0xf] }
  0x2e   : > { %616 = vmatpush.bf16.msra.mxu3 %v949_v28  ;;  %v941_v41 = vor.u32 %v993_v34, %v938_v35  ;;  %v992_v42 = vld [vmem:[%s1156_s11 + $0xc4] sm:$0xf0]  ;;  %v975_v43 = vld [vmem:[%s1156_s11 + $0x44] sm:$0xf]  ;;  %v866_v44 = vld [vmem:[%s1156_s11 + $0x48] sm:$0xf0]  ;;  %v865_v47 = vor.u32 %v976_v39, %v864_v38 }
  0x2f   : > { %v991_v45 = vld [vmem:[%s1156_s11 + $0xc4] sm:$0xf]  ;;  %v930_v46 = vld [vmem:[%s1156_s11 + $0xc8] sm:$0xf0]  ;;  %v929_v48 = vor.u32 %v992_v42, %v928_v40  ;;  %v869_v49 = vor.u32 %v975_v43, %v866_v44  ;;  %v856_v50 = vld [vmem:[%s1156_s11 + $0x30] sm:$0xf] }
  0x30   : > { %575 = vmatpush.bf16.msra.mxu0 %v873_v32  ;;  %v974_v51 = vld [vmem:[%s1156_s11 + $0x34] sm:$0xf0]  ;;  %v920_v52 = vld [vmem:[%s1156_s11 + $0xb0] sm:$0xf]  ;;  %v933_v53 = vor.u32 %v991_v45, %v930_v46  ;;  %v973_v55 = vld [vmem:[%s1156_s11 + $0x34] sm:$0xf] }
  0x31   : > { %589 = vmatpush.bf16.msra.mxu1 %v937_v36  ;;  %603 = vmatpush.bf16.msra.mxu2 %v877_v37  ;;  %v990_v54 = vld [vmem:[%s1156_s11 + $0xb4] sm:$0xf0]  ;;  %v858_v56 = vld [vmem:[%s1156_s11 + $0x38] sm:$0xf0]  ;;  %v989_v57 = vld [vmem:[%s1156_s11 + $0xb4] sm:$0xf]  ;;  %v857_v59 = vor.u32 %v974_v51, %v856_v50 }
  0x32   : > { %617 = vmatpush.bf16.msra.mxu3 %v941_v41  ;;  %v922_v58 = vld [vmem:[%s1156_s11 + $0xb8] sm:$0xf0]  ;;  %v921_v60 = vor.u32 %v990_v54, %v920_v52  ;;  %v861_v61 = vor.u32 %v973_v55, %v858_v56  ;;  %v848_v62 = vld [vmem:[%s1156_s11 + $0x20] sm:$0xf]  ;;  %v972_v63 = vld [vmem:[%s1156_s11 + $0x24] sm:$0xf0] }
  0x33   : > { %v912_v0 = vld [vmem:[%s1156_s11 + $0xa0] sm:$0xf]  ;;  %v925_v1 = vor.u32 %v989_v57, %v922_v58  ;;  %v988_v2 = vld [vmem:[%s1156_s11 + $0xa4] sm:$0xf0]  ;;  %v971_v3 = vld [vmem:[%s1156_s11 + $0x24] sm:$0xf]  ;;  %v849_v7 = vor.u32 %v972_v63, %v848_v62 }
  0x34   : > { %576 = vmatpush.bf16.msra.mxu0 %v865_v47  ;;  %v850_v4 = vld [vmem:[%s1156_s11 + $0x28] sm:$0xf0]  ;;  %v987_v5 = vld [vmem:[%s1156_s11 + $0xa4] sm:$0xf]  ;;  %v913_v8 = vor.u32 %v988_v2, %v912_v0  ;;  %v840_v10 = vld [vmem:[%s1156_s11 + $0x10] sm:$0xf] }
  0x35   : > { %590 = vmatpush.bf16.msra.mxu1 %v929_v48  ;;  %604 = vmatpush.bf16.msra.mxu2 %v869_v49  ;;  %v914_v6 = vld [vmem:[%s1156_s11 + $0xa8] sm:$0xf0]  ;;  %v853_v9 = vor.u32 %v971_v3, %v850_v4  ;;  %v970_v11 = vld [vmem:[%s1156_s11 + $0x14] sm:$0xf0]  ;;  %v904_v12 = vld [vmem:[%s1156_s11 + $0x90] sm:$0xf] }
  0x36   : > { %618 = vmatpush.bf16.msra.mxu3 %v933_v53  ;;  %v917_v13 = vor.u32 %v987_v5, %v914_v6  ;;  %v986_v14 = vld [vmem:[%s1156_s11 + $0x94] sm:$0xf0]  ;;  %v969_v15 = vld [vmem:[%s1156_s11 + $0x14] sm:$0xf]  ;;  %v842_v16 = vld [vmem:[%s1156_s11 + $0x18] sm:$0xf0]  ;;  %v841_v19 = vor.u32 %v970_v11, %v840_v10 }
  0x37   : > { %v985_v17 = vld [vmem:[%s1156_s11 + $0x94] sm:$0xf]  ;;  %v906_v18 = vld [vmem:[%s1156_s11 + $0x98] sm:$0xf0]  ;;  %v905_v20 = vor.u32 %v986_v14, %v904_v12  ;;  %v845_v21 = vor.u32 %v969_v15, %v842_v16  ;;  %v832_v22 = vld [vmem:[%s1156_s11] sm:$0xf] }
  0x38   : > { %577 = vmatpush.bf16.msra.mxu0 %v857_v59  ;;  %v968_v23 = vld [vmem:[%s1156_s11 + $0x4] sm:$0xf0]  ;;  %v896_v24 = vld [vmem:[%s1156_s11 + $0x80] sm:$0xf]  ;;  %v909_v25 = vor.u32 %v985_v17, %v906_v18  ;;  %v967_v27 = vld [vmem:[%s1156_s11 + $0x4] sm:$0xf] }
  0x39   : > { %591 = vmatpush.bf16.msra.mxu1 %v921_v60  ;;  %605 = vmatpush.bf16.msra.mxu2 %v861_v61  ;;  %v984_v26 = vld [vmem:[%s1156_s11 + $0x84] sm:$0xf0]  ;;  %v834_v28 = vld [vmem:[%s1156_s11 + $0x8] sm:$0xf0]  ;;  %v983_v29 = vld [vmem:[%s1156_s11 + $0x84] sm:$0xf]  ;;  %v833_v31 = vor.u32 %v968_v23, %v832_v22 }
  0x3a   : > { %619 = vmatpush.bf16.msra.mxu3 %v925_v1  ;;  %v898_v30 = vld [vmem:[%s1156_s11 + $0x88] sm:$0xf0]  ;;  %v824_v32 = vld [vmem:[%s1158_s12] sm:$0xf]  ;;  %v966_v33 = vld [vmem:[%s1158_s12 + $0x4] sm:$0xf0]  ;;  %v897_v34 = vor.u32 %v984_v26, %v896_v24  ;;  %v837_v35 = vor.u32 %v967_v27, %v834_v28 }
  0x3b   : > { %v965_v36 = vld [vmem:[%s1158_s12 + $0x4] sm:$0xf]  ;;  %v826_v37 = vld [vmem:[%s1158_s12 + $0x8] sm:$0xf0]  ;;  %v901_v38 = vor.u32 %v983_v29, %v898_v30  ;;  %v825_v39 = vor.u32 %v966_v33, %v824_v32  ;;  %p958_p11 = scmp.ne.s32.totalorder %s1070_s17, 4 }
  0x3c   : > { %578 = vmatpush.bf16.msra.mxu0 %v849_v7  ;;  %v829_v40 = vor.u32 %v965_v36, %v826_v37  ;;  %v365_v42 = vld [vmem:[%s1315_s4] sm:$0xff]  ;;  %v366_v47 = vld [vmem:[%s1315_s4 + $0x8] sm:$0xff]  ;;  %v367_v51 = vld [vmem:[%s1315_s4 + $0x10] sm:$0xff] }
  0x3d   : > { %592 = vmatpush.bf16.msra.mxu1 %v913_v8  ;;  %606 = vmatpush.bf16.msra.mxu2 %v853_v9  ;;  %v368_v57 = vld [vmem:[%s1315_s4 + $0x18] sm:$0xff] }
  0x3e   : > { %620 = vmatpush.bf16.msra.mxu3 %v917_v13 }
  0x40   : > { %579 = vmatpush.bf16.msra.mxu0 %v841_v19 }
  0x41   : > { %593 = vmatpush.bf16.msra.mxu1 %v905_v20  ;;  %607 = vmatpush.bf16.msra.mxu2 %v845_v21 }
  0x42   : > { %621 = vmatpush.bf16.msra.mxu3 %v909_v25 }
  0x44   : > { %580 = vmatpush.bf16.msra.mxu0 %v833_v31 }
  0x45   : > { %594 = vmatpush.bf16.msra.mxu1 %v897_v34  ;;  %608 = vmatpush.bf16.msra.mxu2 %v837_v35 }
  0x46   : > { %622 = vmatpush.bf16.msra.mxu3 %v901_v38 }
  0x47   : > { %581 = vmatmul.bf16.vlgmr.msra.gmra.mxu0 %v825_v39 }
  0x48   : > { %595 = vmatmul.bf16.vlgmr.msra.gmra.mxu1 %v829_v40  ;;  %609 = vmatmul.bf16.vlgmr.msra.gmra.mxu2 %v825_v39 }
  0x49   : > { %623 = vmatmul.bf16.vlgmr.msra.gmra.mxu3 %v829_v40 }
  0xc4   : > { %v582_v41 = vpop.f32.mrf.mxu0 }
  0xc5   : > { %v596_v43 = vpop.f32.mrf.mxu1 }
  0xc6   : > { %v597_v44 = vadd.f32 %v596_v43, %v582_v41 }
  0xc8   : > { %v629_v45 = vadd.f32 %v597_v44, %v365_v42 }
  0xca   : > { %633 = vst [vmem:[%s1315_s4] sm:$0xff] %v629_v45 }
  0xcb   : > { %v610_v46 = vpop.f32.mrf.mxu2 }
  0xcc   : > { %v624_v48 = vpop.f32.mrf.mxu3  ;;  %v584_v49 = vpop.f32.mrf.mxu0 }
  0xcd   : > { %v625_v50 = vadd.f32 %v624_v48, %v610_v46  ;;  %v598_v52 = vpop.f32.mrf.mxu1 }
  0xce   : > { %v599_v53 = vadd.f32 %v598_v52, %v584_v49 }
  0xcf   : > { %v630_v54 = vadd.f32 %v625_v50, %v366_v47 }
  0xd0   : > { %v631_v55 = vadd.f32 %v599_v53, %v367_v51 }
  0xd1   : > { %634 = vst [vmem:[%s1315_s4 + $0x8] sm:$0xff] %v630_v54 }
  0xd2   : > { %635 = vst [vmem:[%s1315_s4 + $0x10] sm:$0xff] %v631_v55 }
  0xd3   : > { %v612_v56 = vpop.f32.mrf.mxu2 }
  0xd4   : > { %v626_v58 = vpop.f32.mrf.mxu3 }
  0xd5   : > { %v627_v59 = vadd.f32 %v626_v58, %v612_v56  ;;  %640 = sbr.rel (%p958_p11) target bundleno = 232 (0xe8), region = 82 }
  0xd7   : > { %v632_v60 = vadd.f32 %v627_v59, %v368_v57 }
  0xd9   : > { %636 = vst [vmem:[%s1315_s4 + $0x18] sm:$0xff] %v632_v60 }
  0xda   : > { %v641_v61 = vld [vmem:[%s1315_s4] sm:$0xff]  ;;  %v642_v2 = vld [vmem:[%s1315_s4 + $0x8] sm:$0xff]  ;;  %v643_v5 = vld [vmem:[%s1315_s4 + $0x10] sm:$0xff] }
  0xdb   : > { %v645_v62 = vld [vmem:[%s1313_s2] sm:$0x3] }
  0xdc   : > { %v655_v63 = vld [vmem:[%s1314_s3] sm:$0x3]  ;;  %v647_v0 = vperm.slane %v645_v62, 0  ;;  %v648_v3 = vperm.slane %v645_v62, 1 }
  0xdd   : > { %v657_v1 = vperm.slane %v655_v63, 0  ;;  %v658_v4 = vperm.slane %v655_v63, 1 }
  0xde   : > { %v651_v7 = vmul.f32 %v647_v0, %v641_v61  ;;  %v652_v8 = vmul.f32 %v648_v3, %v642_v2  ;;  %v653_v9 = vmul.f32 %v647_v0, %v643_v5 }
  0xe0   : > { %v644_v6 = vld [vmem:[%s1315_s4 + $0x18] sm:$0xff]  ;;  %v661_v11 = vadd.f32 %v657_v1, %v651_v7  ;;  %v662_v12 = vadd.f32 %v658_v4, %v652_v8  ;;  %v663_v13 = vadd.f32 %v657_v1, %v653_v9 }
  0xe1   : > { %v654_v10 = vmul.f32 %v648_v3, %v644_v6 }
  0xe2   : > { %v665_v15 = vmax.f32 %v661_v11, 0.0  ;;  %v666_v16 = vmax.f32 %v662_v12, 0.0  ;;  %v667_v17 = vmax.f32 %v663_v13, 0.0 }
  0xe3   : > { %v664_v14 = vadd.f32 %v658_v4, %v654_v10 }
  0xe4   : > { %669 = vst [vmem:[%s1315_s4] sm:$0xff] %v665_v15 }
  0xe5   : > { %v668_v18 = vmax.f32 %v664_v14, 0.0  ;;  %670 = vst [vmem:[%s1315_s4 + $0x8] sm:$0xff] %v666_v16 }
  0xe6   : > { %671 = vst [vmem:[%s1315_s4 + $0x10] sm:$0xff] %v667_v17 }
  0xe7   : > { %672 = vst [vmem:[%s1315_s4 + $0x18] sm:$0xff] %v668_v18 }
  0xe8 PF: > { %s14_s19 = sadd.s32 1, %s1078_s19   ;;  %s1316_s15 = smov %s1066_s16 }
  0xe9   : > { %p11_p12 = scmp.ge.s32.totalorder %s14_s19, 7   ;;  %s1317_s16 = smov %s1141_s23 }
  0xea   : > { %s1318_s17 = smov %s1074_s18  ;;  %s1319_s18 = smov %s1321_s20 }
  0xeb   :  { %13 = sbr.rel (!%p11_p12) target bundleno = 3 (0x3), region = 126 }

// kernel: multimodal_forward.34
= control target key start
LH: loop header
LB: loop body
LE: loop exit
PB: predicated region body
PF: predicated region fallthrough
CT: control target
= control target key end

     0   :  { %s432_s1 = inlined_call_operand.vmem [shape: bf16[128,256], index: 1, kind: input, shape index: {}]   ;;  %s433_s0 = inlined_call_operand.vmem [shape: bf16[16,128], index: 0, kind: input, shape index: {}]   ;;  %s434_s2 = inlined_call_operand.vmem [shape: f32[1,256], index: 2, kind: input, shape index: {}]   ;;  %s435_s3 = inlined_call_operand.vmem [shape: f32[1,256], index: 3, kind: input, shape index: {}]   ;;  %s436_s4 = inlined_call_operand.vmem [shape: f32[16,256], index: 4, kind: output, shape index: {}]  }
   0x1   :  { %v266_v0 = vld [vmem:[%s432_s1 + $0x70] sm:$0xf]  ;;  %v288_v1 = vld [vmem:[%s432_s1 + $0x74] sm:$0xf0]  ;;  %v287_v2 = vld [vmem:[%s432_s1 + $0x74] sm:$0xf] }
   0x2   :  { %v267_v3 = vor.u32 %v288_v1, %v266_v0  ;;  %v268_v4 = vld [vmem:[%s432_s1 + $0x78] sm:$0xf0]  ;;  %v258_v5 = vld [vmem:[%s432_s1 + $0x60] sm:$0xf]  ;;  %v286_v6 = vld [vmem:[%s432_s1 + $0x64] sm:$0xf0] }
   0x3   :  { %v271_v7 = vor.u32 %v287_v2, %v268_v4  ;;  %v285_v8 = vld [vmem:[%s432_s1 + $0x64] sm:$0xf]  ;;  %v260_v9 = vld [vmem:[%s432_s1 + $0x68] sm:$0xf0]  ;;  %v259_v10 = vor.u32 %v286_v6, %v258_v5  ;;  %v250_v12 = vld [vmem:[%s432_s1 + $0x50] sm:$0xf] }
   0x4   :  { %133 = vmatpush.bf16.msra.mxu0 %v267_v3  ;;  %v263_v11 = vor.u32 %v285_v8, %v260_v9  ;;  %v284_v13 = vld [vmem:[%s432_s1 + $0x54] sm:$0xf0]  ;;  %v283_v14 = vld [vmem:[%s432_s1 + $0x54] sm:$0xf]  ;;  %v252_v15 = vld [vmem:[%s432_s1 + $0x58] sm:$0xf0] }
   0x5   :  { %147 = vmatpush.bf16.msra.mxu1 %v271_v7  ;;  %v251_v16 = vor.u32 %v284_v13, %v250_v12  ;;  %v255_v17 = vor.u32 %v283_v14, %v252_v15  ;;  %v242_v18 = vld [vmem:[%s432_s1 + $0x40] sm:$0xf]  ;;  %v282_v19 = vld [vmem:[%s432_s1 + $0x44] sm:$0xf0]  ;;  %v281_v20 = vld [vmem:[%s432_s1 + $0x44] sm:$0xf] }
   0x6   :  { %v244_v21 = vld [vmem:[%s432_s1 + $0x48] sm:$0xf0]  ;;  %v243_v22 = vor.u32 %v282_v19, %v242_v18  ;;  %v234_v24 = vld [vmem:[%s432_s1 + $0x30] sm:$0xf]  ;;  %v280_v25 = vld [vmem:[%s432_s1 + $0x34] sm:$0xf0] }
   0x7   :  { %v247_v23 = vor.u32 %v281_v20, %v244_v21  ;;  %v279_v26 = vld [vmem:[%s432_s1 + $0x34] sm:$0xf]  ;;  %v236_v27 = vld [vmem:[%s432_s1 + $0x38] sm:$0xf0]  ;;  %v235_v28 = vor.u32 %v280_v25, %v234_v24  ;;  %v226_v30 = vld [vmem:[%s432_s1 + $0x20] sm:$0xf] }
   0x8   :  { %134 = vmatpush.bf16.msra.mxu0 %v259_v10  ;;  %v239_v29 = vor.u32 %v279_v26, %v236_v27  ;;  %v278_v31 = vld [vmem:[%s432_s1 + $0x24] sm:$0xf0]  ;;  %v277_v32 = vld [vmem:[%s432_s1 + $0x24] sm:$0xf]  ;;  %v228_v33 = vld [vmem:[%s432_s1 + $0x28] sm:$0xf0] }
   0x9   :  { %148 = vmatpush.bf16.msra.mxu1 %v263_v11  ;;  %v227_v34 = vor.u32 %v278_v31, %v226_v30  ;;  %v231_v35 = vor.u32 %v277_v32, %v228_v33  ;;  %v218_v36 = vld [vmem:[%s432_s1 + $0x10] sm:$0xf]  ;;  %v276_v37 = vld [vmem:[%s432_s1 + $0x14] sm:$0xf0]  ;;  %v275_v38 = vld [vmem:[%s432_s1 + $0x14] sm:$0xf] }
   0xa   :  { %v220_v39 = vld [vmem:[%s432_s1 + $0x18] sm:$0xf0]  ;;  %v219_v40 = vor.u32 %v276_v37, %v218_v36  ;;  %v210_v42 = vld [vmem:[%s432_s1] sm:$0xf]  ;;  %v274_v43 = vld [vmem:[%s432_s1 + $0x4] sm:$0xf0] }
   0xb   :  { %v223_v41 = vor.u32 %v275_v38, %v220_v39  ;;  %v273_v44 = vld [vmem:[%s432_s1 + $0x4] sm:$0xf]  ;;  %v212_v45 = vld [vmem:[%s432_s1 + $0x8] sm:$0xf0]  ;;  %v211_v46 = vor.u32 %v274_v43, %v210_v42  ;;  %v176_v49 = vld [vmem:[%s434_s2] sm:$0x3] }
   0xc   :  { %135 = vmatpush.bf16.msra.mxu0 %v251_v16  ;;  %v215_v47 = vor.u32 %v273_v44, %v212_v45  ;;  %v272_v48 = vld [vmem:[%s433_s0] sm:$0xff]  ;;  %v178_v51 = vperm.slane %v176_v49, 0  ;;  %v179_v53 = vperm.slane %v176_v49, 1 }
   0xd   :  { %149 = vmatpush.bf16.msra.mxu1 %v255_v17  ;;  %v186_v50 = vld [vmem:[%s435_s3] sm:$0x3] }
   0xe   :  { %v188_v54 = vperm.slane %v186_v50, 0  ;;  %v189_v56 = vperm.slane %v186_v50, 1 }
  0x10   :  { %136 = vmatpush.bf16.msra.mxu0 %v243_v22 }
  0x11   :  { %150 = vmatpush.bf16.msra.mxu1 %v247_v23 }
  0x14   :  { %137 = vmatpush.bf16.msra.mxu0 %v235_v28 }
  0x15   :  { %151 = vmatpush.bf16.msra.mxu1 %v239_v29 }
  0x18   :  { %138 = vmatpush.bf16.msra.mxu0 %v227_v34 }
  0x19   :  { %152 = vmatpush.bf16.msra.mxu1 %v231_v35 }
  0x1c   :  { %139 = vmatpush.bf16.msra.mxu0 %v219_v40 }
  0x1d   :  { %153 = vmatpush.bf16.msra.mxu1 %v223_v41 }
  0x20   :  { %140 = vmatpush.bf16.msra.mxu0 %v211_v46 }
  0x21   :  { %154 = vmatpush.bf16.msra.mxu1 %v215_v47 }
  0x23   :  { %141 = vmatmul.bf16.vlgmr.msra.gmra.mxu0 %v272_v48 }
  0x24   :  { %155 = vmatmul.bf16.vlgmr.msra.gmra.mxu1 %v272_v48 }
  0xa0   :  { %v142_v52 = vpop.f32.mrf.mxu0 }
  0xa1   :  { %v156_v55 = vpop.f32.mrf.mxu1  ;;  %v182_v57 = vmul.f32 %v178_v51, %v142_v52 }
  0xa2   :  { %v183_v58 = vmul.f32 %v179_v53, %v156_v55 }
  0xa3   :  { %v192_v59 = vadd.f32 %v188_v54, %v182_v57 }
  0xa4   :  { %v193_v60 = vadd.f32 %v189_v56, %v183_v58 }
  0xa5   :  { %196 = vst [vmem:[%s436_s4] sm:$0xff] %v192_v59 }
  0xa6   :  { %197 = vst [vmem:[%s436_s4 + $0x8] sm:$0xff] %v193_v60 }
  0xa8   :  { %v144_v61 = vpop.f32.mrf.mxu0 }
  0xa9   :  { %v158_v62 = vpop.f32.mrf.mxu1  ;;  %v184_v63 = vmul.f32 %v178_v51, %v144_v61 }
  0xaa   :  { %v185_v0 = vmul.f32 %v179_v53, %v158_v62 }
  0xab   :  { %v194_v1 = vadd.f32 %v188_v54, %v184_v63 }
  0xac   :  { %v195_v2 = vadd.f32 %v189_v56, %v185_v0 }
  0xad   :  { %198 = vst [vmem:[%s436_s4 + $0x10] sm:$0xff] %v194_v1 }
  0xae   :  { %199 = vst [vmem:[%s436_s4 + $0x18] sm:$0xff] %v195_v2 }

// kernel: multimodal_forward.35
= control target key start
LH: loop header
LB: loop body
LE: loop exit
PB: predicated region body
PF: predicated region fallthrough
CT: control target
= control target key end

     0   :  { %s1209_s18 = smov 0   ;;  %s1211_s19 = smov 0   ;;  %s1426_s0 = inlined_call_operand.vmem [shape: bf16[16,2304], index: 0, kind: input, shape index: {}]   ;;  %s1427_s1 = inlined_call_operand.vmem [shape: bf16[2304,256], index: 1, kind: input, shape index: {}]   ;;  %s1428_s2 = inlined_call_operand.vmem [shape: f32[1,256], index: 2, kind: input, shape index: {}]   ;;  %s1429_s3 = inlined_call_operand.vmem [shape: f32[1,256], index: 3, kind: input, shape index: {}]   ;;  %s1430_s4 = inlined_call_operand.vmem [shape: f32[16,256], index: 4, kind: input, shape index: {}]   ;;  %s1431_s5 = inlined_call_operand.vmem [shape: f32[16,256], index: 5, kind: output, shape index: {}]  }
   0x1   :  { %s1213_s20 = smov 0   ;;  %s1215_s21 = smov 0  }
   0x2   :  { %s1217_s22 = smov 0  }
   0x3 LB: > { %s27_s23 = sadd.s32 1, %s1172_s21  ;;  %p50_p1 = scmp.ne.s32.totalorder %s1164_s19, %s1160_s18  ;;  %s1176_s22 = sphi %s1217_s22, %s15_s22   ;;  %s1172_s21 = sphi %s1215_s21, %s1435_s21   ;;  %s1168_s20 = sphi %s1213_s20, %s1434_s20   ;;  %s1164_s19 = sphi %s1211_s19, %s1433_s19   ;;  %s1160_s18 = sphi %s1209_s18, %s1432_s18  }
   0x4   : > { %p28_p0 = scmp.ge.s32.totalorder %s27_s23, 9  ;;  %p51_p2 = scmp.eq.s32.totalorder %s1176_s22, 0 }
   0x5   : > { %s43_s25 = sadd.s32 1, %s1164_s19  ;;  %p910_p5 = scmp.ge.s32.totalorder %s1176_s22, 9 }
   0x6   : > { %s1437_s23 = smov (%p28_p0, %s27_s23), 0  ;;  %p52_p3 = por %p51_p2, %p50_p1 }
   0x7   : > { %s39_s24 = ssub.s32 %s1172_s21, %s1437_s23  ;;  %243 = sbr.rel (%p910_p5) target bundleno = 18 (0x12), region = 28 }
   0x8   : > { %p41_p4 = scmp.eq.s32.totalorder %s39_s24, 0 }
   0xa   : > { %s1244_s26 = scalar_select %p41_p4, %s1164_s19, %s43_s25  }
   0xc   : > { %246 = sbr.rel (!%p52_p3) target bundleno = 18 (0x12), region = 32  ;;  %s248_s27 = sand.u32 (%p52_p3), 1, %s1164_s19  }
   0xd   : > { %s1061_s28 = sshll.u32 (%p52_p3), %s1172_s21, 3  ;;  %s911_s29 = sshll.u32 (%p52_p3), %s248_s27, 4 }
   0xe   : > { %s256_s7 = scalar_lea.vmem (%p52_p3), %s1426_s0, %s1061_s28  ;;  %s250_s8 = scalar_lea.vmem (%p52_p3), [#allocation2], %s911_s29 }
   0xf   : > { %v287_v0 = vld [vmem:[%s256_s7] sm:$0xff] (%p52_p3)  ;;  %v289_v1 = vld [vmem:[%s256_s7 + $0x48] sm:$0xff] (%p52_p3) }
  0x10   : > { %288 = vst [vmem:[%s250_s8] sm:$0xff] (%p52_p3), %v287_v0 }
  0x11   : > { %290 = vst [vmem:[%s250_s8 + $0x8] sm:$0xff] %v289_v1 }
  0x12 PF: > { %p914_p6 = scmp.ge.s32.totalorder %s1176_s22, 1  ;;  %p310_p7 = scmp.lt.s32.totalorder %s1176_s22, 10 }
  0x14   : > { %p311_p8 = pnand %p914_p6, %p310_p7 }
  0x15   : > { %s317_s9 = sand.u32 (!%p311_p8), 1, %s1160_s18   ;;  %s916_s10 = sshll.u32 (!%p311_p8), %s1168_s20, 5 }
  0x16   : > { %314 = sbr.rel (%p311_p8) target bundleno = 234 (0xea), region = 74  ;;  %s915_s11 = sshll.u32 (!%p311_p8), %s317_s9, 4 }
  0x17   : > { %p381_p9 = scmp.lt.s32.totalorder (!%p311_p8), %s916_s10, 287  ;;  %s1261_s16 = scalar_lea.vmem (!%p311_p8), [#allocation2], %s915_s11 }
  0x18   : > { %p919_p10 = scmp.ne.s32.totalorder (!%p311_p8), %s1168_s20, 0 }
  0x1b   : > { %s1439_s10 = smov (!%p381_p9, %s916_s10), 287  ;;  %428 = sbr.rel (%p919_p10) target bundleno = 37 (0x25), region = 82 }
  0x1c   : > { %s1062_s12 = sshll.u32 %s1439_s10, 3 }
  0x1d   : > { %s1259_s15 = scalar_lea.vmem %s1427_s1, %s1062_s12 }
  0x20   : > { %v1178_v2 = vmov 0.0  }
  0x21   : > { %429 = vst [vmem:[%s1431_s5] sm:$0xff] %v1178_v2 }
  0x22   : > { %430 = vst [vmem:[%s1431_s5 + $0x8] sm:$0xff] %v1178_v2 }
  0x23   : > { %431 = vst [vmem:[%s1431_s5 + $0x10] sm:$0xff] %v1178_v2 }
  0x24   : > { %432 = vst [vmem:[%s1431_s5 + $0x18] sm:$0xff] %v1178_v2 }
  0x25 PF: > { %v986_v3 = vld [vmem:[%s1259_s15 + $0x70] sm:$0xf]  ;;  %v1080_v4 = vld [vmem:[%s1259_s15 + $0x74] sm:$0xf0]  ;;  %v1079_v8 = vld [vmem:[%s1259_s15 + $0x74] sm:$0xf] }
  0x26   : > { %v1050_v5 = vld [vmem:[%s1259_s15 + $0xf0] sm:$0xf]  ;;  %v987_v6 = vor.u32 %v1080_v4, %v986_v3  ;;  %v1096_v7 = vld [vmem:[%s1259_s15 + $0xf4] sm:$0xf0]  ;;  %v988_v9 = vld [vmem:[%s1259_s15 + $0x78] sm:$0xf0] }
  0x27   : > { %v1051_v10 = vor.u32 %v1096_v7, %v1050_v5  ;;  %v991_v11 = vor.u32 %v1079_v8, %v988_v9  ;;  %v1095_v12 = vld [vmem:[%s1259_s15 + $0xf4] sm:$0xf]  ;;  %v1052_v13 = vld [vmem:[%s1259_s15 + $0xf8] sm:$0xf0]  ;;  %v978_v14 = vld [vmem:[%s1259_s15 + $0x60] sm:$0xf] }
  0x28   : > { %641 = vmatpush.bf16.msra.mxu0 %v987_v6  ;;  %v1055_v15 = vor.u32 %v1095_v12, %v1052_v13  ;;  %v1078_v16 = vld [vmem:[%s1259_s15 + $0x64] sm:$0xf0]  ;;  %v1042_v17 = vld [vmem:[%s1259_s15 + $0xe0] sm:$0xf]  ;;  %v1077_v21 = vld [vmem:[%s1259_s15 + $0x64] sm:$0xf] }
  0x29   : > { %v1094_v18 = vld [vmem:[%s1259_s15 + $0xe4] sm:$0xf0]  ;;  %655 = vmatpush.bf16.msra.mxu1 %v1051_v10  ;;  %669 = vmatpush.bf16.msra.mxu2 %v991_v11  ;;  %v979_v19 = vor.u32 %v1078_v16, %v978_v14  ;;  %v980_v22 = vld [vmem:[%s1259_s15 + $0x68] sm:$0xf0]  ;;  %v1093_v23 = vld [vmem:[%s1259_s15 + $0xe4] sm:$0xf] }
  0x2a   : > { %v1043_v20 = vor.u32 %v1094_v18, %v1042_v17  ;;  %683 = vmatpush.bf16.msra.mxu3 %v1055_v15  ;;  %v983_v24 = vor.u32 %v1077_v21, %v980_v22  ;;  %v1044_v25 = vld [vmem:[%s1259_s15 + $0xe8] sm:$0xf0]  ;;  %v970_v26 = vld [vmem:[%s1259_s15 + $0x50] sm:$0xf]  ;;  %v1076_v27 = vld [vmem:[%s1259_s15 + $0x54] sm:$0xf0] }
  0x2b   : > { %v1047_v28 = vor.u32 %v1093_v23, %v1044_v25  ;;  %v1034_v29 = vld [vmem:[%s1259_s15 + $0xd0] sm:$0xf]  ;;  %v1092_v30 = vld [vmem:[%s1259_s15 + $0xd4] sm:$0xf0]  ;;  %v1075_v31 = vld [vmem:[%s1259_s15 + $0x54] sm:$0xf]  ;;  %v971_v32 = vor.u32 %v1076_v27, %v970_v26 }
  0x2c   : > { %642 = vmatpush.bf16.msra.mxu0 %v979_v19  ;;  %v972_v33 = vld [vmem:[%s1259_s15 + $0x58] sm:$0xf0]  ;;  %v1091_v34 = vld [vmem:[%s1259_s15 + $0xd4] sm:$0xf]  ;;  %v1035_v36 = vor.u32 %v1092_v30, %v1034_v29  ;;  %v962_v38 = vld [vmem:[%s1259_s15 + $0x40] sm:$0xf] }
  0x2d   : > { %v1036_v35 = vld [vmem:[%s1259_s15 + $0xd8] sm:$0xf0]  ;;  %656 = vmatpush.bf16.msra.mxu1 %v1043_v20  ;;  %670 = vmatpush.bf16.msra.mxu2 %v983_v24  ;;  %v975_v37 = vor.u32 %v1075_v31, %v972_v33  ;;  %v1074_v39 = vld [vmem:[%s1259_s15 + $0x44] sm:$0xf0]  ;;  %v1026_v40 = vld [vmem:[%s1259_s15 + $0xc0] sm:$0xf] }
  0x2e   : > { %684 = vmatpush.bf16.msra.mxu3 %v1047_v28  ;;  %v1039_v41 = vor.u32 %v1091_v34, %v1036_v35  ;;  %v1090_v42 = vld [vmem:[%s1259_s15 + $0xc4] sm:$0xf0]  ;;  %v1073_v43 = vld [vmem:[%s1259_s15 + $0x44] sm:$0xf]  ;;  %v964_v44 = vld [vmem:[%s1259_s15 + $0x48] sm:$0xf0]  ;;  %v963_v47 = vor.u32 %v1074_v39, %v962_v38 }
  0x2f   : > { %v1089_v45 = vld [vmem:[%s1259_s15 + $0xc4] sm:$0xf]  ;;  %v1028_v46 = vld [vmem:[%s1259_s15 + $0xc8] sm:$0xf0]  ;;  %v1027_v48 = vor.u32 %v1090_v42, %v1026_v40  ;;  %v967_v49 = vor.u32 %v1073_v43, %v964_v44  ;;  %v954_v50 = vld [vmem:[%s1259_s15 + $0x30] sm:$0xf] }
  0x30   : > { %643 = vmatpush.bf16.msra.mxu0 %v971_v32  ;;  %v1072_v51 = vld [vmem:[%s1259_s15 + $0x34] sm:$0xf0]  ;;  %v1018_v52 = vld [vmem:[%s1259_s15 + $0xb0] sm:$0xf]  ;;  %v1031_v53 = vor.u32 %v1089_v45, %v1028_v46  ;;  %v1071_v55 = vld [vmem:[%s1259_s15 + $0x34] sm:$0xf] }
  0x31   : > { %657 = vmatpush.bf16.msra.mxu1 %v1035_v36  ;;  %671 = vmatpush.bf16.msra.mxu2 %v975_v37  ;;  %v1088_v54 = vld [vmem:[%s1259_s15 + $0xb4] sm:$0xf0]  ;;  %v956_v56 = vld [vmem:[%s1259_s15 + $0x38] sm:$0xf0]  ;;  %v1087_v57 = vld [vmem:[%s1259_s15 + $0xb4] sm:$0xf]  ;;  %v955_v59 = vor.u32 %v1072_v51, %v954_v50 }
  0x32   : > { %685 = vmatpush.bf16.msra.mxu3 %v1039_v41  ;;  %v1020_v58 = vld [vmem:[%s1259_s15 + $0xb8] sm:$0xf0]  ;;  %v1019_v60 = vor.u32 %v1088_v54, %v1018_v52  ;;  %v959_v61 = vor.u32 %v1071_v55, %v956_v56  ;;  %v946_v62 = vld [vmem:[%s1259_s15 + $0x20] sm:$0xf]  ;;  %v1070_v63 = vld [vmem:[%s1259_s15 + $0x24] sm:$0xf0] }
  0x33   : > { %v1010_v0 = vld [vmem:[%s1259_s15 + $0xa0] sm:$0xf]  ;;  %v1023_v1 = vor.u32 %v1087_v57, %v1020_v58  ;;  %v1086_v2 = vld [vmem:[%s1259_s15 + $0xa4] sm:$0xf0]  ;;  %v1069_v3 = vld [vmem:[%s1259_s15 + $0x24] sm:$0xf]  ;;  %v947_v7 = vor.u32 %v1070_v63, %v946_v62 }
  0x34   : > { %644 = vmatpush.bf16.msra.mxu0 %v963_v47  ;;  %v948_v4 = vld [vmem:[%s1259_s15 + $0x28] sm:$0xf0]  ;;  %v1085_v5 = vld [vmem:[%s1259_s15 + $0xa4] sm:$0xf]  ;;  %v1011_v8 = vor.u32 %v1086_v2, %v1010_v0  ;;  %v938_v10 = vld [vmem:[%s1259_s15 + $0x10] sm:$0xf] }
  0x35   : > { %658 = vmatpush.bf16.msra.mxu1 %v1027_v48  ;;  %672 = vmatpush.bf16.msra.mxu2 %v967_v49  ;;  %v1012_v6 = vld [vmem:[%s1259_s15 + $0xa8] sm:$0xf0]  ;;  %v951_v9 = vor.u32 %v1069_v3, %v948_v4  ;;  %v1068_v11 = vld [vmem:[%s1259_s15 + $0x14] sm:$0xf0]  ;;  %v1002_v12 = vld [vmem:[%s1259_s15 + $0x90] sm:$0xf] }
  0x36   : > { %686 = vmatpush.bf16.msra.mxu3 %v1031_v53  ;;  %v1015_v13 = vor.u32 %v1085_v5, %v1012_v6  ;;  %v1084_v14 = vld [vmem:[%s1259_s15 + $0x94] sm:$0xf0]  ;;  %v1067_v15 = vld [vmem:[%s1259_s15 + $0x14] sm:$0xf]  ;;  %v940_v16 = vld [vmem:[%s1259_s15 + $0x18] sm:$0xf0]  ;;  %v939_v19 = vor.u32 %v1068_v11, %v938_v10 }
  0x37   : > { %v1083_v17 = vld [vmem:[%s1259_s15 + $0x94] sm:$0xf]  ;;  %v1004_v18 = vld [vmem:[%s1259_s15 + $0x98] sm:$0xf0]  ;;  %v1003_v20 = vor.u32 %v1084_v14, %v1002_v12  ;;  %v943_v21 = vor.u32 %v1067_v15, %v940_v16  ;;  %v930_v22 = vld [vmem:[%s1259_s15] sm:$0xf] }
  0x38   : > { %645 = vmatpush.bf16.msra.mxu0 %v955_v59  ;;  %v1066_v23 = vld [vmem:[%s1259_s15 + $0x4] sm:$0xf0]  ;;  %v994_v24 = vld [vmem:[%s1259_s15 + $0x80] sm:$0xf]  ;;  %v1007_v25 = vor.u32 %v1083_v17, %v1004_v18  ;;  %v1065_v27 = vld [vmem:[%s1259_s15 + $0x4] sm:$0xf] }
  0x39   : > { %659 = vmatpush.bf16.msra.mxu1 %v1019_v60  ;;  %673 = vmatpush.bf16.msra.mxu2 %v959_v61  ;;  %v1082_v26 = vld [vmem:[%s1259_s15 + $0x84] sm:$0xf0]  ;;  %v932_v28 = vld [vmem:[%s1259_s15 + $0x8] sm:$0xf0]  ;;  %v1081_v29 = vld [vmem:[%s1259_s15 + $0x84] sm:$0xf]  ;;  %v931_v31 = vor.u32 %v1066_v23, %v930_v22 }
  0x3a   : > { %687 = vmatpush.bf16.msra.mxu3 %v1023_v1  ;;  %v996_v30 = vld [vmem:[%s1259_s15 + $0x88] sm:$0xf0]  ;;  %v922_v32 = vld [vmem:[%s1261_s16] sm:$0xf]  ;;  %v1064_v33 = vld [vmem:[%s1261_s16 + $0x4] sm:$0xf0]  ;;  %v995_v34 = vor.u32 %v1082_v26, %v994_v24  ;;  %v935_v35 = vor.u32 %v1065_v27, %v932_v28 }
  0x3b   : > { %v1063_v36 = vld [vmem:[%s1261_s16 + $0x4] sm:$0xf]  ;;  %v924_v37 = vld [vmem:[%s1261_s16 + $0x8] sm:$0xf0]  ;;  %v999_v38 = vor.u32 %v1081_v29, %v996_v30  ;;  %v923_v39 = vor.u32 %v1064_v33, %v922_v32  ;;  %p1056_p11 = scmp.ne.s32.totalorder %s1168_s20, 8 }
  0x3c   : > { %646 = vmatpush.bf16.msra.mxu0 %v947_v7  ;;  %v927_v40 = vor.u32 %v1063_v36, %v924_v37  ;;  %v433_v42 = vld [vmem:[%s1431_s5] sm:$0xff]  ;;  %v434_v47 = vld [vmem:[%s1431_s5 + $0x8] sm:$0xff]  ;;  %v435_v51 = vld [vmem:[%s1431_s5 + $0x10] sm:$0xff] }
  0x3d   : > { %660 = vmatpush.bf16.msra.mxu1 %v1011_v8  ;;  %674 = vmatpush.bf16.msra.mxu2 %v951_v9  ;;  %v436_v57 = vld [vmem:[%s1431_s5 + $0x18] sm:$0xff] }
  0x3e   : > { %688 = vmatpush.bf16.msra.mxu3 %v1015_v13 }
  0x40   : > { %647 = vmatpush.bf16.msra.mxu0 %v939_v19 }
  0x41   : > { %661 = vmatpush.bf16.msra.mxu1 %v1003_v20  ;;  %675 = vmatpush.bf16.msra.mxu2 %v943_v21 }
  0x42   : > { %689 = vmatpush.bf16.msra.mxu3 %v1007_v25 }
  0x44   : > { %648 = vmatpush.bf16.msra.mxu0 %v931_v31 }
  0x45   : > { %662 = vmatpush.bf16.msra.mxu1 %v995_v34  ;;  %676 = vmatpush.bf16.msra.mxu2 %v935_v35 }
  0x46   : > { %690 = vmatpush.bf16.msra.mxu3 %v999_v38 }
  0x47   : > { %649 = vmatmul.bf16.vlgmr.msra.gmra.mxu0 %v923_v39 }
  0x48   : > { %663 = vmatmul.bf16.vlgmr.msra.gmra.mxu1 %v927_v40  ;;  %677 = vmatmul.bf16.vlgmr.msra.gmra.mxu2 %v923_v39 }
  0x49   : > { %691 = vmatmul.bf16.vlgmr.msra.gmra.mxu3 %v927_v40 }
  0xc4   : > { %v650_v41 = vpop.f32.mrf.mxu0 }
  0xc5   : > { %v664_v43 = vpop.f32.mrf.mxu1 }
  0xc6   : > { %v665_v44 = vadd.f32 %v664_v43, %v650_v41 }
  0xc8   : > { %v697_v45 = vadd.f32 %v665_v44, %v433_v42 }
  0xca   : > { %701 = vst [vmem:[%s1431_s5] sm:$0xff] %v697_v45 }
  0xcb   : > { %v678_v46 = vpop.f32.mrf.mxu2 }
  0xcc   : > { %v692_v48 = vpop.f32.mrf.mxu3  ;;  %v652_v49 = vpop.f32.mrf.mxu0 }
  0xcd   : > { %v693_v50 = vadd.f32 %v692_v48, %v678_v46  ;;  %v666_v52 = vpop.f32.mrf.mxu1 }
  0xce   : > { %v667_v53 = vadd.f32 %v666_v52, %v652_v49 }
  0xcf   : > { %v698_v54 = vadd.f32 %v693_v50, %v434_v47 }
  0xd0   : > { %v699_v55 = vadd.f32 %v667_v53, %v435_v51 }
  0xd1   : > { %702 = vst [vmem:[%s1431_s5 + $0x8] sm:$0xff] %v698_v54 }
  0xd2   : > { %703 = vst [vmem:[%s1431_s5 + $0x10] sm:$0xff] %v699_v55 }
  0xd3   : > { %v680_v56 = vpop.f32.mrf.mxu2 }
  0xd4   : > { %v694_v58 = vpop.f32.mrf.mxu3 }
  0xd5   : > { %v695_v59 = vadd.f32 %v694_v58, %v680_v56  ;;  %708 = sbr.rel (%p1056_p11) target bundleno = 234 (0xea), region = 86 }
  0xd7   : > { %v700_v60 = vadd.f32 %v695_v59, %v436_v57 }
  0xd9   : > { %704 = vst [vmem:[%s1431_s5 + $0x18] sm:$0xff] %v700_v60 }
  0xda   : > { %v709_v61 = vld [vmem:[%s1431_s5] sm:$0xff]  ;;  %v710_v2 = vld [vmem:[%s1431_s5 + $0x8] sm:$0xff]  ;;  %v711_v5 = vld [vmem:[%s1431_s5 + $0x10] sm:$0xff] }
  0xdb   : > { %v713_v62 = vld [vmem:[%s1428_s2] sm:$0x3]  ;;  %v734_v11 = vld [vmem:[%s1430_s4 + $0x8] sm:$0xff]  ;;  %v735_v12 = vld [vmem:[%s1430_s4 + $0x10] sm:$0xff] }
  0xdc   : > { %v723_v63 = vld [vmem:[%s1429_s3] sm:$0x3]  ;;  %v715_v0 = vperm.slane %v713_v62, 0  ;;  %v716_v3 = vperm.slane %v713_v62, 1  ;;  %v736_v17 = vld [vmem:[%s1430_s4 + $0x18] sm:$0xff] }
  0xdd   : > { %v725_v1 = vperm.slane %v723_v63, 0  ;;  %v726_v4 = vperm.slane %v723_v63, 1  ;;  %v733_v10 = vld [vmem:[%s1430_s4] sm:$0xff] }
  0xde   : > { %v719_v6 = vmul.f32 %v715_v0, %v709_v61  ;;  %v720_v7 = vmul.f32 %v716_v3, %v710_v2  ;;  %v721_v8 = vmul.f32 %v715_v0, %v711_v5 }
  0xe0   : > { %v712_v9 = vld [vmem:[%s1431_s5 + $0x18] sm:$0xff]  ;;  %v729_v14 = vadd.f32 %v725_v1, %v719_v6  ;;  %v730_v15 = vadd.f32 %v726_v4, %v720_v7  ;;  %v731_v16 = vadd.f32 %v725_v1, %v721_v8 }
  0xe1   : > { %v722_v13 = vmul.f32 %v716_v3, %v712_v9 }
  0xe2   : > { %v737_v19 = vadd.f32 %v733_v10, %v729_v14  ;;  %v738_v20 = vadd.f32 %v734_v11, %v730_v15  ;;  %v739_v21 = vadd.f32 %v735_v12, %v731_v16 }
  0xe3   : > { %v732_v18 = vadd.f32 %v726_v4, %v722_v13 }
  0xe4   : > { %v741_v23 = vmax.f32 %v737_v19, 0.0  ;;  %v742_v24 = vmax.f32 %v738_v20, 0.0  ;;  %v743_v25 = vmax.f32 %v739_v21, 0.0 }
  0xe5   : > { %v740_v22 = vadd.f32 %v736_v17, %v732_v18 }
  0xe6   : > { %745 = vst [vmem:[%s1431_s5] sm:$0xff] %v741_v23 }
  0xe7   : > { %v744_v26 = vmax.f32 %v740_v22, 0.0  ;;  %746 = vst [vmem:[%s1431_s5 + $0x8] sm:$0xff] %v742_v24 }
  0xe8   : > { %747 = vst [vmem:[%s1431_s5 + $0x10] sm:$0xff] %v743_v25 }
  0xe9   : > { %748 = vst [vmem:[%s1431_s5 + $0x18] sm:$0xff] %v744_v26 }
  0xea PF: > { %s15_s22 = sadd.s32 1, %s1176_s22   ;;  %s1432_s18 = smov %s1164_s19 }
  0xeb   : > { %p12_p12 = scmp.ge.s32.totalorder %s15_s22, 11   ;;  %s1433_s19 = smov %s1244_s26 }
  0xec   : > { %s1434_s20 = smov %s1172_s21  ;;  %s1435_s21 = smov %s1437_s23 }
  0xed   :  { %14 = sbr.rel (!%p12_p12) target bundleno = 3 (0x3), region = 133 }

// kernel: multimodal_forward.38
= control target key start
LH: loop header
LB: loop body
LE: loop exit
PB: predicated region body
PF: predicated region fallthrough
CT: control target
= control target key end

     0   :  { %s1356_s15 = smov 0   ;;  %s1358_s16 = smov 0   ;;  %s1703_s0 = inlined_call_operand.vmem [shape: bf16[16,2304], index: 0, kind: input, shape index: {}]   ;;  %s1704_s1 = inlined_call_operand.vmem [shape: bf16[2304,512], index: 1, kind: input, shape index: {}]   ;;  %s1705_s2 = inlined_call_operand.vmem [shape: f32[1,512], index: 2, kind: input, shape index: {}]   ;;  %s1706_s3 = inlined_call_operand.vmem [shape: f32[1,512], index: 3, kind: input, shape index: {}]   ;;  %s1707_s4 = inlined_call_operand.vmem [shape: f32[16,512], index: 4, kind: output, shape index: {}]  }
   0x1   :  { %s1360_s17 = smov 0   ;;  %s1362_s18 = smov 0  }
   0x2   :  { %s1364_s19 = smov 0   ;;  %s1366_s20 = smov 0  }
   0x3   :  { %s1368_s21 = smov 0   ;;  %s1370_s22 = smov 0  }
   0x4   :  { %s1372_s23 = smov 0   ;;  %s1374_s24 = smov 0  }
   0x5   :  { %s1376_s25 = smov 0  }
   0x6 LB: > { %1711 = sst [smem:[#allocation5_spill]] %s1308_s20  ;;  %s955_s26 = sadd.s32 4294967295, %s1328_s25   ;;  %s1328_s25 = sphi %s1376_s25, %s14_s25   ;;  %s1324_s24 = sphi %s1374_s24, %s1729_s24   ;;  %s1320_s23 = sphi %s1372_s23, %s1728_s23   ;;  %s1316_s22 = sphi %s1370_s22, %s1727_s22   ;;  %s1312_s21 = sphi %s1368_s21, %s1726_s21   ;;  %s1308_s20 = sphi %s1366_s20, %s1719_s20   ;;  %s1304_s19 = sphi %s1364_s19, %s1718_s19   ;;  %s1300_s18 = sphi %s1362_s18, %s1725_s18   ;;  %s1296_s17 = sphi %s1360_s17, %s1724_s17   ;;  %s1292_s16 = sphi %s1358_s16, %s1723_s16   ;;  %s1288_s15 = sphi %s1356_s15, %s1722_s15  }
   0x7   : > { %s26_s27 = sadd.s32 1, %s1320_s23  ;;  %s29_s28 = sadd.s32 1, %s1324_s24 }
   0x8   : > { %p27_p0 = scmp.ge.s32.totalorder %s26_s27, 9  ;;  %s42_s29 = sadd.s32 1, %s1308_s20 }
   0x9   : > { %p49_p1 = scmp.ne.s32.totalorder %s1308_s20, %s1304_s19  ;;  %p50_p2 = scmp.eq.s32.totalorder %s1328_s25, 0 }
   0xa   : > { %s1731_s27 = smov (%p27_p0, %s26_s27), 0  ;;  %s1733_s28 = smov (!%p27_p0, %s29_s28), %s1324_s24 }
   0xb   : > { %1712 = sst [smem:[#allocation6_spill]] %s1731_s27  ;;  %s38_s30 = ssub.s32 %s1320_s23, %s1731_s27 }
   0xc   : > { %p31_p3 = scmp.ge.s32.totalorder %s1733_s28, 2  ;;  %p40_p4 = scmp.eq.s32.totalorder %s38_s30, 0 }
   0xd   : > { %p1423_p5 = por %p50_p2, %p49_p1  ;;  %s70_s6 = sadd.s32 1, %s1300_s18 }
   0xe   : > { %s1735_s28 = smov (%p31_p3, %s1733_s28), 0  ;;  %p77_p6 = scmp.ne.s32.totalorder %s1300_s18, %s1296_s17 }
   0xf   : > { %1714 = sst [smem:[#allocation7_spill]] %s1735_s28  ;;  %s66_s8 = ssub.s32 %s1324_s24, %s1735_s28 }
  0x10   : > { %s1431_s7 = scalar_select %p40_p4, %s1308_s20, %s42_s29  }
  0x11   : > { %s67_s9 = sor.u32 %s66_s8, %s38_s30  ;;  %p148_p7 = scmp.eq.s32.totalorder %s66_s8, 0 }
  0x12   : > { %1715 = sst [smem:[#allocation8_spill]] %s1431_s7  ;;  %p68_p8 = scmp.eq.s32.totalorder %s67_s9, 0 }
  0x13   : > { %p1437_p9 = por %p77_p6, %p50_p2  ;;  %s150_s11 = sadd.s32 1, %s1292_s16 }
  0x14   : > { %p160_p10 = scmp.ne.s32.totalorder %s1292_s16, %s1288_s15  ;;  %p161_p11 = scmp.eq.s32.totalorder %s955_s26, 17 }
  0x15   : > { %s1445_s12 = scalar_select %p68_p8, %s1300_s18, %s70_s6  }
  0x16   : > { %s1448_s13 = scalar_select %p148_p7, %s1292_s16, %s150_s11  }
  0x17   : > { %p1450_p12 = por %p161_p11, %p160_p10  ;;  %p958_p13 = scmp.ge.s32.totalorder %s1328_s25, 18 }
  0x19   : > { %183 = sbr.rel (%p958_p13) target bundleno = 75 (0x4b), region = 16 }
  0x1e   : > { %186 = sbr.rel (!%p1423_p5) target bundleno = 36 (0x24), region = 20  ;;  %s188_s29 = sand.u32 (%p1423_p5), 1, %s1308_s20  }
  0x1f   : > { %s1116_s30 = sshll.u32 (%p1423_p5), %s1320_s23, 3  ;;  %s959_s8 = sshll.u32 (%p1423_p5), %s188_s29, 4 }
  0x20   : > { %s196_s11 = scalar_lea.vmem (%p1423_p5), %s1703_s0, %s1116_s30  ;;  %s190_s26 = scalar_lea.vmem (%p1423_p5), [#allocation2], %s959_s8 }
  0x21   : > { %v227_v0 = vld [vmem:[%s196_s11] sm:$0xff] (%p1423_p5)  ;;  %v229_v1 = vld [vmem:[%s196_s11 + $0x48] sm:$0xff] (%p1423_p5) }
  0x22   : > { %228 = vst [vmem:[%s190_s26] sm:$0xff] (%p1423_p5), %v227_v0 }
  0x23   : > { %230 = vst [vmem:[%s190_s26 + $0x8] sm:$0xff] %v229_v1 }
  0x24 PF: > { %236 = sbr.rel (!%p1437_p9) target bundleno = 75 (0x4b), region = 58  ;;  %s238_s5 = sand.u32 (%p1437_p9), 1, %s1300_s18  }
  0x25   : > { %s964_s28 = sshll.u32 (%p1437_p9), %s1324_s24, 1  ;;  %s962_s27 = sshll.u32 (%p1437_p9), %s238_s5, 8 }
  0x26   : > { %s1117_s29 = sshll.u32 (%p1437_p9), %s1320_s23, 7 }
  0x27   : > { %s244_s7 = sadd.s32 (%p1437_p9), %s1117_s29, %s964_s28  ;;  %s1475_s28 = scalar_lea.vmem (%p1437_p9), [#allocation3], %s962_s27 }
  0x28   : > { %s966_s20 = sshll.u32 (%p1437_p9), %s244_s7, 2 }
  0x29   : > { %s1470_s9 = scalar_lea.vmem %s1704_s1, %s966_s20 }
  0x2a   : > { %v337_v2 = vld [vmem:[%s1470_s9] sm:$0xff]  ;;  %v339_v3 = vld [vmem:[%s1470_s9 + $0x10] sm:$0xff] }
  0x2b   : > { %v341_v4 = vld [vmem:[%s1470_s9 + $0x20] sm:$0xff]  ;;  %338 = vst [vmem:[%s1475_s28] sm:$0xff] %v337_v2  ;;  %v343_v5 = vld [vmem:[%s1470_s9 + $0x30] sm:$0xff] }
  0x2c   : > { %340 = vst [vmem:[%s1475_s28 + $0x8] sm:$0xff] %v339_v3  ;;  %v345_v6 = vld [vmem:[%s1470_s9 + $0x40] sm:$0xff]  ;;  %v347_v7 = vld [vmem:[%s1470_s9 + $0x50] sm:$0xff] }
  0x2d   : > { %342 = vst [vmem:[%s1475_s28 + $0x10] sm:$0xff] %v341_v4  ;;  %v349_v8 = vld [vmem:[%s1470_s9 + $0x60] sm:$0xff]  ;;  %v351_v9 = vld [vmem:[%s1470_s9 + $0x70] sm:$0xff] }
  0x2e   : > { %344 = vst [vmem:[%s1475_s28 + $0x18] sm:$0xff] %v343_v5  ;;  %v353_v10 = vld [vmem:[%s1470_s9 + $0x80] sm:$0xff]  ;;  %v355_v11 = vld [vmem:[%s1470_s9 + $0x90] sm:$0xff] }
  0x2f   : > { %346 = vst [vmem:[%s1475_s28 + $0x20] sm:$0xff] %v345_v6  ;;  %v357_v12 = vld [vmem:[%s1470_s9 + $0xa0] sm:$0xff]  ;;  %v359_v13 = vld [vmem:[%s1470_s9 + $0xb0] sm:$0xff] }
  0x30   : > { %348 = vst [vmem:[%s1475_s28 + $0x28] sm:$0xff] %v347_v7  ;;  %v361_v14 = vld [vmem:[%s1470_s9 + $0xc0] sm:$0xff]  ;;  %v363_v15 = vld [vmem:[%s1470_s9 + $0xd0] sm:$0xff] }
  0x31   : > { %350 = vst [vmem:[%s1475_s28 + $0x30] sm:$0xff] %v349_v8  ;;  %v365_v16 = vld [vmem:[%s1470_s9 + $0xe0] sm:$0xff]  ;;  %v367_v17 = vld [vmem:[%s1470_s9 + $0xf0] sm:$0xff] }
  0x32   : > { %352 = vst [vmem:[%s1475_s28 + $0x38] sm:$0xff] %v351_v9  ;;  %v369_v18 = vld [vmem:[%s1470_s9 + $0x100] sm:$0xff]  ;;  %v371_v19 = vld [vmem:[%s1470_s9 + $0x110] sm:$0xff] }
  0x33   : > { %354 = vst [vmem:[%s1475_s28 + $0x40] sm:$0xff] %v353_v10  ;;  %v373_v20 = vld [vmem:[%s1470_s9 + $0x120] sm:$0xff]  ;;  %v375_v21 = vld [vmem:[%s1470_s9 + $0x130] sm:$0xff] }
  0x34   : > { %356 = vst [vmem:[%s1475_s28 + $0x48] sm:$0xff] %v355_v11  ;;  %v377_v22 = vld [vmem:[%s1470_s9 + $0x140] sm:$0xff]  ;;  %v379_v23 = vld [vmem:[%s1470_s9 + $0x150] sm:$0xff] }
  0x35   : > { %358 = vst [vmem:[%s1475_s28 + $0x50] sm:$0xff] %v357_v12  ;;  %v381_v24 = vld [vmem:[%s1470_s9 + $0x160] sm:$0xff]  ;;  %v383_v25 = vld [vmem:[%s1470_s9 + $0x170] sm:$0xff] }
  0x36   : > { %360 = vst [vmem:[%s1475_s28 + $0x58] sm:$0xff] %v359_v13  ;;  %v385_v26 = vld [vmem:[%s1470_s9 + $0x180] sm:$0xff]  ;;  %v387_v27 = vld [vmem:[%s1470_s9 + $0x190] sm:$0xff] }
  0x37   : > { %362 = vst [vmem:[%s1475_s28 + $0x60] sm:$0xff] %v361_v14  ;;  %v389_v28 = vld [vmem:[%s1470_s9 + $0x1a0] sm:$0xff]  ;;  %v391_v29 = vld [vmem:[%s1470_s9 + $0x1b0] sm:$0xff] }
  0x38   : > { %364 = vst [vmem:[%s1475_s28 + $0x68] sm:$0xff] %v363_v15  ;;  %v393_v30 = vld [vmem:[%s1470_s9 + $0x1c0] sm:$0xff]  ;;  %v395_v31 = vld [vmem:[%s1470_s9 + $0x1d0] sm:$0xff] }
  0x39   : > { %366 = vst [vmem:[%s1475_s28 + $0x70] sm:$0xff] %v365_v16  ;;  %v397_v32 = vld [vmem:[%s1470_s9 + $0x1e0] sm:$0xff]  ;;  %v399_v33 = vld [vmem:[%s1470_s9 + $0x1f0] sm:$0xff] }
  0x3a   : > { %368 = vst [vmem:[%s1475_s28 + $0x78] sm:$0xff] %v367_v17 }
  0x3b   : > { %370 = vst [vmem:[%s1475_s28 + $0x80] sm:$0xff] %v369_v18 }
  0x3c   : > { %372 = vst [vmem:[%s1475_s28 + $0x88] sm:$0xff] %v371_v19 }
  0x3d   : > { %374 = vst [vmem:[%s1475_s28 + $0x90] sm:$0xff] %v373_v20 }
  0x3e   : > { %376 = vst [vmem:[%s1475_s28 + $0x98] sm:$0xff] %v375_v21 }
  0x3f   : > { %378 = vst [vmem:[%s1475_s28 + $0xa0] sm:$0xff] %v377_v22 }
  0x40   : > { %380 = vst [vmem:[%s1475_s28 + $0xa8] sm:$0xff] %v379_v23 }
  0x41   : > { %382 = vst [vmem:[%s1475_s28 + $0xb0] sm:$0xff] %v381_v24 }
  0x42   : > { %384 = vst [vmem:[%s1475_s28 + $0xb8] sm:$0xff] %v383_v25 }
  0x43   : > { %386 = vst [vmem:[%s1475_s28 + $0xc0] sm:$0xff] %v385_v26 }
  0x44   : > { %388 = vst [vmem:[%s1475_s28 + $0xc8] sm:$0xff] %v387_v27 }
  0x45   : > { %390 = vst [vmem:[%s1475_s28 + $0xd0] sm:$0xff] %v389_v28 }
  0x46   : > { %392 = vst [vmem:[%s1475_s28 + $0xd8] sm:$0xff] %v391_v29 }
  0x47   : > { %394 = vst [vmem:[%s1475_s28 + $0xe0] sm:$0xff] %v393_v30 }
  0x48   : > { %396 = vst [vmem:[%s1475_s28 + $0xe8] sm:$0xff] %v395_v31 }
  0x49   : > { %398 = vst [vmem:[%s1475_s28 + $0xf0] sm:$0xff] %v397_v32 }
  0x4a   : > { %400 = vst [vmem:[%s1475_s28 + $0xf8] sm:$0xff] %v399_v33 }
  0x4b PF: > { %p967_p0 = scmp.ge.s32.totalorder %s1328_s25, 1  ;;  %p421_p1 = scmp.lt.s32.totalorder %s1328_s25, 19 }
  0x4d   : > { %p422_p2 = pnand %p967_p0, %p421_p1 }
  0x4e   : > { %s428_s20 = sand.u32 (!%p422_p2), 1, %s1304_s19   ;;  %s435_s27 = sand.u32 (!%p422_p2), 1, %s1296_s17  }
  0x4f   : > { %425 = sbr.rel (%p422_p2) target bundleno = 299 (0x12b), region = 104  ;;  %s968_s7 = sshll.u32 (!%p422_p2), %s428_s20, 4 }
  0x50   : > { %s969_s10 = sshll.u32 (!%p422_p2), %s435_s27, 8  ;;  %s468_s8 = sand.u32 (!%p422_p2), 1, %s1288_s15  }
  0x51   : > { %s971_s11 = sshll.u32 (!%p422_p2), %s1316_s22, 1  ;;  %s970_s26 = sshll.u32 (!%p422_p2), %s468_s8, 5 }
  0x52   : > { %p476_p3 = scmp.lt.s32.totalorder (!%p422_p2), %s971_s11, 3  ;;  %s1554_s19 = scalar_lea.vmem (!%p422_p2), [#allocation2], %s968_s7 }
  0x53   : > { %s1556_s17 = scalar_lea.vmem (!%p422_p2), [#allocation3], %s969_s10  ;;  %s1558_s15 = scalar_lea.vmem (!%p422_p2), [#allocation4], %s970_s26 }
  0x54   : > { %s1737_s11 = smov (!%p476_p3, %s971_s11), 3  ;;  %p973_p4 = scmp.ne.s32.totalorder %s1312_s21, 0 }
  0x55   : > { %s478_s6 = scalar_lea.vmem %s1705_s2, %s1737_s11  ;;  %s483_s28 = scalar_lea.vmem %s1706_s3, %s1737_s11 }
  0x56   : > { %490 = sbr.rel (%p973_p4) target bundleno = 96 (0x60), region = 116 }
  0x5b   : > { %v1330_v34 = vmov 0.0  }
  0x5c   : > { %491 = vst [vmem:[%s1558_s15] sm:$0xff] %v1330_v34 }
  0x5d   : > { %492 = vst [vmem:[%s1558_s15 + $0x8] sm:$0xff] %v1330_v34 }
  0x5e   : > { %493 = vst [vmem:[%s1558_s15 + $0x10] sm:$0xff] %v1330_v34 }
  0x5f   : > { %494 = vst [vmem:[%s1558_s15 + $0x18] sm:$0xff] %v1330_v34 }
  0x60 PF: > { %v1040_v35 = vld [vmem:[%s1556_s17 + $0x70] sm:$0xf]  ;;  %v1135_v36 = vld [vmem:[%s1556_s17 + $0x74] sm:$0xf0]  ;;  %v1134_v40 = vld [vmem:[%s1556_s17 + $0x74] sm:$0xf] }
  0x61   : > { %v1104_v37 = vld [vmem:[%s1556_s17 + $0xf0] sm:$0xf]  ;;  %v1041_v38 = vor.u32 %v1135_v36, %v1040_v35  ;;  %v1151_v39 = vld [vmem:[%s1556_s17 + $0xf4] sm:$0xf0]  ;;  %v1042_v41 = vld [vmem:[%s1556_s17 + $0x78] sm:$0xf0] }
  0x62   : > { %v1105_v42 = vor.u32 %v1151_v39, %v1104_v37  ;;  %v1045_v43 = vor.u32 %v1134_v40, %v1042_v41  ;;  %v1150_v44 = vld [vmem:[%s1556_s17 + $0xf4] sm:$0xf]  ;;  %v1106_v45 = vld [vmem:[%s1556_s17 + $0xf8] sm:$0xf0]  ;;  %v1032_v46 = vld [vmem:[%s1556_s17 + $0x60] sm:$0xf] }
  0x63   : > { %703 = vmatpush.bf16.msra.mxu0 %v1041_v38  ;;  %v1109_v47 = vor.u32 %v1150_v44, %v1106_v45  ;;  %v1133_v48 = vld [vmem:[%s1556_s17 + $0x64] sm:$0xf0]  ;;  %v1096_v49 = vld [vmem:[%s1556_s17 + $0xe0] sm:$0xf]  ;;  %v1132_v53 = vld [vmem:[%s1556_s17 + $0x64] sm:$0xf] }
  0x64   : > { %v1149_v50 = vld [vmem:[%s1556_s17 + $0xe4] sm:$0xf0]  ;;  %717 = vmatpush.bf16.msra.mxu1 %v1105_v42  ;;  %731 = vmatpush.bf16.msra.mxu2 %v1045_v43  ;;  %v1033_v51 = vor.u32 %v1133_v48, %v1032_v46  ;;  %v1034_v54 = vld [vmem:[%s1556_s17 + $0x68] sm:$0xf0]  ;;  %v1148_v55 = vld [vmem:[%s1556_s17 + $0xe4] sm:$0xf] }
  0x65   : > { %v1097_v52 = vor.u32 %v1149_v50, %v1096_v49  ;;  %745 = vmatpush.bf16.msra.mxu3 %v1109_v47  ;;  %v1037_v56 = vor.u32 %v1132_v53, %v1034_v54  ;;  %v1098_v57 = vld [vmem:[%s1556_s17 + $0xe8] sm:$0xf0]  ;;  %v1024_v58 = vld [vmem:[%s1556_s17 + $0x50] sm:$0xf]  ;;  %v1131_v59 = vld [vmem:[%s1556_s17 + $0x54] sm:$0xf0] }
  0x66   : > { %v1101_v60 = vor.u32 %v1148_v55, %v1098_v57  ;;  %v1088_v61 = vld [vmem:[%s1556_s17 + $0xd0] sm:$0xf]  ;;  %v1147_v62 = vld [vmem:[%s1556_s17 + $0xd4] sm:$0xf0]  ;;  %v1130_v63 = vld [vmem:[%s1556_s17 + $0x54] sm:$0xf]  ;;  %v1025_v0 = vor.u32 %v1131_v59, %v1024_v58 }
  0x67   : > { %704 = vmatpush.bf16.msra.mxu0 %v1033_v51  ;;  %v1026_v1 = vld [vmem:[%s1556_s17 + $0x58] sm:$0xf0]  ;;  %v1146_v2 = vld [vmem:[%s1556_s17 + $0xd4] sm:$0xf]  ;;  %v1089_v4 = vor.u32 %v1147_v62, %v1088_v61  ;;  %v1016_v6 = vld [vmem:[%s1556_s17 + $0x40] sm:$0xf] }
  0x68   : > { %v1090_v3 = vld [vmem:[%s1556_s17 + $0xd8] sm:$0xf0]  ;;  %718 = vmatpush.bf16.msra.mxu1 %v1097_v52  ;;  %732 = vmatpush.bf16.msra.mxu2 %v1037_v56  ;;  %v1029_v5 = vor.u32 %v1130_v63, %v1026_v1  ;;  %v1129_v7 = vld [vmem:[%s1556_s17 + $0x44] sm:$0xf0]  ;;  %v1080_v8 = vld [vmem:[%s1556_s17 + $0xc0] sm:$0xf] }
  0x69   : > { %746 = vmatpush.bf16.msra.mxu3 %v1101_v60  ;;  %v1093_v9 = vor.u32 %v1146_v2, %v1090_v3  ;;  %v1145_v10 = vld [vmem:[%s1556_s17 + $0xc4] sm:$0xf0]  ;;  %v1128_v11 = vld [vmem:[%s1556_s17 + $0x44] sm:$0xf]  ;;  %v1018_v12 = vld [vmem:[%s1556_s17 + $0x48] sm:$0xf0]  ;;  %v1017_v15 = vor.u32 %v1129_v7, %v1016_v6 }
  0x6a   : > { %v1144_v13 = vld [vmem:[%s1556_s17 + $0xc4] sm:$0xf]  ;;  %v1082_v14 = vld [vmem:[%s1556_s17 + $0xc8] sm:$0xf0]  ;;  %v1081_v16 = vor.u32 %v1145_v10, %v1080_v8  ;;  %v1021_v17 = vor.u32 %v1128_v11, %v1018_v12  ;;  %v1008_v18 = vld [vmem:[%s1556_s17 + $0x30] sm:$0xf] }
  0x6b   : > { %705 = vmatpush.bf16.msra.mxu0 %v1025_v0  ;;  %v1127_v19 = vld [vmem:[%s1556_s17 + $0x34] sm:$0xf0]  ;;  %v1072_v20 = vld [vmem:[%s1556_s17 + $0xb0] sm:$0xf]  ;;  %v1085_v21 = vor.u32 %v1144_v13, %v1082_v14  ;;  %v1126_v23 = vld [vmem:[%s1556_s17 + $0x34] sm:$0xf] }
  0x6c   : > { %719 = vmatpush.bf16.msra.mxu1 %v1089_v4  ;;  %733 = vmatpush.bf16.msra.mxu2 %v1029_v5  ;;  %v1143_v22 = vld [vmem:[%s1556_s17 + $0xb4] sm:$0xf0]  ;;  %v1010_v24 = vld [vmem:[%s1556_s17 + $0x38] sm:$0xf0]  ;;  %v1142_v25 = vld [vmem:[%s1556_s17 + $0xb4] sm:$0xf]  ;;  %v1009_v27 = vor.u32 %v1127_v19, %v1008_v18 }
  0x6d   : > { %747 = vmatpush.bf16.msra.mxu3 %v1093_v9  ;;  %v1074_v26 = vld [vmem:[%s1556_s17 + $0xb8] sm:$0xf0]  ;;  %v1073_v28 = vor.u32 %v1143_v22, %v1072_v20  ;;  %v1013_v29 = vor.u32 %v1126_v23, %v1010_v24  ;;  %v1000_v30 = vld [vmem:[%s1556_s17 + $0x20] sm:$0xf]  ;;  %v1125_v31 = vld [vmem:[%s1556_s17 + $0x24] sm:$0xf0] }
  0x6e   : > { %v1064_v32 = vld [vmem:[%s1556_s17 + $0xa0] sm:$0xf]  ;;  %v1077_v33 = vor.u32 %v1142_v25, %v1074_v26  ;;  %v1141_v34 = vld [vmem:[%s1556_s17 + $0xa4] sm:$0xf0]  ;;  %v1124_v35 = vld [vmem:[%s1556_s17 + $0x24] sm:$0xf]  ;;  %v1001_v39 = vor.u32 %v1125_v31, %v1000_v30 }
  0x6f   : > { %706 = vmatpush.bf16.msra.mxu0 %v1017_v15  ;;  %v1002_v36 = vld [vmem:[%s1556_s17 + $0x28] sm:$0xf0]  ;;  %v1140_v37 = vld [vmem:[%s1556_s17 + $0xa4] sm:$0xf]  ;;  %v1065_v40 = vor.u32 %v1141_v34, %v1064_v32  ;;  %v992_v42 = vld [vmem:[%s1556_s17 + $0x10] sm:$0xf] }
  0x70   : > { %720 = vmatpush.bf16.msra.mxu1 %v1081_v16  ;;  %734 = vmatpush.bf16.msra.mxu2 %v1021_v17  ;;  %v1066_v38 = vld [vmem:[%s1556_s17 + $0xa8] sm:$0xf0]  ;;  %v1005_v41 = vor.u32 %v1124_v35, %v1002_v36  ;;  %v1123_v43 = vld [vmem:[%s1556_s17 + $0x14] sm:$0xf0]  ;;  %v1056_v44 = vld [vmem:[%s1556_s17 + $0x90] sm:$0xf] }
  0x71   : > { %748 = vmatpush.bf16.msra.mxu3 %v1085_v21  ;;  %v1069_v45 = vor.u32 %v1140_v37, %v1066_v38  ;;  %v1139_v46 = vld [vmem:[%s1556_s17 + $0x94] sm:$0xf0]  ;;  %v1122_v47 = vld [vmem:[%s1556_s17 + $0x14] sm:$0xf]  ;;  %v994_v48 = vld [vmem:[%s1556_s17 + $0x18] sm:$0xf0]  ;;  %v993_v51 = vor.u32 %v1123_v43, %v992_v42 }
  0x72   : > { %v1138_v49 = vld [vmem:[%s1556_s17 + $0x94] sm:$0xf]  ;;  %v1058_v50 = vld [vmem:[%s1556_s17 + $0x98] sm:$0xf0]  ;;  %v1057_v52 = vor.u32 %v1139_v46, %v1056_v44  ;;  %v997_v53 = vor.u32 %v1122_v47, %v994_v48  ;;  %v984_v54 = vld [vmem:[%s1556_s17] sm:$0xf] }
  0x73   : > { %707 = vmatpush.bf16.msra.mxu0 %v1009_v27  ;;  %v1121_v55 = vld [vmem:[%s1556_s17 + $0x4] sm:$0xf0]  ;;  %v1048_v56 = vld [vmem:[%s1556_s17 + $0x80] sm:$0xf]  ;;  %v1061_v57 = vor.u32 %v1138_v49, %v1058_v50  ;;  %v1120_v59 = vld [vmem:[%s1556_s17 + $0x4] sm:$0xf] }
  0x74   : > { %721 = vmatpush.bf16.msra.mxu1 %v1073_v28  ;;  %735 = vmatpush.bf16.msra.mxu2 %v1013_v29  ;;  %v1137_v58 = vld [vmem:[%s1556_s17 + $0x84] sm:$0xf0]  ;;  %v986_v60 = vld [vmem:[%s1556_s17 + $0x8] sm:$0xf0]  ;;  %v1136_v61 = vld [vmem:[%s1556_s17 + $0x84] sm:$0xf]  ;;  %v985_v63 = vor.u32 %v1121_v55, %v984_v54 }
  0x75   : > { %749 = vmatpush.bf16.msra.mxu3 %v1077_v33  ;;  %v1050_v62 = vld [vmem:[%s1556_s17 + $0x88] sm:$0xf0]  ;;  %v976_v0 = vld [vmem:[%s1554_s19] sm:$0xf]  ;;  %v1119_v1 = vld [vmem:[%s1554_s19 + $0x4] sm:$0xf0]  ;;  %v1049_v2 = vor.u32 %v1137_v58, %v1048_v56  ;;  %v989_v3 = vor.u32 %v1120_v59, %v986_v60 }
  0x76   : > { %v1118_v4 = vld [vmem:[%s1554_s19 + $0x4] sm:$0xf]  ;;  %v978_v5 = vld [vmem:[%s1554_s19 + $0x8] sm:$0xf0]  ;;  %v1053_v6 = vor.u32 %v1136_v61, %v1050_v62  ;;  %v977_v7 = vor.u32 %v1119_v1, %v976_v0  ;;  %p1110_p5 = scmp.ne.s32.totalorder %s1312_s21, 8 }
  0x77   : > { %708 = vmatpush.bf16.msra.mxu0 %v1001_v39  ;;  %v981_v8 = vor.u32 %v1118_v4, %v978_v5  ;;  %v495_v10 = vld [vmem:[%s1558_s15] sm:$0xff]  ;;  %v496_v15 = vld [vmem:[%s1558_s15 + $0x8] sm:$0xff]  ;;  %v497_v19 = vld [vmem:[%s1558_s15 + $0x10] sm:$0xff] }
  0x78   : > { %722 = vmatpush.bf16.msra.mxu1 %v1065_v40  ;;  %736 = vmatpush.bf16.msra.mxu2 %v1005_v41  ;;  %v498_v25 = vld [vmem:[%s1558_s15 + $0x18] sm:$0xff] }
  0x79   : > { %750 = vmatpush.bf16.msra.mxu3 %v1069_v45 }
  0x7b   : > { %709 = vmatpush.bf16.msra.mxu0 %v993_v51 }
  0x7c   : > { %723 = vmatpush.bf16.msra.mxu1 %v1057_v52  ;;  %737 = vmatpush.bf16.msra.mxu2 %v997_v53 }
  0x7d   : > { %751 = vmatpush.bf16.msra.mxu3 %v1061_v57 }
  0x7f   : > { %710 = vmatpush.bf16.msra.mxu0 %v985_v63 }
  0x80   : > { %724 = vmatpush.bf16.msra.mxu1 %v1049_v2  ;;  %738 = vmatpush.bf16.msra.mxu2 %v989_v3 }
  0x81   : > { %752 = vmatpush.bf16.msra.mxu3 %v1053_v6 }
  0x82   : > { %711 = vmatmul.bf16.vlgmr.msra.gmra.mxu0 %v977_v7 }
  0x83   : > { %725 = vmatmul.bf16.vlgmr.msra.gmra.mxu1 %v981_v8  ;;  %739 = vmatmul.bf16.vlgmr.msra.gmra.mxu2 %v977_v7 }
  0x84   : > { %753 = vmatmul.bf16.vlgmr.msra.gmra.mxu3 %v981_v8 }
  0xff   : > { %v712_v9 = vpop.f32.mrf.mxu0 }
 0x100   : > { %v726_v11 = vpop.f32.mrf.mxu1 }
 0x101   : > { %v727_v12 = vadd.f32 %v726_v11, %v712_v9 }
 0x103   : > { %v759_v13 = vadd.f32 %v727_v12, %v495_v10 }
 0x105   : > { %763 = vst [vmem:[%s1558_s15] sm:$0xff] %v759_v13 }
 0x106   : > { %v740_v14 = vpop.f32.mrf.mxu2 }
 0x107   : > { %v754_v16 = vpop.f32.mrf.mxu3  ;;  %v714_v17 = vpop.f32.mrf.mxu0 }
 0x108   : > { %v755_v18 = vadd.f32 %v754_v16, %v740_v14  ;;  %v728_v20 = vpop.f32.mrf.mxu1 }
 0x109   : > { %v729_v21 = vadd.f32 %v728_v20, %v714_v17 }
 0x10a   : > { %v760_v22 = vadd.f32 %v755_v18, %v496_v15 }
 0x10b   : > { %v761_v23 = vadd.f32 %v729_v21, %v497_v19 }
 0x10c   : > { %764 = vst [vmem:[%s1558_s15 + $0x8] sm:$0xff] %v760_v22 }
 0x10d   : > { %765 = vst [vmem:[%s1558_s15 + $0x10] sm:$0xff] %v761_v23 }
 0x10e   : > { %v742_v24 = vpop.f32.mrf.mxu2 }
 0x10f   : > { %v756_v26 = vpop.f32.mrf.mxu3 }
 0x110   : > { %v757_v27 = vadd.f32 %v756_v26, %v742_v24  ;;  %770 = sbr.rel (%p1110_p5) target bundleno = 291 (0x123), region = 120 }
 0x112   : > { %v762_v28 = vadd.f32 %v757_v27, %v498_v25 }
 0x114   : > { %766 = vst [vmem:[%s1558_s15 + $0x18] sm:$0xff] %v762_v28 }
 0x115   : > { %v771_v29 = vld [vmem:[%s1558_s15] sm:$0xff]  ;;  %v772_v34 = vld [vmem:[%s1558_s15 + $0x8] sm:$0xff]  ;;  %v773_v37 = vld [vmem:[%s1558_s15 + $0x10] sm:$0xff] }
 0x116   : > { %v775_v30 = vld [vmem:[%s478_s6] sm:$0x3] }
 0x117   : > { %v785_v31 = vld [vmem:[%s483_s28] sm:$0x3]  ;;  %v777_v32 = vperm.slane %v775_v30, 0  ;;  %v778_v35 = vperm.slane %v775_v30, 1 }
 0x118   : > { %v787_v33 = vperm.slane %v785_v31, 0  ;;  %v788_v36 = vperm.slane %v785_v31, 1 }
 0x119   : > { %v781_v39 = vmul.f32 %v777_v32, %v771_v29  ;;  %v782_v40 = vmul.f32 %v778_v35, %v772_v34  ;;  %v783_v41 = vmul.f32 %v777_v32, %v773_v37 }
 0x11b   : > { %v774_v38 = vld [vmem:[%s1558_s15 + $0x18] sm:$0xff]  ;;  %v791_v43 = vadd.f32 %v787_v33, %v781_v39  ;;  %v792_v44 = vadd.f32 %v788_v36, %v782_v40  ;;  %v793_v45 = vadd.f32 %v787_v33, %v783_v41 }
 0x11c   : > { %v784_v42 = vmul.f32 %v778_v35, %v774_v38 }
 0x11d   : > { %v795_v47 = vmax.f32 %v791_v43, 0.0  ;;  %v796_v48 = vmax.f32 %v792_v44, 0.0  ;;  %v797_v49 = vmax.f32 %v793_v45, 0.0 }
 0x11e   : > { %v794_v46 = vadd.f32 %v788_v36, %v784_v42 }
 0x11f   : > { %799 = vst [vmem:[%s1558_s15] sm:$0xff] %v795_v47 }
 0x120   : > { %v798_v50 = vmax.f32 %v794_v46, 0.0  ;;  %800 = vst [vmem:[%s1558_s15 + $0x8] sm:$0xff] %v796_v48 }
 0x121   : > { %801 = vst [vmem:[%s1558_s15 + $0x10] sm:$0xff] %v797_v49 }
 0x122   : > { %802 = vst [vmem:[%s1558_s15 + $0x18] sm:$0xff] %v798_v50 }
 0x123 PF: > { %809 = sbr.rel (!%p1450_p12) target bundleno = 299 (0x12b), region = 124  ;;  %s1152_s21 = sshll.u32 (%p1450_p12), %s1316_s22, 4 }
 0x124   : > { %s815_s26 = scalar_lea.vmem (%p1450_p12), %s1707_s4, %s1152_s21 }
 0x126   : > { %v828_v51 = vld [vmem:[%s1558_s15] sm:$0xff] (%p1450_p12) }
 0x127   : > { %v830_v52 = vld [vmem:[%s1558_s15 + $0x8] sm:$0xff] (%p1450_p12)  ;;  %829 = vst [vmem:[%s815_s26] sm:$0xff] (%p1450_p12), %v828_v51 }
 0x128   : > { %v832_v53 = vld [vmem:[%s1558_s15 + $0x10] sm:$0xff]  ;;  %831 = vst [vmem:[%s815_s26 + $0x8] sm:$0xff] %v830_v52 }
 0x129   : > { %v834_v54 = vld [vmem:[%s1558_s15 + $0x18] sm:$0xff]  ;;  %833 = vst [vmem:[%s815_s26 + $0x20] sm:$0xff] %v832_v53 }
 0x12a   : > { %835 = vst [vmem:[%s815_s26 + $0x28] sm:$0xff] %v834_v54 }
 0x12b PF: > { %s14_s25 = sadd.s32 1, %s1328_s25   ;;  %s1718_s19 = sld [smem:[#allocation5_spill]] }
 0x12c   : > { %p11_p6 = scmp.ge.s32.totalorder %s14_s25, 20   ;;  %s1719_s20 = sld [smem:[#allocation8_spill]] }
 0x12d   : > { %s1720_s14 = sld [smem:[#allocation6_spill]]  ;;  %s1722_s15 = smov %s1292_s16 }
 0x12e   : > { %s1721_s5 = sld [smem:[#allocation7_spill]]  ;;  %s1723_s16 = smov %s1448_s13 }
 0x12f   : > { %s1724_s17 = smov %s1300_s18  ;;  %s1725_s18 = smov %s1445_s12 }
 0x130   : > { %s1726_s21 = smov %s1320_s23  ;;  %s1727_s22 = smov %s1324_s24 }
 0x131   :  { %13 = sbr.rel (!%p11_p6) target bundleno = 6 (0x6), region = 192 }
 0x133   : > { %s1728_s23 = smov %s1720_s14 }
 0x134   : > { %s1729_s24 = smov %s1721_s5 }

// kernel: multimodal_forward.36
= control target key start
LH: loop header
LB: loop body
LE: loop exit
PB: predicated region body
PF: predicated region fallthrough
CT: control target
= control target key end

     0   :  { %s1106_s15 = smov 0   ;;  %s1108_s16 = smov 0   ;;  %s1311_s0 = inlined_call_operand.vmem [shape: bf16[16,2304], index: 0, kind: input, shape index: {}]   ;;  %s1312_s1 = inlined_call_operand.vmem [shape: bf16[2304,256], index: 1, kind: input, shape index: {}]   ;;  %s1313_s2 = inlined_call_operand.vmem [shape: f32[1,256], index: 2, kind: input, shape index: {}]   ;;  %s1314_s3 = inlined_call_operand.vmem [shape: f32[1,256], index: 3, kind: input, shape index: {}]   ;;  %s1315_s4 = inlined_call_operand.vmem [shape: f32[16,256], index: 4, kind: output, shape index: {}]  }
   0x1   :  { %s1110_s17 = smov 0   ;;  %s1112_s18 = smov 0  }
   0x2   :  { %s1114_s19 = smov 0  }
   0x3 LB: > { %s26_s20 = sadd.s32 1, %s1074_s18  ;;  %p49_p1 = scmp.ne.s32.totalorder %s1066_s16, %s1062_s15  ;;  %s1078_s19 = sphi %s1114_s19, %s14_s19   ;;  %s1074_s18 = sphi %s1112_s18, %s1319_s18   ;;  %s1070_s17 = sphi %s1110_s17, %s1318_s17   ;;  %s1066_s16 = sphi %s1108_s16, %s1317_s16   ;;  %s1062_s15 = sphi %s1106_s15, %s1316_s15  }
   0x4   : > { %p27_p0 = scmp.ge.s32.totalorder %s26_s20, 9  ;;  %p50_p2 = scmp.eq.s32.totalorder %s1078_s19, 0 }
   0x5   : > { %s42_s22 = sadd.s32 1, %s1066_s16  ;;  %p812_p5 = scmp.ge.s32.totalorder %s1078_s19, 9 }
   0x6   : > { %s1321_s20 = smov (%p27_p0, %s26_s20), 0  ;;  %p51_p3 = por %p50_p2, %p49_p1 }
   0x7   : > { %s38_s21 = ssub.s32 %s1074_s18, %s1321_s20  ;;  %199 = sbr.rel (%p812_p5) target bundleno = 18 (0x12), region = 24 }
   0x8   : > { %p40_p4 = scmp.eq.s32.totalorder %s38_s21, 0 }
   0xa   : > { %s1141_s23 = scalar_select %p40_p4, %s1066_s16, %s42_s22  }
   0xc   : > { %202 = sbr.rel (!%p51_p3) target bundleno = 18 (0x12), region = 28  ;;  %s204_s24 = sand.u32 (%p51_p3), 1, %s1066_s16  }
   0xd   : > { %s963_s25 = sshll.u32 (%p51_p3), %s1074_s18, 3  ;;  %s813_s26 = sshll.u32 (%p51_p3), %s204_s24, 4 }
   0xe   : > { %s212_s29 = scalar_lea.vmem (%p51_p3), %s1311_s0, %s963_s25  ;;  %s206_s30 = scalar_lea.vmem (%p51_p3), [#allocation2], %s813_s26 }
   0xf   : > { %v243_v0 = vld [vmem:[%s212_s29] sm:$0xff] (%p51_p3)  ;;  %v245_v1 = vld [vmem:[%s212_s29 + $0x48] sm:$0xff] (%p51_p3) }
  0x10   : > { %244 = vst [vmem:[%s206_s30] sm:$0xff] (%p51_p3), %v243_v0 }
  0x11   : > { %246 = vst [vmem:[%s206_s30 + $0x8] sm:$0xff] %v245_v1 }
  0x12 PF: > { %p816_p6 = scmp.ge.s32.totalorder %s1078_s19, 1  ;;  %p266_p7 = scmp.lt.s32.totalorder %s1078_s19, 10 }
  0x14   : > { %p267_p8 = pnand %p816_p6, %p266_p7 }
  0x15   : > { %s273_s5 = sand.u32 (!%p267_p8), 1, %s1062_s15   ;;  %s818_s6 = sshll.u32 (!%p267_p8), %s1070_s17, 5 }
  0x16   : > { %270 = sbr.rel (%p267_p8) target bundleno = 232 (0xe8), region = 70  ;;  %s817_s7 = sshll.u32 (!%p267_p8), %s273_s5, 4 }
  0x17   : > { %p325_p9 = scmp.lt.s32.totalorder (!%p267_p8), %s818_s6, 287  ;;  %s1158_s12 = scalar_lea.vmem (!%p267_p8), [#allocation2], %s817_s7 }
  0x18   : > { %p821_p10 = scmp.ne.s32.totalorder (!%p267_p8), %s1070_s17, 0 }
  0x1b   : > { %s1323_s6 = smov (!%p325_p9, %s818_s6), 287  ;;  %360 = sbr.rel (%p821_p10) target bundleno = 37 (0x25), region = 78 }
  0x1c   : > { %s964_s8 = sshll.u32 %s1323_s6, 3 }
  0x1d   : > { %s1156_s11 = scalar_lea.vmem %s1312_s1, %s964_s8 }
  0x20   : > { %v1080_v2 = vmov 0.0  }
  0x21   : > { %361 = vst [vmem:[%s1315_s4] sm:$0xff] %v1080_v2 }
  0x22   : > { %362 = vst [vmem:[%s1315_s4 + $0x8] sm:$0xff] %v1080_v2 }
  0x23   : > { %363 = vst [vmem:[%s1315_s4 + $0x10] sm:$0xff] %v1080_v2 }
  0x24   : > { %364 = vst [vmem:[%s1315_s4 + $0x18] sm:$0xff] %v1080_v2 }
  0x25 PF: > { %v888_v3 = vld [vmem:[%s1156_s11 + $0x70] sm:$0xf]  ;;  %v982_v4 = vld [vmem:[%s1156_s11 + $0x74] sm:$0xf0]  ;;  %v981_v8 = vld [vmem:[%s1156_s11 + $0x74] sm:$0xf] }
  0x26   : > { %v952_v5 = vld [vmem:[%s1156_s11 + $0xf0] sm:$0xf]  ;;  %v889_v6 = vor.u32 %v982_v4, %v888_v3  ;;  %v998_v7 = vld [vmem:[%s1156_s11 + $0xf4] sm:$0xf0]  ;;  %v890_v9 = vld [vmem:[%s1156_s11 + $0x78] sm:$0xf0] }
  0x27   : > { %v953_v10 = vor.u32 %v998_v7, %v952_v5  ;;  %v893_v11 = vor.u32 %v981_v8, %v890_v9  ;;  %v997_v12 = vld [vmem:[%s1156_s11 + $0xf4] sm:$0xf]  ;;  %v954_v13 = vld [vmem:[%s1156_s11 + $0xf8] sm:$0xf0]  ;;  %v880_v14 = vld [vmem:[%s1156_s11 + $0x60] sm:$0xf] }
  0x28   : > { %573 = vmatpush.bf16.msra.mxu0 %v889_v6  ;;  %v957_v15 = vor.u32 %v997_v12, %v954_v13  ;;  %v980_v16 = vld [vmem:[%s1156_s11 + $0x64] sm:$0xf0]  ;;  %v944_v17 = vld [vmem:[%s1156_s11 + $0xe0] sm:$0xf]  ;;  %v979_v21 = vld [vmem:[%s1156_s11 + $0x64] sm:$0xf] }
  0x29   : > { %v996_v18 = vld [vmem:[%s1156_s11 + $0xe4] sm:$0xf0]  ;;  %587 = vmatpush.bf16.msra.mxu1 %v953_v10  ;;  %601 = vmatpush.bf16.msra.mxu2 %v893_v11  ;;  %v881_v19 = vor.u32 %v980_v16, %v880_v14  ;;  %v882_v22 = vld [vmem:[%s1156_s11 + $0x68] sm:$0xf0]  ;;  %v995_v23 = vld [vmem:[%s1156_s11 + $0xe4] sm:$0xf] }
  0x2a   : > { %v945_v20 = vor.u32 %v996_v18, %v944_v17  ;;  %615 = vmatpush.bf16.msra.mxu3 %v957_v15  ;;  %v885_v24 = vor.u32 %v979_v21, %v882_v22  ;;  %v946_v25 = vld [vmem:[%s1156_s11 + $0xe8] sm:$0xf0]  ;;  %v872_v26 = vld [vmem:[%s1156_s11 + $0x50] sm:$0xf]  ;;  %v978_v27 = vld [vmem:[%s1156_s11 + $0x54] sm:$0xf0] }
  0x2b   : > { %v949_v28 = vor.u32 %v995_v23, %v946_v25  ;;  %v936_v29 = vld [vmem:[%s1156_s11 + $0xd0] sm:$0xf]  ;;  %v994_v30 = vld [vmem:[%s1156_s11 + $0xd4] sm:$0xf0]  ;;  %v977_v31 = vld [vmem:[%s1156_s11 + $0x54] sm:$0xf]  ;;  %v873_v32 = vor.u32 %v978_v27, %v872_v26 }
  0x2c   : > { %574 = vmatpush.bf16.msra.mxu0 %v881_v19  ;;  %v874_v33 = vld [vmem:[%s1156_s11 + $0x58] sm:$0xf0]  ;;  %v993_v34 = vld [vmem:[%s1156_s11 + $0xd4] sm:$0xf]  ;;  %v937_v36 = vor.u32 %v994_v30, %v936_v29  ;;  %v864_v38 = vld [vmem:[%s1156_s11 + $0x40] sm:$0xf] }
  0x2d   : > { %v938_v35 = vld [vmem:[%s1156_s11 + $0xd8] sm:$0xf0]  ;;  %588 = vmatpush.bf16.msra.mxu1 %v945_v20  ;;  %602 = vmatpush.bf16.msra.mxu2 %v885_v24  ;;  %v877_v37 = vor.u32 %v977_v31, %v874_v33  ;;  %v976_v39 = vld [vmem:[%s1156_s11 + $0x44] sm:$0xf0]  ;;  %v928_v40 = vld [vmem:[%s1156_s11 + $0xc0] sm:$0xf] }
  0x2e   : > { %616 = vmatpush.bf16.msra.mxu3 %v949_v28  ;;  %v941_v41 = vor.u32 %v993_v34, %v938_v35  ;;  %v992_v42 = vld [vmem:[%s1156_s11 + $0xc4] sm:$0xf0]  ;;  %v975_v43 = vld [vmem:[%s1156_s11 + $0x44] sm:$0xf]  ;;  %v866_v44 = vld [vmem:[%s1156_s11 + $0x48] sm:$0xf0]  ;;  %v865_v47 = vor.u32 %v976_v39, %v864_v38 }
  0x2f   : > { %v991_v45 = vld [vmem:[%s1156_s11 + $0xc4] sm:$0xf]  ;;  %v930_v46 = vld [vmem:[%s1156_s11 + $0xc8] sm:$0xf0]  ;;  %v929_v48 = vor.u32 %v992_v42, %v928_v40  ;;  %v869_v49 = vor.u32 %v975_v43, %v866_v44  ;;  %v856_v50 = vld [vmem:[%s1156_s11 + $0x30] sm:$0xf] }
  0x30   : > { %575 = vmatpush.bf16.msra.mxu0 %v873_v32  ;;  %v974_v51 = vld [vmem:[%s1156_s11 + $0x34] sm:$0xf0]  ;;  %v920_v52 = vld [vmem:[%s1156_s11 + $0xb0] sm:$0xf]  ;;  %v933_v53 = vor.u32 %v991_v45, %v930_v46  ;;  %v973_v55 = vld [vmem:[%s1156_s11 + $0x34] sm:$0xf] }
  0x31   : > { %589 = vmatpush.bf16.msra.mxu1 %v937_v36  ;;  %603 = vmatpush.bf16.msra.mxu2 %v877_v37  ;;  %v990_v54 = vld [vmem:[%s1156_s11 + $0xb4] sm:$0xf0]  ;;  %v858_v56 = vld [vmem:[%s1156_s11 + $0x38] sm:$0xf0]  ;;  %v989_v57 = vld [vmem:[%s1156_s11 + $0xb4] sm:$0xf]  ;;  %v857_v59 = vor.u32 %v974_v51, %v856_v50 }
  0x32   : > { %617 = vmatpush.bf16.msra.mxu3 %v941_v41  ;;  %v922_v58 = vld [vmem:[%s1156_s11 + $0xb8] sm:$0xf0]  ;;  %v921_v60 = vor.u32 %v990_v54, %v920_v52  ;;  %v861_v61 = vor.u32 %v973_v55, %v858_v56  ;;  %v848_v62 = vld [vmem:[%s1156_s11 + $0x20] sm:$0xf]  ;;  %v972_v63 = vld [vmem:[%s1156_s11 + $0x24] sm:$0xf0] }
  0x33   : > { %v912_v0 = vld [vmem:[%s1156_s11 + $0xa0] sm:$0xf]  ;;  %v925_v1 = vor.u32 %v989_v57, %v922_v58  ;;  %v988_v2 = vld [vmem:[%s1156_s11 + $0xa4] sm:$0xf0]  ;;  %v971_v3 = vld [vmem:[%s1156_s11 + $0x24] sm:$0xf]  ;;  %v849_v7 = vor.u32 %v972_v63, %v848_v62 }
  0x34   : > { %576 = vmatpush.bf16.msra.mxu0 %v865_v47  ;;  %v850_v4 = vld [vmem:[%s1156_s11 + $0x28] sm:$0xf0]  ;;  %v987_v5 = vld [vmem:[%s1156_s11 + $0xa4] sm:$0xf]  ;;  %v913_v8 = vor.u32 %v988_v2, %v912_v0  ;;  %v840_v10 = vld [vmem:[%s1156_s11 + $0x10] sm:$0xf] }
  0x35   : > { %590 = vmatpush.bf16.msra.mxu1 %v929_v48  ;;  %604 = vmatpush.bf16.msra.mxu2 %v869_v49  ;;  %v914_v6 = vld [vmem:[%s1156_s11 + $0xa8] sm:$0xf0]  ;;  %v853_v9 = vor.u32 %v971_v3, %v850_v4  ;;  %v970_v11 = vld [vmem:[%s1156_s11 + $0x14] sm:$0xf0]  ;;  %v904_v12 = vld [vmem:[%s1156_s11 + $0x90] sm:$0xf] }
  0x36   : > { %618 = vmatpush.bf16.msra.mxu3 %v933_v53  ;;  %v917_v13 = vor.u32 %v987_v5, %v914_v6  ;;  %v986_v14 = vld [vmem:[%s1156_s11 + $0x94] sm:$0xf0]  ;;  %v969_v15 = vld [vmem:[%s1156_s11 + $0x14] sm:$0xf]  ;;  %v842_v16 = vld [vmem:[%s1156_s11 + $0x18] sm:$0xf0]  ;;  %v841_v19 = vor.u32 %v970_v11, %v840_v10 }
  0x37   : > { %v985_v17 = vld [vmem:[%s1156_s11 + $0x94] sm:$0xf]  ;;  %v906_v18 = vld [vmem:[%s1156_s11 + $0x98] sm:$0xf0]  ;;  %v905_v20 = vor.u32 %v986_v14, %v904_v12  ;;  %v845_v21 = vor.u32 %v969_v15, %v842_v16  ;;  %v832_v22 = vld [vmem:[%s1156_s11] sm:$0xf] }
  0x38   : > { %577 = vmatpush.bf16.msra.mxu0 %v857_v59  ;;  %v968_v23 = vld [vmem:[%s1156_s11 + $0x4] sm:$0xf0]  ;;  %v896_v24 = vld [vmem:[%s1156_s11 + $0x80] sm:$0xf]  ;;  %v909_v25 = vor.u32 %v985_v17, %v906_v18  ;;  %v967_v27 = vld [vmem:[%s1156_s11 + $0x4] sm:$0xf] }
  0x39   : > { %591 = vmatpush.bf16.msra.mxu1 %v921_v60  ;;  %605 = vmatpush.bf16.msra.mxu2 %v861_v61  ;;  %v984_v26 = vld [vmem:[%s1156_s11 + $0x84] sm:$0xf0]  ;;  %v834_v28 = vld [vmem:[%s1156_s11 + $0x8] sm:$0xf0]  ;;  %v983_v29 = vld [vmem:[%s1156_s11 + $0x84] sm:$0xf]  ;;  %v833_v31 = vor.u32 %v968_v23, %v832_v22 }
  0x3a   : > { %619 = vmatpush.bf16.msra.mxu3 %v925_v1  ;;  %v898_v30 = vld [vmem:[%s1156_s11 + $0x88] sm:$0xf0]  ;;  %v824_v32 = vld [vmem:[%s1158_s12] sm:$0xf]  ;;  %v966_v33 = vld [vmem:[%s1158_s12 + $0x4] sm:$0xf0]  ;;  %v897_v34 = vor.u32 %v984_v26, %v896_v24  ;;  %v837_v35 = vor.u32 %v967_v27, %v834_v28 }
  0x3b   : > { %v965_v36 = vld [vmem:[%s1158_s12 + $0x4] sm:$0xf]  ;;  %v826_v37 = vld [vmem:[%s1158_s12 + $0x8] sm:$0xf0]  ;;  %v901_v38 = vor.u32 %v983_v29, %v898_v30  ;;  %v825_v39 = vor.u32 %v966_v33, %v824_v32  ;;  %p958_p11 = scmp.ne.s32.totalorder %s1070_s17, 8 }
  0x3c   : > { %578 = vmatpush.bf16.msra.mxu0 %v849_v7  ;;  %v829_v40 = vor.u32 %v965_v36, %v826_v37  ;;  %v365_v42 = vld [vmem:[%s1315_s4] sm:$0xff]  ;;  %v366_v47 = vld [vmem:[%s1315_s4 + $0x8] sm:$0xff]  ;;  %v367_v51 = vld [vmem:[%s1315_s4 + $0x10] sm:$0xff] }
  0x3d   : > { %592 = vmatpush.bf16.msra.mxu1 %v913_v8  ;;  %606 = vmatpush.bf16.msra.mxu2 %v853_v9  ;;  %v368_v57 = vld [vmem:[%s1315_s4 + $0x18] sm:$0xff] }
  0x3e   : > { %620 = vmatpush.bf16.msra.mxu3 %v917_v13 }
  0x40   : > { %579 = vmatpush.bf16.msra.mxu0 %v841_v19 }
  0x41   : > { %593 = vmatpush.bf16.msra.mxu1 %v905_v20  ;;  %607 = vmatpush.bf16.msra.mxu2 %v845_v21 }
  0x42   : > { %621 = vmatpush.bf16.msra.mxu3 %v909_v25 }
  0x44   : > { %580 = vmatpush.bf16.msra.mxu0 %v833_v31 }
  0x45   : > { %594 = vmatpush.bf16.msra.mxu1 %v897_v34  ;;  %608 = vmatpush.bf16.msra.mxu2 %v837_v35 }
  0x46   : > { %622 = vmatpush.bf16.msra.mxu3 %v901_v38 }
  0x47   : > { %581 = vmatmul.bf16.vlgmr.msra.gmra.mxu0 %v825_v39 }
  0x48   : > { %595 = vmatmul.bf16.vlgmr.msra.gmra.mxu1 %v829_v40  ;;  %609 = vmatmul.bf16.vlgmr.msra.gmra.mxu2 %v825_v39 }
  0x49   : > { %623 = vmatmul.bf16.vlgmr.msra.gmra.mxu3 %v829_v40 }
  0xc4   : > { %v582_v41 = vpop.f32.mrf.mxu0 }
  0xc5   : > { %v596_v43 = vpop.f32.mrf.mxu1 }
  0xc6   : > { %v597_v44 = vadd.f32 %v596_v43, %v582_v41 }
  0xc8   : > { %v629_v45 = vadd.f32 %v597_v44, %v365_v42 }
  0xca   : > { %633 = vst [vmem:[%s1315_s4] sm:$0xff] %v629_v45 }
  0xcb   : > { %v610_v46 = vpop.f32.mrf.mxu2 }
  0xcc   : > { %v624_v48 = vpop.f32.mrf.mxu3  ;;  %v584_v49 = vpop.f32.mrf.mxu0 }
  0xcd   : > { %v625_v50 = vadd.f32 %v624_v48, %v610_v46  ;;  %v598_v52 = vpop.f32.mrf.mxu1 }
  0xce   : > { %v599_v53 = vadd.f32 %v598_v52, %v584_v49 }
  0xcf   : > { %v630_v54 = vadd.f32 %v625_v50, %v366_v47 }
  0xd0   : > { %v631_v55 = vadd.f32 %v599_v53, %v367_v51 }
  0xd1   : > { %634 = vst [vmem:[%s1315_s4 + $0x8] sm:$0xff] %v630_v54 }
  0xd2   : > { %635 = vst [vmem:[%s1315_s4 + $0x10] sm:$0xff] %v631_v55 }
  0xd3   : > { %v612_v56 = vpop.f32.mrf.mxu2 }
  0xd4   : > { %v626_v58 = vpop.f32.mrf.mxu3 }
  0xd5   : > { %v627_v59 = vadd.f32 %v626_v58, %v612_v56  ;;  %640 = sbr.rel (%p958_p11) target bundleno = 232 (0xe8), region = 82 }
  0xd7   : > { %v632_v60 = vadd.f32 %v627_v59, %v368_v57 }
  0xd9   : > { %636 = vst [vmem:[%s1315_s4 + $0x18] sm:$0xff] %v632_v60 }
  0xda   : > { %v641_v61 = vld [vmem:[%s1315_s4] sm:$0xff]  ;;  %v642_v2 = vld [vmem:[%s1315_s4 + $0x8] sm:$0xff]  ;;  %v643_v5 = vld [vmem:[%s1315_s4 + $0x10] sm:$0xff] }
  0xdb   : > { %v645_v62 = vld [vmem:[%s1313_s2] sm:$0x3] }
  0xdc   : > { %v655_v63 = vld [vmem:[%s1314_s3] sm:$0x3]  ;;  %v647_v0 = vperm.slane %v645_v62, 0  ;;  %v648_v3 = vperm.slane %v645_v62, 1 }
  0xdd   : > { %v657_v1 = vperm.slane %v655_v63, 0  ;;  %v658_v4 = vperm.slane %v655_v63, 1 }
  0xde   : > { %v651_v7 = vmul.f32 %v647_v0, %v641_v61  ;;  %v652_v8 = vmul.f32 %v648_v3, %v642_v2  ;;  %v653_v9 = vmul.f32 %v647_v0, %v643_v5 }
  0xe0   : > { %v644_v6 = vld [vmem:[%s1315_s4 + $0x18] sm:$0xff]  ;;  %v661_v11 = vadd.f32 %v657_v1, %v651_v7  ;;  %v662_v12 = vadd.f32 %v658_v4, %v652_v8  ;;  %v663_v13 = vadd.f32 %v657_v1, %v653_v9 }
  0xe1   : > { %v654_v10 = vmul.f32 %v648_v3, %v644_v6 }
  0xe2   : > { %v665_v15 = vmax.f32 %v661_v11, 0.0  ;;  %v666_v16 = vmax.f32 %v662_v12, 0.0  ;;  %v667_v17 = vmax.f32 %v663_v13, 0.0 }
  0xe3   : > { %v664_v14 = vadd.f32 %v658_v4, %v654_v10 }
  0xe4   : > { %669 = vst [vmem:[%s1315_s4] sm:$0xff] %v665_v15 }
  0xe5   : > { %v668_v18 = vmax.f32 %v664_v14, 0.0  ;;  %670 = vst [vmem:[%s1315_s4 + $0x8] sm:$0xff] %v666_v16 }
  0xe6   : > { %671 = vst [vmem:[%s1315_s4 + $0x10] sm:$0xff] %v667_v17 }
  0xe7   : > { %672 = vst [vmem:[%s1315_s4 + $0x18] sm:$0xff] %v668_v18 }
  0xe8 PF: > { %s14_s19 = sadd.s32 1, %s1078_s19   ;;  %s1316_s15 = smov %s1066_s16 }
  0xe9   : > { %p11_p12 = scmp.ge.s32.totalorder %s14_s19, 11   ;;  %s1317_s16 = smov %s1141_s23 }
  0xea   : > { %s1318_s17 = smov %s1074_s18  ;;  %s1319_s18 = smov %s1321_s20 }
  0xeb   :  { %13 = sbr.rel (!%p11_p12) target bundleno = 3 (0x3), region = 126 }

// kernel: multimodal_forward.39
= control target key start
LH: loop header
LB: loop body
LE: loop exit
PB: predicated region body
PF: predicated region fallthrough
CT: control target
= control target key end

     0   :  { %s1217_s15 = smov 0   ;;  %s1219_s16 = smov 0   ;;  %s1446_s0 = inlined_call_operand.vmem [shape: bf16[16,256], index: 0, kind: input, shape index: {}]   ;;  %s1447_s1 = inlined_call_operand.vmem [shape: bf16[256,512], index: 1, kind: input, shape index: {}]   ;;  %s1448_s2 = inlined_call_operand.vmem [shape: f32[1,512], index: 2, kind: input, shape index: {}]   ;;  %s1449_s3 = inlined_call_operand.vmem [shape: f32[1,512], index: 3, kind: input, shape index: {}]   ;;  %s1450_s4 = inlined_call_operand.vmem [shape: f32[16,512], index: 4, kind: output, shape index: {}]  }
   0x1   :  { %s1221_s17 = smov 0   ;;  %s1223_s18 = smov 0  }
   0x2   :  { %s1225_s19 = smov 0  }
   0x3 LB: > { %s29_s20 = sadd.s32 1, %s1186_s18  ;;  %s921_s21 = sadd.s32 4294967295, %s1190_s19   ;;  %s1190_s19 = sphi %s1225_s19, %s14_s19   ;;  %s1186_s18 = sphi %s1223_s18, %s1455_s18   ;;  %s1182_s17 = sphi %s1221_s17, %s1454_s17   ;;  %s1178_s16 = sphi %s1219_s16, %s1453_s16   ;;  %s1174_s15 = sphi %s1217_s15, %s1452_s15  }
   0x4   : > { %p31_p0 = scmp.ge.s32.totalorder %s29_s20, 2  ;;  %p77_p1 = scmp.ne.s32.totalorder %s1178_s16, %s1174_s15 }
   0x5   : > { %p78_p2 = scmp.eq.s32.totalorder %s1190_s19, 0  ;;  %p161_p4 = scmp.eq.s32.totalorder %s921_s21, 1 }
   0x6   : > { %s1457_s20 = smov (%p31_p0, %s29_s20), 0  ;;  %s70_s23 = sadd.s32 1, %s1178_s16 }
   0x7   : > { %p79_p3 = por %p78_p2, %p77_p1  ;;  %s66_s22 = ssub.s32 %s1186_s18, %s1457_s20 }
   0x8   : > { %p68_p5 = scmp.eq.s32.totalorder %s66_s22, 0  ;;  %p1252_p6 = por %p161_p4, %p77_p1 }
   0x9   : > { %p925_p7 = scmp.ge.s32.totalorder %s1190_s19, 2 }
   0xa   : > { %s1257_s25 = scalar_select %p68_p5, %s1178_s16, %s70_s23  }
   0xb   : > { %198 = sbr.rel (%p925_p7) target bundleno = 52 (0x34), region = 20 }
  0x10   : > { %201 = sbr.rel (!%p79_p3) target bundleno = 52 (0x34), region = 24  ;;  %s203_s26 = sand.u32 (%p79_p3), 1, %s1178_s16  }
  0x11   : > { %s1075_s27 = sshll.u32 (%p79_p3), %s1186_s18, 3  ;;  %s926_s28 = sshll.u32 (%p79_p3), %s203_s26, 8 }
  0x12   : > { %s1265_s5 = scalar_lea.vmem (%p79_p3), %s1447_s1, %s1075_s27  ;;  %s1270_s6 = scalar_lea.vmem (%p79_p3), [#allocation2], %s926_s28 }
  0x13   : > { %v302_v0 = vld [vmem:[%s1265_s5] sm:$0xff] (%p79_p3)  ;;  %v304_v1 = vld [vmem:[%s1265_s5 + $0x10] sm:$0xff] (%p79_p3) }
  0x14   : > { %v306_v2 = vld [vmem:[%s1265_s5 + $0x20] sm:$0xff] (%p79_p3)  ;;  %303 = vst [vmem:[%s1270_s6] sm:$0xff] (%p79_p3), %v302_v0  ;;  %v308_v3 = vld [vmem:[%s1265_s5 + $0x30] sm:$0xff] (%p79_p3) }
  0x15   : > { %305 = vst [vmem:[%s1270_s6 + $0x8] sm:$0xff] %v304_v1  ;;  %v310_v4 = vld [vmem:[%s1265_s5 + $0x40] sm:$0xff]  ;;  %v312_v5 = vld [vmem:[%s1265_s5 + $0x50] sm:$0xff] }
  0x16   : > { %307 = vst [vmem:[%s1270_s6 + $0x10] sm:$0xff] %v306_v2  ;;  %v314_v6 = vld [vmem:[%s1265_s5 + $0x60] sm:$0xff]  ;;  %v316_v7 = vld [vmem:[%s1265_s5 + $0x70] sm:$0xff] }
  0x17   : > { %309 = vst [vmem:[%s1270_s6 + $0x18] sm:$0xff] %v308_v3  ;;  %v318_v8 = vld [vmem:[%s1265_s5 + $0x80] sm:$0xff]  ;;  %v320_v9 = vld [vmem:[%s1265_s5 + $0x90] sm:$0xff] }
  0x18   : > { %311 = vst [vmem:[%s1270_s6 + $0x20] sm:$0xff] %v310_v4  ;;  %v322_v10 = vld [vmem:[%s1265_s5 + $0xa0] sm:$0xff]  ;;  %v324_v11 = vld [vmem:[%s1265_s5 + $0xb0] sm:$0xff] }
  0x19   : > { %313 = vst [vmem:[%s1270_s6 + $0x28] sm:$0xff] %v312_v5  ;;  %v326_v12 = vld [vmem:[%s1265_s5 + $0xc0] sm:$0xff]  ;;  %v328_v13 = vld [vmem:[%s1265_s5 + $0xd0] sm:$0xff] }
  0x1a   : > { %315 = vst [vmem:[%s1270_s6 + $0x30] sm:$0xff] %v314_v6  ;;  %v330_v14 = vld [vmem:[%s1265_s5 + $0xe0] sm:$0xff]  ;;  %v332_v15 = vld [vmem:[%s1265_s5 + $0xf0] sm:$0xff] }
  0x1b   : > { %317 = vst [vmem:[%s1270_s6 + $0x38] sm:$0xff] %v316_v7  ;;  %v334_v16 = vld [vmem:[%s1265_s5 + $0x100] sm:$0xff]  ;;  %v336_v17 = vld [vmem:[%s1265_s5 + $0x110] sm:$0xff] }
  0x1c   : > { %319 = vst [vmem:[%s1270_s6 + $0x40] sm:$0xff] %v318_v8  ;;  %v338_v18 = vld [vmem:[%s1265_s5 + $0x120] sm:$0xff]  ;;  %v340_v19 = vld [vmem:[%s1265_s5 + $0x130] sm:$0xff] }
  0x1d   : > { %321 = vst [vmem:[%s1270_s6 + $0x48] sm:$0xff] %v320_v9  ;;  %v342_v20 = vld [vmem:[%s1265_s5 + $0x140] sm:$0xff]  ;;  %v344_v21 = vld [vmem:[%s1265_s5 + $0x150] sm:$0xff] }
  0x1e   : > { %323 = vst [vmem:[%s1270_s6 + $0x50] sm:$0xff] %v322_v10  ;;  %v346_v22 = vld [vmem:[%s1265_s5 + $0x160] sm:$0xff]  ;;  %v348_v23 = vld [vmem:[%s1265_s5 + $0x170] sm:$0xff] }
  0x1f   : > { %325 = vst [vmem:[%s1270_s6 + $0x58] sm:$0xff] %v324_v11  ;;  %v350_v24 = vld [vmem:[%s1265_s5 + $0x180] sm:$0xff]  ;;  %v352_v25 = vld [vmem:[%s1265_s5 + $0x190] sm:$0xff] }
  0x20   : > { %327 = vst [vmem:[%s1270_s6 + $0x60] sm:$0xff] %v326_v12  ;;  %v354_v26 = vld [vmem:[%s1265_s5 + $0x1a0] sm:$0xff]  ;;  %v356_v27 = vld [vmem:[%s1265_s5 + $0x1b0] sm:$0xff] }
  0x21   : > { %329 = vst [vmem:[%s1270_s6 + $0x68] sm:$0xff] %v328_v13  ;;  %v358_v28 = vld [vmem:[%s1265_s5 + $0x1c0] sm:$0xff]  ;;  %v360_v29 = vld [vmem:[%s1265_s5 + $0x1d0] sm:$0xff] }
  0x22   : > { %331 = vst [vmem:[%s1270_s6 + $0x70] sm:$0xff] %v330_v14  ;;  %v362_v30 = vld [vmem:[%s1265_s5 + $0x1e0] sm:$0xff]  ;;  %v364_v31 = vld [vmem:[%s1265_s5 + $0x1f0] sm:$0xff] }
  0x23   : > { %333 = vst [vmem:[%s1270_s6 + $0x78] sm:$0xff] %v332_v15 }
  0x24   : > { %335 = vst [vmem:[%s1270_s6 + $0x80] sm:$0xff] %v334_v16 }
  0x25   : > { %337 = vst [vmem:[%s1270_s6 + $0x88] sm:$0xff] %v336_v17 }
  0x26   : > { %339 = vst [vmem:[%s1270_s6 + $0x90] sm:$0xff] %v338_v18 }
  0x27   : > { %341 = vst [vmem:[%s1270_s6 + $0x98] sm:$0xff] %v340_v19 }
  0x28   : > { %343 = vst [vmem:[%s1270_s6 + $0xa0] sm:$0xff] %v342_v20 }
  0x29   : > { %345 = vst [vmem:[%s1270_s6 + $0xa8] sm:$0xff] %v344_v21 }
  0x2a   : > { %347 = vst [vmem:[%s1270_s6 + $0xb0] sm:$0xff] %v346_v22 }
  0x2b   : > { %349 = vst [vmem:[%s1270_s6 + $0xb8] sm:$0xff] %v348_v23 }
  0x2c   : > { %351 = vst [vmem:[%s1270_s6 + $0xc0] sm:$0xff] %v350_v24 }
  0x2d   : > { %353 = vst [vmem:[%s1270_s6 + $0xc8] sm:$0xff] %v352_v25 }
  0x2e   : > { %355 = vst [vmem:[%s1270_s6 + $0xd0] sm:$0xff] %v354_v26 }
  0x2f   : > { %357 = vst [vmem:[%s1270_s6 + $0xd8] sm:$0xff] %v356_v27 }
  0x30   : > { %359 = vst [vmem:[%s1270_s6 + $0xe0] sm:$0xff] %v358_v28 }
  0x31   : > { %361 = vst [vmem:[%s1270_s6 + $0xe8] sm:$0xff] %v360_v29 }
  0x32   : > { %363 = vst [vmem:[%s1270_s6 + $0xf0] sm:$0xff] %v362_v30 }
  0x33   : > { %365 = vst [vmem:[%s1270_s6 + $0xf8] sm:$0xff] %v364_v31 }
  0x34 PF: > { %p929_p8 = scmp.ge.s32.totalorder %s1190_s19, 1  ;;  %p386_p9 = scmp.lt.s32.totalorder %s1190_s19, 3 }
  0x36   : > { %p387_p10 = pnand %p929_p8, %p386_p9 }
  0x37   : > { %s393_s7 = sand.u32 (!%p387_p10), 1, %s1174_s15   ;;  %s932_s26 = sshll.u32 (!%p387_p10), %s1182_s17, 1 }
  0x38   : > { %390 = sbr.rel (%p387_p10) target bundleno = 252 (0xfc), region = 70  ;;  %s930_s8 = sshll.u32 (!%p387_p10), %s393_s7, 8 }
  0x39   : > { %s1338_s9 = scalar_lea.vmem (!%p387_p10), [#allocation2], %s930_s8  ;;  %p450_p11 = scmp.lt.s32.totalorder (!%p387_p10), %s932_s26, 3 }
  0x3a   : > { %s931_s8 = sshll.u32 (!%p387_p10), %s393_s7, 5 }
  0x3d   : > { %v1000_v32 = vld [vmem:[%s1338_s9 + $0x70] sm:$0xf]  ;;  %v1093_v33 = vld [vmem:[%s1338_s9 + $0x74] sm:$0xf0]  ;;  %v1092_v37 = vld [vmem:[%s1338_s9 + $0x74] sm:$0xf] }
  0x3e   : > { %v1064_v34 = vld [vmem:[%s1338_s9 + $0xf0] sm:$0xf]  ;;  %v1001_v35 = vor.u32 %v1093_v33, %v1000_v32  ;;  %v1109_v36 = vld [vmem:[%s1338_s9 + $0xf4] sm:$0xf0]  ;;  %v1002_v38 = vld [vmem:[%s1338_s9 + $0x78] sm:$0xf0] }
  0x3f   : > { %v1065_v39 = vor.u32 %v1109_v36, %v1064_v34  ;;  %v1005_v40 = vor.u32 %v1092_v37, %v1002_v38  ;;  %v1108_v41 = vld [vmem:[%s1338_s9 + $0xf4] sm:$0xf]  ;;  %v1066_v42 = vld [vmem:[%s1338_s9 + $0xf8] sm:$0xf0]  ;;  %v992_v43 = vld [vmem:[%s1338_s9 + $0x60] sm:$0xf] }
  0x40   : > { %677 = vmatpush.bf16.msra.mxu0 %v1001_v35  ;;  %v1069_v44 = vor.u32 %v1108_v41, %v1066_v42  ;;  %v1091_v45 = vld [vmem:[%s1338_s9 + $0x64] sm:$0xf0]  ;;  %v1056_v46 = vld [vmem:[%s1338_s9 + $0xe0] sm:$0xf]  ;;  %v1090_v50 = vld [vmem:[%s1338_s9 + $0x64] sm:$0xf] }
  0x41   : > { %v1107_v47 = vld [vmem:[%s1338_s9 + $0xe4] sm:$0xf0]  ;;  %691 = vmatpush.bf16.msra.mxu1 %v1065_v39  ;;  %705 = vmatpush.bf16.msra.mxu2 %v1005_v40  ;;  %v993_v48 = vor.u32 %v1091_v45, %v992_v43  ;;  %v994_v51 = vld [vmem:[%s1338_s9 + $0x68] sm:$0xf0]  ;;  %v1106_v52 = vld [vmem:[%s1338_s9 + $0xe4] sm:$0xf] }
  0x42   : > { %v1057_v49 = vor.u32 %v1107_v47, %v1056_v46  ;;  %719 = vmatpush.bf16.msra.mxu3 %v1069_v44  ;;  %v997_v53 = vor.u32 %v1090_v50, %v994_v51  ;;  %v1058_v54 = vld [vmem:[%s1338_s9 + $0xe8] sm:$0xf0]  ;;  %v984_v55 = vld [vmem:[%s1338_s9 + $0x50] sm:$0xf]  ;;  %v1089_v56 = vld [vmem:[%s1338_s9 + $0x54] sm:$0xf0] }
  0x43   : > { %v1061_v57 = vor.u32 %v1106_v52, %v1058_v54  ;;  %v1048_v58 = vld [vmem:[%s1338_s9 + $0xd0] sm:$0xf]  ;;  %v1105_v59 = vld [vmem:[%s1338_s9 + $0xd4] sm:$0xf0]  ;;  %v1088_v60 = vld [vmem:[%s1338_s9 + $0x54] sm:$0xf]  ;;  %v985_v61 = vor.u32 %v1089_v56, %v984_v55 }
  0x44   : > { %678 = vmatpush.bf16.msra.mxu0 %v993_v48  ;;  %v986_v62 = vld [vmem:[%s1338_s9 + $0x58] sm:$0xf0]  ;;  %v1104_v63 = vld [vmem:[%s1338_s9 + $0xd4] sm:$0xf]  ;;  %v1049_v1 = vor.u32 %v1105_v59, %v1048_v58  ;;  %v976_v3 = vld [vmem:[%s1338_s9 + $0x40] sm:$0xf] }
  0x45   : > { %v1050_v0 = vld [vmem:[%s1338_s9 + $0xd8] sm:$0xf0]  ;;  %692 = vmatpush.bf16.msra.mxu1 %v1057_v49  ;;  %706 = vmatpush.bf16.msra.mxu2 %v997_v53  ;;  %v989_v2 = vor.u32 %v1088_v60, %v986_v62  ;;  %v1087_v4 = vld [vmem:[%s1338_s9 + $0x44] sm:$0xf0]  ;;  %v1040_v5 = vld [vmem:[%s1338_s9 + $0xc0] sm:$0xf] }
  0x46   : > { %720 = vmatpush.bf16.msra.mxu3 %v1061_v57  ;;  %v1053_v6 = vor.u32 %v1104_v63, %v1050_v0  ;;  %v1103_v7 = vld [vmem:[%s1338_s9 + $0xc4] sm:$0xf0]  ;;  %v1086_v8 = vld [vmem:[%s1338_s9 + $0x44] sm:$0xf]  ;;  %v978_v9 = vld [vmem:[%s1338_s9 + $0x48] sm:$0xf0]  ;;  %v977_v12 = vor.u32 %v1087_v4, %v976_v3 }
  0x47   : > { %v1102_v10 = vld [vmem:[%s1338_s9 + $0xc4] sm:$0xf]  ;;  %v1042_v11 = vld [vmem:[%s1338_s9 + $0xc8] sm:$0xf0]  ;;  %v1041_v13 = vor.u32 %v1103_v7, %v1040_v5  ;;  %v981_v14 = vor.u32 %v1086_v8, %v978_v9  ;;  %v968_v15 = vld [vmem:[%s1338_s9 + $0x30] sm:$0xf] }
  0x48   : > { %679 = vmatpush.bf16.msra.mxu0 %v985_v61  ;;  %v1085_v16 = vld [vmem:[%s1338_s9 + $0x34] sm:$0xf0]  ;;  %v1032_v17 = vld [vmem:[%s1338_s9 + $0xb0] sm:$0xf]  ;;  %v1045_v18 = vor.u32 %v1102_v10, %v1042_v11  ;;  %v1084_v20 = vld [vmem:[%s1338_s9 + $0x34] sm:$0xf] }
  0x49   : > { %693 = vmatpush.bf16.msra.mxu1 %v1049_v1  ;;  %707 = vmatpush.bf16.msra.mxu2 %v989_v2  ;;  %v1101_v19 = vld [vmem:[%s1338_s9 + $0xb4] sm:$0xf0]  ;;  %v970_v21 = vld [vmem:[%s1338_s9 + $0x38] sm:$0xf0]  ;;  %v1100_v22 = vld [vmem:[%s1338_s9 + $0xb4] sm:$0xf]  ;;  %v969_v24 = vor.u32 %v1085_v16, %v968_v15 }
  0x4a   : > { %721 = vmatpush.bf16.msra.mxu3 %v1053_v6  ;;  %v1034_v23 = vld [vmem:[%s1338_s9 + $0xb8] sm:$0xf0]  ;;  %v1033_v25 = vor.u32 %v1101_v19, %v1032_v17  ;;  %v973_v26 = vor.u32 %v1084_v20, %v970_v21  ;;  %v960_v27 = vld [vmem:[%s1338_s9 + $0x20] sm:$0xf]  ;;  %v1083_v28 = vld [vmem:[%s1338_s9 + $0x24] sm:$0xf0] }
  0x4b   : > { %v1024_v29 = vld [vmem:[%s1338_s9 + $0xa0] sm:$0xf]  ;;  %v1037_v30 = vor.u32 %v1100_v22, %v1034_v23  ;;  %v1099_v31 = vld [vmem:[%s1338_s9 + $0xa4] sm:$0xf0]  ;;  %v1082_v32 = vld [vmem:[%s1338_s9 + $0x24] sm:$0xf]  ;;  %v961_v36 = vor.u32 %v1083_v28, %v960_v27 }
  0x4c   : > { %680 = vmatpush.bf16.msra.mxu0 %v977_v12  ;;  %v962_v33 = vld [vmem:[%s1338_s9 + $0x28] sm:$0xf0]  ;;  %v1098_v34 = vld [vmem:[%s1338_s9 + $0xa4] sm:$0xf]  ;;  %v1025_v37 = vor.u32 %v1099_v31, %v1024_v29  ;;  %v952_v39 = vld [vmem:[%s1338_s9 + $0x10] sm:$0xf] }
  0x4d   : > { %694 = vmatpush.bf16.msra.mxu1 %v1041_v13  ;;  %708 = vmatpush.bf16.msra.mxu2 %v981_v14  ;;  %v1026_v35 = vld [vmem:[%s1338_s9 + $0xa8] sm:$0xf0]  ;;  %v965_v38 = vor.u32 %v1082_v32, %v962_v33  ;;  %v1081_v40 = vld [vmem:[%s1338_s9 + $0x14] sm:$0xf0]  ;;  %v1016_v41 = vld [vmem:[%s1338_s9 + $0x90] sm:$0xf] }
  0x4e   : > { %722 = vmatpush.bf16.msra.mxu3 %v1045_v18  ;;  %v1029_v42 = vor.u32 %v1098_v34, %v1026_v35  ;;  %v1097_v43 = vld [vmem:[%s1338_s9 + $0x94] sm:$0xf0]  ;;  %v1080_v44 = vld [vmem:[%s1338_s9 + $0x14] sm:$0xf]  ;;  %v954_v45 = vld [vmem:[%s1338_s9 + $0x18] sm:$0xf0]  ;;  %v953_v48 = vor.u32 %v1081_v40, %v952_v39 }
  0x4f   : > { %v1096_v46 = vld [vmem:[%s1338_s9 + $0x94] sm:$0xf]  ;;  %v1018_v47 = vld [vmem:[%s1338_s9 + $0x98] sm:$0xf0]  ;;  %v1017_v49 = vor.u32 %v1097_v43, %v1016_v41  ;;  %v957_v50 = vor.u32 %v1080_v44, %v954_v45  ;;  %v944_v51 = vld [vmem:[%s1338_s9] sm:$0xf] }
  0x50   : > { %681 = vmatpush.bf16.msra.mxu0 %v969_v24  ;;  %v1079_v52 = vld [vmem:[%s1338_s9 + $0x4] sm:$0xf0]  ;;  %v1008_v53 = vld [vmem:[%s1338_s9 + $0x80] sm:$0xf]  ;;  %v1021_v54 = vor.u32 %v1096_v46, %v1018_v47  ;;  %v1078_v56 = vld [vmem:[%s1338_s9 + $0x4] sm:$0xf] }
  0x51   : > { %695 = vmatpush.bf16.msra.mxu1 %v1033_v25  ;;  %709 = vmatpush.bf16.msra.mxu2 %v973_v26  ;;  %v1095_v55 = vld [vmem:[%s1338_s9 + $0x84] sm:$0xf0]  ;;  %v946_v57 = vld [vmem:[%s1338_s9 + $0x8] sm:$0xf0]  ;;  %v1094_v58 = vld [vmem:[%s1338_s9 + $0x84] sm:$0xf]  ;;  %v945_v60 = vor.u32 %v1079_v52, %v944_v51 }
  0x52   : > { %723 = vmatpush.bf16.msra.mxu3 %v1037_v30  ;;  %v1010_v59 = vld [vmem:[%s1338_s9 + $0x88] sm:$0xf0]  ;;  %v936_v61 = vld [vmem:[%s1446_s0] sm:$0xf]  ;;  %v1077_v62 = vld [vmem:[%s1446_s0 + $0x4] sm:$0xf0]  ;;  %v1009_v63 = vor.u32 %v1095_v55, %v1008_v53  ;;  %v949_v0 = vor.u32 %v1078_v56, %v946_v57 }
  0x53   : > { %v1076_v1 = vld [vmem:[%s1446_s0 + $0x4] sm:$0xf]  ;;  %v938_v2 = vld [vmem:[%s1446_s0 + $0x8] sm:$0xf0]  ;;  %v1013_v3 = vor.u32 %v1094_v58, %v1010_v59  ;;  %v937_v4 = vor.u32 %v1077_v62, %v936_v61  ;;  %s1459_s26 = smov (!%p450_p11, %s932_s26), 3  ;;  %s434_s9 = scalar_lea.vmem [#allocation3], %s931_s8 }
  0x54   : > { %682 = vmatpush.bf16.msra.mxu0 %v961_v36  ;;  %v941_v5 = vor.u32 %v1076_v1, %v938_v2  ;;  %s452_s29 = scalar_lea.vmem %s1448_s2, %s1459_s26  ;;  %s457_s6 = scalar_lea.vmem %s1449_s3, %s1459_s26 }
  0x55   : > { %696 = vmatpush.bf16.msra.mxu1 %v1025_v37  ;;  %710 = vmatpush.bf16.msra.mxu2 %v965_v38  ;;  %v748_v6 = vld [vmem:[%s452_s29] sm:$0x3]  ;;  %s1110_s15 = sshll.u32 (%p1252_p6), %s1182_s17, 4 }
  0x56   : > { %724 = vmatpush.bf16.msra.mxu3 %v1029_v42  ;;  %v758_v9 = vld [vmem:[%s457_s6] sm:$0x3]  ;;  %v750_v11 = vperm.slane %v748_v6, 0  ;;  %v751_v19 = vperm.slane %v748_v6, 1  ;;  %s784_s11 = scalar_lea.vmem (%p1252_p6), %s1450_s4, %s1110_s15 }
  0x57   : > { %v760_v12 = vperm.slane %v758_v9, 0  ;;  %v761_v22 = vperm.slane %v758_v9, 1 }
  0x58   : > { %683 = vmatpush.bf16.msra.mxu0 %v953_v48 }
  0x59   : > { %697 = vmatpush.bf16.msra.mxu1 %v1017_v49  ;;  %711 = vmatpush.bf16.msra.mxu2 %v957_v50 }
  0x5a   : > { %725 = vmatpush.bf16.msra.mxu3 %v1021_v54 }
  0x5c   : > { %684 = vmatpush.bf16.msra.mxu0 %v945_v60 }
  0x5d   : > { %698 = vmatpush.bf16.msra.mxu1 %v1009_v63  ;;  %712 = vmatpush.bf16.msra.mxu2 %v949_v0 }
  0x5e   : > { %726 = vmatpush.bf16.msra.mxu3 %v1013_v3 }
  0x5f   : > { %685 = vmatmul.bf16.vlgmr.msra.gmra.mxu0 %v937_v4 }
  0x60   : > { %699 = vmatmul.bf16.vlgmr.msra.gmra.mxu1 %v941_v5  ;;  %713 = vmatmul.bf16.vlgmr.msra.gmra.mxu2 %v937_v4 }
  0x61   : > { %727 = vmatmul.bf16.vlgmr.msra.gmra.mxu3 %v941_v5 }
  0xdc   : > { %v686_v7 = vpop.f32.mrf.mxu0 }
  0xdd   : > { %v700_v8 = vpop.f32.mrf.mxu1 }
  0xde   : > { %v701_v10 = vadd.f32 %v700_v8, %v686_v7 }
  0xe0   : > { %v754_v13 = vmul.f32 %v750_v11, %v701_v10 }
  0xe2   : > { %v764_v15 = vadd.f32 %v760_v12, %v754_v13 }
  0xe3   : > { %v714_v14 = vpop.f32.mrf.mxu2 }
  0xe4   : > { %v728_v16 = vpop.f32.mrf.mxu3  ;;  %v688_v17 = vpop.f32.mrf.mxu0  ;;  %768 = vst [vmem:[%s434_s9] sm:$0xff] %v764_v15 }
  0xe5   : > { %v729_v18 = vadd.f32 %v728_v16, %v714_v14  ;;  %v702_v20 = vpop.f32.mrf.mxu1 }
  0xe6   : > { %v703_v21 = vadd.f32 %v702_v20, %v688_v17 }
  0xe7   : > { %v755_v23 = vmul.f32 %v751_v19, %v729_v18 }
  0xe8   : > { %v756_v24 = vmul.f32 %v750_v11, %v703_v21 }
  0xe9   : > { %v765_v25 = vadd.f32 %v761_v22, %v755_v23 }
  0xea   : > { %v766_v27 = vadd.f32 %v760_v12, %v756_v24 }
  0xeb   : > { %v716_v26 = vpop.f32.mrf.mxu2  ;;  %769 = vst [vmem:[%s434_s9 + $0x8] sm:$0xff] %v765_v25  ;;  %v797_v32 = vld [vmem:[%s434_s9] sm:$0xff] (%p1252_p6) }
  0xec   : > { %v730_v28 = vpop.f32.mrf.mxu3  ;;  %770 = vst [vmem:[%s434_s9 + $0x10] sm:$0xff] %v766_v27 }
  0xed   : > { %v731_v29 = vadd.f32 %v730_v28, %v716_v26  ;;  %798 = vst [vmem:[%s784_s11] sm:$0xff] (%p1252_p6), %v797_v32 }
  0xef   : > { %v757_v30 = vmul.f32 %v751_v19, %v731_v29  ;;  %778 = sbr.rel (!%p1252_p6) target bundleno = 252 (0xfc), region = 86 }
  0xf1   : > { %v767_v31 = vadd.f32 %v761_v22, %v757_v30 }
  0xf2   : > { %v799_v33 = vld [vmem:[%s434_s9 + $0x8] sm:$0xff] (%p1252_p6) }
  0xf3   : > { %771 = vst [vmem:[%s434_s9 + $0x18] sm:$0xff] %v767_v31  ;;  %v801_v34 = vld [vmem:[%s434_s9 + $0x10] sm:$0xff] (%p1252_p6) }
  0xf4   : > { %800 = vst [vmem:[%s784_s11 + $0x8] sm:$0xff] %v799_v33 }
  0xf5   : > { %802 = vst [vmem:[%s784_s11 + $0x20] sm:$0xff] %v801_v34 }
  0xfa   : > { %v803_v35 = vld [vmem:[%s434_s9 + $0x18] sm:$0xff] }
  0xfb   : > { %804 = vst [vmem:[%s784_s11 + $0x28] sm:$0xff] %v803_v35 }
  0xfc PF: > { %s14_s19 = sadd.s32 1, %s1190_s19   ;;  %s1452_s15 = smov %s1178_s16 }
  0xfd   : > { %p11_p12 = scmp.ge.s32.totalorder %s14_s19, 4   ;;  %s1453_s16 = smov %s1257_s25 }
  0xfe   : > { %s1454_s17 = smov %s1186_s18  ;;  %s1455_s18 = smov %s1457_s20 }
  0xff   :  { %13 = sbr.rel (!%p11_p12) target bundleno = 3 (0x3), region = 149 }

// kernel: multimodal_forward.41
= control target key start
LH: loop header
LB: loop body
LE: loop exit
PB: predicated region body
PF: predicated region fallthrough
CT: control target
= control target key end

     0   :  { %s1356_s15 = smov 0   ;;  %s1358_s16 = smov 0   ;;  %s1703_s0 = inlined_call_operand.vmem [shape: bf16[16,4608], index: 0, kind: input, shape index: {}]   ;;  %s1704_s1 = inlined_call_operand.vmem [shape: bf16[4608,512], index: 1, kind: input, shape index: {}]   ;;  %s1705_s2 = inlined_call_operand.vmem [shape: f32[1,512], index: 2, kind: input, shape index: {}]   ;;  %s1706_s3 = inlined_call_operand.vmem [shape: f32[1,512], index: 3, kind: input, shape index: {}]   ;;  %s1707_s4 = inlined_call_operand.vmem [shape: f32[16,512], index: 4, kind: output, shape index: {}]  }
   0x1   :  { %s1360_s17 = smov 0   ;;  %s1362_s18 = smov 0  }
   0x2   :  { %s1364_s19 = smov 0   ;;  %s1366_s20 = smov 0  }
   0x3   :  { %s1368_s21 = smov 0   ;;  %s1370_s22 = smov 0  }
   0x4   :  { %s1372_s23 = smov 0   ;;  %s1374_s24 = smov 0  }
   0x5   :  { %s1376_s25 = smov 0  }
   0x6 LB: > { %1711 = sst [smem:[#allocation5_spill]] %s1308_s20  ;;  %s955_s26 = sadd.s32 4294967295, %s1328_s25   ;;  %s1328_s25 = sphi %s1376_s25, %s14_s25   ;;  %s1324_s24 = sphi %s1374_s24, %s1729_s24   ;;  %s1320_s23 = sphi %s1372_s23, %s1728_s23   ;;  %s1316_s22 = sphi %s1370_s22, %s1727_s22   ;;  %s1312_s21 = sphi %s1368_s21, %s1726_s21   ;;  %s1308_s20 = sphi %s1366_s20, %s1719_s20   ;;  %s1304_s19 = sphi %s1364_s19, %s1718_s19   ;;  %s1300_s18 = sphi %s1362_s18, %s1725_s18   ;;  %s1296_s17 = sphi %s1360_s17, %s1724_s17   ;;  %s1292_s16 = sphi %s1358_s16, %s1723_s16   ;;  %s1288_s15 = sphi %s1356_s15, %s1722_s15  }
   0x7   : > { %s26_s27 = sadd.s32 1, %s1320_s23  ;;  %s29_s28 = sadd.s32 1, %s1324_s24 }
   0x8   : > { %p27_p0 = scmp.ge.s32.totalorder %s26_s27, 18  ;;  %s42_s29 = sadd.s32 1, %s1308_s20 }
   0x9   : > { %p49_p1 = scmp.ne.s32.totalorder %s1308_s20, %s1304_s19  ;;  %p50_p2 = scmp.eq.s32.totalorder %s1328_s25, 0 }
   0xa   : > { %s1731_s27 = smov (%p27_p0, %s26_s27), 0  ;;  %s1733_s28 = smov (!%p27_p0, %s29_s28), %s1324_s24 }
   0xb   : > { %1712 = sst [smem:[#allocation6_spill]] %s1731_s27  ;;  %s38_s30 = ssub.s32 %s1320_s23, %s1731_s27 }
   0xc   : > { %p31_p3 = scmp.ge.s32.totalorder %s1733_s28, 2  ;;  %p40_p4 = scmp.eq.s32.totalorder %s38_s30, 0 }
   0xd   : > { %p1423_p5 = por %p50_p2, %p49_p1  ;;  %s70_s6 = sadd.s32 1, %s1300_s18 }
   0xe   : > { %s1735_s28 = smov (%p31_p3, %s1733_s28), 0  ;;  %p77_p6 = scmp.ne.s32.totalorder %s1300_s18, %s1296_s17 }
   0xf   : > { %1714 = sst [smem:[#allocation7_spill]] %s1735_s28  ;;  %s66_s8 = ssub.s32 %s1324_s24, %s1735_s28 }
  0x10   : > { %s1431_s7 = scalar_select %p40_p4, %s1308_s20, %s42_s29  }
  0x11   : > { %s67_s9 = sor.u32 %s66_s8, %s38_s30  ;;  %p148_p7 = scmp.eq.s32.totalorder %s66_s8, 0 }
  0x12   : > { %1715 = sst [smem:[#allocation8_spill]] %s1431_s7  ;;  %p68_p8 = scmp.eq.s32.totalorder %s67_s9, 0 }
  0x13   : > { %p1437_p9 = por %p77_p6, %p50_p2  ;;  %s150_s11 = sadd.s32 1, %s1292_s16 }
  0x14   : > { %p160_p10 = scmp.ne.s32.totalorder %s1292_s16, %s1288_s15  ;;  %p161_p11 = scmp.eq.s32.totalorder %s955_s26, 35 }
  0x15   : > { %s1445_s12 = scalar_select %p68_p8, %s1300_s18, %s70_s6  }
  0x16   : > { %s1448_s13 = scalar_select %p148_p7, %s1292_s16, %s150_s11  }
  0x17   : > { %p1450_p12 = por %p161_p11, %p160_p10  ;;  %p958_p13 = scmp.ge.s32.totalorder %s1328_s25, 36 }
  0x19   : > { %183 = sbr.rel (%p958_p13) target bundleno = 75 (0x4b), region = 16 }
  0x1e   : > { %186 = sbr.rel (!%p1423_p5) target bundleno = 36 (0x24), region = 20  ;;  %s188_s29 = sand.u32 (%p1423_p5), 1, %s1308_s20  }
  0x1f   : > { %s1116_s30 = sshll.u32 (%p1423_p5), %s1320_s23, 3  ;;  %s959_s8 = sshll.u32 (%p1423_p5), %s188_s29, 4 }
  0x20   : > { %s196_s11 = scalar_lea.vmem (%p1423_p5), %s1703_s0, %s1116_s30  ;;  %s190_s26 = scalar_lea.vmem (%p1423_p5), [#allocation2], %s959_s8 }
  0x21   : > { %v227_v0 = vld [vmem:[%s196_s11] sm:$0xff] (%p1423_p5)  ;;  %v229_v1 = vld [vmem:[%s196_s11 + $0x90] sm:$0xff] (%p1423_p5) }
  0x22   : > { %228 = vst [vmem:[%s190_s26] sm:$0xff] (%p1423_p5), %v227_v0 }
  0x23   : > { %230 = vst [vmem:[%s190_s26 + $0x8] sm:$0xff] %v229_v1 }
  0x24 PF: > { %236 = sbr.rel (!%p1437_p9) target bundleno = 75 (0x4b), region = 58  ;;  %s238_s5 = sand.u32 (%p1437_p9), 1, %s1300_s18  }
  0x25   : > { %s964_s28 = sshll.u32 (%p1437_p9), %s1324_s24, 1  ;;  %s962_s27 = sshll.u32 (%p1437_p9), %s238_s5, 8 }
  0x26   : > { %s1117_s29 = sshll.u32 (%p1437_p9), %s1320_s23, 7 }
  0x27   : > { %s244_s7 = sadd.s32 (%p1437_p9), %s1117_s29, %s964_s28  ;;  %s1475_s28 = scalar_lea.vmem (%p1437_p9), [#allocation3], %s962_s27 }
  0x28   : > { %s966_s20 = sshll.u32 (%p1437_p9), %s244_s7, 2 }
  0x29   : > { %s1470_s9 = scalar_lea.vmem %s1704_s1, %s966_s20 }
  0x2a   : > { %v337_v2 = vld [vmem:[%s1470_s9] sm:$0xff]  ;;  %v339_v3 = vld [vmem:[%s1470_s9 + $0x10] sm:$0xff] }
  0x2b   : > { %v341_v4 = vld [vmem:[%s1470_s9 + $0x20] sm:$0xff]  ;;  %338 = vst [vmem:[%s1475_s28] sm:$0xff] %v337_v2  ;;  %v343_v5 = vld [vmem:[%s1470_s9 + $0x30] sm:$0xff] }
  0x2c   : > { %340 = vst [vmem:[%s1475_s28 + $0x8] sm:$0xff] %v339_v3  ;;  %v345_v6 = vld [vmem:[%s1470_s9 + $0x40] sm:$0xff]  ;;  %v347_v7 = vld [vmem:[%s1470_s9 + $0x50] sm:$0xff] }
  0x2d   : > { %342 = vst [vmem:[%s1475_s28 + $0x10] sm:$0xff] %v341_v4  ;;  %v349_v8 = vld [vmem:[%s1470_s9 + $0x60] sm:$0xff]  ;;  %v351_v9 = vld [vmem:[%s1470_s9 + $0x70] sm:$0xff] }
  0x2e   : > { %344 = vst [vmem:[%s1475_s28 + $0x18] sm:$0xff] %v343_v5  ;;  %v353_v10 = vld [vmem:[%s1470_s9 + $0x80] sm:$0xff]  ;;  %v355_v11 = vld [vmem:[%s1470_s9 + $0x90] sm:$0xff] }
  0x2f   : > { %346 = vst [vmem:[%s1475_s28 + $0x20] sm:$0xff] %v345_v6  ;;  %v357_v12 = vld [vmem:[%s1470_s9 + $0xa0] sm:$0xff]  ;;  %v359_v13 = vld [vmem:[%s1470_s9 + $0xb0] sm:$0xff] }
  0x30   : > { %348 = vst [vmem:[%s1475_s28 + $0x28] sm:$0xff] %v347_v7  ;;  %v361_v14 = vld [vmem:[%s1470_s9 + $0xc0] sm:$0xff]  ;;  %v363_v15 = vld [vmem:[%s1470_s9 + $0xd0] sm:$0xff] }
  0x31   : > { %350 = vst [vmem:[%s1475_s28 + $0x30] sm:$0xff] %v349_v8  ;;  %v365_v16 = vld [vmem:[%s1470_s9 + $0xe0] sm:$0xff]  ;;  %v367_v17 = vld [vmem:[%s1470_s9 + $0xf0] sm:$0xff] }
  0x32   : > { %352 = vst [vmem:[%s1475_s28 + $0x38] sm:$0xff] %v351_v9  ;;  %v369_v18 = vld [vmem:[%s1470_s9 + $0x100] sm:$0xff]  ;;  %v371_v19 = vld [vmem:[%s1470_s9 + $0x110] sm:$0xff] }
  0x33   : > { %354 = vst [vmem:[%s1475_s28 + $0x40] sm:$0xff] %v353_v10  ;;  %v373_v20 = vld [vmem:[%s1470_s9 + $0x120] sm:$0xff]  ;;  %v375_v21 = vld [vmem:[%s1470_s9 + $0x130] sm:$0xff] }
  0x34   : > { %356 = vst [vmem:[%s1475_s28 + $0x48] sm:$0xff] %v355_v11  ;;  %v377_v22 = vld [vmem:[%s1470_s9 + $0x140] sm:$0xff]  ;;  %v379_v23 = vld [vmem:[%s1470_s9 + $0x150] sm:$0xff] }
  0x35   : > { %358 = vst [vmem:[%s1475_s28 + $0x50] sm:$0xff] %v357_v12  ;;  %v381_v24 = vld [vmem:[%s1470_s9 + $0x160] sm:$0xff]  ;;  %v383_v25 = vld [vmem:[%s1470_s9 + $0x170] sm:$0xff] }
  0x36   : > { %360 = vst [vmem:[%s1475_s28 + $0x58] sm:$0xff] %v359_v13  ;;  %v385_v26 = vld [vmem:[%s1470_s9 + $0x180] sm:$0xff]  ;;  %v387_v27 = vld [vmem:[%s1470_s9 + $0x190] sm:$0xff] }
  0x37   : > { %362 = vst [vmem:[%s1475_s28 + $0x60] sm:$0xff] %v361_v14  ;;  %v389_v28 = vld [vmem:[%s1470_s9 + $0x1a0] sm:$0xff]  ;;  %v391_v29 = vld [vmem:[%s1470_s9 + $0x1b0] sm:$0xff] }
  0x38   : > { %364 = vst [vmem:[%s1475_s28 + $0x68] sm:$0xff] %v363_v15  ;;  %v393_v30 = vld [vmem:[%s1470_s9 + $0x1c0] sm:$0xff]  ;;  %v395_v31 = vld [vmem:[%s1470_s9 + $0x1d0] sm:$0xff] }
  0x39   : > { %366 = vst [vmem:[%s1475_s28 + $0x70] sm:$0xff] %v365_v16  ;;  %v397_v32 = vld [vmem:[%s1470_s9 + $0x1e0] sm:$0xff]  ;;  %v399_v33 = vld [vmem:[%s1470_s9 + $0x1f0] sm:$0xff] }
  0x3a   : > { %368 = vst [vmem:[%s1475_s28 + $0x78] sm:$0xff] %v367_v17 }
  0x3b   : > { %370 = vst [vmem:[%s1475_s28 + $0x80] sm:$0xff] %v369_v18 }
  0x3c   : > { %372 = vst [vmem:[%s1475_s28 + $0x88] sm:$0xff] %v371_v19 }
  0x3d   : > { %374 = vst [vmem:[%s1475_s28 + $0x90] sm:$0xff] %v373_v20 }
  0x3e   : > { %376 = vst [vmem:[%s1475_s28 + $0x98] sm:$0xff] %v375_v21 }
  0x3f   : > { %378 = vst [vmem:[%s1475_s28 + $0xa0] sm:$0xff] %v377_v22 }
  0x40   : > { %380 = vst [vmem:[%s1475_s28 + $0xa8] sm:$0xff] %v379_v23 }
  0x41   : > { %382 = vst [vmem:[%s1475_s28 + $0xb0] sm:$0xff] %v381_v24 }
  0x42   : > { %384 = vst [vmem:[%s1475_s28 + $0xb8] sm:$0xff] %v383_v25 }
  0x43   : > { %386 = vst [vmem:[%s1475_s28 + $0xc0] sm:$0xff] %v385_v26 }
  0x44   : > { %388 = vst [vmem:[%s1475_s28 + $0xc8] sm:$0xff] %v387_v27 }
  0x45   : > { %390 = vst [vmem:[%s1475_s28 + $0xd0] sm:$0xff] %v389_v28 }
  0x46   : > { %392 = vst [vmem:[%s1475_s28 + $0xd8] sm:$0xff] %v391_v29 }
  0x47   : > { %394 = vst [vmem:[%s1475_s28 + $0xe0] sm:$0xff] %v393_v30 }
  0x48   : > { %396 = vst [vmem:[%s1475_s28 + $0xe8] sm:$0xff] %v395_v31 }
  0x49   : > { %398 = vst [vmem:[%s1475_s28 + $0xf0] sm:$0xff] %v397_v32 }
  0x4a   : > { %400 = vst [vmem:[%s1475_s28 + $0xf8] sm:$0xff] %v399_v33 }
  0x4b PF: > { %p967_p0 = scmp.ge.s32.totalorder %s1328_s25, 1  ;;  %p421_p1 = scmp.lt.s32.totalorder %s1328_s25, 37 }
  0x4d   : > { %p422_p2 = pnand %p967_p0, %p421_p1 }
  0x4e   : > { %s428_s20 = sand.u32 (!%p422_p2), 1, %s1304_s19   ;;  %s435_s27 = sand.u32 (!%p422_p2), 1, %s1296_s17  }
  0x4f   : > { %425 = sbr.rel (%p422_p2) target bundleno = 299 (0x12b), region = 104  ;;  %s968_s7 = sshll.u32 (!%p422_p2), %s428_s20, 4 }
  0x50   : > { %s969_s10 = sshll.u32 (!%p422_p2), %s435_s27, 8  ;;  %s468_s8 = sand.u32 (!%p422_p2), 1, %s1288_s15  }
  0x51   : > { %s971_s11 = sshll.u32 (!%p422_p2), %s1316_s22, 1  ;;  %s970_s26 = sshll.u32 (!%p422_p2), %s468_s8, 5 }
  0x52   : > { %p476_p3 = scmp.lt.s32.totalorder (!%p422_p2), %s971_s11, 3  ;;  %s1554_s19 = scalar_lea.vmem (!%p422_p2), [#allocation2], %s968_s7 }
  0x53   : > { %s1556_s17 = scalar_lea.vmem (!%p422_p2), [#allocation3], %s969_s10  ;;  %s1558_s15 = scalar_lea.vmem (!%p422_p2), [#allocation4], %s970_s26 }
  0x54   : > { %s1737_s11 = smov (!%p476_p3, %s971_s11), 3  ;;  %p973_p4 = scmp.ne.s32.totalorder %s1312_s21, 0 }
  0x55   : > { %s478_s6 = scalar_lea.vmem %s1705_s2, %s1737_s11  ;;  %s483_s28 = scalar_lea.vmem %s1706_s3, %s1737_s11 }
  0x56   : > { %490 = sbr.rel (%p973_p4) target bundleno = 96 (0x60), region = 116 }
  0x5b   : > { %v1330_v34 = vmov 0.0  }
  0x5c   : > { %491 = vst [vmem:[%s1558_s15] sm:$0xff] %v1330_v34 }
  0x5d   : > { %492 = vst [vmem:[%s1558_s15 + $0x8] sm:$0xff] %v1330_v34 }
  0x5e   : > { %493 = vst [vmem:[%s1558_s15 + $0x10] sm:$0xff] %v1330_v34 }
  0x5f   : > { %494 = vst [vmem:[%s1558_s15 + $0x18] sm:$0xff] %v1330_v34 }
  0x60 PF: > { %v1040_v35 = vld [vmem:[%s1556_s17 + $0x70] sm:$0xf]  ;;  %v1135_v36 = vld [vmem:[%s1556_s17 + $0x74] sm:$0xf0]  ;;  %v1134_v40 = vld [vmem:[%s1556_s17 + $0x74] sm:$0xf] }
  0x61   : > { %v1104_v37 = vld [vmem:[%s1556_s17 + $0xf0] sm:$0xf]  ;;  %v1041_v38 = vor.u32 %v1135_v36, %v1040_v35  ;;  %v1151_v39 = vld [vmem:[%s1556_s17 + $0xf4] sm:$0xf0]  ;;  %v1042_v41 = vld [vmem:[%s1556_s17 + $0x78] sm:$0xf0] }
  0x62   : > { %v1105_v42 = vor.u32 %v1151_v39, %v1104_v37  ;;  %v1045_v43 = vor.u32 %v1134_v40, %v1042_v41  ;;  %v1150_v44 = vld [vmem:[%s1556_s17 + $0xf4] sm:$0xf]  ;;  %v1106_v45 = vld [vmem:[%s1556_s17 + $0xf8] sm:$0xf0]  ;;  %v1032_v46 = vld [vmem:[%s1556_s17 + $0x60] sm:$0xf] }
  0x63   : > { %703 = vmatpush.bf16.msra.mxu0 %v1041_v38  ;;  %v1109_v47 = vor.u32 %v1150_v44, %v1106_v45  ;;  %v1133_v48 = vld [vmem:[%s1556_s17 + $0x64] sm:$0xf0]  ;;  %v1096_v49 = vld [vmem:[%s1556_s17 + $0xe0] sm:$0xf]  ;;  %v1132_v53 = vld [vmem:[%s1556_s17 + $0x64] sm:$0xf] }
  0x64   : > { %v1149_v50 = vld [vmem:[%s1556_s17 + $0xe4] sm:$0xf0]  ;;  %717 = vmatpush.bf16.msra.mxu1 %v1105_v42  ;;  %731 = vmatpush.bf16.msra.mxu2 %v1045_v43  ;;  %v1033_v51 = vor.u32 %v1133_v48, %v1032_v46  ;;  %v1034_v54 = vld [vmem:[%s1556_s17 + $0x68] sm:$0xf0]  ;;  %v1148_v55 = vld [vmem:[%s1556_s17 + $0xe4] sm:$0xf] }
  0x65   : > { %v1097_v52 = vor.u32 %v1149_v50, %v1096_v49  ;;  %745 = vmatpush.bf16.msra.mxu3 %v1109_v47  ;;  %v1037_v56 = vor.u32 %v1132_v53, %v1034_v54  ;;  %v1098_v57 = vld [vmem:[%s1556_s17 + $0xe8] sm:$0xf0]  ;;  %v1024_v58 = vld [vmem:[%s1556_s17 + $0x50] sm:$0xf]  ;;  %v1131_v59 = vld [vmem:[%s1556_s17 + $0x54] sm:$0xf0] }
  0x66   : > { %v1101_v60 = vor.u32 %v1148_v55, %v1098_v57  ;;  %v1088_v61 = vld [vmem:[%s1556_s17 + $0xd0] sm:$0xf]  ;;  %v1147_v62 = vld [vmem:[%s1556_s17 + $0xd4] sm:$0xf0]  ;;  %v1130_v63 = vld [vmem:[%s1556_s17 + $0x54] sm:$0xf]  ;;  %v1025_v0 = vor.u32 %v1131_v59, %v1024_v58 }
  0x67   : > { %704 = vmatpush.bf16.msra.mxu0 %v1033_v51  ;;  %v1026_v1 = vld [vmem:[%s1556_s17 + $0x58] sm:$0xf0]  ;;  %v1146_v2 = vld [vmem:[%s1556_s17 + $0xd4] sm:$0xf]  ;;  %v1089_v4 = vor.u32 %v1147_v62, %v1088_v61  ;;  %v1016_v6 = vld [vmem:[%s1556_s17 + $0x40] sm:$0xf] }
  0x68   : > { %v1090_v3 = vld [vmem:[%s1556_s17 + $0xd8] sm:$0xf0]  ;;  %718 = vmatpush.bf16.msra.mxu1 %v1097_v52  ;;  %732 = vmatpush.bf16.msra.mxu2 %v1037_v56  ;;  %v1029_v5 = vor.u32 %v1130_v63, %v1026_v1  ;;  %v1129_v7 = vld [vmem:[%s1556_s17 + $0x44] sm:$0xf0]  ;;  %v1080_v8 = vld [vmem:[%s1556_s17 + $0xc0] sm:$0xf] }
  0x69   : > { %746 = vmatpush.bf16.msra.mxu3 %v1101_v60  ;;  %v1093_v9 = vor.u32 %v1146_v2, %v1090_v3  ;;  %v1145_v10 = vld [vmem:[%s1556_s17 + $0xc4] sm:$0xf0]  ;;  %v1128_v11 = vld [vmem:[%s1556_s17 + $0x44] sm:$0xf]  ;;  %v1018_v12 = vld [vmem:[%s1556_s17 + $0x48] sm:$0xf0]  ;;  %v1017_v15 = vor.u32 %v1129_v7, %v1016_v6 }
  0x6a   : > { %v1144_v13 = vld [vmem:[%s1556_s17 + $0xc4] sm:$0xf]  ;;  %v1082_v14 = vld [vmem:[%s1556_s17 + $0xc8] sm:$0xf0]  ;;  %v1081_v16 = vor.u32 %v1145_v10, %v1080_v8  ;;  %v1021_v17 = vor.u32 %v1128_v11, %v1018_v12  ;;  %v1008_v18 = vld [vmem:[%s1556_s17 + $0x30] sm:$0xf] }
  0x6b   : > { %705 = vmatpush.bf16.msra.mxu0 %v1025_v0  ;;  %v1127_v19 = vld [vmem:[%s1556_s17 + $0x34] sm:$0xf0]  ;;  %v1072_v20 = vld [vmem:[%s1556_s17 + $0xb0] sm:$0xf]  ;;  %v1085_v21 = vor.u32 %v1144_v13, %v1082_v14  ;;  %v1126_v23 = vld [vmem:[%s1556_s17 + $0x34] sm:$0xf] }
  0x6c   : > { %719 = vmatpush.bf16.msra.mxu1 %v1089_v4  ;;  %733 = vmatpush.bf16.msra.mxu2 %v1029_v5  ;;  %v1143_v22 = vld [vmem:[%s1556_s17 + $0xb4] sm:$0xf0]  ;;  %v1010_v24 = vld [vmem:[%s1556_s17 + $0x38] sm:$0xf0]  ;;  %v1142_v25 = vld [vmem:[%s1556_s17 + $0xb4] sm:$0xf]  ;;  %v1009_v27 = vor.u32 %v1127_v19, %v1008_v18 }
  0x6d   : > { %747 = vmatpush.bf16.msra.mxu3 %v1093_v9  ;;  %v1074_v26 = vld [vmem:[%s1556_s17 + $0xb8] sm:$0xf0]  ;;  %v1073_v28 = vor.u32 %v1143_v22, %v1072_v20  ;;  %v1013_v29 = vor.u32 %v1126_v23, %v1010_v24  ;;  %v1000_v30 = vld [vmem:[%s1556_s17 + $0x20] sm:$0xf]  ;;  %v1125_v31 = vld [vmem:[%s1556_s17 + $0x24] sm:$0xf0] }
  0x6e   : > { %v1064_v32 = vld [vmem:[%s1556_s17 + $0xa0] sm:$0xf]  ;;  %v1077_v33 = vor.u32 %v1142_v25, %v1074_v26  ;;  %v1141_v34 = vld [vmem:[%s1556_s17 + $0xa4] sm:$0xf0]  ;;  %v1124_v35 = vld [vmem:[%s1556_s17 + $0x24] sm:$0xf]  ;;  %v1001_v39 = vor.u32 %v1125_v31, %v1000_v30 }
  0x6f   : > { %706 = vmatpush.bf16.msra.mxu0 %v1017_v15  ;;  %v1002_v36 = vld [vmem:[%s1556_s17 + $0x28] sm:$0xf0]  ;;  %v1140_v37 = vld [vmem:[%s1556_s17 + $0xa4] sm:$0xf]  ;;  %v1065_v40 = vor.u32 %v1141_v34, %v1064_v32  ;;  %v992_v42 = vld [vmem:[%s1556_s17 + $0x10] sm:$0xf] }
  0x70   : > { %720 = vmatpush.bf16.msra.mxu1 %v1081_v16  ;;  %734 = vmatpush.bf16.msra.mxu2 %v1021_v17  ;;  %v1066_v38 = vld [vmem:[%s1556_s17 + $0xa8] sm:$0xf0]  ;;  %v1005_v41 = vor.u32 %v1124_v35, %v1002_v36  ;;  %v1123_v43 = vld [vmem:[%s1556_s17 + $0x14] sm:$0xf0]  ;;  %v1056_v44 = vld [vmem:[%s1556_s17 + $0x90] sm:$0xf] }
  0x71   : > { %748 = vmatpush.bf16.msra.mxu3 %v1085_v21  ;;  %v1069_v45 = vor.u32 %v1140_v37, %v1066_v38  ;;  %v1139_v46 = vld [vmem:[%s1556_s17 + $0x94] sm:$0xf0]  ;;  %v1122_v47 = vld [vmem:[%s1556_s17 + $0x14] sm:$0xf]  ;;  %v994_v48 = vld [vmem:[%s1556_s17 + $0x18] sm:$0xf0]  ;;  %v993_v51 = vor.u32 %v1123_v43, %v992_v42 }
  0x72   : > { %v1138_v49 = vld [vmem:[%s1556_s17 + $0x94] sm:$0xf]  ;;  %v1058_v50 = vld [vmem:[%s1556_s17 + $0x98] sm:$0xf0]  ;;  %v1057_v52 = vor.u32 %v1139_v46, %v1056_v44  ;;  %v997_v53 = vor.u32 %v1122_v47, %v994_v48  ;;  %v984_v54 = vld [vmem:[%s1556_s17] sm:$0xf] }
  0x73   : > { %707 = vmatpush.bf16.msra.mxu0 %v1009_v27  ;;  %v1121_v55 = vld [vmem:[%s1556_s17 + $0x4] sm:$0xf0]  ;;  %v1048_v56 = vld [vmem:[%s1556_s17 + $0x80] sm:$0xf]  ;;  %v1061_v57 = vor.u32 %v1138_v49, %v1058_v50  ;;  %v1120_v59 = vld [vmem:[%s1556_s17 + $0x4] sm:$0xf] }
  0x74   : > { %721 = vmatpush.bf16.msra.mxu1 %v1073_v28  ;;  %735 = vmatpush.bf16.msra.mxu2 %v1013_v29  ;;  %v1137_v58 = vld [vmem:[%s1556_s17 + $0x84] sm:$0xf0]  ;;  %v986_v60 = vld [vmem:[%s1556_s17 + $0x8] sm:$0xf0]  ;;  %v1136_v61 = vld [vmem:[%s1556_s17 + $0x84] sm:$0xf]  ;;  %v985_v63 = vor.u32 %v1121_v55, %v984_v54 }
  0x75   : > { %749 = vmatpush.bf16.msra.mxu3 %v1077_v33  ;;  %v1050_v62 = vld [vmem:[%s1556_s17 + $0x88] sm:$0xf0]  ;;  %v976_v0 = vld [vmem:[%s1554_s19] sm:$0xf]  ;;  %v1119_v1 = vld [vmem:[%s1554_s19 + $0x4] sm:$0xf0]  ;;  %v1049_v2 = vor.u32 %v1137_v58, %v1048_v56  ;;  %v989_v3 = vor.u32 %v1120_v59, %v986_v60 }
  0x76   : > { %v1118_v4 = vld [vmem:[%s1554_s19 + $0x4] sm:$0xf]  ;;  %v978_v5 = vld [vmem:[%s1554_s19 + $0x8] sm:$0xf0]  ;;  %v1053_v6 = vor.u32 %v1136_v61, %v1050_v62  ;;  %v977_v7 = vor.u32 %v1119_v1, %v976_v0  ;;  %p1110_p5 = scmp.ne.s32.totalorder %s1312_s21, 17 }
  0x77   : > { %708 = vmatpush.bf16.msra.mxu0 %v1001_v39  ;;  %v981_v8 = vor.u32 %v1118_v4, %v978_v5  ;;  %v495_v10 = vld [vmem:[%s1558_s15] sm:$0xff]  ;;  %v496_v15 = vld [vmem:[%s1558_s15 + $0x8] sm:$0xff]  ;;  %v497_v19 = vld [vmem:[%s1558_s15 + $0x10] sm:$0xff] }
  0x78   : > { %722 = vmatpush.bf16.msra.mxu1 %v1065_v40  ;;  %736 = vmatpush.bf16.msra.mxu2 %v1005_v41  ;;  %v498_v25 = vld [vmem:[%s1558_s15 + $0x18] sm:$0xff] }
  0x79   : > { %750 = vmatpush.bf16.msra.mxu3 %v1069_v45 }
  0x7b   : > { %709 = vmatpush.bf16.msra.mxu0 %v993_v51 }
  0x7c   : > { %723 = vmatpush.bf16.msra.mxu1 %v1057_v52  ;;  %737 = vmatpush.bf16.msra.mxu2 %v997_v53 }
  0x7d   : > { %751 = vmatpush.bf16.msra.mxu3 %v1061_v57 }
  0x7f   : > { %710 = vmatpush.bf16.msra.mxu0 %v985_v63 }
  0x80   : > { %724 = vmatpush.bf16.msra.mxu1 %v1049_v2  ;;  %738 = vmatpush.bf16.msra.mxu2 %v989_v3 }
  0x81   : > { %752 = vmatpush.bf16.msra.mxu3 %v1053_v6 }
  0x82   : > { %711 = vmatmul.bf16.vlgmr.msra.gmra.mxu0 %v977_v7 }
  0x83   : > { %725 = vmatmul.bf16.vlgmr.msra.gmra.mxu1 %v981_v8  ;;  %739 = vmatmul.bf16.vlgmr.msra.gmra.mxu2 %v977_v7 }
  0x84   : > { %753 = vmatmul.bf16.vlgmr.msra.gmra.mxu3 %v981_v8 }
  0xff   : > { %v712_v9 = vpop.f32.mrf.mxu0 }
 0x100   : > { %v726_v11 = vpop.f32.mrf.mxu1 }
 0x101   : > { %v727_v12 = vadd.f32 %v726_v11, %v712_v9 }
 0x103   : > { %v759_v13 = vadd.f32 %v727_v12, %v495_v10 }
 0x105   : > { %763 = vst [vmem:[%s1558_s15] sm:$0xff] %v759_v13 }
 0x106   : > { %v740_v14 = vpop.f32.mrf.mxu2 }
 0x107   : > { %v754_v16 = vpop.f32.mrf.mxu3  ;;  %v714_v17 = vpop.f32.mrf.mxu0 }
 0x108   : > { %v755_v18 = vadd.f32 %v754_v16, %v740_v14  ;;  %v728_v20 = vpop.f32.mrf.mxu1 }
 0x109   : > { %v729_v21 = vadd.f32 %v728_v20, %v714_v17 }
 0x10a   : > { %v760_v22 = vadd.f32 %v755_v18, %v496_v15 }
 0x10b   : > { %v761_v23 = vadd.f32 %v729_v21, %v497_v19 }
 0x10c   : > { %764 = vst [vmem:[%s1558_s15 + $0x8] sm:$0xff] %v760_v22 }
 0x10d   : > { %765 = vst [vmem:[%s1558_s15 + $0x10] sm:$0xff] %v761_v23 }
 0x10e   : > { %v742_v24 = vpop.f32.mrf.mxu2 }
 0x10f   : > { %v756_v26 = vpop.f32.mrf.mxu3 }
 0x110   : > { %v757_v27 = vadd.f32 %v756_v26, %v742_v24  ;;  %770 = sbr.rel (%p1110_p5) target bundleno = 291 (0x123), region = 120 }
 0x112   : > { %v762_v28 = vadd.f32 %v757_v27, %v498_v25 }
 0x114   : > { %766 = vst [vmem:[%s1558_s15 + $0x18] sm:$0xff] %v762_v28 }
 0x115   : > { %v771_v29 = vld [vmem:[%s1558_s15] sm:$0xff]  ;;  %v772_v34 = vld [vmem:[%s1558_s15 + $0x8] sm:$0xff]  ;;  %v773_v37 = vld [vmem:[%s1558_s15 + $0x10] sm:$0xff] }
 0x116   : > { %v775_v30 = vld [vmem:[%s478_s6] sm:$0x3] }
 0x117   : > { %v785_v31 = vld [vmem:[%s483_s28] sm:$0x3]  ;;  %v777_v32 = vperm.slane %v775_v30, 0  ;;  %v778_v35 = vperm.slane %v775_v30, 1 }
 0x118   : > { %v787_v33 = vperm.slane %v785_v31, 0  ;;  %v788_v36 = vperm.slane %v785_v31, 1 }
 0x119   : > { %v781_v39 = vmul.f32 %v777_v32, %v771_v29  ;;  %v782_v40 = vmul.f32 %v778_v35, %v772_v34  ;;  %v783_v41 = vmul.f32 %v777_v32, %v773_v37 }
 0x11b   : > { %v774_v38 = vld [vmem:[%s1558_s15 + $0x18] sm:$0xff]  ;;  %v791_v43 = vadd.f32 %v787_v33, %v781_v39  ;;  %v792_v44 = vadd.f32 %v788_v36, %v782_v40  ;;  %v793_v45 = vadd.f32 %v787_v33, %v783_v41 }
 0x11c   : > { %v784_v42 = vmul.f32 %v778_v35, %v774_v38 }
 0x11d   : > { %v795_v47 = vmax.f32 %v791_v43, 0.0  ;;  %v796_v48 = vmax.f32 %v792_v44, 0.0  ;;  %v797_v49 = vmax.f32 %v793_v45, 0.0 }
 0x11e   : > { %v794_v46 = vadd.f32 %v788_v36, %v784_v42 }
 0x11f   : > { %799 = vst [vmem:[%s1558_s15] sm:$0xff] %v795_v47 }
 0x120   : > { %v798_v50 = vmax.f32 %v794_v46, 0.0  ;;  %800 = vst [vmem:[%s1558_s15 + $0x8] sm:$0xff] %v796_v48 }
 0x121   : > { %801 = vst [vmem:[%s1558_s15 + $0x10] sm:$0xff] %v797_v49 }
 0x122   : > { %802 = vst [vmem:[%s1558_s15 + $0x18] sm:$0xff] %v798_v50 }
 0x123 PF: > { %809 = sbr.rel (!%p1450_p12) target bundleno = 299 (0x12b), region = 124  ;;  %s1152_s21 = sshll.u32 (%p1450_p12), %s1316_s22, 4 }
 0x124   : > { %s815_s26 = scalar_lea.vmem (%p1450_p12), %s1707_s4, %s1152_s21 }
 0x126   : > { %v828_v51 = vld [vmem:[%s1558_s15] sm:$0xff] (%p1450_p12) }
 0x127   : > { %v830_v52 = vld [vmem:[%s1558_s15 + $0x8] sm:$0xff] (%p1450_p12)  ;;  %829 = vst [vmem:[%s815_s26] sm:$0xff] (%p1450_p12), %v828_v51 }
 0x128   : > { %v832_v53 = vld [vmem:[%s1558_s15 + $0x10] sm:$0xff]  ;;  %831 = vst [vmem:[%s815_s26 + $0x8] sm:$0xff] %v830_v52 }
 0x129   : > { %v834_v54 = vld [vmem:[%s1558_s15 + $0x18] sm:$0xff]  ;;  %833 = vst [vmem:[%s815_s26 + $0x20] sm:$0xff] %v832_v53 }
 0x12a   : > { %835 = vst [vmem:[%s815_s26 + $0x28] sm:$0xff] %v834_v54 }
 0x12b PF: > { %s14_s25 = sadd.s32 1, %s1328_s25   ;;  %s1718_s19 = sld [smem:[#allocation5_spill]] }
 0x12c   : > { %p11_p6 = scmp.ge.s32.totalorder %s14_s25, 38   ;;  %s1719_s20 = sld [smem:[#allocation8_spill]] }
 0x12d   : > { %s1720_s14 = sld [smem:[#allocation6_spill]]  ;;  %s1722_s15 = smov %s1292_s16 }
 0x12e   : > { %s1721_s5 = sld [smem:[#allocation7_spill]]  ;;  %s1723_s16 = smov %s1448_s13 }
 0x12f   : > { %s1724_s17 = smov %s1300_s18  ;;  %s1725_s18 = smov %s1445_s12 }
 0x130   : > { %s1726_s21 = smov %s1320_s23  ;;  %s1727_s22 = smov %s1324_s24 }
 0x131   :  { %13 = sbr.rel (!%p11_p6) target bundleno = 6 (0x6), region = 192 }
 0x133   : > { %s1728_s23 = smov %s1720_s14 }
 0x134   : > { %s1729_s24 = smov %s1721_s5 }

// kernel: multimodal_forward.40
= control target key start
LH: loop header
LB: loop body
LE: loop exit
PB: predicated region body
PF: predicated region fallthrough
CT: control target
= control target key end

     0   :  { %s1475_s18 = smov 0   ;;  %s1477_s19 = smov 0   ;;  %s1845_s0 = inlined_call_operand.vmem [shape: bf16[16,4608], index: 0, kind: input, shape index: {}]   ;;  %s1846_s1 = inlined_call_operand.vmem [shape: bf16[4608,512], index: 1, kind: input, shape index: {}]   ;;  %s1847_s2 = inlined_call_operand.vmem [shape: f32[1,512], index: 2, kind: input, shape index: {}]   ;;  %s1848_s3 = inlined_call_operand.vmem [shape: f32[1,512], index: 3, kind: input, shape index: {}]   ;;  %s1849_s4 = inlined_call_operand.vmem [shape: f32[16,512], index: 4, kind: input, shape index: {}]   ;;  %s1850_s5 = inlined_call_operand.vmem [shape: f32[16,512], index: 5, kind: output, shape index: {}]  }
   0x1   :  { %s1479_s20 = smov 0   ;;  %s1481_s21 = smov 0  }
   0x2   :  { %s1483_s22 = smov 0   ;;  %s1485_s23 = smov 0  }
   0x3   :  { %s1487_s24 = smov 0   ;;  %s1489_s25 = smov 0  }
   0x4   :  { %s1491_s26 = smov 0   ;;  %s1493_s27 = smov 0  }
   0x5   :  { %s1495_s28 = smov 0  }
   0x6 LB: > { %1854 = sst [smem:[#allocation6_spill]] %s1422_s23  ;;  %s1064_s29 = sadd.s32 4294967295, %s1442_s28   ;;  %s1442_s28 = sphi %s1495_s28, %s15_s28   ;;  %s1438_s27 = sphi %s1493_s27, %s1877_s27   ;;  %s1434_s26 = sphi %s1491_s26, %s1876_s26   ;;  %s1430_s25 = sphi %s1489_s25, %s1875_s25   ;;  %s1426_s24 = sphi %s1487_s24, %s1874_s24   ;;  %s1422_s23 = sphi %s1485_s23, %s1867_s23   ;;  %s1418_s22 = sphi %s1483_s22, %s1866_s22   ;;  %s1414_s21 = sphi %s1481_s21, %s1873_s21   ;;  %s1410_s20 = sphi %s1479_s20, %s1872_s20   ;;  %s1406_s19 = sphi %s1477_s19, %s1871_s19   ;;  %s1402_s18 = sphi %s1475_s18, %s1870_s18  }
   0x7   : > { %s27_s30 = sadd.s32 1, %s1434_s26  ;;  %s30_s6 = sadd.s32 1, %s1438_s27 }
   0x8   : > { %p28_p0 = scmp.ge.s32.totalorder %s27_s30, 18  ;;  %s43_s7 = sadd.s32 1, %s1422_s23 }
   0x9   : > { %p50_p1 = scmp.ne.s32.totalorder %s1422_s23, %s1418_s22  ;;  %p51_p2 = scmp.eq.s32.totalorder %s1442_s28, 0 }
   0xa   : > { %s1879_s30 = smov (%p28_p0, %s27_s30), 0  ;;  %s1881_s6 = smov (!%p28_p0, %s30_s6), %s1438_s27 }
   0xb   : > { %1855 = sst [smem:[#allocation7_spill]] %s1879_s30  ;;  %s39_s8 = ssub.s32 %s1434_s26, %s1879_s30 }
   0xc   : > { %p32_p3 = scmp.ge.s32.totalorder %s1881_s6, 2  ;;  %p41_p4 = scmp.eq.s32.totalorder %s39_s8, 0 }
   0xd   : > { %p1544_p5 = por %p51_p2, %p50_p1  ;;  %s71_s10 = sadd.s32 1, %s1414_s21 }
   0xe   : > { %s1883_s6 = smov (%p32_p3, %s1881_s6), 0  ;;  %p78_p6 = scmp.ne.s32.totalorder %s1414_s21, %s1410_s20 }
   0xf   : > { %1857 = sst [smem:[#allocation8_spill]] %s1883_s6  ;;  %s67_s12 = ssub.s32 %s1438_s27, %s1883_s6 }
  0x10   : > { %s1552_s11 = scalar_select %p41_p4, %s1422_s23, %s43_s7  }
  0x11   : > { %s68_s13 = sor.u32 %s67_s12, %s39_s8  ;;  %p149_p7 = scmp.eq.s32.totalorder %s67_s12, 0 }
  0x12   : > { %1858 = sst [smem:[#allocation9_spill]] %s1552_s11  ;;  %p69_p8 = scmp.eq.s32.totalorder %s68_s13, 0 }
  0x13   : > { %p1560_p9 = por %p78_p6, %p51_p2  ;;  %s151_s15 = sadd.s32 1, %s1406_s19 }
  0x14   : > { %p158_p10 = scmp.ne.s32.totalorder %s1406_s19, %s1402_s18  ;;  %p190_p12 = scmp.eq.s32.totalorder %s1064_s29, 35 }
  0x15   : > { %s1568_s16 = scalar_select %p69_p8, %s1414_s21, %s71_s10  }
  0x16   : > { %s1571_s17 = scalar_select %p149_p7, %s1406_s19, %s151_s15  }
  0x17   : > { %1860 = sst [smem:[#allocation10_spill]] %s1568_s16  ;;  %p1575_p11 = por %p158_p10, %p51_p2 }
  0x18   : > { %1861 = sst [smem:[#allocation11_spill]] %s1571_s17  ;;  %p1579_p13 = por %p190_p12, %p158_p10 }
  0x19   : > { %p1067_p0 = scmp.ge.s32.totalorder %s1442_s28, 36 }
  0x1b   : > { %212 = sbr.rel (%p1067_p0) target bundleno = 85 (0x55), region = 16 }
  0x20   : > { %215 = sbr.rel (!%p1544_p5) target bundleno = 38 (0x26), region = 20  ;;  %s217_s10 = sand.u32 (%p1544_p5), 1, %s1422_s23  }
  0x21   : > { %s1229_s12 = sshll.u32 (%p1544_p5), %s1434_s26, 3  ;;  %s1068_s13 = sshll.u32 (%p1544_p5), %s217_s10, 4 }
  0x22   : > { %s225_s30 = scalar_lea.vmem (%p1544_p5), %s1845_s0, %s1229_s12  ;;  %s219_s29 = scalar_lea.vmem (%p1544_p5), [#allocation2], %s1068_s13 }
  0x23   : > { %v256_v0 = vld [vmem:[%s225_s30] sm:$0xff] (%p1544_p5)  ;;  %v258_v1 = vld [vmem:[%s225_s30 + $0x90] sm:$0xff] (%p1544_p5) }
  0x24   : > { %257 = vst [vmem:[%s219_s29] sm:$0xff] (%p1544_p5), %v256_v0 }
  0x25   : > { %259 = vst [vmem:[%s219_s29 + $0x8] sm:$0xff] %v258_v1 }
  0x26 PF: > { %265 = sbr.rel (!%p1560_p9) target bundleno = 77 (0x4d), region = 58  ;;  %s267_s9 = sand.u32 (%p1560_p9), 1, %s1414_s21  }
  0x27   : > { %s1073_s11 = sshll.u32 (%p1560_p9), %s1438_s27, 1  ;;  %s1071_s23 = sshll.u32 (%p1560_p9), %s267_s9, 8 }
  0x28   : > { %s1230_s10 = sshll.u32 (%p1560_p9), %s1434_s26, 7 }
  0x29   : > { %s273_s16 = sadd.s32 (%p1560_p9), %s1230_s10, %s1073_s11  ;;  %s1604_s11 = scalar_lea.vmem (%p1560_p9), [#allocation3], %s1071_s23 }
  0x2a   : > { %s1075_s17 = sshll.u32 (%p1560_p9), %s273_s16, 2 }
  0x2b   : > { %s1599_s30 = scalar_lea.vmem %s1846_s1, %s1075_s17 }
  0x2c   : > { %v366_v2 = vld [vmem:[%s1599_s30] sm:$0xff]  ;;  %v368_v3 = vld [vmem:[%s1599_s30 + $0x10] sm:$0xff] }
  0x2d   : > { %v370_v4 = vld [vmem:[%s1599_s30 + $0x20] sm:$0xff]  ;;  %367 = vst [vmem:[%s1604_s11] sm:$0xff] %v366_v2  ;;  %v372_v5 = vld [vmem:[%s1599_s30 + $0x30] sm:$0xff] }
  0x2e   : > { %369 = vst [vmem:[%s1604_s11 + $0x8] sm:$0xff] %v368_v3  ;;  %v374_v6 = vld [vmem:[%s1599_s30 + $0x40] sm:$0xff]  ;;  %v376_v7 = vld [vmem:[%s1599_s30 + $0x50] sm:$0xff] }
  0x2f   : > { %371 = vst [vmem:[%s1604_s11 + $0x10] sm:$0xff] %v370_v4  ;;  %v378_v8 = vld [vmem:[%s1599_s30 + $0x60] sm:$0xff]  ;;  %v380_v9 = vld [vmem:[%s1599_s30 + $0x70] sm:$0xff] }
  0x30   : > { %373 = vst [vmem:[%s1604_s11 + $0x18] sm:$0xff] %v372_v5  ;;  %v382_v10 = vld [vmem:[%s1599_s30 + $0x80] sm:$0xff]  ;;  %v384_v11 = vld [vmem:[%s1599_s30 + $0x90] sm:$0xff] }
  0x31   : > { %375 = vst [vmem:[%s1604_s11 + $0x20] sm:$0xff] %v374_v6  ;;  %v386_v12 = vld [vmem:[%s1599_s30 + $0xa0] sm:$0xff]  ;;  %v388_v13 = vld [vmem:[%s1599_s30 + $0xb0] sm:$0xff] }
  0x32   : > { %377 = vst [vmem:[%s1604_s11 + $0x28] sm:$0xff] %v376_v7  ;;  %v390_v14 = vld [vmem:[%s1599_s30 + $0xc0] sm:$0xff]  ;;  %v392_v15 = vld [vmem:[%s1599_s30 + $0xd0] sm:$0xff] }
  0x33   : > { %379 = vst [vmem:[%s1604_s11 + $0x30] sm:$0xff] %v378_v8  ;;  %v394_v16 = vld [vmem:[%s1599_s30 + $0xe0] sm:$0xff]  ;;  %v396_v17 = vld [vmem:[%s1599_s30 + $0xf0] sm:$0xff] }
  0x34   : > { %381 = vst [vmem:[%s1604_s11 + $0x38] sm:$0xff] %v380_v9  ;;  %v398_v18 = vld [vmem:[%s1599_s30 + $0x100] sm:$0xff]  ;;  %v400_v19 = vld [vmem:[%s1599_s30 + $0x110] sm:$0xff] }
  0x35   : > { %383 = vst [vmem:[%s1604_s11 + $0x40] sm:$0xff] %v382_v10  ;;  %v402_v20 = vld [vmem:[%s1599_s30 + $0x120] sm:$0xff]  ;;  %v404_v21 = vld [vmem:[%s1599_s30 + $0x130] sm:$0xff] }
  0x36   : > { %385 = vst [vmem:[%s1604_s11 + $0x48] sm:$0xff] %v384_v11  ;;  %v406_v22 = vld [vmem:[%s1599_s30 + $0x140] sm:$0xff]  ;;  %v408_v23 = vld [vmem:[%s1599_s30 + $0x150] sm:$0xff] }
  0x37   : > { %387 = vst [vmem:[%s1604_s11 + $0x50] sm:$0xff] %v386_v12  ;;  %v410_v24 = vld [vmem:[%s1599_s30 + $0x160] sm:$0xff]  ;;  %v412_v25 = vld [vmem:[%s1599_s30 + $0x170] sm:$0xff] }
  0x38   : > { %389 = vst [vmem:[%s1604_s11 + $0x58] sm:$0xff] %v388_v13  ;;  %v414_v26 = vld [vmem:[%s1599_s30 + $0x180] sm:$0xff]  ;;  %v416_v27 = vld [vmem:[%s1599_s30 + $0x190] sm:$0xff] }
  0x39   : > { %391 = vst [vmem:[%s1604_s11 + $0x60] sm:$0xff] %v390_v14  ;;  %v418_v28 = vld [vmem:[%s1599_s30 + $0x1a0] sm:$0xff]  ;;  %v420_v29 = vld [vmem:[%s1599_s30 + $0x1b0] sm:$0xff] }
  0x3a   : > { %393 = vst [vmem:[%s1604_s11 + $0x68] sm:$0xff] %v392_v15  ;;  %v422_v30 = vld [vmem:[%s1599_s30 + $0x1c0] sm:$0xff]  ;;  %v424_v31 = vld [vmem:[%s1599_s30 + $0x1d0] sm:$0xff] }
  0x3b   : > { %395 = vst [vmem:[%s1604_s11 + $0x70] sm:$0xff] %v394_v16  ;;  %v426_v32 = vld [vmem:[%s1599_s30 + $0x1e0] sm:$0xff]  ;;  %v428_v33 = vld [vmem:[%s1599_s30 + $0x1f0] sm:$0xff] }
  0x3c   : > { %397 = vst [vmem:[%s1604_s11 + $0x78] sm:$0xff] %v396_v17 }
  0x3d   : > { %399 = vst [vmem:[%s1604_s11 + $0x80] sm:$0xff] %v398_v18 }
  0x3e   : > { %401 = vst [vmem:[%s1604_s11 + $0x88] sm:$0xff] %v400_v19 }
  0x3f   : > { %403 = vst [vmem:[%s1604_s11 + $0x90] sm:$0xff] %v402_v20 }
  0x40   : > { %405 = vst [vmem:[%s1604_s11 + $0x98] sm:$0xff] %v404_v21 }
  0x41   : > { %407 = vst [vmem:[%s1604_s11 + $0xa0] sm:$0xff] %v406_v22 }
  0x42   : > { %409 = vst [vmem:[%s1604_s11 + $0xa8] sm:$0xff] %v408_v23 }
  0x43   : > { %411 = vst [vmem:[%s1604_s11 + $0xb0] sm:$0xff] %v410_v24 }
  0x44   : > { %413 = vst [vmem:[%s1604_s11 + $0xb8] sm:$0xff] %v412_v25 }
  0x45   : > { %415 = vst [vmem:[%s1604_s11 + $0xc0] sm:$0xff] %v414_v26 }
  0x46   : > { %417 = vst [vmem:[%s1604_s11 + $0xc8] sm:$0xff] %v416_v27 }
  0x47   : > { %419 = vst [vmem:[%s1604_s11 + $0xd0] sm:$0xff] %v418_v28 }
  0x48   : > { %421 = vst [vmem:[%s1604_s11 + $0xd8] sm:$0xff] %v420_v29 }
  0x49   : > { %423 = vst [vmem:[%s1604_s11 + $0xe0] sm:$0xff] %v422_v30 }
  0x4a   : > { %425 = vst [vmem:[%s1604_s11 + $0xe8] sm:$0xff] %v424_v31 }
  0x4b   : > { %427 = vst [vmem:[%s1604_s11 + $0xf0] sm:$0xff] %v426_v32 }
  0x4c   : > { %429 = vst [vmem:[%s1604_s11 + $0xf8] sm:$0xff] %v428_v33 }
  0x4d PF: > { %451 = sbr.rel (!%p1575_p11) target bundleno = 85 (0x55), region = 104  ;;  %s453_s23 = sand.u32 (%p1575_p11), 1, %s1406_s19  }
  0x4e   : > { %s1231_s14 = sshll.u32 (%p1575_p11), %s1438_s27, 4  ;;  %s1076_s16 = sshll.u32 (%p1575_p11), %s453_s23, 5 }
  0x4f   : > { %s461_s15 = scalar_lea.vmem (%p1575_p11), %s1849_s4, %s1231_s14  ;;  %s455_s29 = scalar_lea.vmem (%p1575_p11), [#allocation4], %s1076_s16 }
  0x50   : > { %v474_v34 = vld [vmem:[%s461_s15] sm:$0xff] (%p1575_p11)  ;;  %v476_v35 = vld [vmem:[%s461_s15 + $0x8] sm:$0xff] (%p1575_p11) }
  0x51   : > { %v478_v36 = vld [vmem:[%s461_s15 + $0x20] sm:$0xff] (%p1575_p11)  ;;  %475 = vst [vmem:[%s455_s29] sm:$0xff] (%p1575_p11), %v474_v34  ;;  %v480_v37 = vld [vmem:[%s461_s15 + $0x28] sm:$0xff] (%p1575_p11) }
  0x52   : > { %477 = vst [vmem:[%s455_s29 + $0x8] sm:$0xff] %v476_v35 }
  0x53   : > { %479 = vst [vmem:[%s455_s29 + $0x10] sm:$0xff] %v478_v36 }
  0x54   : > { %481 = vst [vmem:[%s455_s29 + $0x18] sm:$0xff] %v480_v37 }
  0x55 PF: > { %p1079_p1 = scmp.ge.s32.totalorder %s1442_s28, 1  ;;  %p486_p2 = scmp.lt.s32.totalorder %s1442_s28, 37 }
  0x57   : > { %p487_p3 = pnand %p1079_p1, %p486_p2 }
  0x58   : > { %s493_s7 = sand.u32 (!%p487_p3), 1, %s1418_s22   ;;  %s500_s9 = sand.u32 (!%p487_p3), 1, %s1410_s20  }
  0x59   : > { %490 = sbr.rel (%p487_p3) target bundleno = 313 (0x139), region = 127  ;;  %s1080_s10 = sshll.u32 (!%p487_p3), %s493_s7, 4 }
  0x5a   : > { %s1081_s6 = sshll.u32 (!%p487_p3), %s500_s9, 8  ;;  %s507_s12 = sand.u32 (!%p487_p3), 1, %s1402_s18  }
  0x5b   : > { %s1084_s30 = sshll.u32 (!%p487_p3), %s1430_s25, 1  ;;  %s1082_s11 = sshll.u32 (!%p487_p3), %s507_s12, 5 }
  0x5c   : > { %p554_p4 = scmp.lt.s32.totalorder (!%p487_p3), %s1084_s30, 3  ;;  %s1690_s22 = scalar_lea.vmem (!%p487_p3), [#allocation2], %s1080_s10 }
  0x5d   : > { %s1692_s20 = scalar_lea.vmem (!%p487_p3), [#allocation3], %s1081_s6  ;;  %s1694_s18 = scalar_lea.vmem (!%p487_p3), [#allocation4], %s1082_s11 }
  0x5e   : > { %s1885_s30 = smov (!%p554_p4, %s1084_s30), 3  ;;  %s1696_s29 = scalar_lea.vmem [#allocation5], %s1082_s11 }
  0x5f   : > { %s556_s16 = scalar_lea.vmem %s1847_s2, %s1885_s30  ;;  %s561_s15 = scalar_lea.vmem %s1848_s3, %s1885_s30 }
  0x60   : > { %p1086_p5 = scmp.ne.s32.totalorder %s1426_s24, 0 }
  0x62   : > { %570 = sbr.rel (%p1086_p5) target bundleno = 108 (0x6c), region = 143 }
  0x67   : > { %v1444_v38 = vmov 0.0  }
  0x68   : > { %571 = vst [vmem:[%s1696_s29] sm:$0xff] %v1444_v38 }
  0x69   : > { %572 = vst [vmem:[%s1696_s29 + $0x8] sm:$0xff] %v1444_v38 }
  0x6a   : > { %573 = vst [vmem:[%s1696_s29 + $0x10] sm:$0xff] %v1444_v38 }
  0x6b   : > { %574 = vst [vmem:[%s1696_s29 + $0x18] sm:$0xff] %v1444_v38 }
  0x6c PF: > { %v1153_v39 = vld [vmem:[%s1692_s20 + $0x70] sm:$0xf]  ;;  %v1249_v40 = vld [vmem:[%s1692_s20 + $0x74] sm:$0xf0]  ;;  %v1248_v44 = vld [vmem:[%s1692_s20 + $0x74] sm:$0xf] }
  0x6d   : > { %v1217_v41 = vld [vmem:[%s1692_s20 + $0xf0] sm:$0xf]  ;;  %v1154_v42 = vor.u32 %v1249_v40, %v1153_v39  ;;  %v1265_v43 = vld [vmem:[%s1692_s20 + $0xf4] sm:$0xf0]  ;;  %v1155_v45 = vld [vmem:[%s1692_s20 + $0x78] sm:$0xf0] }
  0x6e   : > { %v1218_v46 = vor.u32 %v1265_v43, %v1217_v41  ;;  %v1158_v47 = vor.u32 %v1248_v44, %v1155_v45  ;;  %v1264_v48 = vld [vmem:[%s1692_s20 + $0xf4] sm:$0xf]  ;;  %v1219_v49 = vld [vmem:[%s1692_s20 + $0xf8] sm:$0xf0]  ;;  %v1145_v50 = vld [vmem:[%s1692_s20 + $0x60] sm:$0xf] }
  0x6f   : > { %783 = vmatpush.bf16.msra.mxu0 %v1154_v42  ;;  %v1222_v51 = vor.u32 %v1264_v48, %v1219_v49  ;;  %v1247_v52 = vld [vmem:[%s1692_s20 + $0x64] sm:$0xf0]  ;;  %v1209_v53 = vld [vmem:[%s1692_s20 + $0xe0] sm:$0xf]  ;;  %v1246_v57 = vld [vmem:[%s1692_s20 + $0x64] sm:$0xf] }
  0x70   : > { %v1263_v54 = vld [vmem:[%s1692_s20 + $0xe4] sm:$0xf0]  ;;  %797 = vmatpush.bf16.msra.mxu1 %v1218_v46  ;;  %811 = vmatpush.bf16.msra.mxu2 %v1158_v47  ;;  %v1146_v55 = vor.u32 %v1247_v52, %v1145_v50  ;;  %v1147_v58 = vld [vmem:[%s1692_s20 + $0x68] sm:$0xf0]  ;;  %v1262_v59 = vld [vmem:[%s1692_s20 + $0xe4] sm:$0xf] }
  0x71   : > { %v1210_v56 = vor.u32 %v1263_v54, %v1209_v53  ;;  %825 = vmatpush.bf16.msra.mxu3 %v1222_v51  ;;  %v1150_v60 = vor.u32 %v1246_v57, %v1147_v58  ;;  %v1211_v61 = vld [vmem:[%s1692_s20 + $0xe8] sm:$0xf0]  ;;  %v1137_v62 = vld [vmem:[%s1692_s20 + $0x50] sm:$0xf]  ;;  %v1245_v63 = vld [vmem:[%s1692_s20 + $0x54] sm:$0xf0] }
  0x72   : > { %v1214_v0 = vor.u32 %v1262_v59, %v1211_v61  ;;  %v1201_v1 = vld [vmem:[%s1692_s20 + $0xd0] sm:$0xf]  ;;  %v1261_v2 = vld [vmem:[%s1692_s20 + $0xd4] sm:$0xf0]  ;;  %v1244_v3 = vld [vmem:[%s1692_s20 + $0x54] sm:$0xf]  ;;  %v1138_v4 = vor.u32 %v1245_v63, %v1137_v62 }
  0x73   : > { %784 = vmatpush.bf16.msra.mxu0 %v1146_v55  ;;  %v1139_v5 = vld [vmem:[%s1692_s20 + $0x58] sm:$0xf0]  ;;  %v1260_v6 = vld [vmem:[%s1692_s20 + $0xd4] sm:$0xf]  ;;  %v1202_v8 = vor.u32 %v1261_v2, %v1201_v1  ;;  %v1129_v10 = vld [vmem:[%s1692_s20 + $0x40] sm:$0xf] }
  0x74   : > { %v1203_v7 = vld [vmem:[%s1692_s20 + $0xd8] sm:$0xf0]  ;;  %798 = vmatpush.bf16.msra.mxu1 %v1210_v56  ;;  %812 = vmatpush.bf16.msra.mxu2 %v1150_v60  ;;  %v1142_v9 = vor.u32 %v1244_v3, %v1139_v5  ;;  %v1243_v11 = vld [vmem:[%s1692_s20 + $0x44] sm:$0xf0]  ;;  %v1193_v12 = vld [vmem:[%s1692_s20 + $0xc0] sm:$0xf] }
  0x75   : > { %826 = vmatpush.bf16.msra.mxu3 %v1214_v0  ;;  %v1206_v13 = vor.u32 %v1260_v6, %v1203_v7  ;;  %v1259_v14 = vld [vmem:[%s1692_s20 + $0xc4] sm:$0xf0]  ;;  %v1242_v15 = vld [vmem:[%s1692_s20 + $0x44] sm:$0xf]  ;;  %v1131_v16 = vld [vmem:[%s1692_s20 + $0x48] sm:$0xf0]  ;;  %v1130_v19 = vor.u32 %v1243_v11, %v1129_v10 }
  0x76   : > { %v1258_v17 = vld [vmem:[%s1692_s20 + $0xc4] sm:$0xf]  ;;  %v1195_v18 = vld [vmem:[%s1692_s20 + $0xc8] sm:$0xf0]  ;;  %v1194_v20 = vor.u32 %v1259_v14, %v1193_v12  ;;  %v1134_v21 = vor.u32 %v1242_v15, %v1131_v16  ;;  %v1121_v22 = vld [vmem:[%s1692_s20 + $0x30] sm:$0xf] }
  0x77   : > { %785 = vmatpush.bf16.msra.mxu0 %v1138_v4  ;;  %v1241_v23 = vld [vmem:[%s1692_s20 + $0x34] sm:$0xf0]  ;;  %v1185_v24 = vld [vmem:[%s1692_s20 + $0xb0] sm:$0xf]  ;;  %v1198_v25 = vor.u32 %v1258_v17, %v1195_v18  ;;  %v1240_v27 = vld [vmem:[%s1692_s20 + $0x34] sm:$0xf] }
  0x78   : > { %799 = vmatpush.bf16.msra.mxu1 %v1202_v8  ;;  %813 = vmatpush.bf16.msra.mxu2 %v1142_v9  ;;  %v1257_v26 = vld [vmem:[%s1692_s20 + $0xb4] sm:$0xf0]  ;;  %v1123_v28 = vld [vmem:[%s1692_s20 + $0x38] sm:$0xf0]  ;;  %v1256_v29 = vld [vmem:[%s1692_s20 + $0xb4] sm:$0xf]  ;;  %v1122_v31 = vor.u32 %v1241_v23, %v1121_v22 }
  0x79   : > { %827 = vmatpush.bf16.msra.mxu3 %v1206_v13  ;;  %v1187_v30 = vld [vmem:[%s1692_s20 + $0xb8] sm:$0xf0]  ;;  %v1186_v32 = vor.u32 %v1257_v26, %v1185_v24  ;;  %v1126_v33 = vor.u32 %v1240_v27, %v1123_v28  ;;  %v1113_v34 = vld [vmem:[%s1692_s20 + $0x20] sm:$0xf]  ;;  %v1239_v35 = vld [vmem:[%s1692_s20 + $0x24] sm:$0xf0] }
  0x7a   : > { %v1177_v36 = vld [vmem:[%s1692_s20 + $0xa0] sm:$0xf]  ;;  %v1190_v37 = vor.u32 %v1256_v29, %v1187_v30  ;;  %v1255_v38 = vld [vmem:[%s1692_s20 + $0xa4] sm:$0xf0]  ;;  %v1238_v39 = vld [vmem:[%s1692_s20 + $0x24] sm:$0xf]  ;;  %v1114_v43 = vor.u32 %v1239_v35, %v1113_v34 }
  0x7b   : > { %786 = vmatpush.bf16.msra.mxu0 %v1130_v19  ;;  %v1115_v40 = vld [vmem:[%s1692_s20 + $0x28] sm:$0xf0]  ;;  %v1254_v41 = vld [vmem:[%s1692_s20 + $0xa4] sm:$0xf]  ;;  %v1178_v44 = vor.u32 %v1255_v38, %v1177_v36  ;;  %v1105_v46 = vld [vmem:[%s1692_s20 + $0x10] sm:$0xf] }
  0x7c   : > { %800 = vmatpush.bf16.msra.mxu1 %v1194_v20  ;;  %814 = vmatpush.bf16.msra.mxu2 %v1134_v21  ;;  %v1179_v42 = vld [vmem:[%s1692_s20 + $0xa8] sm:$0xf0]  ;;  %v1118_v45 = vor.u32 %v1238_v39, %v1115_v40  ;;  %v1237_v47 = vld [vmem:[%s1692_s20 + $0x14] sm:$0xf0]  ;;  %v1169_v48 = vld [vmem:[%s1692_s20 + $0x90] sm:$0xf] }
  0x7d   : > { %828 = vmatpush.bf16.msra.mxu3 %v1198_v25  ;;  %v1182_v49 = vor.u32 %v1254_v41, %v1179_v42  ;;  %v1253_v50 = vld [vmem:[%s1692_s20 + $0x94] sm:$0xf0]  ;;  %v1236_v51 = vld [vmem:[%s1692_s20 + $0x14] sm:$0xf]  ;;  %v1107_v52 = vld [vmem:[%s1692_s20 + $0x18] sm:$0xf0]  ;;  %v1106_v55 = vor.u32 %v1237_v47, %v1105_v46 }
  0x7e   : > { %v1252_v53 = vld [vmem:[%s1692_s20 + $0x94] sm:$0xf]  ;;  %v1171_v54 = vld [vmem:[%s1692_s20 + $0x98] sm:$0xf0]  ;;  %v1170_v56 = vor.u32 %v1253_v50, %v1169_v48  ;;  %v1110_v57 = vor.u32 %v1236_v51, %v1107_v52  ;;  %v1097_v58 = vld [vmem:[%s1692_s20] sm:$0xf] }
  0x7f   : > { %787 = vmatpush.bf16.msra.mxu0 %v1122_v31  ;;  %v1235_v59 = vld [vmem:[%s1692_s20 + $0x4] sm:$0xf0]  ;;  %v1161_v60 = vld [vmem:[%s1692_s20 + $0x80] sm:$0xf]  ;;  %v1174_v61 = vor.u32 %v1252_v53, %v1171_v54  ;;  %v1234_v63 = vld [vmem:[%s1692_s20 + $0x4] sm:$0xf] }
  0x80   : > { %801 = vmatpush.bf16.msra.mxu1 %v1186_v32  ;;  %815 = vmatpush.bf16.msra.mxu2 %v1126_v33  ;;  %v1251_v62 = vld [vmem:[%s1692_s20 + $0x84] sm:$0xf0]  ;;  %v1099_v0 = vld [vmem:[%s1692_s20 + $0x8] sm:$0xf0]  ;;  %v1250_v1 = vld [vmem:[%s1692_s20 + $0x84] sm:$0xf]  ;;  %v1098_v3 = vor.u32 %v1235_v59, %v1097_v58 }
  0x81   : > { %829 = vmatpush.bf16.msra.mxu3 %v1190_v37  ;;  %v1163_v2 = vld [vmem:[%s1692_s20 + $0x88] sm:$0xf0]  ;;  %v1089_v4 = vld [vmem:[%s1690_s22] sm:$0xf]  ;;  %v1233_v5 = vld [vmem:[%s1690_s22 + $0x4] sm:$0xf0]  ;;  %v1162_v6 = vor.u32 %v1251_v62, %v1161_v60  ;;  %v1102_v7 = vor.u32 %v1234_v63, %v1099_v0 }
  0x82   : > { %v1232_v8 = vld [vmem:[%s1690_s22 + $0x4] sm:$0xf]  ;;  %v1091_v9 = vld [vmem:[%s1690_s22 + $0x8] sm:$0xf0]  ;;  %v1166_v10 = vor.u32 %v1250_v1, %v1163_v2  ;;  %v1090_v11 = vor.u32 %v1233_v5, %v1089_v4  ;;  %p1223_p6 = scmp.ne.s32.totalorder %s1426_s24, 17 }
  0x83   : > { %788 = vmatpush.bf16.msra.mxu0 %v1114_v43  ;;  %v1094_v12 = vor.u32 %v1232_v8, %v1091_v9  ;;  %v575_v14 = vld [vmem:[%s1696_s29] sm:$0xff]  ;;  %v576_v19 = vld [vmem:[%s1696_s29 + $0x8] sm:$0xff]  ;;  %v577_v23 = vld [vmem:[%s1696_s29 + $0x10] sm:$0xff] }
  0x84   : > { %802 = vmatpush.bf16.msra.mxu1 %v1178_v44  ;;  %816 = vmatpush.bf16.msra.mxu2 %v1118_v45  ;;  %v578_v29 = vld [vmem:[%s1696_s29 + $0x18] sm:$0xff] }
  0x85   : > { %830 = vmatpush.bf16.msra.mxu3 %v1182_v49 }
  0x87   : > { %789 = vmatpush.bf16.msra.mxu0 %v1106_v55 }
  0x88   : > { %803 = vmatpush.bf16.msra.mxu1 %v1170_v56  ;;  %817 = vmatpush.bf16.msra.mxu2 %v1110_v57 }
  0x89   : > { %831 = vmatpush.bf16.msra.mxu3 %v1174_v61 }
  0x8b   : > { %790 = vmatpush.bf16.msra.mxu0 %v1098_v3 }
  0x8c   : > { %804 = vmatpush.bf16.msra.mxu1 %v1162_v6  ;;  %818 = vmatpush.bf16.msra.mxu2 %v1102_v7 }
  0x8d   : > { %832 = vmatpush.bf16.msra.mxu3 %v1166_v10 }
  0x8e   : > { %791 = vmatmul.bf16.vlgmr.msra.gmra.mxu0 %v1090_v11 }
  0x8f   : > { %805 = vmatmul.bf16.vlgmr.msra.gmra.mxu1 %v1094_v12  ;;  %819 = vmatmul.bf16.vlgmr.msra.gmra.mxu2 %v1090_v11 }
  0x90   : > { %833 = vmatmul.bf16.vlgmr.msra.gmra.mxu3 %v1094_v12 }
 0x10b   : > { %v792_v13 = vpop.f32.mrf.mxu0 }
 0x10c   : > { %v806_v15 = vpop.f32.mrf.mxu1 }
 0x10d   : > { %v807_v16 = vadd.f32 %v806_v15, %v792_v13 }
 0x10f   : > { %v839_v17 = vadd.f32 %v807_v16, %v575_v14 }
 0x111   : > { %843 = vst [vmem:[%s1696_s29] sm:$0xff] %v839_v17 }
 0x112   : > { %v820_v18 = vpop.f32.mrf.mxu2 }
 0x113   : > { %v834_v20 = vpop.f32.mrf.mxu3  ;;  %v794_v21 = vpop.f32.mrf.mxu0 }
 0x114   : > { %v835_v22 = vadd.f32 %v834_v20, %v820_v18  ;;  %v808_v24 = vpop.f32.mrf.mxu1 }
 0x115   : > { %v809_v25 = vadd.f32 %v808_v24, %v794_v21 }
 0x116   : > { %v840_v26 = vadd.f32 %v835_v22, %v576_v19 }
 0x117   : > { %v841_v27 = vadd.f32 %v809_v25, %v577_v23 }
 0x118   : > { %844 = vst [vmem:[%s1696_s29 + $0x8] sm:$0xff] %v840_v26 }
 0x119   : > { %845 = vst [vmem:[%s1696_s29 + $0x10] sm:$0xff] %v841_v27 }
 0x11a   : > { %v822_v28 = vpop.f32.mrf.mxu2 }
 0x11b   : > { %v836_v30 = vpop.f32.mrf.mxu3 }
 0x11c   : > { %v837_v31 = vadd.f32 %v836_v30, %v822_v28  ;;  %850 = sbr.rel (%p1223_p6) target bundleno = 305 (0x131), region = 147 }
 0x11e   : > { %v842_v32 = vadd.f32 %v837_v31, %v578_v29 }
 0x120   : > { %846 = vst [vmem:[%s1696_s29 + $0x18] sm:$0xff] %v842_v32 }
 0x121   : > { %v851_v33 = vld [vmem:[%s1696_s29] sm:$0xff]  ;;  %v852_v38 = vld [vmem:[%s1696_s29 + $0x8] sm:$0xff]  ;;  %v853_v41 = vld [vmem:[%s1696_s29 + $0x10] sm:$0xff] }
 0x122   : > { %v855_v34 = vld [vmem:[%s556_s16] sm:$0x3]  ;;  %v876_v47 = vld [vmem:[%s1694_s18 + $0x8] sm:$0xff]  ;;  %v877_v48 = vld [vmem:[%s1694_s18 + $0x10] sm:$0xff] }
 0x123   : > { %v865_v35 = vld [vmem:[%s561_s15] sm:$0x3]  ;;  %v857_v36 = vperm.slane %v855_v34, 0  ;;  %v858_v39 = vperm.slane %v855_v34, 1  ;;  %v878_v53 = vld [vmem:[%s1694_s18 + $0x18] sm:$0xff] }
 0x124   : > { %v867_v37 = vperm.slane %v865_v35, 0  ;;  %v868_v40 = vperm.slane %v865_v35, 1  ;;  %v875_v46 = vld [vmem:[%s1694_s18] sm:$0xff] }
 0x125   : > { %v861_v42 = vmul.f32 %v857_v36, %v851_v33  ;;  %v862_v43 = vmul.f32 %v858_v39, %v852_v38  ;;  %v863_v44 = vmul.f32 %v857_v36, %v853_v41 }
 0x127   : > { %v854_v45 = vld [vmem:[%s1696_s29 + $0x18] sm:$0xff]  ;;  %v871_v50 = vadd.f32 %v867_v37, %v861_v42  ;;  %v872_v51 = vadd.f32 %v868_v40, %v862_v43  ;;  %v873_v52 = vadd.f32 %v867_v37, %v863_v44 }
 0x128   : > { %v864_v49 = vmul.f32 %v858_v39, %v854_v45 }
 0x129   : > { %v879_v55 = vadd.f32 %v875_v46, %v871_v50  ;;  %v880_v56 = vadd.f32 %v876_v47, %v872_v51  ;;  %v881_v57 = vadd.f32 %v877_v48, %v873_v52 }
 0x12a   : > { %v874_v54 = vadd.f32 %v868_v40, %v864_v49 }
 0x12b   : > { %v883_v59 = vmax.f32 %v879_v55, 0.0  ;;  %v884_v60 = vmax.f32 %v880_v56, 0.0  ;;  %v885_v61 = vmax.f32 %v881_v57, 0.0 }
 0x12c   : > { %v882_v58 = vadd.f32 %v878_v53, %v874_v54 }
 0x12d   : > { %887 = vst [vmem:[%s1696_s29] sm:$0xff] %v883_v59 }
 0x12e   : > { %v886_v62 = vmax.f32 %v882_v58, 0.0  ;;  %888 = vst [vmem:[%s1696_s29 + $0x8] sm:$0xff] %v884_v60 }
 0x12f   : > { %889 = vst [vmem:[%s1696_s29 + $0x10] sm:$0xff] %v885_v61 }
 0x130   : > { %890 = vst [vmem:[%s1696_s29 + $0x18] sm:$0xff] %v886_v62 }
 0x131 PF: > { %897 = sbr.rel (!%p1579_p13) target bundleno = 313 (0x139), region = 151  ;;  %s1266_s24 = sshll.u32 (%p1579_p13), %s1430_s25, 4 }
 0x132   : > { %s903_s11 = scalar_lea.vmem (%p1579_p13), %s1850_s5, %s1266_s24 }
 0x134   : > { %v916_v63 = vld [vmem:[%s1696_s29] sm:$0xff] (%p1579_p13) }
 0x135   : > { %v918_v0 = vld [vmem:[%s1696_s29 + $0x8] sm:$0xff] (%p1579_p13)  ;;  %917 = vst [vmem:[%s903_s11] sm:$0xff] (%p1579_p13), %v916_v63 }
 0x136   : > { %v920_v1 = vld [vmem:[%s1696_s29 + $0x10] sm:$0xff]  ;;  %919 = vst [vmem:[%s903_s11 + $0x8] sm:$0xff] %v918_v0 }
 0x137   : > { %v922_v2 = vld [vmem:[%s1696_s29 + $0x18] sm:$0xff]  ;;  %921 = vst [vmem:[%s903_s11 + $0x20] sm:$0xff] %v920_v1 }
 0x138   : > { %923 = vst [vmem:[%s903_s11 + $0x28] sm:$0xff] %v922_v2 }
 0x139 PF: > { %s15_s28 = sadd.s32 1, %s1442_s28   ;;  %s1864_s8 = sld [smem:[#allocation11_spill]] }
 0x13a   : > { %p12_p7 = scmp.ge.s32.totalorder %s15_s28, 38   ;;  %s1865_s25 = sld [smem:[#allocation10_spill]] }
 0x13b   : > { %s1866_s22 = sld [smem:[#allocation6_spill]]  ;;  %s1870_s18 = smov %s1406_s19 }
 0x13c   : > { %s1867_s23 = sld [smem:[#allocation9_spill]]  ;;  %s1872_s20 = smov %s1414_s21 }
 0x13d   : > { %s1868_s14 = sld [smem:[#allocation7_spill]]  ;;  %s1874_s24 = smov %s1434_s26 }
 0x13e   : > { %s1869_s16 = sld [smem:[#allocation8_spill]] }
 0x13f   : > { %s1871_s19 = smov %s1864_s8 }
 0x140   : > { %s1873_s21 = smov %s1865_s25  ;;  %s1875_s25 = smov %s1438_s27 }
 0x141   :  { %14 = sbr.rel (!%p12_p7) target bundleno = 6 (0x6), region = 227 }
 0x143   : > { %s1876_s26 = smov %s1868_s14 }
 0x144   : > { %s1877_s27 = smov %s1869_s16 }

// kernel: multimodal_forward.43
= control target key start
LH: loop header
LB: loop body
LE: loop exit
PB: predicated region body
PF: predicated region fallthrough
CT: control target
= control target key end

     0   :  { %s97_s0 = inlined_call_operand.vmem [shape: f32[2,1,512], index: 0, kind: input, shape index: {}]   ;;  %s98_s1 = inlined_call_operand.hbm [shape: f32[2,512], index: 1, kind: output, shape index: {}]  }
   0x1   :  { %v15_v0 = vld [vmem:[%s97_s0] sm:$0xf]  ;;  %v16_v1 = vld [vmem:[%s97_s0 + $0x4] sm:$0xf] }
   0x2   :  { %21 = vst [vmem:[#allocation1] ss:$2 sm:$0xff] %v15_v0 }
   0x3   :  { %6 = vsyncpa [#allocation3], 0  ;;  %23 = vst [vmem:[#allocation1 + $0x1] ss:$2 sm:$0xff] %v16_v1  ;;  %s77_s10 = smov [#allocation2]   ;;  %s40_s14 = sshll.u32 %s98_s1, 4  ;;  %s41_s14 = int_to_ptr.hbm [resolvable:$true] %s40_s14 }
   0x4   :  { %s38_s11 = sshll.u32 %s77_s10, 4  ;;  %s39_s11 = int_to_ptr.vmem [resolvable:$true] %s38_s11 }
   0xa   :  { %v24_v2 = vld [vmem:[#allocation1] sm:$0xff] }
   0xb   :  { %32 = vst [vmem:[#allocation2] sm:$0xff] %v24_v2 }
   0xc   :  { %43 = dma.vmem_to_hbm [thread:$0]  %s39_s11, 128, %s41_s14, [#allocation3]  }
   0xd   :  { %75 = dma.done.wait [#allocation3], 128  }
   0xe   :  { %76 = vsyncadd [#allocation3], 4294967168 }
   0xf   :  { %48 = vsyncpa [#allocation3], 1 }

</bundles_post_ra>
